<compile_context>
chip_gen: v5e
topology: v5e:2x2
jax: 0.10.0
libtpu: 0.0.40
codegen_flags: <defaults>
</compile_context>

<pallas_src>
import jax
import jax.numpy as jnp
import numpy as np
from jax.experimental import pallas as pl
from jax.experimental.pallas import tpu as pltpu


def _kernel(pw_ref,                                            # SMEM: [L] softmax(mix)*gamma
            x_ref, mm_ref, w1_ref, b1_ref, w2_ref, b2_ref,     # VMEM tiles
            out_ref):                                          # VMEM: [TB, H] masked means
    TB, L, S, F = x_ref.shape

    # softmax-weighted layer mix (gamma already folded into pw); f32 on the VPU.
    xw = x_ref[:, 0].astype(jnp.float32) * pw_ref[0]
    for l in range(1, L):                                      # L is small & static
        xw = xw + x_ref[:, l].astype(jnp.float32) * pw_ref[l]
    xw = xw.reshape(TB * S, F)                                 # token-major [M, F], M ~ 256

    # pointwise convs (kernel_size=1) == per-token matmuls; bf16 operands, f32 acc.
    h1 = jnp.dot(xw.astype(jnp.bfloat16), w1_ref[...],
                 preferred_element_type=jnp.float32) + b1_ref[...]
    h1 = jnp.maximum(h1, 0.0)                                  # [M, H]
    h2 = jnp.dot(h1.astype(jnp.bfloat16), w2_ref[...],
                 preferred_element_type=jnp.float32) + b2_ref[...]
    h2 = jnp.maximum(h2, 0.0)                                  # [M, H]

    # length-masked per-example mean as one more tiny MXU matmul:
    # mm is block-diagonal [TB, TB*S] with (s < len_b)/len_b entries.
    out_ref[...] = jnp.dot(mm_ref[...], h2,
                           preferred_element_type=jnp.float32).astype(out_ref.dtype)


def _choose_batch_tile(B, L, S, F, itemsize):
    """TB such that TB*S ~ 256 MXU rows, TB a multiple of 8 (or == B), and the
    double-buffered x tile stays well inside VMEM (v7x: 64 MiB physical)."""
    tb = max(1, 256 // max(S, 1))
    if tb >= B:
        return B
    tb = max(8, (tb // 8) * 8)
    budget = 24 * 1024 * 1024
    while tb > 8 and 2 * tb * L * S * F * itemsize > budget:
        tb -= 8
    return tb


def cumulative_probing_dense(x, lengths, layer, params):
    """x: [B, num_layers_total, S, F]; lengths: [B] int; returns [B, num_labels]."""
    # TODO(synk): as in the PyTorch module, softmax runs over ALL mixing_weights;
    # the module only type-checks when layer + 1 == num_layers (its reshape would
    # fail otherwise), so we keep that behavior and take the first L entries.
    if layer + 1 < x.shape[1]:
        x = x[:, :layer + 1]
    B, L, S, F = x.shape
    H = params["w1"].shape[0]
    NL = params["wl"].shape[0]

    TB = _choose_batch_tile(B, L, S, F, x.dtype.itemsize)
    B_pad = ((B + TB - 1) // TB) * TB

    # --- tiny parameter glue stays in plain JAX --------------------------------
    pw = jax.nn.softmax(params["mixing_weights"].astype(jnp.float32))
    pw = (pw[:L] * params["gamma"].astype(jnp.float32)[0]).astype(jnp.float32)   # [L]
    w1_t = params["w1"].T.astype(jnp.bfloat16)                                   # [F, H]
    w2_t = params["w2"].T.astype(jnp.bfloat16)                                   # [H, H]
    b1 = params["b1"].reshape(1, H).astype(jnp.float32)
    b2 = params["b2"].reshape(1, H).astype(jnp.float32)

    # Block-diagonal mask/mean matrix: row b carries (s < len_b)/len_b in the S
    # columns of its slot inside the batch tile, so masked-mean == mm @ h2.
    lengths = lengths.astype(jnp.int32)
    valid = (jnp.arange(S, dtype=jnp.int32)[None, :] < lengths[:, None])
    inv_len = 1.0 / jnp.maximum(lengths, 1).astype(jnp.float32)                  # len>=1 guard
    mm_rows = valid.astype(jnp.float32) * inv_len[:, None]                       # [B, S]
    if B_pad != B:
        mm_rows = jnp.pad(mm_rows, ((0, B_pad - B), (0, 0)))
        x = jnp.pad(x, ((0, B_pad - B), (0, 0), (0, 0), (0, 0)))
    slot = jax.nn.one_hot(jnp.arange(B_pad) % TB, TB, dtype=jnp.float32)         # [B_pad, TB]
    mm = (slot[:, :, None] * mm_rows[:, None, :]).reshape(B_pad, TB * S)         # [B_pad, TB*S]

    x_tile_bytes = TB * L * S * F * x.dtype.itemsize
    vmem_limit = int(min(2 * x_tile_bytes + 16 * 1024 * 1024, 48 * 1024 * 1024))

    smem_spec = pl.BlockSpec(memory_space=pltpu.MemorySpace.SMEM)
    # NOTE: the weight/bias specs have constant block indices, so Pallas does not
    # re-DMA them across grid steps; default buffering is fine.
    mean = pl.pallas_call(
        _kernel,
        out_shape=jax.ShapeDtypeStruct((B_pad, H), jnp.float32),
        grid=(B_pad // TB,),
        in_specs=[
            smem_spec,                                              # pw (* gamma)
            pl.BlockSpec((TB, L, S, F), lambda i: (i, 0, 0, 0)),    # x batch tile
            pl.BlockSpec((TB, TB * S), lambda i: (i, 0)),           # mask/mean matrix
            pl.BlockSpec((F, H), lambda i: (0, 0)),                 # W1^T (bf16)
            pl.BlockSpec((1, H), lambda i: (0, 0)),                 # b1
            pl.BlockSpec((H, H), lambda i: (0, 0)),                 # W2^T (bf16)
            pl.BlockSpec((1, H), lambda i: (0, 0)),                 # b2
        ],
        out_specs=pl.BlockSpec((TB, H), lambda i: (i, 0)),          # lane-dense means
        compiler_params=pltpu.CompilerParams(
            dimension_semantics=("parallel",),
            vmem_limit_bytes=vmem_limit),
    )(pw, x, mm, w1_t, b1, w2_t, b2)

    mean = mean[:B]                                                 # [B, H]
    # Tiny classification head (H -> NL=8) in XLA: keeps the kernel store path
    # full-lane instead of an 8-lane masked store.
    wl_t = params["wl"].T.astype(jnp.float32)                       # [H, NL]
    bl = params["bl"].reshape(1, NL).astype(jnp.float32)
    return jnp.dot(mean, wl_t, precision="highest") + bl


def reference(x, lengths, layer, params):
    """Pure-JAX reference mirroring the PyTorch forward (f32, highest precision)."""
    xs = x[:, :layer + 1].astype(jnp.float32)
    B, L, S, F = xs.shape
    pw = jax.nn.softmax(params["mixing_weights"]).reshape(1, L, 1, 1)
    xw = jnp.sum(xs * pw, axis=1) * params["gamma"][0]                            # [B,S,F]
    h1 = jax.nn.relu(jnp.einsum("bsf,hf->bsh", xw, params["w1"],
                                precision="highest") + params["b1"])
    h2 = jax.nn.relu(jnp.einsum("bsh,gh->bsg", h1, params["w2"],
                                precision="highest") + params["b2"])
    mask = (jnp.arange(S)[None, :] < lengths[:, None]).astype(jnp.float32)
    mean = jnp.sum(h2 * mask[:, :, None], axis=1) / lengths[:, None].astype(jnp.float32)
    return jnp.einsum("bh,nh->bn", mean, params["wl"],
                      precision="highest") + params["bl"]


if __name__ == "__main__":
    # 'BASE' -> feature_dim=768, hidden=256.  B=32 with S=16 exercises the
    # batched path: TB=16 (256 MXU rows per step), grid of 2 parallel steps.
    B, NUM_LAYERS, S, F = 32, 4, 16, 768
    H, NUM_LABELS = 256, 8
    LAYER = NUM_LAYERS - 1   # forward slices x[:, :layer+1]; softmax over all mixing_weights

    key = jax.random.PRNGKey(0)
    kx, k1, k2, k3, k4, k5, k6 = jax.random.split(key, 7)

    x = jax.random.normal(kx, (B, NUM_LAYERS, S, F), dtype=jnp.float32)
    lengths = jnp.array([(i * 5) % S + 1 for i in range(B)], dtype=jnp.int32)

    params = {
        # nn.Parameter inits from __init__
        "gamma": jnp.ones((1,), jnp.float32),
        "mixing_weights": jnp.ones((NUM_LAYERS,), jnp.float32),
        # Conv1d(F->H, k=1) weight (H,F,1) squeezed -> (H,F); Conv1d(H->H, k=1) -> (H,H)
        "w1": jax.random.normal(k1, (H, F), jnp.float32) * (1.0 / np.sqrt(F)),
        "b1": jax.random.normal(k2, (H,), jnp.float32) * 0.01,
        "w2": jax.random.normal(k3, (H, H), jnp.float32) * (1.0 / np.sqrt(H)),
        "b2": jax.random.normal(k4, (H,), jnp.float32) * 0.01,
        # Linear(H -> NUM_LABELS)
        "wl": jax.random.normal(k5, (NUM_LABELS, H), jnp.float32) * (1.0 / np.sqrt(H)),
        "bl": jax.random.normal(k6, (NUM_LABELS,), jnp.float32) * 0.01,
    }

    logits = cumulative_probing_dense(x, lengths, LAYER, params)
    logits = jax.block_until_ready(logits)

    ref = jax.block_until_ready(reference(x, lengths, LAYER, params))
    assert logits.shape == (B, NUM_LABELS)
    np.testing.assert_allclose(np.asarray(logits), np.asarray(ref), rtol=2e-2, atol=2e-2)

    print("KERNEL_OK")
</pallas_src>

<mosaic_0001>
module attributes {stable_mosaic.version = 11 : i64} {
  func.func @_kernel(%arg0: i32, %arg1: memref<4xf32, #tpu.memory_space<smem>>, %arg2: memref<16x4x16x768xf32, #tpu.memory_space<vmem>>, %arg3: memref<16x256xf32, #tpu.memory_space<vmem>>, %arg4: memref<768x256xbf16, #tpu.memory_space<vmem>>, %arg5: memref<1x256xf32, #tpu.memory_space<vmem>>, %arg6: memref<256x256xbf16, #tpu.memory_space<vmem>>, %arg7: memref<1x256xf32, #tpu.memory_space<vmem>>, %arg8: memref<16x256xf32, #tpu.memory_space<vmem>>) attributes {dimension_semantics = [#tpu.dimension_semantics<parallel>], iteration_bounds = array<i64: 2>, scalar_prefetch = 0 : i64, scratch_operands = 0 : i64, tpu.core_type = #tpu.core_type<tc>, window_params = [{transform_indices = @transform_0, window_bounds = array<i64: 4>}, {transform_indices = @transform_1, window_bounds = array<i64: 16, 4, 16, 768>}, {transform_indices = @transform_2, window_bounds = array<i64: 16, 256>}, {pipeline_mode = #tpu.pipeline_mode<synchronous>, transform_indices = @transform_3, window_bounds = array<i64: 768, 256>}, {pipeline_mode = #tpu.pipeline_mode<synchronous>, transform_indices = @transform_4, window_bounds = array<i64: 1, 256>}, {pipeline_mode = #tpu.pipeline_mode<synchronous>, transform_indices = @transform_5, window_bounds = array<i64: 256, 256>}, {pipeline_mode = #tpu.pipeline_mode<synchronous>, transform_indices = @transform_6, window_bounds = array<i64: 1, 256>}, {transform_indices = @transform_7, window_bounds = array<i64: 16, 256>}]} {
    %c0 = arith.constant 0 : index
    %c0_0 = arith.constant 0 : index
    %c0_1 = arith.constant 0 : index
    %c0_2 = arith.constant 0 : index
    %0 = vector.load %arg2[%c0, %c0_0, %c0_1, %c0_2] : memref<16x4x16x768xf32, #tpu.memory_space<vmem>>, vector<16x1x16x768xf32>
    %1 = vector.shape_cast %0 : vector<16x1x16x768xf32> to vector<16x16x768xf32>
    %c0_3 = arith.constant 0 : index
    %2 = memref.load %arg1[%c0_3] : memref<4xf32, #tpu.memory_space<smem>>
    %3 = vector.broadcast %2 : f32 to vector<16x16x768xf32>
    %4 = arith.mulf %1, %3 : vector<16x16x768xf32>
    %c0_4 = arith.constant 0 : index
    %c1 = arith.constant 1 : index
    %c0_5 = arith.constant 0 : index
    %c0_6 = arith.constant 0 : index
    %5 = vector.load %arg2[%c0_4, %c1, %c0_5, %c0_6] : memref<16x4x16x768xf32, #tpu.memory_space<vmem>>, vector<16x1x16x768xf32>
    %6 = vector.shape_cast %5 : vector<16x1x16x768xf32> to vector<16x16x768xf32>
    %c1_7 = arith.constant 1 : index
    %7 = memref.load %arg1[%c1_7] : memref<4xf32, #tpu.memory_space<smem>>
    %8 = vector.broadcast %7 : f32 to vector<16x16x768xf32>
    %9 = arith.mulf %6, %8 : vector<16x16x768xf32>
    %10 = arith.addf %4, %9 : vector<16x16x768xf32>
    %c0_8 = arith.constant 0 : index
    %c2 = arith.constant 2 : index
    %c0_9 = arith.constant 0 : index
    %c0_10 = arith.constant 0 : index
    %11 = vector.load %arg2[%c0_8, %c2, %c0_9, %c0_10] : memref<16x4x16x768xf32, #tpu.memory_space<vmem>>, vector<16x1x16x768xf32>
    %12 = vector.shape_cast %11 : vector<16x1x16x768xf32> to vector<16x16x768xf32>
    %c2_11 = arith.constant 2 : index
    %13 = memref.load %arg1[%c2_11] : memref<4xf32, #tpu.memory_space<smem>>
    %14 = vector.broadcast %13 : f32 to vector<16x16x768xf32>
    %15 = arith.mulf %12, %14 : vector<16x16x768xf32>
    %16 = arith.addf %10, %15 : vector<16x16x768xf32>
    %c0_12 = arith.constant 0 : index
    %c3 = arith.constant 3 : index
    %c0_13 = arith.constant 0 : index
    %c0_14 = arith.constant 0 : index
    %17 = vector.load %arg2[%c0_12, %c3, %c0_13, %c0_14] : memref<16x4x16x768xf32, #tpu.memory_space<vmem>>, vector<16x1x16x768xf32>
    %18 = vector.shape_cast %17 : vector<16x1x16x768xf32> to vector<16x16x768xf32>
    %c3_15 = arith.constant 3 : index
    %19 = memref.load %arg1[%c3_15] : memref<4xf32, #tpu.memory_space<smem>>
    %20 = vector.broadcast %19 : f32 to vector<16x16x768xf32>
    %21 = arith.mulf %18, %20 : vector<16x16x768xf32>
    %22 = arith.addf %16, %21 : vector<16x16x768xf32>
    %23 = vector.shape_cast %22 : vector<16x16x768xf32> to vector<256x768xf32>
    %24 = arith.truncf %23 : vector<256x768xf32> to vector<256x768xbf16>
    %c0_16 = arith.constant 0 : index
    %c0_17 = arith.constant 0 : index
    %25 = vector.load %arg4[%c0_16, %c0_17] : memref<768x256xbf16, #tpu.memory_space<vmem>>, vector<768x256xbf16>
    %cst = arith.constant dense<0.000000e+00> : vector<256x256xf32>
    %26 = tpu.matmul %24, %25, %cst {dimension_numbers = #tpu.dot_dimension_numbers<[1], [0], [0], [1], [0, 0, 1, 1], [], []>} : vector<256x768xbf16>, vector<768x256xbf16>, vector<256x256xf32> -> vector<256x256xf32>
    %c0_18 = arith.constant 0 : index
    %c0_19 = arith.constant 0 : index
    %27 = vector.load %arg5[%c0_18, %c0_19] : memref<1x256xf32, #tpu.memory_space<vmem>>, vector<1x256xf32>
    %28 = vector.broadcast %27 : vector<1x256xf32> to vector<256x256xf32>
    %29 = arith.addf %26, %28 : vector<256x256xf32>
    %cst_20 = arith.constant 0.000000e+00 : f32
    %30 = vector.broadcast %cst_20 : f32 to vector<256x256xf32>
    %31 = arith.maximumf %29, %30 : vector<256x256xf32>
    %32 = arith.truncf %31 : vector<256x256xf32> to vector<256x256xbf16>
    %c0_21 = arith.constant 0 : index
    %c0_22 = arith.constant 0 : index
    %33 = vector.load %arg6[%c0_21, %c0_22] : memref<256x256xbf16, #tpu.memory_space<vmem>>, vector<256x256xbf16>
    %cst_23 = arith.constant dense<0.000000e+00> : vector<256x256xf32>
    %34 = tpu.matmul %32, %33, %cst_23 {dimension_numbers = #tpu.dot_dimension_numbers<[1], [0], [0], [1], [0, 0, 1, 1], [], []>} : vector<256x256xbf16>, vector<256x256xbf16>, vector<256x256xf32> -> vector<256x256xf32>
    %c0_24 = arith.constant 0 : index
    %c0_25 = arith.constant 0 : index
    %35 = vector.load %arg7[%c0_24, %c0_25] : memref<1x256xf32, #tpu.memory_space<vmem>>, vector<1x256xf32>
    %36 = vector.broadcast %35 : vector<1x256xf32> to vector<256x256xf32>
    %37 = arith.addf %34, %36 : vector<256x256xf32>
    %cst_26 = arith.constant 0.000000e+00 : f32
    %38 = vector.broadcast %cst_26 : f32 to vector<256x256xf32>
    %39 = arith.maximumf %37, %38 : vector<256x256xf32>
    %c0_27 = arith.constant 0 : index
    %c0_28 = arith.constant 0 : index
    %40 = vector.load %arg3[%c0_27, %c0_28] : memref<16x256xf32, #tpu.memory_space<vmem>>, vector<16x256xf32>
    %cst_29 = arith.constant dense<0.000000e+00> : vector<16x256xf32>
    %41 = tpu.matmul %40, %39, %cst_29 {dimension_numbers = #tpu.dot_dimension_numbers<[1], [0], [0], [1], [0, 0, 1, 1], [], []>} : vector<16x256xf32>, vector<256x256xf32>, vector<16x256xf32> -> vector<16x256xf32>
    %c0_30 = arith.constant 0 : index
    %c0_31 = arith.constant 0 : index
    %42 = vector.load %arg8[%c0_30, %c0_31] : memref<16x256xf32, #tpu.memory_space<vmem>>, vector<16x256xf32>
    tpu.vector_store %arg8[%c0_30, %c0_31], %41 {strides = array<i32>} : memref<16x256xf32, #tpu.memory_space<vmem>>, vector<16x256xf32>,
    return
  }
  func.func @transform_0(%arg0: i32) -> i32 {
    %c0_i32 = arith.constant 0 : i32
    %c0_i32_0 = arith.constant 0 : i32
    return %c0_i32 : i32
  }
  func.func @transform_1(%arg0: i32) -> (i32, i32, i32, i32) {
    %c0_i32 = arith.constant 0 : i32
    %c0_i32_0 = arith.constant 0 : i32
    %c0_i32_1 = arith.constant 0 : i32
    %c0_i32_2 = arith.constant 0 : i32
    return %arg0, %c0_i32, %c0_i32_0, %c0_i32_1 : i32, i32, i32, i32
  }
  func.func @transform_2(%arg0: i32) -> (i32, i32) {
    %c0_i32 = arith.constant 0 : i32
    %c0_i32_0 = arith.constant 0 : i32
    return %arg0, %c0_i32 : i32, i32
  }
  func.func @transform_3(%arg0: i32) -> (i32, i32) {
    %c0_i32 = arith.constant 0 : i32
    %c0_i32_0 = arith.constant 0 : i32
    %c0_i32_1 = arith.constant 0 : i32
    return %c0_i32, %c0_i32_0 : i32, i32
  }
  func.func @transform_4(%arg0: i32) -> (i32, i32) {
    %c0_i32 = arith.constant 0 : i32
    %c0_i32_0 = arith.constant 0 : i32
    %c0_i32_1 = arith.constant 0 : i32
    return %c0_i32, %c0_i32_0 : i32, i32
  }
  func.func @transform_5(%arg0: i32) -> (i32, i32) {
    %c0_i32 = arith.constant 0 : i32
    %c0_i32_0 = arith.constant 0 : i32
    %c0_i32_1 = arith.constant 0 : i32
    return %c0_i32, %c0_i32_0 : i32, i32
  }
  func.func @transform_6(%arg0: i32) -> (i32, i32) {
    %c0_i32 = arith.constant 0 : i32
    %c0_i32_0 = arith.constant 0 : i32
    %c0_i32_1 = arith.constant 0 : i32
    return %c0_i32, %c0_i32_0 : i32, i32
  }
  func.func @transform_7(%arg0: i32) -> (i32, i32) {
    %c0_i32 = arith.constant 0 : i32
    %c0_i32_0 = arith.constant 0 : i32
    return %arg0, %c0_i32 : i32, i32
  }
}

</mosaic_0001>

<bundles_post_ra>
// kernel: tpu_custom_call.1
= control target key start
LH: loop header
LB: loop body
LE: loop exit
PB: predicated region body
PF: predicated region fallthrough
CT: control target
= control target key end

     0   :  { %s9930_s0 = inlined_call_operand.hbm [shape: f32[4], index: 0, kind: input, shape index: {}]   ;;  %s9931_s1 = inlined_call_operand.hbm [shape: f32[32,4,16,768], index: 1, kind: input, shape index: {}]   ;;  %s9932_s2 = inlined_call_operand.hbm [shape: f32[32,256], index: 2, kind: input, shape index: {}]   ;;  %s9933_s3 = inlined_call_operand.hbm [shape: bf16[768,256], index: 3, kind: input, shape index: {}]   ;;  %s9934_s4 = inlined_call_operand.hbm [shape: f32[1,256], index: 4, kind: input, shape index: {}]   ;;  %s9935_s5 = inlined_call_operand.hbm [shape: bf16[256,256], index: 5, kind: input, shape index: {}]   ;;  %s9936_s6 = inlined_call_operand.hbm [shape: f32[1,256], index: 6, kind: input, shape index: {}]   ;;  %s9937_s7 = inlined_call_operand.hbm [shape: f32[32,256], index: 7, kind: output, shape index: {}]  }
   0x1   :  { %10013 = sst [smem:[#allocation105_spill]] %s9930_s0 }
   0x2   :  { %10014 = sst [smem:[#allocation106_spill]] %s9931_s1 }
   0x3   :  { %10015 = sst [smem:[#allocation107_spill]] %s9933_s3 }
   0x4   :  { %10016 = sst [smem:[#allocation108_spill]] %s9934_s4 }
   0x5   :  { %10017 = sst [smem:[#allocation109_spill]] %s9935_s5 }
   0x6   :  { %10018 = sst [smem:[#allocation110_spill]] %s9936_s6 }
   0x7   :  { %12 = vsyncpa [#allocation5], 0 }
   0x8   :  { %13 = vsyncpa [#allocation3], 0 }
   0x9   :  { %15 = vsyncpa [#allocation3 + $0x1], 0 }
   0xa   :  { %16 = vsyncpa [#allocation8], 0 }
   0xb   :  { %18 = vsyncpa [#allocation8 + $0x1], 0 }
   0xc   :  { %19 = vsyncpa [#allocation11], 0 }
   0xd   :  { %20 = vsyncpa [#allocation14], 0 }
   0xe   :  { %21 = vsyncpa [#allocation4], 0 }
   0xf   :  { %23 = vsyncpa [#allocation4 + $0x1], 0  ;;  %s6970_s24 = smov 0   ;;  %s6972_s25 = smov 0  }
  0x10   :  { %s6974_s26 = smov 0   ;;  %s6976_s27 = smov 0  }
  0x11 LB: > { %s10019_s3 = sld [smem:[#allocation107_spill]]  ;;  %s6994_s8 = sadd.s32 4294967295, %s6915_s27   ;;  %s6915_s27 = sphi %s6976_s27, %s10247_s27   ;;  %s6911_s26 = sphi %s6974_s26, %s10246_s26   ;;  %s6907_s25 = sphi %s6972_s25, %s10245_s25   ;;  %s6903_s24 = sphi %s6970_s24, %s10244_s24  }
  0x12   : > { %p5269_p0 = scmp.ge.s32.totalorder %s6915_s27, 1  ;;  %p71_p1 = scmp.eq.s32.totalorder %s6994_s8, 0 }
  0x13   : > { %p217_p2 = scmp.lt.s32.totalorder %s6915_s27, 3  ;;  %s6917_s10 = smov [#allocation9]  }
  0x14   : > { %s240_s11 = sshll.u32 %s6917_s10, 4  ;;  %s10021_s4 = sld [smem:[#allocation108_spill]]  ;;  %s241_s11 = int_to_ptr.vmem [resolvable:$true] %s240_s11 }
  0x15   : > { %p6999_p3 = pnand %p5269_p0, %p217_p2  ;;  %s10023_s0 = sld [smem:[#allocation105_spill]] }
  0x16   : > { %s6918_s19 = smov [#allocation10]   ;;  %s6919_s21 = smov 128  }
  0x17   : > { %s238_s30 = sshll.u32 %s10019_s3, 4  ;;  %p6549_p4 = pneg %p6999_p3  ;;  %s239_s30 = int_to_ptr.hbm [resolvable:$true] %s238_s30 }
  0x18   : > { %s255_s20 = sshll.u32 %s6918_s19, 4  ;;  %s6920_s22 = smov 8   ;;  %s256_s20 = int_to_ptr.vmem [resolvable:$true] %s255_s20 }
  0x19   : > { %p7011_p6 = pnand %p6549_p4, %p71_p1  ;;  %s10024_s5 = sld [smem:[#allocation109_spill]] }
  0x1a   : > { %s253_s14 = sshll.u32 %s10021_s4, 4  ;;  %s6921_s10 = smov [#allocation2]   ;;  %s254_s14 = int_to_ptr.hbm [resolvable:$true] %s253_s14 }
  0x1b   : > { %s229_s18 = sshll.u32 %s10023_s0, 4  ;;  %s10025_s6 = sld [smem:[#allocation110_spill]]  ;;  %s230_s18 = int_to_ptr.hbm [resolvable:$true] %s229_s18 }
  0x1c   : > { %6555 = dma.hbm_to_vmem [thread:$0]  (!%p7011_p6), %s239_s30, 12288, %s241_s11, [#allocation8], %s6919_s21, %s6919_s21, %s6920_s22  }
  0x1d   : > { %6558 = dma.hbm_to_vmem [thread:$0]  (!%p7011_p6), %s254_s14, 32, %s256_s20, [#allocation11]  }
  0x1e   : > { %6552 = dma.hbm_to_smem (!%p7011_p6), %s230_s18, 16, %s6921_s10, [#allocation5]  }
  0x1f   : > { %s264_s29 = sshll.u32 %s10024_s5, 4  ;;  %s6922_s30 = smov [#allocation12]   ;;  %s265_s29 = int_to_ptr.hbm [resolvable:$true] %s264_s29 }
  0x20   : > { %s266_s11 = sshll.u32 %s6922_s30, 4  ;;  %s6923_s16 = smov [#allocation13]   ;;  %s267_s11 = int_to_ptr.vmem [resolvable:$true] %s266_s11 }
  0x21   : > { %s279_s14 = sshll.u32 %s10025_s6, 4  ;;  %s281_s17 = sshll.u32 %s6923_s16, 4  ;;  %s280_s14 = int_to_ptr.hbm [resolvable:$true] %s279_s14  ;;  %s282_s17 = int_to_ptr.vmem [resolvable:$true] %s281_s17 }
  0x22   : > { %6561 = dma.hbm_to_vmem [thread:$0]  (!%p7011_p6), %s265_s29, 4096, %s267_s11, [#allocation11], %s6919_s21, %s6919_s21, %s6920_s22  }
  0x23   : > { %6564 = dma.hbm_to_vmem [thread:$0]  (!%p7011_p6), %s280_s14, 32, %s282_s17, [#allocation14]  }
  0x24   : > { %s5268_s18 = sadd.s32 4294967294, %s6915_s27   ;;  %s7036_s19 = sadd.s32 1, %s6915_s27  }
  0x25   : > { %s57_s20 = sadd.s32 1, %s6911_s26  ;;  %s54_s23 = ssub.s32 %s6915_s27, %s7036_s19 }
  0x26   : > { %p64_p7 = scmp.ne.s32.totalorder %s6911_s26, %s6907_s25  ;;  %p55_p8 = scmp.eq.s32.totalorder %s54_s23, 0 }
  0x27   : > { %p65_p9 = scmp.eq.s32.totalorder %s6915_s27, 0  ;;  %p70_p10 = scmp.ne.s32.totalorder %s6907_s25, %s6903_s24 }
  0x28   : > { %p204_p11 = scmp.eq.s32.totalorder %s6994_s8, 1  ;;  %p210_p2 = scmp.eq.s32.totalorder %s5268_s18, 1 }
  0x29   : > { %s7048_s21 = scalar_select %p55_p8, %s6911_s26, %s57_s20  }
  0x2a   : > { %p66_p12 = por %p65_p9, %p64_p7  ;;  %p7052_p13 = por %p71_p1, %p70_p10 }
  0x2b   : > { %10026 = sst [smem:[#allocation23_spill]] %s7048_s21  ;;  %p7056_p0 = por %p204_p11, %p64_p7 }
  0x2c   : > { %p6581_p4 = scmp.lt.s32.totalorder %s6915_s27, 2  ;;  %s7062_s28 = sand.u32 1, %s6911_s26  }
  0x2d   : > { %p7064_p6 = por %p210_p2, %p70_p10  ;;  %s6520_s10 = smul.u32 6144, %s7062_s28 }
  0x2e   : > { %p7069_p8 = pnand %p6581_p4, %p66_p12  ;;  %s6521_s11 = smul.u32 6144, %s6915_s27 }
  0x2f   : > { %s10031_s1 = sld [smem:[#allocation106_spill]]  ;;  %s296_s16 = scalar_lea.vmem [#allocation6], %s6520_s10 }
  0x30   : > { %s305_s17 = sshll.u32 %s296_s16, 4  ;;  %s293_s20 = scalar_lea.sflag [#allocation3], %s7062_s28  ;;  %s306_s17 = int_to_ptr.vmem [resolvable:$true] %s305_s17 }
  0x31   : > { %p6773_p9 = pneg %p7069_p8 }
  0x35   : > { %s302_s14 = scalar_lea.hbm %s10031_s1, %s6521_s11  ;;  %s6776_s11 = scalar_lea.hbm %s10031_s1, 12288 }
  0x36   : > { %s303_s18 = sshll.u32 %s302_s14, 4  ;;  %s304_s18 = int_to_ptr.hbm [resolvable:$true] %s303_s18 }
  0x37   : > { %s6769_s23 = sshra.s32 %s304_s18, 4  ;;  %s6770_s23 = int_to_ptr.hbm [resolvable:$true] %s6769_s23 }
  0x38   : > { %s6771_s0 = scalar_lea.hbm %s6770_s23, 6144  ;;  %p6777_p12 = scmp.lt.s32.totalorder %s6770_s23, %s10031_s1 }
  0x39   : > { %p6772_p7 = scmp.ne.s32.totalorder %s6770_s23, %s6771_s0  ;;  %p6778_p2 = scmp.lt.s32.totalorder %s6776_s11, %s6771_s0 }
  0x3b   : > { %p6774_p10 = pnand %p6773_p9, %p6772_p7  ;;  %p6779_p4 = por %p6778_p2, %p6777_p12 }
  0x3d   : > { %p6775_p11 = pneg %p6774_p10 }
  0x3f   : > { %p6780_p5 = pnand %p6779_p4, %p6775_p11 }
  0x41   : > { %6783 = shalt.err (!%p6780_p5)
}
  0x42   : > { %s6924_s13 = smov 768   ;;  %s6925_s14 = smov 48  }
  0x43   : > { %6568 = dma.hbm_to_vmem [thread:$0]  (!%p7069_p8), %s304_s18, 98304, %s306_s17, %s293_s20, %s6924_s13, %s6924_s13, %s6925_s14  }
  0x44   : > { %s315_s16 = sand.u32 1, %s6915_s27   ;;  %s5279_s3 = sshll.u32 %s7062_s28, 5 }
  0x45   : > { %s6389_s4 = sshll.u32 %s6915_s27, 5  ;;  %s319_s5 = scalar_lea.vmem [#allocation7], %s5279_s3 }
  0x46   : > { %s328_s6 = sshll.u32 %s319_s5, 4  ;;  %s325_s0 = scalar_lea.hbm %s9932_s2, %s6389_s4  ;;  %s329_s6 = int_to_ptr.vmem [resolvable:$true] %s328_s6 }
  0x47   : > { %s326_s11 = sshll.u32 %s325_s0, 4  ;;  %s316_s12 = scalar_lea.sflag [#allocation8], %s315_s16  ;;  %s327_s11 = int_to_ptr.hbm [resolvable:$true] %s326_s11 }
  0x48   : > { %s6799_s1 = sshra.s32 %s327_s11, 4  ;;  %s6806_s5 = scalar_lea.hbm %s9932_s2, 64  ;;  %s6800_s1 = int_to_ptr.hbm [resolvable:$true] %s6799_s1 }
  0x49   : > { %s6801_s21 = scalar_lea.hbm %s6800_s1, 32  ;;  %p6807_p11 = scmp.lt.s32.totalorder %s6800_s1, %s9932_s2 }
  0x4a   : > { %p6802_p5 = scmp.ne.s32.totalorder %s6800_s1, %s6801_s21  ;;  %p6808_p12 = scmp.lt.s32.totalorder %s6806_s5, %s6801_s21 }
  0x4c   : > { %p6804_p7 = pnand %p6802_p5, %p6773_p9  ;;  %p6809_p2 = por %p6808_p12, %p6807_p11 }
  0x4e   : > { %p6805_p10 = pneg %p6804_p7 }
  0x50   : > { %p6810_p4 = pnand %p6809_p2, %p6805_p10 }
  0x52   : > { %6813 = shalt.err (!%p6810_p4)
}
  0x53   : > { %s6926_s13 = smov 256   ;;  %s6927_s14 = smov 16  }
  0x54   : > { %6571 = dma.hbm_to_vmem [thread:$0]  (!%p7069_p8), %s327_s11, 512, %s329_s6, %s316_s12, %s6926_s13, %s6926_s13, %s6927_s14  }
  0x55   : > { %340 = sbr.rel (%p6999_p3) target bundleno = 1493 (0x5d5), region = 48 }
  0x5a   : > { %6874 = dma.done.wait (%p71_p1), [#allocation5], 16  }
  0x5b   : > { %6876 = vsyncadd (%p71_p1), [#allocation5], 4294967280  ;;  %s7115_s1 = sand.u32 1, %s6907_s25  }
  0x5c   : > { %s6522_s21 = smul.u32 6144, %s7115_s1  ;;  %s348_s16 = scalar_lea.sflag [#allocation3], %s7115_s1 }
  0x5e   : > { %s7119_s3 = scalar_lea.vmem [#allocation6], %s6522_s21 }
  0x5f   : > { %6878 = dma.done.wait (%p7052_p13), %s348_s16, 98304  }
  0x60   : > { %6880 = vsyncadd (%p7052_p13), %s348_s16, 4294868992  ;;  %s357_s6 = sand.u32 1, %s6994_s8   ;;  %s5285_s9 = sshll.u32 %s7115_s1, 5 }
  0x61   : > { %s358_s30 = scalar_lea.sflag [#allocation8], %s357_s6  ;;  %s7129_s4 = scalar_lea.vmem [#allocation7], %s5285_s9 }
  0x62   : > { %6882 = dma.done.wait (%p7052_p13), %s358_s30, 512  }
  0x63   : > { %6884 = vsyncadd (%p7052_p13), %s358_s30, 4294966784 }
  0x64   : > { %6886 = dma.done.wait (%p71_p1), [#allocation8], 12288  }
  0x65   : > { %6888 = vsyncadd (%p71_p1), [#allocation8], 4294955008 }
  0x66   : > { %6890 = dma.done.wait (%p71_p1), [#allocation11], 4128  }
  0x67   : > { %6892 = vsyncadd (%p71_p1), [#allocation11], 4294963168 }
  0x68   : > { %6894 = dma.done.wait (%p71_p1), [#allocation14], 32  }
  0x69   : > { %6896 = vsyncadd (%p71_p1), [#allocation14], 4294967264 }
  0x6a   : > { %387 = sfence }
  0x6b   : > { %v5928_v0 = vld [vmem:[#allocation9 + $0x70] sm:$0xf]  ;;  %v6405_v1 = vld [vmem:[#allocation9 + $0x74] sm:$0xf0]  ;;  %v5920_v11 = vld [vmem:[#allocation9 + $0x60] sm:$0xf] }
  0x6c   : > { %v5992_v2 = vld [vmem:[#allocation9 + $0xf0] sm:$0xf]  ;;  %v5929_v3 = vor.u32 %v6405_v1, %v5928_v0  ;;  %v6421_v4 = vld [vmem:[#allocation9 + $0xf4] sm:$0xf0]  ;;  %v6403_v13 = vld [vmem:[#allocation9 + $0x64] sm:$0xf0] }
  0x6d   : > { %v6056_v5 = vld [vmem:[#allocation9 + $0x170] sm:$0xf]  ;;  %v6437_v6 = vld [vmem:[#allocation9 + $0x174] sm:$0xf0]  ;;  %v5993_v7 = vor.u32 %v6421_v4, %v5992_v2  ;;  %v5984_v14 = vld [vmem:[#allocation9 + $0xe0] sm:$0xf]  ;;  %v5921_v16 = vor.u32 %v6403_v13, %v5920_v11 }
  0x6e   : > { %v6057_v8 = vor.u32 %v6437_v6, %v6056_v5  ;;  %v6120_v9 = vld [vmem:[#allocation9 + $0x1f0] sm:$0xf]  ;;  %v6453_v10 = vld [vmem:[#allocation9 + $0x1f4] sm:$0xf0]  ;;  %3223 = vmatpush.bf16.msra.mxu0 %v5929_v3  ;;  %v6419_v15 = vld [vmem:[#allocation9 + $0xe4] sm:$0xf0] }
  0x6f   : > { %v6121_v12 = vor.u32 %v6453_v10, %v6120_v9  ;;  %3312 = vmatpush.bf16.msra.mxu1 %v5993_v7  ;;  %v5985_v17 = vor.u32 %v6419_v15, %v5984_v14  ;;  %v6048_v18 = vld [vmem:[#allocation9 + $0x160] sm:$0xf]  ;;  %v6435_v19 = vld [vmem:[#allocation9 + $0x164] sm:$0xf0]  ;;  %v5912_v23 = vld [vmem:[#allocation9 + $0x50] sm:$0xf] }
  0x70   : > { %3401 = vmatpush.bf16.msra.mxu2 %v6057_v8  ;;  %v6112_v20 = vld [vmem:[#allocation9 + $0x1e0] sm:$0xf]  ;;  %v6049_v21 = vor.u32 %v6435_v19, %v6048_v18  ;;  %v6451_v22 = vld [vmem:[#allocation9 + $0x1e4] sm:$0xf0]  ;;  %v6401_v24 = vld [vmem:[#allocation9 + $0x54] sm:$0xf0] }
  0x71   : > { %3490 = vmatpush.bf16.msra.mxu3 %v6121_v12  ;;  %v6113_v25 = vor.u32 %v6451_v22, %v6112_v20  ;;  %v5976_v26 = vld [vmem:[#allocation9 + $0xd0] sm:$0xf]  ;;  %v6417_v27 = vld [vmem:[#allocation9 + $0xd4] sm:$0xf0]  ;;  %v5913_v29 = vor.u32 %v6401_v24, %v5912_v23  ;;  %v5904_v35 = vld [vmem:[#allocation9 + $0x40] sm:$0xf] }
  0x72   : > { %v6040_v28 = vld [vmem:[#allocation9 + $0x150] sm:$0xf]  ;;  %3224 = vmatpush.bf16.msra.mxu0 %v5921_v16  ;;  %v6433_v30 = vld [vmem:[#allocation9 + $0x154] sm:$0xf0]  ;;  %v5977_v33 = vor.u32 %v6417_v27, %v5976_v26  ;;  %v6399_v36 = vld [vmem:[#allocation9 + $0x44] sm:$0xf0] }
  0x73   : > { %v6104_v31 = vld [vmem:[#allocation9 + $0x1d0] sm:$0xf]  ;;  %v6449_v32 = vld [vmem:[#allocation9 + $0x1d4] sm:$0xf0]  ;;  %3313 = vmatpush.bf16.msra.mxu1 %v5985_v17  ;;  %v6041_v34 = vor.u32 %v6433_v30, %v6040_v28  ;;  %v5968_v37 = vld [vmem:[#allocation9 + $0xc0] sm:$0xf]  ;;  %v5905_v44 = vor.u32 %v6399_v36, %v5904_v35 }
  0x74   : > { %3402 = vmatpush.bf16.msra.mxu2 %v6049_v21  ;;  %v6105_v38 = vor.u32 %v6449_v32, %v6104_v31  ;;  %v6415_v39 = vld [vmem:[#allocation9 + $0xc4] sm:$0xf0]  ;;  %v6032_v40 = vld [vmem:[#allocation9 + $0x140] sm:$0xf]  ;;  %v5896_v47 = vld [vmem:[#allocation9 + $0x30] sm:$0xf] }
  0x75   : > { %3491 = vmatpush.bf16.msra.mxu3 %v6113_v25  ;;  %v6431_v41 = vld [vmem:[#allocation9 + $0x144] sm:$0xf0]  ;;  %v6096_v42 = vld [vmem:[#allocation9 + $0x1c0] sm:$0xf]  ;;  %v5969_v45 = vor.u32 %v6415_v39, %v5968_v37  ;;  %v6397_v48 = vld [vmem:[#allocation9 + $0x34] sm:$0xf0] }
  0x76   : > { %v6447_v43 = vld [vmem:[#allocation9 + $0x1c4] sm:$0xf0]  ;;  %3225 = vmatpush.bf16.msra.mxu0 %v5913_v29  ;;  %v6033_v46 = vor.u32 %v6431_v41, %v6032_v40  ;;  %v5960_v49 = vld [vmem:[#allocation9 + $0xb0] sm:$0xf]  ;;  %v6413_v51 = vld [vmem:[#allocation9 + $0xb4] sm:$0xf0]  ;;  %v5897_v56 = vor.u32 %v6397_v48, %v5896_v47 }
  0x77   : > { %3314 = vmatpush.bf16.msra.mxu1 %v5977_v33  ;;  %v6097_v50 = vor.u32 %v6447_v43, %v6096_v42  ;;  %v6024_v52 = vld [vmem:[#allocation9 + $0x130] sm:$0xf]  ;;  %v6429_v53 = vld [vmem:[#allocation9 + $0x134] sm:$0xf0]  ;;  %v5888_v57 = vld [vmem:[#allocation9 + $0x20] sm:$0xf]  ;;  %v5961_v58 = vor.u32 %v6413_v51, %v5960_v49 }
  0x78   : > { %3403 = vmatpush.bf16.msra.mxu2 %v6041_v34  ;;  %v6088_v54 = vld [vmem:[#allocation9 + $0x1b0] sm:$0xf]  ;;  %v6445_v55 = vld [vmem:[#allocation9 + $0x1b4] sm:$0xf0]  ;;  %v6025_v59 = vor.u32 %v6429_v53, %v6024_v52  ;;  %v6395_v60 = vld [vmem:[#allocation9 + $0x24] sm:$0xf0] }
  0x79   : > { %3492 = vmatpush.bf16.msra.mxu3 %v6105_v38  ;;  %v5952_v61 = vld [vmem:[#allocation9 + $0xa0] sm:$0xf]  ;;  %v6411_v62 = vld [vmem:[#allocation9 + $0xa4] sm:$0xf0]  ;;  %v6089_v63 = vor.u32 %v6445_v55, %v6088_v54  ;;  %v5880_v4 = vld [vmem:[#allocation9 + $0x10] sm:$0xf]  ;;  %v5889_v6 = vor.u32 %v6395_v60, %v5888_v57 }
  0x7a   : > { %3226 = vmatpush.bf16.msra.mxu0 %v5905_v44  ;;  %v6016_v0 = vld [vmem:[#allocation9 + $0x120] sm:$0xf]  ;;  %v6427_v1 = vld [vmem:[#allocation9 + $0x124] sm:$0xf0]  ;;  %v6393_v5 = vld [vmem:[#allocation9 + $0x14] sm:$0xf0]  ;;  %v5953_v10 = vor.u32 %v6411_v62, %v5952_v61 }
  0x7b   : > { %3315 = vmatpush.bf16.msra.mxu1 %v5969_v45  ;;  %v6080_v2 = vld [vmem:[#allocation9 + $0x1a0] sm:$0xf]  ;;  %v6443_v3 = vld [vmem:[#allocation9 + $0x1a4] sm:$0xf0]  ;;  %v5944_v7 = vld [vmem:[#allocation9 + $0x90] sm:$0xf]  ;;  %v6017_v11 = vor.u32 %v6427_v1, %v6016_v0  ;;  %v5881_v20 = vor.u32 %v6393_v5, %v5880_v4 }
  0x7c   : > { %3404 = vmatpush.bf16.msra.mxu2 %v6033_v46  ;;  %v6409_v8 = vld [vmem:[#allocation9 + $0x94] sm:$0xf0]  ;;  %v6008_v9 = vld [vmem:[#allocation9 + $0x110] sm:$0xf]  ;;  %v6081_v15 = vor.u32 %v6443_v3, %v6080_v2  ;;  %v5872_v16 = vld [vmem:[#allocation9] sm:$0xf] }
  0x7d   : > { %3493 = vmatpush.bf16.msra.mxu3 %v6097_v50  ;;  %v6425_v12 = vld [vmem:[#allocation9 + $0x114] sm:$0xf0]  ;;  %v6072_v13 = vld [vmem:[#allocation9 + $0x190] sm:$0xf]  ;;  %v6391_v17 = vld [vmem:[#allocation9 + $0x4] sm:$0xf0]  ;;  %v5945_v23 = vor.u32 %v6409_v8, %v5944_v7 }
  0x7e   : > { %3227 = vmatpush.bf16.msra.mxu0 %v5897_v56  ;;  %v6441_v14 = vld [vmem:[#allocation9 + $0x194] sm:$0xf0]  ;;  %s614_s15 = sld [smem:[#allocation2]]  ;;  %v5936_v18 = vld [vmem:[#allocation9 + $0x80] sm:$0xf]  ;;  %v6009_v24 = vor.u32 %v6425_v12, %v6008_v9  ;;  %v428_v29 = vld [vmem:[%s7119_s3 + $0x30] sm:$0xff]  ;;  %v5873_v31 = vor.u32 %v6391_v17, %v5872_v16 }
  0x7f   : > { %3316 = vmatpush.bf16.msra.mxu1 %v5961_v58  ;;  %v6407_v19 = vld [vmem:[#allocation9 + $0x84] sm:$0xf0]  ;;  %s7147_s10 = sld [smem:[#allocation2 + $0x1]]  ;;  %v6000_v21 = vld [vmem:[#allocation9 + $0x100] sm:$0xf]  ;;  %v6073_v27 = vor.u32 %v6441_v14, %v6072_v13  ;;  %v5297_v33 = vld [vmem:[%s7119_s3 + $0x90] sm:$0xff] }
  0x80   : > { %3405 = vmatpush.bf16.msra.mxu2 %v6025_v59  ;;  %v6423_v22 = vld [vmem:[#allocation9 + $0x104] sm:$0xf0]  ;;  %s7149_s23 = sld [smem:[#allocation2 + $0x2]]  ;;  %v6064_v25 = vld [vmem:[#allocation9 + $0x180] sm:$0xf]  ;;  %v429_v34 = vld [vmem:[%s7119_s3 + $0x38] sm:$0xff]  ;;  %v5937_v35 = vor.u32 %v6407_v19, %v5936_v18 }
  0x81   : > { %3494 = vmatpush.bf16.msra.mxu3 %v6089_v63  ;;  %v6439_v26 = vld [vmem:[#allocation9 + $0x184] sm:$0xf0]  ;;  %s7151_s0 = sld [smem:[#allocation2 + $0x3]]  ;;  %v422_v28 = vld [vmem:[%s7119_s3] sm:$0xff]  ;;  %v6001_v36 = vor.u32 %v6423_v22, %v6000_v21  ;;  %v5490_v40 = vld [vmem:[%s7119_s3 + $0xf0] sm:$0xff]  ;;  %s418_s11 = scalar_lea.vmem [#allocation15], %s5285_s9 }
  0x82   : > { %3228 = vmatpush.bf16.msra.mxu0 %v5889_v6  ;;  %v423_v30 = vld [vmem:[%s7119_s3 + $0x8] sm:$0xff]  ;;  %v5291_v32 = vld [vmem:[%s7119_s3 + $0x60] sm:$0xff]  ;;  %v6065_v37 = vor.u32 %v6439_v26, %v6064_v25  ;;  %v5683_v46 = vld [vmem:[%s7119_s3 + $0x150] sm:$0xff]  ;;  %s6519_s12 = sshll.u32 %s6994_s8, 5  ;;  %s5119_s18 = sshll.u32 %s418_s11, 4  ;;  %s5120_s18 = int_to_ptr.vmem [resolvable:$true] %s5119_s18 }
  0x83   : > { %3317 = vmatpush.bf16.msra.mxu1 %v5953_v10  ;;  %v5484_v39 = vld [vmem:[%s7119_s3 + $0xc0] sm:$0xff]  ;;  %v5292_v41 = vld [vmem:[%s7119_s3 + $0x68] sm:$0xff]  ;;  %v5298_v52 = vld [vmem:[%s7119_s3 + $0x98] sm:$0xff]  ;;  %s5118_s5 = scalar_lea.hbm %s9937_s7, %s6519_s12  ;;  %s5106_s13 = scalar_lea.sflag [#allocation4], %s7115_s1 }
  0x84   : > { %3406 = vmatpush.bf16.msra.mxu2 %v6017_v11  ;;  %v7159_v38 = vstv %s614_s15  ;;  %v5677_v45 = vld [vmem:[%s7119_s3 + $0x120] sm:$0xff]  ;;  %v5485_v53 = vld [vmem:[%s7119_s3 + $0xc8] sm:$0xff]  ;;  %v5491_v58 = vld [vmem:[%s7119_s3 + $0xf8] sm:$0xff]  ;;  %s5121_s20 = sshll.u32 %s5118_s5, 4  ;;  %s5122_s20 = int_to_ptr.hbm [resolvable:$true] %s5121_s20 }
  0x85   : > { %3495 = vmatpush.bf16.msra.mxu3 %v6081_v15  ;;  %v616_v42 = vmul.f32 %v7159_v38, %v422_v28  ;;  %v622_v43 = vmul.f32 %v7159_v38, %v428_v29  ;;  %v7167_v44 = vstv %s7147_s10  ;;  %v617_v47 = vmul.f32 %v7159_v38, %v423_v30  ;;  %v5678_v59 = vld [vmem:[%s7119_s3 + $0x128] sm:$0xff]  ;;  %v5684_v0 = vld [vmem:[%s7119_s3 + $0x158] sm:$0xff]  ;;  %v424_v1 = vld [vmem:[%s7119_s3 + $0x10] sm:$0xff]  ;;  %s6843_s14 = sshra.s32 %s5122_s20, 4  ;;  %s6844_s14 = int_to_ptr.hbm [resolvable:$true] %s6843_s14 }
  0x86   : > { %3229 = vmatpush.bf16.msra.mxu0 %v5881_v20  ;;  %v1003_v48 = vmul.f32 %v5291_v32, %v7167_v44  ;;  %v1009_v49 = vmul.f32 %v5297_v33, %v7167_v44  ;;  %v7175_v50 = vstv %s7149_s23  ;;  %v623_v51 = vmul.f32 %v7159_v38, %v429_v34  ;;  %v430_v5 = vld [vmem:[%s7119_s3 + $0x40] sm:$0xff]  ;;  %v5293_v6 = vld [vmem:[%s7119_s3 + $0x70] sm:$0xff]  ;;  %v431_v29 = vld [vmem:[%s7119_s3 + $0x48] sm:$0xff]  ;;  %s6845_s21 = scalar_lea.hbm %s6844_s14, 32  ;;  %p6850_p8 = scmp.lt.s32.totalorder %s6844_s14, %s9937_s7 }
  0x87   : > { %3318 = vmatpush.bf16.msra.mxu1 %v5945_v23  ;;  %v1582_v54 = vmul.f32 %v5484_v39, %v7175_v50  ;;  %v1588_v55 = vmul.f32 %v5490_v40, %v7175_v50  ;;  %v7183_v56 = vstv %s7151_s0  ;;  %v1004_v57 = vmul.f32 %v5292_v41, %v7167_v44  ;;  %v5299_v11 = vld [vmem:[%s7119_s3 + $0xa0] sm:$0xff]  ;;  %v5486_v12 = vld [vmem:[%s7119_s3 + $0xd0] sm:$0xff]  ;;  %v5294_v30 = vld [vmem:[%s7119_s3 + $0x78] sm:$0xff]  ;;  %p6846_p1 = scmp.ne.s32.totalorder %s6844_s14, %s6845_s21 }
  0x88   : > { %3407 = vmatpush.bf16.msra.mxu2 %v6009_v24  ;;  %v1195_v60 = vadd.f32 %v1003_v48, %v616_v42  ;;  %v1201_v61 = vadd.f32 %v1009_v49, %v622_v43  ;;  %v2161_v62 = vmul.f32 %v5677_v45, %v7183_v56  ;;  %v2167_v63 = vmul.f32 %v5683_v46, %v7183_v56  ;;  %v5492_v17 = vld [vmem:[%s7119_s3 + $0x100] sm:$0xff]  ;;  %v5679_v18 = vld [vmem:[%s7119_s3 + $0x130] sm:$0xff]  ;;  %v425_v24 = vld [vmem:[%s7119_s3 + $0x18] sm:$0xff] }
  0x89   : > { %3496 = vmatpush.bf16.msra.mxu3 %v6073_v27  ;;  %v1010_v2 = vmul.f32 %v5298_v52, %v7167_v44  ;;  %v1196_v3 = vadd.f32 %v1004_v57, %v617_v47  ;;  %v1583_v4 = vmul.f32 %v5485_v53, %v7175_v50  ;;  %v1589_v9 = vmul.f32 %v5491_v58, %v7175_v50  ;;  %v5685_v23 = vld [vmem:[%s7119_s3 + $0x160] sm:$0xff]  ;;  %v5680_v43 = vld [vmem:[%s7119_s3 + $0x138] sm:$0xff]  ;;  %v5686_v49 = vld [vmem:[%s7119_s3 + $0x168] sm:$0xff]  ;;  %p6847_p3 = pnand %p6846_p1, %p7056_p0 }
  0x8a   : > { %3230 = vmatpush.bf16.msra.mxu0 %v5873_v31  ;;  %v1774_v7 = vadd.f32 %v1582_v54, %v1195_v60  ;;  %v1780_v8 = vadd.f32 %v1588_v55, %v1201_v61  ;;  %v2162_v10 = vmul.f32 %v5678_v59, %v7183_v56  ;;  %v2168_v15 = vmul.f32 %v5684_v0, %v7183_v56  ;;  %v5300_v31 = vld [vmem:[%s7119_s3 + $0xa8] sm:$0xff]  ;;  %v440_v52 = vld [vmem:[%s7119_s3 + $0x1b0] sm:$0xff]  ;;  %v5303_v58 = vld [vmem:[%s7119_s3 + $0x1e0] sm:$0xff] }
  0x8b   : > { %3319 = vmatpush.bf16.msra.mxu1 %v5937_v35  ;;  %v1202_v13 = vadd.f32 %v1010_v2, %v623_v51  ;;  %v1775_v14 = vadd.f32 %v1583_v4, %v1196_v3  ;;  %v618_v16 = vmul.f32 %v7159_v38, %v424_v1  ;;  %v624_v21 = vmul.f32 %v7159_v38, %v430_v5  ;;  %v434_v51 = vld [vmem:[%s7119_s3 + $0x180] sm:$0xff]  ;;  %v5309_v59 = vld [vmem:[%s7119_s3 + $0x210] sm:$0xff]  ;;  %p6848_p13 = pneg %p6847_p3 }
  0x8c   : > { %3408 = vmatpush.bf16.msra.mxu2 %v6001_v36  ;;  %v2353_v19 = vadd.f32 %v2161_v62, %v1774_v7  ;;  %v2359_v20 = vadd.f32 %v2167_v63, %v1780_v8  ;;  %v1005_v22 = vmul.f32 %v5293_v6, %v7167_v44  ;;  %v1011_v27 = vmul.f32 %v5299_v11, %v7167_v44  ;;  %v5487_v36 = vld [vmem:[%s7119_s3 + $0xd8] sm:$0xff]  ;;  %v5496_v0 = vld [vmem:[%s7119_s3 + $0x240] sm:$0xff]  ;;  %v5502_v1 = vld [vmem:[%s7119_s3 + $0x270] sm:$0xff] }
  0x8d   : > { %3497 = vmatpush.bf16.msra.mxu3 %v6065_v37  ;;  %v1781_v25 = vadd.f32 %v1589_v9, %v1202_v13  ;;  %v2354_v26 = vadd.f32 %v2162_v10, %v1775_v14  ;;  %v1584_v28 = vmul.f32 %v5486_v12, %v7175_v50  ;;  %v1590_v34 = vmul.f32 %v5492_v17, %v7175_v50  ;;  %v5493_v37 = vld [vmem:[%s7119_s3 + $0x108] sm:$0xff]  ;;  %v5689_v2 = vld [vmem:[%s7119_s3 + $0x2a0] sm:$0xff]  ;;  %v5695_v7 = vld [vmem:[%s7119_s3 + $0x2d0] sm:$0xff] }
  0x8e   : > { %v7213_v32 = vpack.c.bf16 %v2359_v20, %v2353_v19  ;;  %v1197_v33 = vadd.f32 %v1005_v22, %v618_v16  ;;  %v2163_v35 = vmul.f32 %v5679_v18, %v7183_v56  ;;  %v1203_v40 = vadd.f32 %v1011_v27, %v624_v21  ;;  %v435_v12 = vld [vmem:[%s7119_s3 + $0x188] sm:$0xff]  ;;  %v441_v13 = vld [vmem:[%s7119_s3 + $0x1b8] sm:$0xff] }
  0x8f   : > { %v2360_v39 = vadd.f32 %v2168_v15, %v1781_v25  ;;  %v2169_v41 = vmul.f32 %v5685_v23, %v7183_v56  ;;  %v619_v42 = vmul.f32 %v7159_v38, %v425_v24  ;;  %v625_v46 = vmul.f32 %v7159_v38, %v431_v29  ;;  %v5304_v14 = vld [vmem:[%s7119_s3 + $0x1e8] sm:$0xff]  ;;  %v5310_v19 = vld [vmem:[%s7119_s3 + $0x218] sm:$0xff] }
  0x90   : > { %3231 = vmatmul.bf16.vlgmr.msra.gmra.mxu0 %v7213_v32  ;;  %v1776_v45 = vadd.f32 %v1584_v28, %v1197_v33  ;;  %v1006_v47 = vmul.f32 %v5294_v30, %v7167_v44  ;;  %v1012_v48 = vmul.f32 %v5300_v31, %v7167_v44  ;;  %v1782_v54 = vadd.f32 %v1590_v34, %v1203_v40  ;;  %v5497_v24 = vld [vmem:[%s7119_s3 + $0x248] sm:$0xff]  ;;  %v5503_v25 = vld [vmem:[%s7119_s3 + $0x278] sm:$0xff]  ;;  %v5305_v40 = vld [vmem:[%s7119_s3 + $0x1f0] sm:$0xff] }
  0x91   : > { %v7229_v53 = vpack.c.bf16 %v2360_v39, %v2354_v26  ;;  %v1585_v55 = vmul.f32 %v5487_v36, %v7175_v50  ;;  %v1591_v57 = vmul.f32 %v5493_v37, %v7175_v50  ;;  %v2164_v63 = vmul.f32 %v5680_v43, %v7183_v56  ;;  %v5690_v26 = vld [vmem:[%s7119_s3 + $0x2a8] sm:$0xff]  ;;  %v5696_v31 = vld [vmem:[%s7119_s3 + $0x2d8] sm:$0xff]  ;;  %v436_v37 = vld [vmem:[%s7119_s3 + $0x190] sm:$0xff] }
  0x92   : > { %v2355_v60 = vadd.f32 %v2163_v35, %v1776_v45  ;;  %v1198_v61 = vadd.f32 %v1006_v47, %v619_v42  ;;  %v1204_v62 = vadd.f32 %v1012_v48, %v625_v46  ;;  %v2361_v3 = vadd.f32 %v2169_v41, %v1782_v54  ;;  %v442_v39 = vld [vmem:[%s7119_s3 + $0x1c0] sm:$0xff]  ;;  %v5498_v47 = vld [vmem:[%s7119_s3 + $0x250] sm:$0xff] }
  0x93   : > { %3320 = vmatmul.bf16.vlgmr.msra.gmra.mxu1 %v7229_v53  ;;  %v2170_v4 = vmul.f32 %v5686_v49, %v7183_v56  ;;  %v628_v5 = vmul.f32 %v7159_v38, %v434_v51  ;;  %v634_v6 = vmul.f32 %v7159_v38, %v440_v52  ;;  %v1015_v10 = vmul.f32 %v5303_v58, %v7167_v44  ;;  %v5311_v46 = vld [vmem:[%s7119_s3 + $0x220] sm:$0xff] }
  0x94   : > { %v1777_v8 = vadd.f32 %v1585_v55, %v1198_v61  ;;  %v1783_v9 = vadd.f32 %v1591_v57, %v1204_v62  ;;  %v1021_v11 = vmul.f32 %v5309_v59, %v7167_v44  ;;  %v7249_v15 = vpack.c.bf16 %v2361_v3, %v2355_v60  ;;  %v5504_v54 = vld [vmem:[%s7119_s3 + $0x280] sm:$0xff]  ;;  %v5691_v55 = vld [vmem:[%s7119_s3 + $0x2b0] sm:$0xff]  ;;  %v437_v62 = vld [vmem:[%s7119_s3 + $0x198] sm:$0xff] }
  0x95   : > { %v1594_v16 = vmul.f32 %v5496_v0, %v7175_v50  ;;  %v1600_v17 = vmul.f32 %v5502_v1, %v7175_v50  ;;  %v2173_v18 = vmul.f32 %v5689_v2, %v7183_v56  ;;  %v1207_v22 = vadd.f32 %v1015_v10, %v628_v5  ;;  %v5697_v61 = vld [vmem:[%s7119_s3 + $0x2e0] sm:$0xff]  ;;  %v443_v3 = vld [vmem:[%s7119_s3 + $0x1c8] sm:$0xff]  ;;  %v5499_v10 = vld [vmem:[%s7119_s3 + $0x258] sm:$0xff] }
  0x96   : > { %10032 = vst [vmem:[#allocation24_spill] sm:$0xff] %v7249_v15  ;;  %v2356_v20 = vadd.f32 %v2164_v63, %v1777_v8  ;;  %v2362_v21 = vadd.f32 %v2170_v4, %v1783_v9  ;;  %v1213_v23 = vadd.f32 %v1021_v11, %v634_v6  ;;  %3409 = vmatmul.bf16.vlgmr.msra.gmra.mxu2 %v7249_v15  ;;  %v5306_v4 = vld [vmem:[%s7119_s3 + $0x1f8] sm:$0xff]  ;;  %v5312_v5 = vld [vmem:[%s7119_s3 + $0x228] sm:$0xff] }
  0x97   : > { %v2179_v27 = vmul.f32 %v5695_v7, %v7183_v56  ;;  %v629_v28 = vmul.f32 %v7159_v38, %v435_v12  ;;  %v635_v29 = vmul.f32 %v7159_v38, %v441_v13  ;;  %v1016_v30 = vmul.f32 %v5304_v14, %v7167_v44  ;;  %v5505_v11 = vld [vmem:[%s7119_s3 + $0x288] sm:$0xff]  ;;  %v5635_v15 = vld [vmem:[%s7119_s3 + $0x12f8] sm:$0xff] }
  0x98   : > { %v7264_v33 = vpack.c.bf16 %v2362_v21, %v2356_v20  ;;  %v1786_v34 = vadd.f32 %v1594_v16, %v1207_v22  ;;  %v1792_v35 = vadd.f32 %v1600_v17, %v1213_v23  ;;  %v1022_v36 = vmul.f32 %v5310_v19, %v7167_v44  ;;  %v5692_v17 = vld [vmem:[%s7119_s3 + $0x2b8] sm:$0xff]  ;;  %v5698_v22 = vld [vmem:[%s7119_s3 + $0x2e8] sm:$0xff]  ;;  %v446_v23 = vld [vmem:[%s7119_s3 + $0x300] sm:$0xff] }
  0x99   : > { %v1208_v41 = vadd.f32 %v1016_v30, %v629_v28  ;;  %v1595_v42 = vmul.f32 %v5497_v24, %v7175_v50  ;;  %v1601_v43 = vmul.f32 %v5503_v25, %v7175_v50  ;;  %v2174_v45 = vmul.f32 %v5690_v26, %v7183_v56  ;;  %v452_v24 = vld [vmem:[%s7119_s3 + $0x330] sm:$0xff] }
  0x9a   : > { %10033 = vst [vmem:[#allocation25_spill] sm:$0xff] %v7264_v33  ;;  %3498 = vmatmul.bf16.vlgmr.msra.gmra.mxu3 %v7264_v33  ;;  %v2365_v48 = vadd.f32 %v2173_v18, %v1786_v34  ;;  %v2371_v49 = vadd.f32 %v2179_v27, %v1792_v35  ;;  %v1214_v51 = vadd.f32 %v1022_v36, %v635_v29  ;;  %v5315_v29 = vld [vmem:[%s7119_s3 + $0x360] sm:$0xff]  ;;  %v5321_v30 = vld [vmem:[%s7119_s3 + $0x390] sm:$0xff]  ;;  %v5812_v33 = vld [vmem:[%s7119_s3 + $0x11b8] sm:$0xff] }
  0x9b   : > { %v2180_v52 = vmul.f32 %v5696_v31, %v7183_v56  ;;  %v1787_v57 = vadd.f32 %v1595_v42, %v1208_v41  ;;  %v630_v58 = vmul.f32 %v7159_v38, %v436_v37  ;;  %v636_v59 = vmul.f32 %v7159_v38, %v442_v39  ;;  %v5508_v37 = vld [vmem:[%s7119_s3 + $0x3c0] sm:$0xff]  ;;  %v5514_v39 = vld [vmem:[%s7119_s3 + $0x3f0] sm:$0xff] }
  0x9c   : > { %v1017_v60 = vmul.f32 %v5305_v40, %v7167_v44  ;;  %v7284_v63 = vpack.c.bf16 %v2371_v49, %v2365_v48  ;;  %v1793_v0 = vadd.f32 %v1601_v43, %v1214_v51  ;;  %v1023_v1 = vmul.f32 %v5311_v46, %v7167_v44  ;;  %v5701_v40 = vld [vmem:[%s7119_s3 + $0x420] sm:$0xff]  ;;  %v5707_v46 = vld [vmem:[%s7119_s3 + $0x450] sm:$0xff] }
  0x9d   : > { %v1596_v2 = vmul.f32 %v5498_v47, %v7175_v50  ;;  %v2366_v6 = vadd.f32 %v2174_v45, %v1787_v57  ;;  %v1602_v8 = vmul.f32 %v5504_v54, %v7175_v50  ;;  %v2175_v9 = vmul.f32 %v5691_v55, %v7183_v56  ;;  %v453_v54 = vld [vmem:[%s7119_s3 + $0x338] sm:$0xff]  ;;  %v5316_v55 = vld [vmem:[%s7119_s3 + $0x368] sm:$0xff] }
  0x9e   : > { %v1209_v7 = vadd.f32 %v1017_v60, %v630_v58  ;;  %v2372_v12 = vadd.f32 %v2180_v52, %v1793_v0  ;;  %v1215_v13 = vadd.f32 %v1023_v1, %v636_v59  ;;  %v2181_v14 = vmul.f32 %v5697_v61, %v7183_v56  ;;  %v447_v52 = vld [vmem:[%s7119_s3 + $0x308] sm:$0xff]  ;;  %v5322_v61 = vld [vmem:[%s7119_s3 + $0x398] sm:$0xff] }
  0x9f   : > { %v631_v16 = vmul.f32 %v7159_v38, %v437_v62  ;;  %v637_v19 = vmul.f32 %v7159_v38, %v443_v3  ;;  %v1018_v20 = vmul.f32 %v5306_v4, %v7167_v44  ;;  %v1024_v21 = vmul.f32 %v5312_v5, %v7167_v44  ;;  %v5509_v3 = vld [vmem:[%s7119_s3 + $0x3c8] sm:$0xff]  ;;  %v5515_v4 = vld [vmem:[%s7119_s3 + $0x3f8] sm:$0xff] }
  0xa0   : > { %v1788_v18 = vadd.f32 %v1596_v2, %v1209_v7  ;;  %3236 = vmatmul.bf16.gmra.mxu0 %v7284_v63  ;;  %v7305_v25 = vpack.c.bf16 %v2372_v12, %v2366_v6  ;;  %v1794_v26 = vadd.f32 %v1602_v8, %v1215_v13  ;;  %v1597_v27 = vmul.f32 %v5499_v10, %v7175_v50  ;;  %v5702_v5 = vld [vmem:[%s7119_s3 + $0x428] sm:$0xff]  ;;  %v5708_v10 = vld [vmem:[%s7119_s3 + $0x458] sm:$0xff] }
  0xa1   : > { %v1603_v28 = vmul.f32 %v5505_v11, %v7175_v50  ;;  %v1210_v34 = vadd.f32 %v1018_v20, %v631_v16  ;;  %v1216_v35 = vadd.f32 %v1024_v21, %v637_v19  ;;  %v2176_v36 = vmul.f32 %v5692_v17, %v7183_v56  ;;  %v448_v16 = vld [vmem:[%s7119_s3 + $0x310] sm:$0xff]  ;;  %v454_v17 = vld [vmem:[%s7119_s3 + $0x340] sm:$0xff] }
  0xa2   : > { %v2367_v31 = vadd.f32 %v2175_v9, %v1788_v18  ;;  %v2373_v41 = vadd.f32 %v2181_v14, %v1794_v26  ;;  %v2182_v42 = vmul.f32 %v5698_v22, %v7183_v56  ;;  %v640_v43 = vmul.f32 %v7159_v38, %v446_v23  ;;  %v5317_v18 = vld [vmem:[%s7119_s3 + $0x370] sm:$0xff]  ;;  %v5323_v23 = vld [vmem:[%s7119_s3 + $0x3a0] sm:$0xff] }
  0xa3   : > { %v646_v45 = vmul.f32 %v7159_v38, %v452_v24  ;;  %3325 = vmatmul.bf16.gmra.mxu1 %v7305_v25  ;;  %v1789_v47 = vadd.f32 %v1597_v27, %v1210_v34  ;;  %v1795_v48 = vadd.f32 %v1603_v28, %v1216_v35  ;;  %v1027_v49 = vmul.f32 %v5315_v29, %v7167_v44  ;;  %v5510_v24 = vld [vmem:[%s7119_s3 + $0x3d0] sm:$0xff] }
  0xa4   : > { %v1033_v51 = vmul.f32 %v5321_v30, %v7167_v44  ;;  %v7325_v57 = vpack.c.bf16 %v2373_v41, %v2367_v31  ;;  %v1606_v58 = vmul.f32 %v5508_v37, %v7175_v50  ;;  %v1612_v59 = vmul.f32 %v5514_v39, %v7175_v50  ;;  %v5516_v30 = vld [vmem:[%s7119_s3 + $0x400] sm:$0xff]  ;;  %v5703_v31 = vld [vmem:[%s7119_s3 + $0x430] sm:$0xff] }
  0xa5   : > { %v2185_v60 = vmul.f32 %v5701_v40, %v7183_v56  ;;  %v2368_v62 = vadd.f32 %v2176_v36, %v1789_v47  ;;  %v2374_v0 = vadd.f32 %v2182_v42, %v1795_v48  ;;  %v1219_v1 = vadd.f32 %v1027_v49, %v640_v43  ;;  %v5709_v39 = vld [vmem:[%s7119_s3 + $0x460] sm:$0xff]  ;;  %v449_v40 = vld [vmem:[%s7119_s3 + $0x318] sm:$0xff]  ;;  %v5324_v48 = vld [vmem:[%s7119_s3 + $0x3a8] sm:$0xff] }
  0xa6   : > { %10034 = vst [vmem:[#allocation26_spill] sm:$0xff] %v7325_v57  ;;  %v1225_v2 = vadd.f32 %v1033_v51, %v646_v45  ;;  %v2191_v6 = vmul.f32 %v5707_v46, %v7183_v56  ;;  %v641_v7 = vmul.f32 %v7159_v38, %v447_v52  ;;  %v647_v8 = vmul.f32 %v7159_v38, %v453_v54  ;;  %v455_v46 = vld [vmem:[%s7119_s3 + $0x348] sm:$0xff]  ;;  %v5318_v47 = vld [vmem:[%s7119_s3 + $0x378] sm:$0xff] }
  0xa7   : > { %v1028_v9 = vmul.f32 %v5316_v55, %v7167_v44  ;;  %3414 = vmatmul.bf16.gmra.mxu2 %v7325_v57  ;;  %v7340_v11 = vpack.c.bf16 %v2374_v0, %v2368_v62  ;;  %v1798_v12 = vadd.f32 %v1606_v58, %v1219_v1  ;;  %v1034_v14 = vmul.f32 %v5322_v61, %v7167_v44  ;;  %v5511_v55 = vld [vmem:[%s7119_s3 + $0x3d8] sm:$0xff]  ;;  %v5517_v58 = vld [vmem:[%s7119_s3 + $0x408] sm:$0xff] }
  0xa8   : > { %v1804_v13 = vadd.f32 %v1612_v59, %v1225_v2  ;;  %v1607_v20 = vmul.f32 %v5509_v3, %v7175_v50  ;;  %v1613_v21 = vmul.f32 %v5515_v4, %v7175_v50  ;;  %v2186_v22 = vmul.f32 %v5702_v5, %v7183_v56  ;;  %v5704_v0 = vld [vmem:[%s7119_s3 + $0x438] sm:$0xff]  ;;  %v5710_v5 = vld [vmem:[%s7119_s3 + $0x468] sm:$0xff] }
  0xa9   : > { %10035 = vst [vmem:[#allocation27_spill] sm:$0xff] %v7340_v11  ;;  %v1220_v19 = vadd.f32 %v1028_v9, %v641_v7  ;;  %v2377_v26 = vadd.f32 %v2185_v60, %v1798_v12  ;;  %v1226_v28 = vadd.f32 %v1034_v14, %v647_v8  ;;  %v2192_v29 = vmul.f32 %v5708_v10, %v7183_v56  ;;  %v464_v7 = vld [vmem:[%s7119_s3 + $0x4b0] sm:$0xff] }
  0xaa   : > { %v2383_v27 = vadd.f32 %v2191_v6, %v1804_v13  ;;  %3503 = vmatmul.bf16.gmra.mxu3 %v7340_v11  ;;  %v642_v35 = vmul.f32 %v7159_v38, %v448_v16  ;;  %v648_v36 = vmul.f32 %v7159_v38, %v454_v17  ;;  %v1029_v37 = vmul.f32 %v5317_v18, %v7167_v44  ;;  %v458_v6 = vld [vmem:[%s7119_s3 + $0x480] sm:$0xff]  ;;  %v5333_v14 = vld [vmem:[%s7119_s3 + $0x510] sm:$0xff] }
  0xab   : > { %v1799_v34 = vadd.f32 %v1607_v20, %v1220_v19  ;;  %v1805_v42 = vadd.f32 %v1613_v21, %v1226_v28  ;;  %v1035_v43 = vmul.f32 %v5323_v23, %v7167_v44  ;;  %v1608_v45 = vmul.f32 %v5510_v24, %v7175_v50  ;;  %v5327_v13 = vld [vmem:[%s7119_s3 + $0x4e0] sm:$0xff]  ;;  %v5526_v21 = vld [vmem:[%s7119_s3 + $0x570] sm:$0xff] }
  0xac   : > { %v7360_v41 = vpack.c.bf16 %v2383_v27, %v2377_v26  ;;  %v1221_v51 = vadd.f32 %v1029_v37, %v642_v35  ;;  %v1614_v52 = vmul.f32 %v5516_v30, %v7175_v50  ;;  %v2187_v54 = vmul.f32 %v5703_v31, %v7183_v56  ;;  %v5520_v20 = vld [vmem:[%s7119_s3 + $0x540] sm:$0xff]  ;;  %v5719_v28 = vld [vmem:[%s7119_s3 + $0x5d0] sm:$0xff]  ;;  %v459_v35 = vld [vmem:[%s7119_s3 + $0x488] sm:$0xff] }
  0xad   : > { %v2378_v49 = vadd.f32 %v2186_v22, %v1799_v34  ;;  %v2384_v59 = vadd.f32 %v2192_v29, %v1805_v42  ;;  %v1227_v60 = vadd.f32 %v1035_v43, %v648_v36  ;;  %v2193_v61 = vmul.f32 %v5709_v39, %v7183_v56  ;;  %v5713_v22 = vld [vmem:[%s7119_s3 + $0x5a0] sm:$0xff]  ;;  %v465_v36 = vld [vmem:[%s7119_s3 + $0x4b8] sm:$0xff]  ;;  %v5328_v37 = vld [vmem:[%s7119_s3 + $0x4e8] sm:$0xff] }
  0xae   : > { %v643_v62 = vmul.f32 %v7159_v38, %v449_v40  ;;  %v1800_v1 = vadd.f32 %v1608_v45, %v1221_v51  ;;  %v649_v2 = vmul.f32 %v7159_v38, %v455_v46  ;;  %v1030_v3 = vmul.f32 %v5318_v47, %v7167_v44  ;;  %v5334_v45 = vld [vmem:[%s7119_s3 + $0x518] sm:$0xff]  ;;  %v5521_v51 = vld [vmem:[%s7119_s3 + $0x548] sm:$0xff] }
  0xaf   : > { %v1036_v4 = vmul.f32 %v5324_v48, %v7167_v44  ;;  %v7380_v8 = vpack.c.bf16 %v2384_v59, %v2378_v49  ;;  %v1806_v9 = vadd.f32 %v1614_v52, %v1227_v60  ;;  %v1609_v10 = vmul.f32 %v5511_v55, %v7175_v50  ;;  %v5527_v52 = vld [vmem:[%s7119_s3 + $0x578] sm:$0xff] }
  0xb0   : > { %v1615_v12 = vmul.f32 %v5517_v58, %v7175_v50  ;;  %3241 = vmatmul.bf16.gmra.mxu0 %v7360_v41  ;;  %v2379_v16 = vadd.f32 %v2187_v54, %v1800_v1  ;;  %v1222_v17 = vadd.f32 %v1030_v3, %v643_v62  ;;  %v2188_v19 = vmul.f32 %v5704_v0, %v7183_v56  ;;  %v5714_v54 = vld [vmem:[%s7119_s3 + $0x5a8] sm:$0xff]  ;;  %v460_v3 = vld [vmem:[%s7119_s3 + $0x490] sm:$0xff] }
  0xb1   : > { %v1228_v18 = vadd.f32 %v1036_v4, %v649_v2  ;;  %v2385_v23 = vadd.f32 %v2193_v61, %v1806_v9  ;;  %v2194_v24 = vmul.f32 %v5710_v5, %v7183_v56  ;;  %v652_v26 = vmul.f32 %v7159_v38, %v458_v6  ;;  %v5720_v61 = vld [vmem:[%s7119_s3 + $0x5d8] sm:$0xff]  ;;  %v466_v4 = vld [vmem:[%s7119_s3 + $0x4c0] sm:$0xff]  ;;  %v5329_v5 = vld [vmem:[%s7119_s3 + $0x4f0] sm:$0xff] }
  0xb2   : > { %v658_v27 = vmul.f32 %v7159_v38, %v464_v7  ;;  %v1801_v29 = vadd.f32 %v1609_v10, %v1222_v17  ;;  %v1039_v31 = vmul.f32 %v5327_v13, %v7167_v44  ;;  %v1045_v34 = vmul.f32 %v5333_v14, %v7167_v44  ;;  %v5522_v13 = vld [vmem:[%s7119_s3 + $0x550] sm:$0xff] }
  0xb3   : > { %v1807_v30 = vadd.f32 %v1615_v12, %v1228_v18  ;;  %3330 = vmatmul.bf16.gmra.mxu1 %v7380_v8  ;;  %v7401_v39 = vpack.c.bf16 %v2385_v23, %v2379_v16  ;;  %v1618_v40 = vmul.f32 %v5520_v20, %v7175_v50  ;;  %v1624_v42 = vmul.f32 %v5526_v21, %v7175_v50  ;;  %v5335_v12 = vld [vmem:[%s7119_s3 + $0x520] sm:$0xff]  ;;  %v5715_v20 = vld [vmem:[%s7119_s3 + $0x5b0] sm:$0xff] }
  0xb4   : > { %v2197_v43 = vmul.f32 %v5713_v22, %v7183_v56  ;;  %v2380_v46 = vadd.f32 %v2188_v19, %v1801_v29  ;;  %v1231_v48 = vadd.f32 %v1039_v31, %v652_v26  ;;  %v1237_v49 = vadd.f32 %v1045_v34, %v658_v27  ;;  %v5528_v19 = vld [vmem:[%s7119_s3 + $0x580] sm:$0xff]  ;;  %v461_v27 = vld [vmem:[%s7119_s3 + $0x498] sm:$0xff]  ;;  %v467_v34 = vld [vmem:[%s7119_s3 + $0x4c8] sm:$0xff] }
  0xb5   : > { %10036 = vst [vmem:[#allocation28_spill] sm:$0xff] %v7401_v39  ;;  %v2386_v47 = vadd.f32 %v2194_v24, %v1807_v30  ;;  %v2203_v55 = vmul.f32 %v5719_v28, %v7183_v56  ;;  %v653_v58 = vmul.f32 %v7159_v38, %v459_v35  ;;  %v659_v59 = vmul.f32 %v7159_v38, %v465_v36  ;;  %v5721_v26 = vld [vmem:[%s7119_s3 + $0x5e0] sm:$0xff]  ;;  %v5330_v35 = vld [vmem:[%s7119_s3 + $0x4f8] sm:$0xff]  ;;  %v5336_v36 = vld [vmem:[%s7119_s3 + $0x528] sm:$0xff] }
  0xb6   : > { %v1040_v60 = vmul.f32 %v5328_v37, %v7167_v44  ;;  %v1810_v0 = vadd.f32 %v1618_v40, %v1231_v48  ;;  %v1816_v1 = vadd.f32 %v1624_v42, %v1237_v49  ;;  %v1046_v2 = vmul.f32 %v5334_v45, %v7167_v44  ;;  %v5523_v45 = vld [vmem:[%s7119_s3 + $0x558] sm:$0xff] }
  0xb7   : > { %v7415_v62 = vpack.c.bf16 %v2386_v47, %v2380_v46  ;;  %3419 = vmatmul.bf16.gmra.mxu2 %v7401_v39  ;;  %v1619_v7 = vmul.f32 %v5521_v51, %v7175_v50  ;;  %v1625_v9 = vmul.f32 %v5527_v52, %v7175_v50  ;;  %v2198_v10 = vmul.f32 %v5714_v54, %v7183_v56  ;;  %v5529_v46 = vld [vmem:[%s7119_s3 + $0x588] sm:$0xff]  ;;  %v5716_v52 = vld [vmem:[%s7119_s3 + $0x5b8] sm:$0xff] }
  0xb8   : > { %v1232_v6 = vadd.f32 %v1040_v60, %v653_v58  ;;  %v2389_v14 = vadd.f32 %v2197_v43, %v1810_v0  ;;  %v2395_v16 = vadd.f32 %v2203_v55, %v1816_v1  ;;  %v1238_v17 = vadd.f32 %v1046_v2, %v659_v59  ;;  %v5722_v60 = vld [vmem:[%s7119_s3 + $0x5e8] sm:$0xff]  ;;  %v476_v0 = vld [vmem:[%s7119_s3 + $0x630] sm:$0xff] }
  0xb9   : > { %10037 = vst [vmem:[#allocation29_spill] sm:$0xff] %v7415_v62  ;;  %v2204_v18 = vmul.f32 %v5720_v61, %v7183_v56  ;;  %v654_v22 = vmul.f32 %v7159_v38, %v460_v3  ;;  %v660_v23 = vmul.f32 %v7159_v38, %v466_v4  ;;  %v1041_v24 = vmul.f32 %v5329_v5, %v7167_v44  ;;  %v470_v61 = vld [vmem:[%s7119_s3 + $0x600] sm:$0xff] }
  0xba   : > { %v1811_v21 = vadd.f32 %v1619_v7, %v1232_v6  ;;  %3508 = vmatmul.bf16.gmra.mxu3 %v7415_v62  ;;  %v7436_v28 = vpack.c.bf16 %v2395_v16, %v2389_v14  ;;  %v1817_v29 = vadd.f32 %v1625_v9, %v1238_v17  ;;  %v1047_v30 = vmul.f32 %v5335_v12, %v7167_v44  ;;  %v5339_v5 = vld [vmem:[%s7119_s3 + $0x660] sm:$0xff]  ;;  %v5345_v6 = vld [vmem:[%s7119_s3 + $0x690] sm:$0xff] }
  0xbb   : > { %v1620_v31 = vmul.f32 %v5522_v13, %v7175_v50  ;;  %v1233_v40 = vadd.f32 %v1041_v24, %v654_v22  ;;  %v1626_v42 = vmul.f32 %v5528_v19, %v7175_v50  ;;  %v2199_v43 = vmul.f32 %v5715_v20, %v7183_v56  ;;  %v5532_v13 = vld [vmem:[%s7119_s3 + $0x6c0] sm:$0xff]  ;;  %v5538_v14 = vld [vmem:[%s7119_s3 + $0x6f0] sm:$0xff] }
  0xbc   : > { %v2390_v37 = vadd.f32 %v2198_v10, %v1811_v21  ;;  %v2396_v47 = vadd.f32 %v2204_v18, %v1817_v29  ;;  %v1239_v48 = vadd.f32 %v1047_v30, %v660_v23  ;;  %v2205_v49 = vmul.f32 %v5721_v26, %v7183_v56  ;;  %v5725_v16 = vld [vmem:[%s7119_s3 + $0x720] sm:$0xff]  ;;  %v5731_v21 = vld [vmem:[%s7119_s3 + $0x750] sm:$0xff]  ;;  %v477_v29 = vld [vmem:[%s7119_s3 + $0x638] sm:$0xff] }
  0xbd   : > { %v655_v51 = vmul.f32 %v7159_v38, %v461_v27  ;;  %v1812_v54 = vadd.f32 %v1620_v31, %v1233_v40  ;;  %v661_v55 = vmul.f32 %v7159_v38, %v467_v34  ;;  %v1042_v58 = vmul.f32 %v5330_v35, %v7167_v44  ;;  %v471_v27 = vld [vmem:[%s7119_s3 + $0x608] sm:$0xff] }
  0xbe   : > { %v1048_v59 = vmul.f32 %v5336_v36, %v7167_v44  ;;  %v7456_v1 = vpack.c.bf16 %v2396_v47, %v2390_v37  ;;  %v1818_v2 = vadd.f32 %v1626_v42, %v1239_v48  ;;  %v1621_v3 = vmul.f32 %v5523_v45, %v7175_v50  ;;  %v5340_v30 = vld [vmem:[%s7119_s3 + $0x668] sm:$0xff]  ;;  %v5346_v37 = vld [vmem:[%s7119_s3 + $0x698] sm:$0xff] }
  0xbf   : > { %v1627_v4 = vmul.f32 %v5529_v46, %v7175_v50  ;;  %v2391_v7 = vadd.f32 %v2199_v43, %v1812_v54  ;;  %v1234_v9 = vadd.f32 %v1042_v58, %v655_v51  ;;  %v2200_v12 = vmul.f32 %v5716_v52, %v7183_v56  ;;  %v5533_v46 = vld [vmem:[%s7119_s3 + $0x6c8] sm:$0xff]  ;;  %v5539_v47 = vld [vmem:[%s7119_s3 + $0x6f8] sm:$0xff] }
  0xc0   : > { %v1240_v10 = vadd.f32 %v1048_v59, %v661_v55  ;;  %3246 = vmatmul.bf16.gmra.mxu0 %v7436_v28  ;;  %v2397_v17 = vadd.f32 %v2205_v49, %v1818_v2  ;;  %v2206_v18 = vmul.f32 %v5722_v60, %v7183_v56  ;;  %v664_v19 = vmul.f32 %v7159_v38, %v470_v61  ;;  %v5726_v48 = vld [vmem:[%s7119_s3 + $0x728] sm:$0xff]  ;;  %v5732_v55 = vld [vmem:[%s7119_s3 + $0x758] sm:$0xff]  ;;  %v478_v2 = vld [vmem:[%s7119_s3 + $0x640] sm:$0xff] }
  0xc1   : > { %v670_v20 = vmul.f32 %v7159_v38, %v476_v0  ;;  %v1813_v22 = vadd.f32 %v1621_v3, %v1234_v9  ;;  %v1051_v24 = vmul.f32 %v5339_v5, %v7167_v44  ;;  %v1057_v26 = vmul.f32 %v5345_v6, %v7167_v44  ;;  %v472_v0 = vld [vmem:[%s7119_s3 + $0x610] sm:$0xff]  ;;  %v5347_v9 = vld [vmem:[%s7119_s3 + $0x6a0] sm:$0xff] }
  0xc2   : > { %v1819_v23 = vadd.f32 %v1627_v4, %v1240_v10  ;;  %v7476_v31 = vpack.c.bf16 %v2397_v17, %v2391_v7  ;;  %v1630_v34 = vmul.f32 %v5532_v13, %v7175_v50  ;;  %v1636_v35 = vmul.f32 %v5538_v14, %v7175_v50  ;;  %v5341_v3 = vld [vmem:[%s7119_s3 + $0x670] sm:$0xff]  ;;  %v5540_v17 = vld [vmem:[%s7119_s3 + $0x700] sm:$0xff] }
  0xc3   : > { %v2209_v36 = vmul.f32 %v5725_v16, %v7183_v56  ;;  %3335 = vmatmul.bf16.gmra.mxu1 %v7456_v1  ;;  %v2392_v40 = vadd.f32 %v2200_v12, %v1813_v22  ;;  %v1243_v43 = vadd.f32 %v1051_v24, %v664_v19  ;;  %v1249_v45 = vadd.f32 %v1057_v26, %v670_v20  ;;  %v5534_v10 = vld [vmem:[%s7119_s3 + $0x6d0] sm:$0xff]  ;;  %v473_v24 = vld [vmem:[%s7119_s3 + $0x618] sm:$0xff] }
  0xc4   : > { %10038 = vst [vmem:[#allocation30_spill] sm:$0xff] %v7476_v31  ;;  %v2398_v42 = vadd.f32 %v2206_v18, %v1819_v23  ;;  %v2215_v49 = vmul.f32 %v5731_v21, %v7183_v56  ;;  %v665_v51 = vmul.f32 %v7159_v38, %v471_v27  ;;  %v671_v52 = vmul.f32 %v7159_v38, %v477_v29  ;;  %v5727_v18 = vld [vmem:[%s7119_s3 + $0x730] sm:$0xff]  ;;  %v5733_v23 = vld [vmem:[%s7119_s3 + $0x760] sm:$0xff] }
  0xc5   : > { %v1052_v54 = vmul.f32 %v5340_v30, %v7167_v44  ;;  %v1822_v59 = vadd.f32 %v1630_v34, %v1243_v43  ;;  %v1828_v60 = vadd.f32 %v1636_v35, %v1249_v45  ;;  %v1058_v61 = vmul.f32 %v5346_v37, %v7167_v44  ;;  %v479_v34 = vld [vmem:[%s7119_s3 + $0x648] sm:$0xff]  ;;  %v5342_v35 = vld [vmem:[%s7119_s3 + $0x678] sm:$0xff] }
  0xc6   : > { %v7491_v58 = vpack.c.bf16 %v2398_v42, %v2392_v40  ;;  %v1631_v5 = vmul.f32 %v5533_v46, %v7175_v50  ;;  %v1637_v6 = vmul.f32 %v5539_v47, %v7175_v50  ;;  %v2210_v7 = vmul.f32 %v5726_v48, %v7183_v56  ;;  %v5535_v45 = vld [vmem:[%s7119_s3 + $0x6d8] sm:$0xff]  ;;  %v5541_v46 = vld [vmem:[%s7119_s3 + $0x708] sm:$0xff] }
  0xc7   : > { %v1244_v4 = vadd.f32 %v1052_v54, %v665_v51  ;;  %3424 = vmatmul.bf16.gmra.mxu2 %v7476_v31  ;;  %v2401_v12 = vadd.f32 %v2209_v36, %v1822_v59  ;;  %v2407_v13 = vadd.f32 %v2215_v49, %v1828_v60  ;;  %v1250_v14 = vadd.f32 %v1058_v61, %v671_v52  ;;  %v5348_v36 = vld [vmem:[%s7119_s3 + $0x6a8] sm:$0xff]  ;;  %v5728_v52 = vld [vmem:[%s7119_s3 + $0x738] sm:$0xff] }
  0xc8   : > { %10039 = vst [vmem:[#allocation31_spill] sm:$0xff] %v7491_v58  ;;  %v2216_v16 = vmul.f32 %v5732_v55, %v7183_v56  ;;  %v666_v20 = vmul.f32 %v7159_v38, %v472_v0  ;;  %v672_v21 = vmul.f32 %v7159_v38, %v478_v2  ;;  %v1053_v22 = vmul.f32 %v5341_v3, %v7167_v44  ;;  %v5734_v61 = vld [vmem:[%s7119_s3 + $0x768] sm:$0xff]  ;;  %v482_v0 = vld [vmem:[%s7119_s3 + $0x780] sm:$0xff]  ;;  %v488_v2 = vld [vmem:[%s7119_s3 + $0x7b0] sm:$0xff] }
  0xc9   : > { %v1823_v19 = vadd.f32 %v1631_v5, %v1244_v4  ;;  %v7511_v26 = vpack.c.bf16 %v2407_v13, %v2401_v12  ;;  %v1829_v27 = vadd.f32 %v1637_v6, %v1250_v14  ;;  %v1059_v29 = vmul.f32 %v5347_v9, %v7167_v44  ;;  %v5357_v9 = vld [vmem:[%s7119_s3 + $0x810] sm:$0xff] }
  0xca   : > { %v1632_v30 = vmul.f32 %v5534_v10, %v7175_v50  ;;  %3513 = vmatmul.bf16.gmra.mxu3 %v7491_v58  ;;  %v1245_v40 = vadd.f32 %v1053_v22, %v666_v20  ;;  %v1638_v42 = vmul.f32 %v5540_v17, %v7175_v50  ;;  %v2211_v43 = vmul.f32 %v5727_v18, %v7183_v56  ;;  %v5550_v17 = vld [vmem:[%s7119_s3 + $0x870] sm:$0xff]  ;;  %v5737_v18 = vld [vmem:[%s7119_s3 + $0x8a0] sm:$0xff]  ;;  %v5798_v58 = vld [vmem:[%s7119_s3 + $0x1028] sm:$0xff] }
  0xcb   : > { %v2402_v37 = vadd.f32 %v2210_v7, %v1823_v19  ;;  %v2408_v47 = vadd.f32 %v2216_v16, %v1829_v27  ;;  %v1251_v48 = vadd.f32 %v1059_v29, %v672_v21  ;;  %v2217_v49 = vmul.f32 %v5733_v23, %v7183_v56  ;;  %v5351_v7 = vld [vmem:[%s7119_s3 + $0x7e0] sm:$0xff]  ;;  %v5743_v23 = vld [vmem:[%s7119_s3 + $0x8d0] sm:$0xff] }
  0xcc   : > { %v667_v51 = vmul.f32 %v7159_v38, %v473_v24  ;;  %v1824_v54 = vadd.f32 %v1632_v30, %v1245_v40  ;;  %v673_v55 = vmul.f32 %v7159_v38, %v479_v34  ;;  %v1054_v59 = vmul.f32 %v5342_v35, %v7167_v44  ;;  %v5544_v16 = vld [vmem:[%s7119_s3 + $0x840] sm:$0xff]  ;;  %v483_v34 = vld [vmem:[%s7119_s3 + $0x788] sm:$0xff]  ;;  %v489_v35 = vld [vmem:[%s7119_s3 + $0x7b8] sm:$0xff] }
  0xcd   : > { %v1060_v60 = vmul.f32 %v5348_v36, %v7167_v44  ;;  %v7532_v3 = vpack.c.bf16 %v2408_v47, %v2402_v37  ;;  %v1830_v4 = vadd.f32 %v1638_v42, %v1251_v48  ;;  %v1633_v5 = vmul.f32 %v5535_v45, %v7175_v50  ;;  %v5352_v36 = vld [vmem:[%s7119_s3 + $0x7e8] sm:$0xff]  ;;  %v5358_v45 = vld [vmem:[%s7119_s3 + $0x818] sm:$0xff] }
  0xce   : > { %v1639_v6 = vmul.f32 %v5541_v46, %v7175_v50  ;;  %v2403_v10 = vadd.f32 %v2211_v43, %v1824_v54  ;;  %v1246_v12 = vadd.f32 %v1054_v59, %v667_v51  ;;  %v2212_v14 = vmul.f32 %v5728_v52, %v7183_v56  ;;  %v5545_v51 = vld [vmem:[%s7119_s3 + $0x848] sm:$0xff]  ;;  %v5551_v52 = vld [vmem:[%s7119_s3 + $0x878] sm:$0xff] }
  0xcf   : > { %v1252_v13 = vadd.f32 %v1060_v60, %v673_v55  ;;  %v2409_v19 = vadd.f32 %v2217_v49, %v1830_v4  ;;  %v2218_v20 = vmul.f32 %v5734_v61, %v7183_v56  ;;  %v676_v21 = vmul.f32 %v7159_v38, %v482_v0  ;;  %v5738_v54 = vld [vmem:[%s7119_s3 + $0x8a8] sm:$0xff]  ;;  %v5744_v0 = vld [vmem:[%s7119_s3 + $0x8d8] sm:$0xff] }
  0xd0   : > { %v682_v22 = vmul.f32 %v7159_v38, %v488_v2  ;;  %3251 = vmatmul.bf16.gmra.mxu0 %v7511_v26  ;;  %v1825_v24 = vadd.f32 %v1633_v5, %v1246_v12  ;;  %v1063_v29 = vmul.f32 %v5351_v7, %v7167_v44  ;;  %v1069_v30 = vmul.f32 %v5357_v9, %v7167_v44  ;;  %v484_v7 = vld [vmem:[%s7119_s3 + $0x790] sm:$0xff]  ;;  %v490_v9 = vld [vmem:[%s7119_s3 + $0x7c0] sm:$0xff] }
  0xd1   : > { %v1831_v27 = vadd.f32 %v1639_v6, %v1252_v13  ;;  %v7552_v37 = vpack.c.bf16 %v2409_v19, %v2403_v10  ;;  %v1642_v40 = vmul.f32 %v5544_v16, %v7175_v50  ;;  %v1648_v42 = vmul.f32 %v5550_v17, %v7175_v50  ;;  %v5353_v10 = vld [vmem:[%s7119_s3 + $0x7f0] sm:$0xff]  ;;  %v5359_v17 = vld [vmem:[%s7119_s3 + $0x820] sm:$0xff] }
  0xd2   : > { %v2221_v43 = vmul.f32 %v5737_v18, %v7183_v56  ;;  %v2404_v46 = vadd.f32 %v2212_v14, %v1825_v24  ;;  %v1255_v48 = vadd.f32 %v1063_v29, %v676_v21  ;;  %v1261_v49 = vadd.f32 %v1069_v30, %v682_v22  ;;  %v5546_v18 = vld [vmem:[%s7119_s3 + $0x850] sm:$0xff] }
  0xd3   : > { %10040 = vst [vmem:[#allocation32_spill] sm:$0xff] %v7552_v37  ;;  %v2410_v47 = vadd.f32 %v2218_v20, %v1831_v27  ;;  %3340 = vmatmul.bf16.gmra.mxu1 %v7532_v3  ;;  %v2227_v55 = vmul.f32 %v5743_v23, %v7183_v56  ;;  %v677_v59 = vmul.f32 %v7159_v38, %v483_v34  ;;  %v5552_v23 = vld [vmem:[%s7119_s3 + $0x880] sm:$0xff]  ;;  %v5739_v24 = vld [vmem:[%s7119_s3 + $0x8b0] sm:$0xff] }
  0xd4   : > { %v683_v60 = vmul.f32 %v7159_v38, %v489_v35  ;;  %v1064_v61 = vmul.f32 %v5352_v36, %v7167_v44  ;;  %v1834_v4 = vadd.f32 %v1642_v40, %v1255_v48  ;;  %v1840_v5 = vadd.f32 %v1648_v42, %v1261_v49  ;;  %v5745_v35 = vld [vmem:[%s7119_s3 + $0x8e0] sm:$0xff]  ;;  %v485_v36 = vld [vmem:[%s7119_s3 + $0x798] sm:$0xff]  ;;  %v5360_v48 = vld [vmem:[%s7119_s3 + $0x828] sm:$0xff] }
  0xd5   : > { %v7567_v2 = vpack.c.bf16 %v2410_v47, %v2404_v46  ;;  %v1070_v6 = vmul.f32 %v5358_v45, %v7167_v44  ;;  %v1643_v13 = vmul.f32 %v5545_v51, %v7175_v50  ;;  %v1649_v14 = vmul.f32 %v5551_v52, %v7175_v50  ;;  %v491_v46 = vld [vmem:[%s7119_s3 + $0x7c8] sm:$0xff]  ;;  %v5354_v47 = vld [vmem:[%s7119_s3 + $0x7f8] sm:$0xff] }
  0xd6   : > { %v1256_v12 = vadd.f32 %v1064_v61, %v677_v59  ;;  %v2222_v16 = vmul.f32 %v5738_v54, %v7183_v56  ;;  %v2413_v19 = vadd.f32 %v2221_v43, %v1834_v4  ;;  %v2419_v20 = vadd.f32 %v2227_v55, %v1840_v5  ;;  %v5547_v55 = vld [vmem:[%s7119_s3 + $0x858] sm:$0xff]  ;;  %v5553_v59 = vld [vmem:[%s7119_s3 + $0x888] sm:$0xff] }
  0xd7   : > { %10041 = vst [vmem:[#allocation33_spill] sm:$0xff] %v7567_v2  ;;  %v1262_v21 = vadd.f32 %v1070_v6, %v683_v60  ;;  %v2228_v22 = vmul.f32 %v5744_v0, %v7183_v56  ;;  %3429 = vmatmul.bf16.gmra.mxu2 %v7552_v37  ;;  %v678_v29 = vmul.f32 %v7159_v38, %v484_v7  ;;  %v5740_v5 = vld [vmem:[%s7119_s3 + $0x8b8] sm:$0xff] }
  0xd8   : > { %v1835_v27 = vadd.f32 %v1643_v13, %v1256_v12  ;;  %v684_v30 = vmul.f32 %v7159_v38, %v490_v9  ;;  %v1065_v34 = vmul.f32 %v5353_v10, %v7167_v44  ;;  %v7587_v40 = vpack.c.bf16 %v2419_v20, %v2413_v19  ;;  %v5746_v12 = vld [vmem:[%s7119_s3 + $0x8e8] sm:$0xff]  ;;  %v494_v13 = vld [vmem:[%s7119_s3 + $0x900] sm:$0xff]  ;;  %v5611_v37 = vld [vmem:[%s7119_s3 + $0xff8] sm:$0xff] }
  0xd9   : > { %v1841_v42 = vadd.f32 %v1649_v14, %v1262_v21  ;;  %v1071_v43 = vmul.f32 %v5359_v17, %v7167_v44  ;;  %v1644_v45 = vmul.f32 %v5546_v18, %v7175_v50  ;;  %v1650_v52 = vmul.f32 %v5552_v23, %v7175_v50  ;;  %v500_v14 = vld [vmem:[%s7119_s3 + $0x930] sm:$0xff]  ;;  %v5363_v20 = vld [vmem:[%s7119_s3 + $0x960] sm:$0xff] }
  0xda   : > { %v2414_v49 = vadd.f32 %v2222_v16, %v1835_v27  ;;  %v1257_v51 = vadd.f32 %v1065_v34, %v678_v29  ;;  %v2223_v54 = vmul.f32 %v5739_v24, %v7183_v56  ;;  %3518 = vmatmul.bf16.gmra.mxu3 %v7567_v2  ;;  %v2229_v0 = vmul.f32 %v5745_v35, %v7183_v56  ;;  %v5369_v21 = vld [vmem:[%s7119_s3 + $0x990] sm:$0xff]  ;;  %v5556_v29 = vld [vmem:[%s7119_s3 + $0x9c0] sm:$0xff] }
  0xdb   : > { %v2420_v60 = vadd.f32 %v2228_v22, %v1841_v42  ;;  %v1263_v61 = vadd.f32 %v1071_v43, %v684_v30  ;;  %v679_v4 = vmul.f32 %v7159_v38, %v485_v36  ;;  %v685_v7 = vmul.f32 %v7159_v38, %v491_v46  ;;  %v5562_v30 = vld [vmem:[%s7119_s3 + $0x9f0] sm:$0xff]  ;;  %v5749_v34 = vld [vmem:[%s7119_s3 + $0xa20] sm:$0xff] }
  0xdc   : > { %v1836_v6 = vadd.f32 %v1644_v45, %v1257_v51  ;;  %v1066_v9 = vmul.f32 %v5354_v47, %v7167_v44  ;;  %v1072_v10 = vmul.f32 %v5360_v48, %v7167_v44  ;;  %v1645_v18 = vmul.f32 %v5547_v55, %v7175_v50  ;;  %v5755_v45 = vld [vmem:[%s7119_s3 + $0xa50] sm:$0xff]  ;;  %v495_v51 = vld [vmem:[%s7119_s3 + $0x908] sm:$0xff] }
  0xdd   : > { %v7608_v16 = vpack.c.bf16 %v2420_v60, %v2414_v49  ;;  %v1842_v17 = vadd.f32 %v1650_v52, %v1263_v61  ;;  %v1651_v19 = vmul.f32 %v5553_v59, %v7175_v50  ;;  %v2224_v27 = vmul.f32 %v5740_v5, %v7183_v56  ;;  %v501_v52 = vld [vmem:[%s7119_s3 + $0x938] sm:$0xff] }
  0xde   : > { %v2415_v22 = vadd.f32 %v2223_v54, %v1836_v6  ;;  %v1258_v23 = vadd.f32 %v1066_v9, %v679_v4  ;;  %v1264_v24 = vadd.f32 %v1072_v10, %v685_v7  ;;  %v2230_v36 = vmul.f32 %v5746_v12, %v7183_v56  ;;  %v5364_v54 = vld [vmem:[%s7119_s3 + $0x968] sm:$0xff]  ;;  %v5563_v10 = vld [vmem:[%s7119_s3 + $0x9f8] sm:$0xff] }
  0xdf   : > { %v2421_v35 = vadd.f32 %v2229_v0, %v1842_v17  ;;  %v688_v42 = vmul.f32 %v7159_v38, %v494_v13  ;;  %v694_v43 = vmul.f32 %v7159_v38, %v500_v14  ;;  %v1075_v48 = vmul.f32 %v5363_v20, %v7167_v44  ;;  %v5370_v0 = vld [vmem:[%s7119_s3 + $0x998] sm:$0xff]  ;;  %v5557_v9 = vld [vmem:[%s7119_s3 + $0x9c8] sm:$0xff] }
  0xe0   : > { %v1837_v46 = vadd.f32 %v1645_v18, %v1258_v23  ;;  %v1843_v47 = vadd.f32 %v1651_v19, %v1264_v24  ;;  %v1081_v49 = vmul.f32 %v5369_v21, %v7167_v44  ;;  %3256 = vmatmul.bf16.gmra.mxu0 %v7587_v40  ;;  %v1654_v59 = vmul.f32 %v5556_v29, %v7175_v50  ;;  %v5750_v12 = vld [vmem:[%s7119_s3 + $0xa28] sm:$0xff]  ;;  %v5756_v19 = vld [vmem:[%s7119_s3 + $0xa58] sm:$0xff]  ;;  %v496_v24 = vld [vmem:[%s7119_s3 + $0x910] sm:$0xff] }
  0xe1   : > { %v7628_v55 = vpack.c.bf16 %v2421_v35, %v2415_v22  ;;  %v1660_v60 = vmul.f32 %v5562_v30, %v7175_v50  ;;  %v2233_v61 = vmul.f32 %v5749_v34, %v7183_v56  ;;  %v1267_v6 = vadd.f32 %v1075_v48, %v688_v42  ;;  %v5365_v29 = vld [vmem:[%s7119_s3 + $0x970] sm:$0xff]  ;;  %v5371_v42 = vld [vmem:[%s7119_s3 + $0x9a0] sm:$0xff] }
  0xe2   : > { %v2416_v4 = vadd.f32 %v2224_v27, %v1837_v46  ;;  %v2422_v5 = vadd.f32 %v2230_v36, %v1843_v47  ;;  %v1273_v7 = vadd.f32 %v1081_v49, %v694_v43  ;;  %v2239_v13 = vmul.f32 %v5755_v45, %v7183_v56  ;;  %v502_v27 = vld [vmem:[%s7119_s3 + $0x940] sm:$0xff]  ;;  %v5558_v43 = vld [vmem:[%s7119_s3 + $0x9d0] sm:$0xff] }
  0xe3   : > { %10042 = vst [vmem:[#allocation34_spill] sm:$0xff] %v7628_v55  ;;  %v689_v14 = vmul.f32 %v7159_v38, %v495_v51  ;;  %v695_v17 = vmul.f32 %v7159_v38, %v501_v52  ;;  %v1076_v18 = vmul.f32 %v5364_v54, %v7167_v44  ;;  %3345 = vmatmul.bf16.gmra.mxu1 %v7608_v16  ;;  %v5564_v49 = vld [vmem:[%s7119_s3 + $0xa00] sm:$0xff]  ;;  %v5751_v51 = vld [vmem:[%s7119_s3 + $0xa30] sm:$0xff] }
  0xe4   : > { %v7643_v20 = vpack.c.bf16 %v2422_v5, %v2416_v4  ;;  %v1846_v21 = vadd.f32 %v1654_v59, %v1267_v6  ;;  %v1852_v22 = vadd.f32 %v1660_v60, %v1273_v7  ;;  %v1082_v23 = vmul.f32 %v5370_v0, %v7167_v44  ;;  %v5757_v0 = vld [vmem:[%s7119_s3 + $0xa60] sm:$0xff] }
  0xe5   : > { %v1268_v30 = vadd.f32 %v1076_v18, %v689_v14  ;;  %v1655_v34 = vmul.f32 %v5557_v9, %v7175_v50  ;;  %v1661_v35 = vmul.f32 %v5563_v10, %v7175_v50  ;;  %v2234_v36 = vmul.f32 %v5750_v12, %v7183_v56  ;;  %v503_v9 = vld [vmem:[%s7119_s3 + $0x948] sm:$0xff]  ;;  %v5366_v10 = vld [vmem:[%s7119_s3 + $0x978] sm:$0xff] }
  0xe6   : > { %10043 = vst [vmem:[#allocation35_spill] sm:$0xff] %v7643_v20  ;;  %v2425_v45 = vadd.f32 %v2233_v61, %v1846_v21  ;;  %v2431_v46 = vadd.f32 %v2239_v13, %v1852_v22  ;;  %v1274_v47 = vadd.f32 %v1082_v23, %v695_v17  ;;  %v2240_v48 = vmul.f32 %v5756_v19, %v7183_v56  ;;  %v497_v61 = vld [vmem:[%s7119_s3 + $0x918] sm:$0xff]  ;;  %v5372_v12 = vld [vmem:[%s7119_s3 + $0x9a8] sm:$0xff] }
  0xe7   : > { %v1847_v52 = vadd.f32 %v1655_v34, %v1268_v30  ;;  %v690_v54 = vmul.f32 %v7159_v38, %v496_v24  ;;  %v696_v59 = vmul.f32 %v7159_v38, %v502_v27  ;;  %v1077_v60 = vmul.f32 %v5365_v29, %v7167_v44  ;;  %3434 = vmatmul.bf16.gmra.mxu2 %v7628_v55  ;;  %v5559_v19 = vld [vmem:[%s7119_s3 + $0x9d8] sm:$0xff]  ;;  %v5565_v21 = vld [vmem:[%s7119_s3 + $0xa08] sm:$0xff] }
  0xe8   : > { %v7663_v4 = vpack.c.bf16 %v2431_v46, %v2425_v45  ;;  %v1853_v5 = vadd.f32 %v1661_v35, %v1274_v47  ;;  %v1083_v6 = vmul.f32 %v5371_v42, %v7167_v44  ;;  %v1656_v7 = vmul.f32 %v5558_v43, %v7175_v50  ;;  %v5752_v29 = vld [vmem:[%s7119_s3 + $0xa38] sm:$0xff]  ;;  %v5758_v42 = vld [vmem:[%s7119_s3 + $0xa68] sm:$0xff]  ;;  %v506_v43 = vld [vmem:[%s7119_s3 + $0xa80] sm:$0xff] }
  0xe9   : > { %v2426_v13 = vadd.f32 %v2234_v36, %v1847_v52  ;;  %v1269_v14 = vadd.f32 %v1077_v60, %v690_v54  ;;  %v1662_v17 = vmul.f32 %v5564_v49, %v7175_v50  ;;  %v2235_v18 = vmul.f32 %v5751_v51, %v7183_v56  ;;  %v512_v45 = vld [vmem:[%s7119_s3 + $0xab0] sm:$0xff]  ;;  %v5375_v51 = vld [vmem:[%s7119_s3 + $0xae0] sm:$0xff]  ;;  %v5595_v55 = vld [vmem:[%s7119_s3 + $0xe58] sm:$0xff] }
  0xea   : > { %v2432_v22 = vadd.f32 %v2240_v48, %v1853_v5  ;;  %v1275_v23 = vadd.f32 %v1083_v6, %v696_v59  ;;  %v2241_v24 = vmul.f32 %v5757_v0, %v7183_v56  ;;  %v691_v27 = vmul.f32 %v7159_v38, %v497_v61  ;;  %3523 = vmatmul.bf16.gmra.mxu3 %v7643_v20  ;;  %v5381_v52 = vld [vmem:[%s7119_s3 + $0xb10] sm:$0xff]  ;;  %v5568_v61 = vld [vmem:[%s7119_s3 + $0xb40] sm:$0xff] }
  0xeb   : > { %v1848_v30 = vadd.f32 %v1656_v7, %v1269_v14  ;;  %v697_v34 = vmul.f32 %v7159_v38, %v503_v9  ;;  %v1078_v35 = vmul.f32 %v5366_v10, %v7167_v44  ;;  %v1084_v36 = vmul.f32 %v5372_v12, %v7167_v44  ;;  %v5574_v5 = vld [vmem:[%s7119_s3 + $0xb70] sm:$0xff]  ;;  %v5761_v6 = vld [vmem:[%s7119_s3 + $0xba0] sm:$0xff] }
  0xec   : > { %v7684_v46 = vpack.c.bf16 %v2432_v22, %v2426_v13  ;;  %v1854_v47 = vadd.f32 %v1662_v17, %v1275_v23  ;;  %v1657_v48 = vmul.f32 %v5559_v19, %v7175_v50  ;;  %v1663_v49 = vmul.f32 %v5565_v21, %v7175_v50  ;;  %v5767_v13 = vld [vmem:[%s7119_s3 + $0xbd0] sm:$0xff]  ;;  %v507_v21 = vld [vmem:[%s7119_s3 + $0xa88] sm:$0xff]  ;;  %v513_v22 = vld [vmem:[%s7119_s3 + $0xab8] sm:$0xff] }
  0xed   : > { %v2427_v54 = vadd.f32 %v2235_v18, %v1848_v30  ;;  %v1270_v59 = vadd.f32 %v1078_v35, %v691_v27  ;;  %v1276_v60 = vadd.f32 %v1084_v36, %v697_v34  ;;  %v2236_v0 = vmul.f32 %v5752_v29, %v7183_v56  ;;  %v5376_v23 = vld [vmem:[%s7119_s3 + $0xae8] sm:$0xff]  ;;  %v5382_v34 = vld [vmem:[%s7119_s3 + $0xb18] sm:$0xff]  ;;  %v5594_v20 = vld [vmem:[%s7119_s3 + $0xe50] sm:$0xff] }
  0xee   : > { %v2433_v7 = vadd.f32 %v2241_v24, %v1854_v47  ;;  %v2242_v9 = vmul.f32 %v5758_v42, %v7183_v56  ;;  %v700_v10 = vmul.f32 %v7159_v38, %v506_v43  ;;  %v706_v12 = vmul.f32 %v7159_v38, %v512_v45  ;;  %v5569_v45 = vld [vmem:[%s7119_s3 + $0xb48] sm:$0xff]  ;;  %v5575_v47 = vld [vmem:[%s7119_s3 + $0xb78] sm:$0xff] }
  0xef   : > { %v1849_v14 = vadd.f32 %v1657_v48, %v1270_v59  ;;  %v1855_v17 = vadd.f32 %v1663_v49, %v1276_v60  ;;  %v1087_v18 = vmul.f32 %v5375_v51, %v7167_v44  ;;  %v1093_v19 = vmul.f32 %v5381_v52, %v7167_v44  ;;  %v5762_v48 = vld [vmem:[%s7119_s3 + $0xba8] sm:$0xff]  ;;  %v5768_v59 = vld [vmem:[%s7119_s3 + $0xbd8] sm:$0xff] }
  0xf0   : > { %v7703_v24 = vpack.c.bf16 %v2433_v7, %v2427_v54  ;;  %v1666_v27 = vmul.f32 %v5568_v61, %v7175_v50  ;;  %v1672_v29 = vmul.f32 %v5574_v5, %v7175_v50  ;;  %v2245_v30 = vmul.f32 %v5761_v6, %v7183_v56  ;;  %3261 = vmatmul.bf16.gmra.mxu0 %v7663_v4  ;;  %v508_v6 = vld [vmem:[%s7119_s3 + $0xa90] sm:$0xff]  ;;  %v514_v7 = vld [vmem:[%s7119_s3 + $0xac0] sm:$0xff] }
  0xf1   : > { %v2428_v35 = vadd.f32 %v2236_v0, %v1849_v14  ;;  %v2434_v36 = vadd.f32 %v2242_v9, %v1855_v17  ;;  %v1279_v42 = vadd.f32 %v1087_v18, %v700_v10  ;;  %v1285_v43 = vadd.f32 %v1093_v19, %v706_v12  ;;  %v5377_v9 = vld [vmem:[%s7119_s3 + $0xaf0] sm:$0xff]  ;;  %v5383_v17 = vld [vmem:[%s7119_s3 + $0xb20] sm:$0xff] }
  0xf2   : > { %10044 = vst [vmem:[#allocation36_spill] sm:$0xff] %v7703_v24  ;;  %v2251_v49 = vmul.f32 %v5767_v13, %v7183_v56  ;;  %v701_v51 = vmul.f32 %v7159_v38, %v507_v21  ;;  %v707_v52 = vmul.f32 %v7159_v38, %v513_v22  ;;  %v1088_v54 = vmul.f32 %v5376_v23, %v7167_v44  ;;  %v5570_v18 = vld [vmem:[%s7119_s3 + $0xb50] sm:$0xff] }
  0xf3   : > { %v7718_v60 = vpack.c.bf16 %v2434_v36, %v2428_v35  ;;  %v1858_v0 = vadd.f32 %v1666_v27, %v1279_v42  ;;  %v1864_v61 = vadd.f32 %v1672_v29, %v1285_v43  ;;  %v1094_v5 = vmul.f32 %v5382_v34, %v7167_v44  ;;  %3350 = vmatmul.bf16.gmra.mxu1 %v7684_v46  ;;  %v5576_v27 = vld [vmem:[%s7119_s3 + $0xb80] sm:$0xff]  ;;  %v5763_v29 = vld [vmem:[%s7119_s3 + $0xbb0] sm:$0xff] }
  0xf4   : > { %v1280_v10 = vadd.f32 %v1088_v54, %v701_v51  ;;  %v1667_v12 = vmul.f32 %v5569_v45, %v7175_v50  ;;  %v1673_v13 = vmul.f32 %v5575_v47, %v7175_v50  ;;  %v2246_v14 = vmul.f32 %v5762_v48, %v7183_v56  ;;  %v5769_v43 = vld [vmem:[%s7119_s3 + $0xbe0] sm:$0xff]  ;;  %v515_v51 = vld [vmem:[%s7119_s3 + $0xac8] sm:$0xff] }
  0xf5   : > { %10045 = vst [vmem:[#allocation37_spill] sm:$0xff] %v7718_v60  ;;  %v2437_v19 = vadd.f32 %v2245_v30, %v1858_v0  ;;  %v2443_v21 = vadd.f32 %v2251_v49, %v1864_v61  ;;  %v1286_v22 = vadd.f32 %v1094_v5, %v707_v52  ;;  %v2252_v23 = vmul.f32 %v5768_v59, %v7183_v56  ;;  %v509_v30 = vld [vmem:[%s7119_s3 + $0xa98] sm:$0xff]  ;;  %v5384_v54 = vld [vmem:[%s7119_s3 + $0xb28] sm:$0xff] }
  0xf6   : > { %v1859_v34 = vadd.f32 %v1667_v12, %v1280_v10  ;;  %v702_v35 = vmul.f32 %v7159_v38, %v508_v6  ;;  %v708_v36 = vmul.f32 %v7159_v38, %v514_v7  ;;  %v1089_v42 = vmul.f32 %v5377_v9, %v7167_v44  ;;  %v5378_v52 = vld [vmem:[%s7119_s3 + $0xaf8] sm:$0xff]  ;;  %v5577_v7 = vld [vmem:[%s7119_s3 + $0xb88] sm:$0xff] }
  0xf7   : > { %v7738_v45 = vpack.c.bf16 %v2443_v21, %v2437_v19  ;;  %v1865_v47 = vadd.f32 %v1673_v13, %v1286_v22  ;;  %v1095_v48 = vmul.f32 %v5383_v17, %v7167_v44  ;;  %v1668_v49 = vmul.f32 %v5570_v18, %v7175_v50  ;;  %3439 = vmatmul.bf16.gmra.mxu2 %v7703_v24  ;;  %v5571_v6 = vld [vmem:[%s7119_s3 + $0xb58] sm:$0xff]  ;;  %v5770_v22 = vld [vmem:[%s7119_s3 + $0xbe8] sm:$0xff] }
  0xf8   : > { %v2438_v59 = vadd.f32 %v2246_v14, %v1859_v34  ;;  %v1281_v0 = vadd.f32 %v1089_v42, %v702_v35  ;;  %v1674_v61 = vmul.f32 %v5576_v27, %v7175_v50  ;;  %v2247_v5 = vmul.f32 %v5763_v29, %v7183_v56  ;;  %v5764_v17 = vld [vmem:[%s7119_s3 + $0xbb8] sm:$0xff]  ;;  %v518_v27 = vld [vmem:[%s7119_s3 + $0xc00] sm:$0xff]  ;;  %v524_v42 = vld [vmem:[%s7119_s3 + $0xc30] sm:$0xff] }
  0xf9   : > { %10046 = vst [vmem:[#allocation38_spill] sm:$0xff] %v7738_v45  ;;  %v2444_v9 = vadd.f32 %v2252_v23, %v1865_v47  ;;  %v1287_v10 = vadd.f32 %v1095_v48, %v708_v36  ;;  %v2253_v12 = vmul.f32 %v5769_v43, %v7183_v56  ;;  %v703_v13 = vmul.f32 %v7159_v38, %v509_v30  ;;  %v2737_v23 = vld [vmem:[#allocation10] sm:$0x3] }
  0xfa   : > { %v1860_v18 = vadd.f32 %v1668_v49, %v1281_v0  ;;  %v709_v14 = vmul.f32 %v7159_v38, %v515_v51  ;;  %v1090_v19 = vmul.f32 %v5378_v52, %v7167_v44  ;;  %v1096_v21 = vmul.f32 %v5384_v54, %v7167_v44  ;;  %3528 = vmatmul.bf16.gmra.mxu3 %v7718_v60  ;;  %v5387_v43 = vld [vmem:[%s7119_s3 + $0xc60] sm:$0xff]  ;;  %v5393_v51 = vld [vmem:[%s7119_s3 + $0xc90] sm:$0xff] }
  0xfb   : > { %v7759_v29 = vpack.c.bf16 %v2444_v9, %v2438_v59  ;;  %v1866_v34 = vadd.f32 %v1674_v61, %v1287_v10  ;;  %v1669_v35 = vmul.f32 %v5571_v6, %v7175_v50  ;;  %v1675_v36 = vmul.f32 %v5577_v7, %v7175_v50  ;;  %v5580_v52 = vld [vmem:[%s7119_s3 + $0xcc0] sm:$0xff]  ;;  %v5586_v54 = vld [vmem:[%s7119_s3 + $0xcf0] sm:$0xff] }
  0xfc   : > { %v2439_v30 = vadd.f32 %v2247_v5, %v1860_v18  ;;  %v1282_v47 = vadd.f32 %v1090_v19, %v703_v13  ;;  %v1288_v48 = vadd.f32 %v1096_v21, %v709_v14  ;;  %v2248_v49 = vmul.f32 %v5764_v17, %v7183_v56  ;;  %v5773_v5 = vld [vmem:[%s7119_s3 + $0xd20] sm:$0xff]  ;;  %v5779_v17 = vld [vmem:[%s7119_s3 + $0xd50] sm:$0xff]  ;;  %v525_v18 = vld [vmem:[%s7119_s3 + $0xc38] sm:$0xff] }
  0xfd   : > { %10047 = vst [vmem:[#allocation39_spill] sm:$0xff] %v7759_v29  ;;  %v2445_v59 = vadd.f32 %v2253_v12, %v1866_v34  ;;  %v2254_v0 = vmul.f32 %v5770_v22, %v7183_v56  ;;  %v7770_v61 = vperm.slane %v2737_v23, 0  ;;  %v712_v6 = vmul.f32 %v7159_v38, %v518_v27  ;;  %v519_v12 = vld [vmem:[%s7119_s3 + $0xc08] sm:$0xff]  ;;  %v5394_v27 = vld [vmem:[%s7119_s3 + $0xc98] sm:$0xff]  ;;  %v5781_v60 = vld [vmem:[%s7119_s3 + $0xd60] sm:$0xff] }
  0xfe   : > { %v1861_v7 = vadd.f32 %v1669_v35, %v1282_v47  ;;  %v1867_v9 = vadd.f32 %v1675_v36, %v1288_v48  ;;  %v718_v10 = vmul.f32 %v7159_v38, %v524_v42  ;;  %v1099_v13 = vmul.f32 %v5387_v43, %v7167_v44  ;;  %v5388_v23 = vld [vmem:[%s7119_s3 + $0xc68] sm:$0xff] }
  0xff   : > { %v7779_v14 = vpack.c.bf16 %v2445_v59, %v2439_v30  ;;  %v1105_v19 = vmul.f32 %v5393_v51, %v7167_v44  ;;  %v1678_v21 = vmul.f32 %v5580_v52, %v7175_v50  ;;  %v1684_v22 = vmul.f32 %v5586_v54, %v7175_v50  ;;  %v5581_v43 = vld [vmem:[%s7119_s3 + $0xcc8] sm:$0xff]  ;;  %v5587_v30 = vld [vmem:[%s7119_s3 + $0xcf8] sm:$0xff] }
 0x100   : > { %v2440_v34 = vadd.f32 %v2248_v49, %v1861_v7  ;;  %v2446_v35 = vadd.f32 %v2254_v0, %v1867_v9  ;;  %v1291_v36 = vadd.f32 %v1099_v13, %v712_v6  ;;  %v2257_v42 = vmul.f32 %v5773_v5, %v7183_v56  ;;  %v5774_v47 = vld [vmem:[%s7119_s3 + $0xd28] sm:$0xff]  ;;  %3266 = vmatmul.bf16.gmra.mxu0 %v7738_v45  ;;  %v5780_v54 = vld [vmem:[%s7119_s3 + $0xd58] sm:$0xff]  ;;  %v520_v7 = vld [vmem:[%s7119_s3 + $0xc10] sm:$0xff] }
 0x101   : > { %10048 = vst [vmem:[#allocation40_spill] sm:$0xff] %v7779_v14  ;;  %v1297_v48 = vadd.f32 %v1105_v19, %v718_v10  ;;  %v2263_v51 = vmul.f32 %v5779_v17, %v7183_v56  ;;  %v713_v52 = vmul.f32 %v7159_v38, %v519_v12  ;;  %v719_v49 = vmul.f32 %v7159_v38, %v525_v18  ;;  %v526_v9 = vld [vmem:[%s7119_s3 + $0xc40] sm:$0xff]  ;;  %v5389_v10 = vld [vmem:[%s7119_s3 + $0xc70] sm:$0xff]  ;;  %v8399_v45 = vld [vmem:[#allocation9 + $0x58] sm:$0xf0] }
 0x102   : > { %v7795_v59 = vpack.c.bf16 %v2446_v35, %v2440_v34  ;;  %v1870_v0 = vadd.f32 %v1678_v21, %v1291_v36  ;;  %v1100_v6 = vmul.f32 %v5388_v23, %v7167_v44  ;;  %v1106_v5 = vmul.f32 %v5394_v27, %v7167_v44  ;;  %v5395_v19 = vld [vmem:[%s7119_s3 + $0xca0] sm:$0xff]  ;;  %v5582_v34 = vld [vmem:[%s7119_s3 + $0xcd0] sm:$0xff] }
 0x103   : > { %v1876_v13 = vadd.f32 %v1684_v22, %v1297_v48  ;;  %v1679_v17 = vmul.f32 %v5581_v43, %v7175_v50  ;;  %v1685_v12 = vmul.f32 %v5587_v30, %v7175_v50  ;;  %v2258_v18 = vmul.f32 %v5774_v47, %v7183_v56  ;;  %3355 = vmatmul.bf16.gmra.mxu1 %v7759_v29  ;;  %v5588_v22 = vld [vmem:[%s7119_s3 + $0xd00] sm:$0xff]  ;;  %v5775_v36 = vld [vmem:[%s7119_s3 + $0xd30] sm:$0xff] }
 0x104   : > { %10049 = vst [vmem:[#allocation41_spill] sm:$0xff] %v7795_v59  ;;  %v2449_v21 = vadd.f32 %v2257_v42, %v1870_v0  ;;  %v1292_v23 = vadd.f32 %v1100_v6, %v713_v52  ;;  %v1298_v27 = vadd.f32 %v1106_v5, %v719_v49  ;;  %v2264_v35 = vmul.f32 %v5780_v54, %v7183_v56  ;;  %v521_v54 = vld [vmem:[%s7119_s3 + $0xc18] sm:$0xff]  ;;  %v527_v0 = vld [vmem:[%s7119_s3 + $0xc48] sm:$0xff]  ;;  %v8397_v29 = vld [vmem:[#allocation9 + $0x54] sm:$0xf] }
 0x105   : > { %v2455_v43 = vadd.f32 %v2263_v51, %v1876_v13  ;;  %v714_v30 = vmul.f32 %v7159_v38, %v520_v7  ;;  %v720_v47 = vmul.f32 %v7159_v38, %v526_v9  ;;  %v1101_v48 = vmul.f32 %v5389_v10, %v7167_v44  ;;  %v5390_v51 = vld [vmem:[%s7119_s3 + $0xc78] sm:$0xff]  ;;  %v5396_v10 = vld [vmem:[%s7119_s3 + $0xca8] sm:$0xff] }
 0x106   : > { %v1871_v24 = vadd.f32 %v1679_v17, %v1292_v23  ;;  %v1877_v42 = vadd.f32 %v1685_v12, %v1298_v27  ;;  %v1107_v52 = vmul.f32 %v5395_v19, %v7167_v44  ;;  %v1680_v49 = vmul.f32 %v5582_v34, %v7175_v50  ;;  %v5583_v13 = vld [vmem:[%s7119_s3 + $0xcd8] sm:$0xff] }
 0x107   : > { %v7820_v6 = vpack.c.bf16 %v2455_v43, %v2449_v21  ;;  %v1293_v5 = vadd.f32 %v1101_v48, %v714_v30  ;;  %v1686_v7 = vmul.f32 %v5588_v22, %v7175_v50  ;;  %v2259_v9 = vmul.f32 %v5775_v36, %v7183_v56  ;;  %3444 = vmatmul.bf16.gmra.mxu2 %v7779_v14  ;;  %v5589_v21 = vld [vmem:[%s7119_s3 + $0xd08] sm:$0xff]  ;;  %v5776_v23 = vld [vmem:[%s7119_s3 + $0xd38] sm:$0xff]  ;;  %v536_v48 = vld [vmem:[%s7119_s3 + $0xdb0] sm:$0xff] }
 0x108   : > { %v2450_v17 = vadd.f32 %v2258_v18, %v1871_v24  ;;  %v2456_v12 = vadd.f32 %v2264_v35, %v1877_v42  ;;  %v1299_v19 = vadd.f32 %v1107_v52, %v720_v47  ;;  %v2265_v34 = vmul.f32 %v5781_v60, %v7183_v56  ;;  %v5782_v30 = vld [vmem:[%s7119_s3 + $0xd68] sm:$0xff]  ;;  %v530_v24 = vld [vmem:[%s7119_s3 + $0xd80] sm:$0xff]  ;;  %v5405_v52 = vld [vmem:[%s7119_s3 + $0xe10] sm:$0xff] }
 0x109   : > { %10050 = vst [vmem:[#allocation42_spill] sm:$0xff] %v7820_v6  ;;  %v1872_v27 = vadd.f32 %v1680_v49, %v1293_v5  ;;  %v715_v22 = vmul.f32 %v7159_v38, %v521_v54  ;;  %v721_v43 = vmul.f32 %v7159_v38, %v527_v0  ;;  %v1102_v36 = vmul.f32 %v5390_v51, %v7167_v44  ;;  %v5399_v42 = vld [vmem:[%s7119_s3 + $0xde0] sm:$0xff]  ;;  %v5593_v14 = vld [vmem:[%s7119_s3 + $0xe48] sm:$0xff] }
 0x10a   : > { %v7835_v18 = vpack.c.bf16 %v2456_v12, %v2450_v17  ;;  %v1878_v35 = vadd.f32 %v1686_v7, %v1299_v19  ;;  %v1108_v47 = vmul.f32 %v5396_v10, %v7167_v44  ;;  %v1681_v60 = vmul.f32 %v5583_v13, %v7175_v50  ;;  %3533 = vmatmul.bf16.gmra.mxu3 %v7795_v59  ;;  %v5592_v5 = vld [vmem:[%s7119_s3 + $0xe40] sm:$0xff]  ;;  %v5598_v7 = vld [vmem:[%s7119_s3 + $0xe70] sm:$0xff] }
 0x10b   : > { %v2451_v49 = vadd.f32 %v2259_v9, %v1872_v27  ;;  %v1294_v54 = vadd.f32 %v1102_v36, %v715_v22  ;;  %v1687_v0 = vmul.f32 %v5589_v21, %v7175_v50  ;;  %v2260_v51 = vmul.f32 %v5776_v23, %v7183_v56  ;;  %v5785_v23 = vld [vmem:[%s7119_s3 + $0xea0] sm:$0xff]  ;;  %v5791_v27 = vld [vmem:[%s7119_s3 + $0xed0] sm:$0xff]  ;;  %v531_v22 = vld [vmem:[%s7119_s3 + $0xd88] sm:$0xff] }
 0x10c   : > { %10051 = vst [vmem:[#allocation43_spill] sm:$0xff] %v7835_v18  ;;  %v2457_v17 = vadd.f32 %v2265_v34, %v1878_v35  ;;  %v1300_v10 = vadd.f32 %v1108_v47, %v721_v43  ;;  %v2266_v13 = vmul.f32 %v5782_v30, %v7183_v56  ;;  %v724_v12 = vmul.f32 %v7159_v38, %v530_v24  ;;  %v537_v35 = vld [vmem:[%s7119_s3 + $0xdb8] sm:$0xff]  ;;  %v5400_v47 = vld [vmem:[%s7119_s3 + $0xde8] sm:$0xff] }
 0x10d   : > { %v1873_v19 = vadd.f32 %v1681_v60, %v1294_v54  ;;  %v730_v59 = vmul.f32 %v7159_v38, %v536_v48  ;;  %v1111_v9 = vmul.f32 %v5399_v42, %v7167_v44  ;;  %v1117_v21 = vmul.f32 %v5405_v52, %v7167_v44  ;;  %v3232_v34 = vpop.f32.mrf.mxu0  ;;  %v5406_v54 = vld [vmem:[%s7119_s3 + $0xe18] sm:$0xff] }
 0x10e   : > { %v7855_v36 = vpack.c.bf16 %v2457_v17, %v2451_v49  ;;  %v1879_v43 = vadd.f32 %v1687_v0, %v1300_v10  ;;  %v1690_v30 = vmul.f32 %v5592_v5, %v7175_v50  ;;  %v1696_v24 = vmul.f32 %v5598_v7, %v7175_v50  ;;  %v5599_v7 = vld [vmem:[%s7119_s3 + $0xe78] sm:$0xff] }
 0x10f   : > { %v3233_v60 = vadd.f32 %v3232_v34, %v7770_v61  ;;  %v2452_v48 = vadd.f32 %v2260_v51, %v1873_v19  ;;  %v1303_v42 = vadd.f32 %v1111_v9, %v724_v12  ;;  %v1309_v52 = vadd.f32 %v1117_v21, %v730_v59  ;;  %v5786_v19 = vld [vmem:[%s7119_s3 + $0xea8] sm:$0xff]  ;;  %v5792_v9 = vld [vmem:[%s7119_s3 + $0xed8] sm:$0xff]  ;;  %v532_v21 = vld [vmem:[%s7119_s3 + $0xd90] sm:$0xff] }
 0x110   : > { %10052 = vst [vmem:[#allocation44_spill] sm:$0xff] %v7855_v36  ;;  %v2458_v49 = vadd.f32 %v2266_v13, %v1879_v43  ;;  %v2269_v17 = vmul.f32 %v5785_v23, %v7183_v56  ;;  %v2275_v0 = vmul.f32 %v5791_v27, %v7183_v56  ;;  %v725_v5 = vmul.f32 %v7159_v38, %v531_v22  ;;  %v3321_v10 = vpop.f32.mrf.mxu1  ;;  %v538_v43 = vld [vmem:[%s7119_s3 + $0xdc0] sm:$0xff] }
 0x111   : > { %3271 = vmatmul.bf16.gmra.mxu0 %v7820_v6  ;;  %v1882_v51 = vadd.f32 %v1690_v30, %v1303_v42  ;;  %v1888_v12 = vadd.f32 %v1696_v24, %v1309_v52  ;;  %v731_v59 = vmul.f32 %v7159_v38, %v537_v35  ;;  %v1112_v13 = vmul.f32 %v5400_v47, %v7167_v44  ;;  %v5401_v30 = vld [vmem:[%s7119_s3 + $0xdf0] sm:$0xff]  ;;  %v5407_v52 = vld [vmem:[%s7119_s3 + $0xe20] sm:$0xff] }
 0x112   : > { %v7874_v23 = vadd.f32 %v3321_v10, %v3233_v60  ;;  %v7876_v27 = vpack.c.bf16 %v2458_v49, %v2452_v48  ;;  %v1118_v22 = vmul.f32 %v5406_v54, %v7167_v44  ;;  %v1691_v34 = vmul.f32 %v5593_v14, %v7175_v50  ;;  %v5600_v60 = vld [vmem:[%s7119_s3 + $0xe80] sm:$0xff] }
 0x113   : > { %v2461_v24 = vadd.f32 %v2269_v17, %v1882_v51  ;;  %v2467_v35 = vadd.f32 %v2275_v0, %v1888_v12  ;;  %v1304_v42 = vadd.f32 %v1112_v13, %v725_v5  ;;  %v1697_v47 = vmul.f32 %v5599_v7, %v7175_v50  ;;  %3360 = vmatmul.bf16.gmra.mxu1 %v7835_v18  ;;  %v5787_v17 = vld [vmem:[%s7119_s3 + $0xeb0] sm:$0xff]  ;;  %v5793_v51 = vld [vmem:[%s7119_s3 + $0xee0] sm:$0xff]  ;;  %v533_v12 = vld [vmem:[%s7119_s3 + $0xd98] sm:$0xff] }
 0x114   : > { %10053 = vst [vmem:[#allocation45_spill] sm:$0xff] %v7876_v27  ;;  %v1310_v48 = vadd.f32 %v1118_v22, %v731_v59  ;;  %v2270_v54 = vmul.f32 %v5786_v19, %v7183_v56  ;;  %v2276_v14 = vmul.f32 %v5792_v9, %v7183_v56  ;;  %v726_v49 = vmul.f32 %v7159_v38, %v532_v21  ;;  %v539_v22 = vld [vmem:[%s7119_s3 + $0xdc8] sm:$0xff] }
 0x115   : > { %v7891_v0 = vpack.c.bf16 %v2467_v35, %v2461_v24  ;;  %v1883_v5 = vadd.f32 %v1691_v34, %v1304_v42  ;;  %v732_v7 = vmul.f32 %v7159_v38, %v538_v43  ;;  %v1113_v10 = vmul.f32 %v5401_v30, %v7167_v44  ;;  %v3234_v59 = vpop.f32.mrf.mxu0  ;;  %v5402_v24 = vld [vmem:[%s7119_s3 + $0xdf8] sm:$0xff]  ;;  %v5408_v35 = vld [vmem:[%s7119_s3 + $0xe28] sm:$0xff] }
 0x116   : > { %v1889_v13 = vadd.f32 %v1697_v47, %v1310_v48  ;;  %v1119_v19 = vmul.f32 %v5407_v52, %v7167_v44  ;;  %v1692_v9 = vmul.f32 %v5594_v20, %v7175_v50  ;;  %v1698_v21 = vmul.f32 %v5600_v60, %v7175_v50  ;;  %v5601_v48 = vld [vmem:[%s7119_s3 + $0xe88] sm:$0xff] }
 0x117   : > { %10054 = vst [vmem:[#allocation46_spill] sm:$0xff] %v7891_v0  ;;  %v3235_v34 = vadd.f32 %v3234_v59, %v7770_v61  ;;  %v2462_v43 = vadd.f32 %v2270_v54, %v1883_v5  ;;  %v1305_v30 = vadd.f32 %v1113_v10, %v726_v49  ;;  %v2271_v42 = vmul.f32 %v5787_v17, %v7183_v56  ;;  %v5788_v5 = vld [vmem:[%s7119_s3 + $0xeb8] sm:$0xff] }
 0x118   : > { %3449 = vmatmul.bf16.gmra.mxu2 %v7855_v36  ;;  %v2468_v47 = vadd.f32 %v2276_v14, %v1889_v13  ;;  %v1311_v52 = vadd.f32 %v1119_v19, %v732_v7  ;;  %v2277_v20 = vmul.f32 %v5793_v51, %v7183_v56  ;;  %v727_v60 = vmul.f32 %v7159_v38, %v533_v12  ;;  %v3323_v2 = vpop.f32.mrf.mxu1  ;;  %v5794_v14 = vld [vmem:[%s7119_s3 + $0xee8] sm:$0xff]  ;;  %v542_v13 = vld [vmem:[%s7119_s3 + $0xf00] sm:$0xff]  ;;  %v548_v19 = vld [vmem:[%s7119_s3 + $0xf30] sm:$0xff] }
 0x119   : > { %v1884_v59 = vadd.f32 %v1692_v9, %v1305_v30  ;;  %v733_v54 = vmul.f32 %v7159_v38, %v539_v22  ;;  %v1114_v49 = vmul.f32 %v5402_v24, %v7167_v44  ;;  %v1120_v17 = vmul.f32 %v5408_v35, %v7167_v44  ;;  %v3410_v9 = vpop.f32.mrf.mxu2  ;;  %v5411_v36 = vld [vmem:[%s7119_s3 + $0xf60] sm:$0xff] }
 0x11a   : > { %v7915_v7 = vadd.f32 %v3323_v2, %v3235_v34  ;;  %v7917_v10 = vpack.c.bf16 %v2468_v47, %v2462_v43  ;;  %v1890_v51 = vadd.f32 %v1698_v21, %v1311_v52  ;;  %v1693_v12 = vmul.f32 %v5595_v55, %v7175_v50  ;;  %3538 = vmatmul.bf16.gmra.mxu3 %v7876_v27  ;;  %v5417_v2 = vld [vmem:[%s7119_s3 + $0xf90] sm:$0xff]  ;;  %v5604_v34 = vld [vmem:[%s7119_s3 + $0xfc0] sm:$0xff]  ;;  %v5605_v27 = vld [vmem:[%s7119_s3 + $0xfc8] sm:$0xff] }
 0x11b   : > { %v2463_v22 = vadd.f32 %v2271_v42, %v1884_v59  ;;  %v1306_v24 = vadd.f32 %v1114_v49, %v727_v60  ;;  %v1312_v35 = vadd.f32 %v1120_v17, %v733_v54  ;;  %v1699_v30 = vmul.f32 %v5601_v48, %v7175_v50  ;;  %v5610_v48 = vld [vmem:[%s7119_s3 + $0xff0] sm:$0xff]  ;;  %v5797_v54 = vld [vmem:[%s7119_s3 + $0x1020] sm:$0xff] }
 0x11c   : > { %10055 = vst [vmem:[#allocation47_spill] sm:$0xff] %v7917_v10  ;;  %v3411_v43 = vadd.f32 %v3410_v9, %v7874_v23  ;;  %v2469_v21 = vadd.f32 %v2277_v20, %v1890_v51  ;;  %v2272_v55 = vmul.f32 %v5788_v5, %v7183_v56  ;;  %v2278_v47 = vmul.f32 %v5794_v14, %v7183_v56  ;;  %v5803_v51 = vld [vmem:[%s7119_s3 + $0x1050] sm:$0xff] }
 0x11d   : > { %v1885_v52 = vadd.f32 %v1693_v12, %v1306_v24  ;;  %v1891_v42 = vadd.f32 %v1699_v30, %v1312_v35  ;;  %v736_v60 = vmul.f32 %v7159_v38, %v542_v13  ;;  %v742_v59 = vmul.f32 %v7159_v38, %v548_v19  ;;  %v3499_v49 = vpop.f32.mrf.mxu3  ;;  %v3237_v23 = vpop.f32.mrf.mxu0  ;;  %v543_v12 = vld [vmem:[%s7119_s3 + $0xf08] sm:$0xff]  ;;  %v549_v13 = vld [vmem:[%s7119_s3 + $0xf38] sm:$0xff] }
 0x11e   : > { %v7934_v17 = vpack.c.bf16 %v2469_v21, %v2463_v22  ;;  %v1123_v20 = vmul.f32 %v5411_v36, %v7167_v44  ;;  %v1129_v5 = vmul.f32 %v5417_v2, %v7167_v44  ;;  %v1702_v14 = vmul.f32 %v5604_v34, %v7175_v50  ;;  %v5412_v22 = vld [vmem:[%s7119_s3 + $0xf68] sm:$0xff]  ;;  %v5418_v30 = vld [vmem:[%s7119_s3 + $0xf98] sm:$0xff] }
 0x11f   : > { %v7942_v19 = vadd.f32 %v3499_v49, %v3411_v43  ;;  %v3238_v9 = vadd.f32 %v3237_v23, %v7770_v61  ;;  %v2464_v24 = vadd.f32 %v2272_v55, %v1885_v52  ;;  %v2470_v35 = vadd.f32 %v2278_v47, %v1891_v42  ;;  %v544_v23 = vld [vmem:[%s7119_s3 + $0xf10] sm:$0xff] }
 0x120   : > { %10056 = vst [vmem:[#allocation48_spill] sm:$0xff] %v7934_v17  ;;  %v1315_v21 = vadd.f32 %v1123_v20, %v736_v60  ;;  %v1321_v36 = vadd.f32 %v1129_v5, %v742_v59  ;;  %v1708_v2 = vmul.f32 %v5610_v48, %v7175_v50  ;;  %v2281_v34 = vmul.f32 %v5797_v54, %v7183_v56  ;;  %v3326_v43 = vpop.f32.mrf.mxu1  ;;  %v5804_v54 = vld [vmem:[%s7119_s3 + $0x1058] sm:$0xff]  ;;  %v550_v20 = vld [vmem:[%s7119_s3 + $0xf40] sm:$0xff] }
 0x121   : > { %10057 = vst [vmem:[#allocation49_spill] sm:$0xff] %v7942_v19  ;;  %3276 = vmatmul.bf16.gmra.mxu0 %v7891_v0  ;;  %v7953_v49 = vpack.c.bf16 %v2470_v35, %v2464_v24  ;;  %v2287_v55 = vmul.f32 %v5803_v51, %v7183_v56  ;;  %v737_v47 = vmul.f32 %v7159_v38, %v543_v12  ;;  %v3412_v5 = vpop.f32.mrf.mxu2  ;;  %v5419_v35 = vld [vmem:[%s7119_s3 + $0xfa0] sm:$0xff]  ;;  %v8368_v0 = vld [vmem:[#allocation9 + $0x264] sm:$0xf0]  ;;  %v8389_v19 = vld [vmem:[#allocation9 + $0x254] sm:$0xf0] }
 0x122   : > { %v743_v52 = vmul.f32 %v7159_v38, %v549_v13  ;;  %v7958_v42 = vadd.f32 %v3326_v43, %v3238_v9  ;;  %v1894_v60 = vadd.f32 %v1702_v14, %v1315_v21  ;;  %v1900_v59 = vadd.f32 %v1708_v2, %v1321_v36  ;;  %v5413_v9 = vld [vmem:[%s7119_s3 + $0xf70] sm:$0xff]  ;;  %v5612_v43 = vld [vmem:[%s7119_s3 + $0x1000] sm:$0xff] }
 0x123   : > { %10058 = vst [vmem:[#allocation50_spill] sm:$0xff] %v7953_v49  ;;  %v1124_v48 = vmul.f32 %v5412_v22, %v7167_v44  ;;  %v1130_v24 = vmul.f32 %v5418_v30, %v7167_v44  ;;  %v1703_v51 = vmul.f32 %v5605_v27, %v7175_v50  ;;  %v1709_v12 = vmul.f32 %v5611_v37, %v7175_v50  ;;  %v5606_v30 = vld [vmem:[%s7119_s3 + $0xfd0] sm:$0xff] }
 0x124   : > { %v2282_v13 = vmul.f32 %v5798_v58, %v7183_v56  ;;  %v3413_v14 = vadd.f32 %v3412_v5, %v7915_v7  ;;  %3365 = vmatmul.bf16.gmra.mxu1 %v7917_v10  ;;  %v2473_v22 = vadd.f32 %v2281_v34, %v1894_v60  ;;  %v2479_v21 = vadd.f32 %v2287_v55, %v1900_v59  ;;  %v545_v60 = vld [vmem:[%s7119_s3 + $0xf18] sm:$0xff] }
 0x125   : > { %v1316_v36 = vadd.f32 %v1124_v48, %v737_v47  ;;  %v1322_v2 = vadd.f32 %v1130_v24, %v743_v52  ;;  %v2288_v27 = vmul.f32 %v5804_v54, %v7183_v56  ;;  %v738_v37 = vmul.f32 %v7159_v38, %v544_v23  ;;  %v3501_v31 = vpop.f32.mrf.mxu3  ;;  %v3239_v7 = vpop.f32.mrf.mxu0  ;;  %v5799_v47 = vld [vmem:[%s7119_s3 + $0x1030] sm:$0xff]  ;;  %v5805_v52 = vld [vmem:[%s7119_s3 + $0x1060] sm:$0xff] }
 0x126   : > { %v744_v58 = vmul.f32 %v7159_v38, %v550_v20  ;;  %v7977_v5 = vpack.c.bf16 %v2479_v21, %v2473_v22  ;;  %v1125_v34 = vmul.f32 %v5413_v9, %v7167_v44  ;;  %v1131_v55 = vmul.f32 %v5419_v35, %v7167_v44  ;;  %v551_v20 = vld [vmem:[%s7119_s3 + $0xf48] sm:$0xff]  ;;  %v5414_v22 = vld [vmem:[%s7119_s3 + $0xf78] sm:$0xff] }
 0x127   : > { %v1895_v62 = vadd.f32 %v1703_v51, %v1316_v36  ;;  %v7984_v59 = vadd.f32 %v3501_v31, %v3413_v14  ;;  %v3240_v48 = vadd.f32 %v3239_v7, %v7770_v61  ;;  %v1901_v54 = vadd.f32 %v1709_v12, %v1322_v2  ;;  %v5420_v21 = vld [vmem:[%s7119_s3 + $0xfa8] sm:$0xff]  ;;  %v5607_v31 = vld [vmem:[%s7119_s3 + $0xfd8] sm:$0xff] }
 0x128   : > { %10059 = vst [vmem:[#allocation51_spill] sm:$0xff] %v7977_v5  ;;  %v1704_v23 = vmul.f32 %v5606_v30, %v7175_v50  ;;  %3454 = vmatmul.bf16.gmra.mxu2 %v7934_v17  ;;  %v1317_v51 = vadd.f32 %v1125_v34, %v738_v37  ;;  %v1323_v9 = vadd.f32 %v1131_v55, %v744_v58  ;;  %v3328_v14 = vpop.f32.mrf.mxu1  ;;  %v5800_v7 = vld [vmem:[%s7119_s3 + $0x1038] sm:$0xff]  ;;  %v5806_v34 = vld [vmem:[%s7119_s3 + $0x1068] sm:$0xff] }
 0x129   : > { %10060 = vst [vmem:[#allocation52_spill] sm:$0xff] %v7984_v59  ;;  %v2474_v24 = vadd.f32 %v2282_v13, %v1895_v62  ;;  %v1710_v35 = vmul.f32 %v5612_v43, %v7175_v50  ;;  %v2480_v36 = vadd.f32 %v2288_v27, %v1901_v54  ;;  %v2283_v12 = vmul.f32 %v5799_v47, %v7183_v56  ;;  %v5613_v62 = vld [vmem:[%s7119_s3 + $0x1008] sm:$0xff]  ;;  %v560_v54 = vld [vmem:[%s7119_s3 + $0x10b0] sm:$0xff] }
 0x12a   : > { %v2289_v30 = vmul.f32 %v5805_v52, %v7183_v56  ;;  %v739_v2 = vmul.f32 %v7159_v38, %v545_v60  ;;  %v7998_v13 = vadd.f32 %v3328_v14, %v3240_v48  ;;  %v1896_v37 = vadd.f32 %v1704_v23, %v1317_v51  ;;  %3543 = vmatmul.bf16.gmra.mxu3 %v7953_v49  ;;  %v3415_v27 = vpop.f32.mrf.mxu2  ;;  %v554_v48 = vld [vmem:[%s7119_s3 + $0x1080] sm:$0xff]  ;;  %v5622_v49 = vld [vmem:[%s7119_s3 + $0x1170] sm:$0xff] }
 0x12b   : > { %v1902_v58 = vadd.f32 %v1710_v35, %v1323_v9  ;;  %v745_v43 = vmul.f32 %v7159_v38, %v551_v20  ;;  %v8004_v55 = vpack.c.bf16 %v2480_v36, %v2474_v24  ;;  %v1126_v47 = vmul.f32 %v5414_v22, %v7167_v44  ;;  %v5423_v23 = vld [vmem:[%s7119_s3 + $0x10e0] sm:$0xff] }
 0x12c   : > { %v1132_v52 = vmul.f32 %v5420_v21, %v7167_v44  ;;  %v1705_v60 = vmul.f32 %v5607_v31, %v7175_v50  ;;  %v3416_v20 = vadd.f32 %v3415_v27, %v7958_v42  ;;  %v2475_v51 = vadd.f32 %v2283_v12, %v1896_v37  ;;  %v5429_v21 = vld [vmem:[%s7119_s3 + $0x1110] sm:$0xff]  ;;  %v5616_v31 = vld [vmem:[%s7119_s3 + $0x1140] sm:$0xff]  ;;  %v555_v27 = vld [vmem:[%s7119_s3 + $0x1088] sm:$0xff] }
 0x12d   : > { %10061 = vst [vmem:[#allocation53_spill] sm:$0xff] %v8004_v55  ;;  %v2481_v9 = vadd.f32 %v2289_v30, %v1902_v58  ;;  %v1711_v24 = vmul.f32 %v5613_v62, %v7175_v50  ;;  %v1318_v35 = vadd.f32 %v1126_v47, %v739_v2  ;;  %v2284_v22 = vmul.f32 %v5800_v7, %v7183_v56  ;;  %v3504_v17 = vpop.f32.mrf.mxu3  ;;  %v3242_v39 = vpop.f32.mrf.mxu0  ;;  %v5809_v62 = vld [vmem:[%s7119_s3 + $0x11a0] sm:$0xff]  ;;  %v5815_v37 = vld [vmem:[%s7119_s3 + $0x11d0] sm:$0xff] }
 0x12e   : > { %v1324_v14 = vadd.f32 %v1132_v52, %v745_v43  ;;  %v2290_v36 = vmul.f32 %v5806_v34, %v7183_v56  ;;  %v748_v12 = vmul.f32 %v7159_v38, %v554_v48  ;;  %v754_v30 = vmul.f32 %v7159_v38, %v560_v54 }
 0x12f   : > { %v8019_v42 = vpack.c.bf16 %v2481_v9, %v2475_v51  ;;  %v1135_v2 = vmul.f32 %v5423_v23, %v7167_v44  ;;  %v8026_v58 = vadd.f32 %v3504_v17, %v3416_v20  ;;  %v3243_v43 = vadd.f32 %v3242_v39, %v7770_v61  ;;  %v561_v23 = vld [vmem:[%s7119_s3 + $0x10b8] sm:$0xff]  ;;  %v5424_v51 = vld [vmem:[%s7119_s3 + $0x10e8] sm:$0xff] }
 0x130   : > { %v1897_v7 = vadd.f32 %v1705_v60, %v1318_v35  ;;  %v1903_v34 = vadd.f32 %v1711_v24, %v1324_v14  ;;  %v1141_v47 = vmul.f32 %v5429_v21, %v7167_v44  ;;  %v1714_v48 = vmul.f32 %v5616_v31, %v7175_v50  ;;  %v5430_v9 = vld [vmem:[%s7119_s3 + $0x1118] sm:$0xff]  ;;  %v3331_v17 = vpop.f32.mrf.mxu1  ;;  %v5617_v35 = vld [vmem:[%s7119_s3 + $0x1148] sm:$0xff] }
 0x131   : > { %10062 = vst [vmem:[#allocation54_spill] sm:$0xff] %v8019_v42  ;;  %v1327_v52 = vadd.f32 %v1135_v2, %v748_v12  ;;  %v1720_v54 = vmul.f32 %v5622_v49, %v7175_v50  ;;  %3281 = vmatmul.bf16.gmra.mxu0 %v7977_v5  ;;  %v2293_v20 = vmul.f32 %v5809_v62, %v7183_v56  ;;  %v5623_v12 = vld [vmem:[%s7119_s3 + $0x1178] sm:$0xff]  ;;  %v5810_v2 = vld [vmem:[%s7119_s3 + $0x11a8] sm:$0xff] }
 0x132   : > { %10063 = vst [vmem:[#allocation55_spill] sm:$0xff] %v8026_v58  ;;  %v2476_v39 = vadd.f32 %v2284_v22, %v1897_v7  ;;  %v2482_v60 = vadd.f32 %v2290_v36, %v1903_v34  ;;  %v2299_v24 = vmul.f32 %v5815_v37, %v7183_v56  ;;  %v8040_v14 = vadd.f32 %v3331_v17, %v3243_v43  ;;  %v3417_v11 = vpop.f32.mrf.mxu2  ;;  %v5816_v37 = vld [vmem:[%s7119_s3 + $0x11d8] sm:$0xff]  ;;  %v556_v43 = vld [vmem:[%s7119_s3 + $0x1090] sm:$0xff]  ;;  %v5431_v17 = vld [vmem:[%s7119_s3 + $0x1120] sm:$0xff] }
 0x133   : > { %v1333_v49 = vadd.f32 %v1141_v47, %v754_v30  ;;  %v1906_v21 = vadd.f32 %v1714_v48, %v1327_v52  ;;  %v749_v31 = vmul.f32 %v7159_v38, %v555_v27  ;;  %v755_v22 = vmul.f32 %v7159_v38, %v561_v23  ;;  %v562_v30 = vld [vmem:[%s7119_s3 + $0x10c0] sm:$0xff]  ;;  %v6469_v5 = vld [vmem:[#allocation9 + $0x274] sm:$0xf0] }
 0x134   : > { %v8045_v57 = vpack.c.bf16 %v2482_v60, %v2476_v39  ;;  %v1136_v36 = vmul.f32 %v5424_v51, %v7167_v44  ;;  %v1142_v62 = vmul.f32 %v5430_v9, %v7167_v44  ;;  %v3418_v7 = vadd.f32 %v3417_v11, %v7998_v13  ;;  %3370 = vmatmul.bf16.gmra.mxu1 %v8004_v55  ;;  %v5425_v9 = vld [vmem:[%s7119_s3 + $0x10f0] sm:$0xff]  ;;  %v5647_v55 = vld [vmem:[%s7119_s3 + $0x1478] sm:$0xff] }
 0x135   : > { %v1912_v34 = vadd.f32 %v1720_v54, %v1333_v49  ;;  %v2485_v27 = vadd.f32 %v2293_v20, %v1906_v21  ;;  %v1715_v47 = vmul.f32 %v5617_v35, %v7175_v50  ;;  %v1721_v23 = vmul.f32 %v5623_v12, %v7175_v50  ;;  %v5618_v39 = vld [vmem:[%s7119_s3 + $0x1150] sm:$0xff]  ;;  %v3506_v60 = vpop.f32.mrf.mxu3  ;;  %v3244_v11 = vpop.f32.mrf.mxu0  ;;  %v5624_v49 = vld [vmem:[%s7119_s3 + $0x1180] sm:$0xff] }
 0x136   : > { %10064 = vst [vmem:[#allocation56_spill] sm:$0xff] %v8045_v57  ;;  %v1328_v52 = vadd.f32 %v1136_v36, %v749_v31  ;;  %v1334_v48 = vadd.f32 %v1142_v62, %v755_v22  ;;  %v2294_v51 = vmul.f32 %v5810_v2, %v7183_v56  ;;  %v2300_v54 = vmul.f32 %v5816_v37, %v7183_v56  ;;  %v5811_v21 = vld [vmem:[%s7119_s3 + $0x11b0] sm:$0xff]  ;;  %v5817_v36 = vld [vmem:[%s7119_s3 + $0x11e0] sm:$0xff] }
 0x137   : > { %v2491_v13 = vadd.f32 %v2299_v24, %v1912_v34  ;;  %v750_v20 = vmul.f32 %v7159_v38, %v556_v43  ;;  %v756_v35 = vmul.f32 %v7159_v38, %v562_v30  ;;  %v8066_v31 = vadd.f32 %v3506_v60, %v3418_v7  ;;  %v557_v30 = vld [vmem:[%s7119_s3 + $0x1098] sm:$0xff]  ;;  %v563_v7 = vld [vmem:[%s7119_s3 + $0x10c8] sm:$0xff] }
 0x138   : > { %v3245_v12 = vadd.f32 %v3244_v11, %v7770_v61  ;;  %v1907_v2 = vadd.f32 %v1715_v47, %v1328_v52  ;;  %v1913_v22 = vadd.f32 %v1721_v23, %v1334_v48  ;;  %3459 = vmatmul.bf16.gmra.mxu2 %v8019_v42  ;;  %v1137_v62 = vmul.f32 %v5425_v9, %v7167_v44  ;;  %v5426_v34 = vld [vmem:[%s7119_s3 + $0x10f8] sm:$0xff]  ;;  %v3333_v47 = vpop.f32.mrf.mxu1  ;;  %v5432_v60 = vld [vmem:[%s7119_s3 + $0x1128] sm:$0xff] }
 0x139   : > { %10065 = vst [vmem:[#allocation57_spill] sm:$0xff] %v8066_v31  ;;  %v8071_v24 = vpack.c.bf16 %v2491_v13, %v2485_v27  ;;  %v1143_v37 = vmul.f32 %v5431_v17, %v7167_v44  ;;  %v1716_v43 = vmul.f32 %v5618_v39, %v7175_v50  ;;  %v1722_v23 = vmul.f32 %v5624_v49, %v7175_v50  ;;  %v5619_v13 = vld [vmem:[%s7119_s3 + $0x1158] sm:$0xff]  ;;  %v5625_v42 = vld [vmem:[%s7119_s3 + $0x1188] sm:$0xff] }
 0x13a   : > { %v2486_v52 = vadd.f32 %v2294_v51, %v1907_v2  ;;  %v2492_v48 = vadd.f32 %v2300_v54, %v1913_v22  ;;  %v2295_v27 = vmul.f32 %v5811_v21, %v7183_v56  ;;  %v8082_v9 = vadd.f32 %v3333_v47, %v3245_v12  ;;  %3548 = vmatmul.bf16.gmra.mxu3 %v8045_v57  ;;  %v3420_v51 = vpop.f32.mrf.mxu2  ;;  %v5821_v57 = vld [vmem:[%s7119_s3 + $0x1320] sm:$0xff] }
 0x13b   : > { %10066 = vst [vmem:[#allocation58_spill] sm:$0xff] %v8071_v24  ;;  %v1329_v11 = vadd.f32 %v1137_v62, %v750_v20  ;;  %v1335_v17 = vadd.f32 %v1143_v37, %v756_v35  ;;  %v2301_v39 = vmul.f32 %v5817_v36, %v7183_v56  ;;  %v751_v49 = vmul.f32 %v7159_v38, %v557_v30  ;;  %v5818_v35 = vld [vmem:[%s7119_s3 + $0x11e8] sm:$0xff]  ;;  %v566_v62 = vld [vmem:[%s7119_s3 + $0x1200] sm:$0xff] }
 0x13c   : > { %v8089_v54 = vpack.c.bf16 %v2492_v48, %v2486_v52  ;;  %v757_v21 = vmul.f32 %v7159_v38, %v563_v7  ;;  %v1138_v20 = vmul.f32 %v5426_v34, %v7167_v44  ;;  %v3421_v12 = vadd.f32 %v3420_v51, %v8040_v14  ;;  %v572_v34 = vld [vmem:[%s7119_s3 + $0x1230] sm:$0xff]  ;;  %v5435_v52 = vld [vmem:[%s7119_s3 + $0x1260] sm:$0xff] }
 0x13d   : > { %v1908_v2 = vadd.f32 %v1716_v43, %v1329_v11  ;;  %v1914_v22 = vadd.f32 %v1722_v23, %v1335_v17  ;;  %v1144_v36 = vmul.f32 %v5432_v60, %v7167_v44  ;;  %v1717_v47 = vmul.f32 %v5619_v13, %v7175_v50  ;;  %v3509_v48 = vpop.f32.mrf.mxu3  ;;  %v3247_v14 = vpop.f32.mrf.mxu0  ;;  %v5441_v17 = vld [vmem:[%s7119_s3 + $0x1290] sm:$0xff]  ;;  %v5628_v51 = vld [vmem:[%s7119_s3 + $0x12c0] sm:$0xff] }
 0x13e   : > { %10067 = vst [vmem:[#allocation59_spill] sm:$0xff] %v8089_v54  ;;  %v1330_v37 = vadd.f32 %v1138_v20, %v751_v49  ;;  %v1723_v30 = vmul.f32 %v5625_v42, %v7175_v50  ;;  %v2296_v7 = vmul.f32 %v5812_v33, %v7183_v56  ;;  %v2302_v60 = vmul.f32 %v5818_v35, %v7183_v56  ;;  %v5634_v13 = vld [vmem:[%s7119_s3 + $0x12f0] sm:$0xff] }
 0x13f   : > { %v2487_v43 = vadd.f32 %v2295_v27, %v1908_v2  ;;  %v2493_v23 = vadd.f32 %v2301_v39, %v1914_v22  ;;  %v1336_v11 = vadd.f32 %v1144_v36, %v757_v21  ;;  %v8107_v49 = vadd.f32 %v3509_v48, %v3421_v12  ;;  %v5827_v2 = vld [vmem:[%s7119_s3 + $0x1350] sm:$0xff]  ;;  %v567_v12 = vld [vmem:[%s7119_s3 + $0x1208] sm:$0xff]  ;;  %v573_v22 = vld [vmem:[%s7119_s3 + $0x1238] sm:$0xff] }
 0x140   : > { %v3248_v33 = vadd.f32 %v3247_v14, %v7770_v61  ;;  %v1909_v42 = vadd.f32 %v1717_v47, %v1330_v37  ;;  %v760_v20 = vmul.f32 %v7159_v38, %v566_v62  ;;  %v766_v21 = vmul.f32 %v7159_v38, %v572_v34  ;;  %v3336_v36 = vpop.f32.mrf.mxu1  ;;  %v5436_v34 = vld [vmem:[%s7119_s3 + $0x1268] sm:$0xff] }
 0x141   : > { %10068 = vst [vmem:[#allocation60_spill] sm:$0xff] %v8107_v49  ;;  %v8112_v27 = vpack.c.bf16 %v2493_v23, %v2487_v43  ;;  %v1915_v39 = vadd.f32 %v1723_v30, %v1336_v11  ;;  %v1147_v35 = vmul.f32 %v5435_v52, %v7167_v44  ;;  %3286 = vmatmul.bf16.gmra.mxu0 %v8071_v24  ;;  %v5442_v23 = vld [vmem:[%s7119_s3 + $0x1298] sm:$0xff]  ;;  %v5629_v11 = vld [vmem:[%s7119_s3 + $0x12c8] sm:$0xff] }
 0x142   : > { %v2488_v37 = vadd.f32 %v2296_v7, %v1909_v42  ;;  %v1153_v62 = vmul.f32 %v5441_v17, %v7167_v44  ;;  %v1726_v47 = vmul.f32 %v5628_v51, %v7175_v50  ;;  %v1732_v30 = vmul.f32 %v5634_v13, %v7175_v50  ;;  %v3422_v24 = vpop.f32.mrf.mxu2  ;;  %v5828_v42 = vld [vmem:[%s7119_s3 + $0x1358] sm:$0xff] }
 0x143   : > { %10069 = vst [vmem:[#allocation61_spill] sm:$0xff] %v8112_v27  ;;  %v8124_v48 = vadd.f32 %v3336_v36, %v3248_v33  ;;  %v2494_v52 = vadd.f32 %v2302_v60, %v1915_v39  ;;  %v1339_v14 = vadd.f32 %v1147_v35, %v760_v20  ;;  %v2305_v43 = vmul.f32 %v5821_v57, %v7183_v56  ;;  %v5822_v33 = vld [vmem:[%s7119_s3 + $0x1328] sm:$0xff]  ;;  %v574_v36 = vld [vmem:[%s7119_s3 + $0x1240] sm:$0xff] }
 0x144   : > { %v1345_v7 = vadd.f32 %v1153_v62, %v766_v21  ;;  %v2311_v17 = vmul.f32 %v5827_v2, %v7183_v56  ;;  %v761_v51 = vmul.f32 %v7159_v38, %v567_v12  ;;  %v767_v13 = vmul.f32 %v7159_v38, %v573_v22  ;;  %3375 = vmatmul.bf16.gmra.mxu1 %v8089_v54  ;;  %v568_v22 = vld [vmem:[%s7119_s3 + $0x1210] sm:$0xff]  ;;  %v5636_v54 = vld [vmem:[%s7119_s3 + $0x1300] sm:$0xff] }
 0x145   : > { %v3423_v60 = vadd.f32 %v3422_v24, %v8082_v9  ;;  %v8137_v57 = vpack.c.bf16 %v2494_v52, %v2488_v37  ;;  %v1918_v20 = vadd.f32 %v1726_v47, %v1339_v14  ;;  %v1148_v39 = vmul.f32 %v5436_v34, %v7167_v44  ;;  %v5437_v24 = vld [vmem:[%s7119_s3 + $0x1270] sm:$0xff]  ;;  %v3511_v9 = vpop.f32.mrf.mxu3  ;;  %v3249_v62 = vpop.f32.mrf.mxu0  ;;  %v5443_v34 = vld [vmem:[%s7119_s3 + $0x12a0] sm:$0xff] }
 0x146   : > { %v1924_v21 = vadd.f32 %v1732_v30, %v1345_v7  ;;  %v1154_v35 = vmul.f32 %v5442_v23, %v7167_v44  ;;  %v1727_v2 = vmul.f32 %v5629_v11, %v7175_v50  ;;  %v1733_v12 = vmul.f32 %v5635_v15, %v7175_v50  ;;  %v5630_v14 = vld [vmem:[%s7119_s3 + $0x12d0] sm:$0xff] }
 0x147   : > { %10070 = vst [vmem:[#allocation62_spill] sm:$0xff] %v8137_v57  ;;  %v2497_v37 = vadd.f32 %v2305_v43, %v1918_v20  ;;  %v1340_v52 = vadd.f32 %v1148_v39, %v761_v51  ;;  %v2306_v47 = vmul.f32 %v5822_v33, %v7183_v56  ;;  %v2312_v30 = vmul.f32 %v5828_v42, %v7183_v56  ;;  %v5829_v20 = vld [vmem:[%s7119_s3 + $0x1360] sm:$0xff] }
 0x148   : > { %v8150_v23 = vadd.f32 %v3511_v9, %v3423_v60  ;;  %v3250_v15 = vadd.f32 %v3249_v62, %v7770_v61  ;;  %v2503_v11 = vadd.f32 %v2311_v17, %v1924_v21  ;;  %v1346_v7 = vadd.f32 %v1154_v35, %v767_v13  ;;  %3464 = vmatmul.bf16.gmra.mxu2 %v8112_v27  ;;  %v5823_v60 = vld [vmem:[%s7119_s3 + $0x1330] sm:$0xff]  ;;  %v3338_v39 = vpop.f32.mrf.mxu1  ;;  %v569_v35 = vld [vmem:[%s7119_s3 + $0x1218] sm:$0xff]  ;;  %v5444_v27 = vld [vmem:[%s7119_s3 + $0x12a8] sm:$0xff] }
 0x149   : > { %v1919_v43 = vadd.f32 %v1727_v2, %v1340_v52  ;;  %v762_v51 = vmul.f32 %v7159_v38, %v568_v22  ;;  %v768_v33 = vmul.f32 %v7159_v38, %v574_v36  ;;  %v1149_v42 = vmul.f32 %v5437_v24, %v7167_v44  ;;  %v575_v2 = vld [vmem:[%s7119_s3 + $0x1248] sm:$0xff]  ;;  %v5438_v52 = vld [vmem:[%s7119_s3 + $0x1278] sm:$0xff] }
 0x14a   : > { %10071 = vst [vmem:[#allocation63_spill] sm:$0xff] %v8150_v23  ;;  %v8160_v9 = vpack.c.bf16 %v2503_v11, %v2497_v37  ;;  %v1925_v17 = vadd.f32 %v1733_v12, %v1346_v7  ;;  %v1155_v13 = vmul.f32 %v5443_v34, %v7167_v44  ;;  %v1728_v21 = vmul.f32 %v5630_v14, %v7175_v50  ;;  %v3425_v12 = vpop.f32.mrf.mxu2  ;;  %v5637_v7 = vld [vmem:[%s7119_s3 + $0x1308] sm:$0xff]  ;;  %v5646_v23 = vld [vmem:[%s7119_s3 + $0x1470] sm:$0xff] }
 0x14b   : > { %v8166_v22 = vadd.f32 %v3338_v39, %v3250_v15  ;;  %v2498_v36 = vadd.f32 %v2306_v47, %v1919_v43  ;;  %v1341_v62 = vadd.f32 %v1149_v42, %v762_v51  ;;  %v1734_v24 = vmul.f32 %v5636_v54, %v7175_v50  ;;  %3553 = vmatmul.bf16.gmra.mxu3 %v8137_v57  ;;  %v5631_v15 = vld [vmem:[%s7119_s3 + $0x12d8] sm:$0xff]  ;;  %v5640_v57 = vld [vmem:[%s7119_s3 + $0x1440] sm:$0xff] }
 0x14c   : > { %10072 = vst [vmem:[#allocation64_spill] sm:$0xff] %v8160_v9  ;;  %v2504_v37 = vadd.f32 %v2312_v30, %v1925_v17  ;;  %v1347_v34 = vadd.f32 %v1155_v13, %v768_v33  ;;  %v2307_v14 = vmul.f32 %v5823_v60, %v7183_v56  ;;  %v2313_v11 = vmul.f32 %v5829_v20, %v7183_v56  ;;  %v5824_v47 = vld [vmem:[%s7119_s3 + $0x1338] sm:$0xff]  ;;  %v5830_v20 = vld [vmem:[%s7119_s3 + $0x1368] sm:$0xff]  ;;  %v578_v17 = vld [vmem:[%s7119_s3 + $0x1380] sm:$0xff] }
 0x14d   : > { %v3426_v43 = vadd.f32 %v3425_v12, %v8124_v48  ;;  %v1920_v54 = vadd.f32 %v1728_v21, %v1341_v62  ;;  %v763_v51 = vmul.f32 %v7159_v38, %v569_v35  ;;  %v769_v42 = vmul.f32 %v7159_v38, %v575_v2  ;;  %v584_v13 = vld [vmem:[%s7119_s3 + $0x13b0] sm:$0xff]  ;;  %v3514_v48 = vpop.f32.mrf.mxu3  ;;  %v3252_v21 = vpop.f32.mrf.mxu0 }
 0x14e   : > { %v8180_v30 = vpack.c.bf16 %v2504_v37, %v2498_v36  ;;  %v1926_v33 = vadd.f32 %v1734_v24, %v1347_v34  ;;  %v1150_v39 = vmul.f32 %v5438_v52, %v7167_v44  ;;  %v1156_v60 = vmul.f32 %v5444_v27, %v7167_v44  ;;  %v5447_v24 = vld [vmem:[%s7119_s3 + $0x13e0] sm:$0xff]  ;;  %v5453_v12 = vld [vmem:[%s7119_s3 + $0x1410] sm:$0xff] }
 0x14f   : > { %v2499_v62 = vadd.f32 %v2307_v14, %v1920_v54  ;;  %v1729_v35 = vmul.f32 %v5631_v15, %v7175_v50  ;;  %v1735_v2 = vmul.f32 %v5637_v7, %v7175_v50  ;;  %v2308_v36 = vmul.f32 %v5824_v47, %v7183_v56  ;;  %v5833_v47 = vld [vmem:[%s7119_s3 + $0x14a0] sm:$0xff] }
 0x150   : > { %10073 = vst [vmem:[#allocation65_spill] sm:$0xff] %v8180_v30  ;;  %v8192_v52 = vadd.f32 %v3514_v48, %v3426_v43  ;;  %v3253_v27 = vadd.f32 %v3252_v21, %v7770_v61  ;;  %v2505_v37 = vadd.f32 %v2313_v11, %v1926_v33  ;;  %v1342_v34 = vadd.f32 %v1150_v39, %v763_v51  ;;  %v3341_v43 = vpop.f32.mrf.mxu1  ;;  %v5839_v33 = vld [vmem:[%s7119_s3 + $0x14d0] sm:$0xff]  ;;  %v579_v39 = vld [vmem:[%s7119_s3 + $0x1388] sm:$0xff]  ;;  %v585_v21 = vld [vmem:[%s7119_s3 + $0x13b8] sm:$0xff] }
 0x151   : > { %v1348_v14 = vadd.f32 %v1156_v60, %v769_v42  ;;  %v2314_v54 = vmul.f32 %v5830_v20, %v7183_v56  ;;  %v772_v15 = vmul.f32 %v7159_v38, %v578_v17  ;;  %v778_v7 = vmul.f32 %v7159_v38, %v584_v13  ;;  %3291 = vmatmul.bf16.gmra.mxu0 %v8160_v9  ;;  %v5454_v9 = vld [vmem:[%s7119_s3 + $0x1418] sm:$0xff] }
 0x152   : > { %10074 = vst [vmem:[#allocation66_spill] sm:$0xff] %v8192_v52  ;;  %v8202_v48 = vpack.c.bf16 %v2505_v37, %v2499_v62  ;;  %v1921_v11 = vadd.f32 %v1729_v35, %v1342_v34  ;;  %v1159_v51 = vmul.f32 %v5447_v24, %v7167_v44  ;;  %v1165_v42 = vmul.f32 %v5453_v12, %v7167_v44  ;;  %v5448_v62 = vld [vmem:[%s7119_s3 + $0x13e8] sm:$0xff]  ;;  %v3427_v37 = vpop.f32.mrf.mxu2 }
 0x153   : > { %v8208_v60 = vadd.f32 %v3341_v43, %v3253_v27  ;;  %v1927_v20 = vadd.f32 %v1735_v2, %v1348_v14  ;;  %v1738_v17 = vmul.f32 %v5640_v57, %v7175_v50  ;;  %v1744_v13 = vmul.f32 %v5646_v23, %v7175_v50  ;;  %v5641_v52 = vld [vmem:[%s7119_s3 + $0x1448] sm:$0xff]  ;;  %v5840_v43 = vld [vmem:[%s7119_s3 + $0x14d8] sm:$0xff] }
 0x154   : > { %10075 = vst [vmem:[#allocation67_spill] sm:$0xff] %v8202_v48  ;;  %v2500_v35 = vadd.f32 %v2308_v36, %v1921_v11  ;;  %v1351_v34 = vadd.f32 %v1159_v51, %v772_v15  ;;  %v1357_v24 = vadd.f32 %v1165_v42, %v778_v7  ;;  %v2317_v12 = vmul.f32 %v5833_v47, %v7183_v56  ;;  %v5834_v47 = vld [vmem:[%s7119_s3 + $0x14a8] sm:$0xff] }
 0x155   : > { %v3428_v27 = vadd.f32 %v3427_v37, %v8166_v22  ;;  %3380 = vmatmul.bf16.gmra.mxu1 %v8180_v30  ;;  %v2506_v57 = vadd.f32 %v2314_v54, %v1927_v20  ;;  %v2323_v23 = vmul.f32 %v5839_v33, %v7183_v56  ;;  %v773_v2 = vmul.f32 %v7159_v38, %v579_v39  ;;  %v3516_v22 = vpop.f32.mrf.mxu3  ;;  %v3254_v51 = vpop.f32.mrf.mxu0  ;;  %v580_v39 = vld [vmem:[%s7119_s3 + $0x1390] sm:$0xff]  ;;  %v586_v20 = vld [vmem:[%s7119_s3 + $0x13c0] sm:$0xff] }
 0x156   : > { %v1930_v36 = vadd.f32 %v1738_v17, %v1351_v34  ;;  %v1936_v14 = vadd.f32 %v1744_v13, %v1357_v24  ;;  %v779_v15 = vmul.f32 %v7159_v38, %v585_v21  ;;  %v1160_v7 = vmul.f32 %v5448_v62, %v7167_v44  ;;  %v5449_v17 = vld [vmem:[%s7119_s3 + $0x13f0] sm:$0xff] }
 0x157   : > { %v8226_v11 = vpack.c.bf16 %v2506_v57, %v2500_v35  ;;  %v1166_v54 = vmul.f32 %v5454_v9, %v7167_v44  ;;  %v1739_v42 = vmul.f32 %v5641_v52, %v7175_v50  ;;  %v1745_v33 = vmul.f32 %v5647_v55, %v7175_v50  ;;  %v5455_v35 = vld [vmem:[%s7119_s3 + $0x1420] sm:$0xff]  ;;  %v5642_v24 = vld [vmem:[%s7119_s3 + $0x1450] sm:$0xff] }
 0x158   : > { %v8234_v13 = vadd.f32 %v3516_v22, %v3428_v27  ;;  %v3255_v21 = vadd.f32 %v3254_v51, %v7770_v61  ;;  %v2509_v62 = vadd.f32 %v2317_v12, %v1930_v36  ;;  %v2515_v37 = vadd.f32 %v2323_v23, %v1936_v14  ;;  %3469 = vmatmul.bf16.gmra.mxu2 %v8202_v48  ;;  %v5648_v57 = vld [vmem:[%s7119_s3 + $0x1480] sm:$0xff]  ;;  %v5835_v27 = vld [vmem:[%s7119_s3 + $0x14b0] sm:$0xff]  ;;  %v3343_v22 = vpop.f32.mrf.mxu1  ;;  %v587_v51 = vld [vmem:[%s7119_s3 + $0x13c8] sm:$0xff] }
 0x159   : > { %10076 = vst [vmem:[#allocation68_spill] sm:$0xff] %v8226_v11  ;;  %v1352_v9 = vadd.f32 %v1160_v7, %v773_v2  ;;  %v1358_v34 = vadd.f32 %v1166_v54, %v779_v15  ;;  %v2318_v52 = vmul.f32 %v5834_v47, %v7183_v56  ;;  %v2324_v55 = vmul.f32 %v5840_v43, %v7183_v56  ;;  %v5841_v47 = vld [vmem:[%s7119_s3 + $0x14e0] sm:$0xff]  ;;  %v581_v43 = vld [vmem:[%s7119_s3 + $0x1398] sm:$0xff] }
 0x15a   : > { %10077 = vst [vmem:[#allocation69_spill] sm:$0xff] %v8234_v13  ;;  %v8244_v30 = vpack.c.bf16 %v2515_v37, %v2509_v62  ;;  %v774_v12 = vmul.f32 %v7159_v38, %v580_v39  ;;  %v780_v23 = vmul.f32 %v7159_v38, %v586_v20  ;;  %v1161_v2 = vmul.f32 %v5449_v17, %v7167_v44  ;;  %v3430_v54 = vpop.f32.mrf.mxu2 }
 0x15b   : > { %v8249_v36 = vadd.f32 %v3343_v22, %v3255_v21  ;;  %v1931_v14 = vadd.f32 %v1739_v42, %v1352_v9  ;;  %v1937_v15 = vadd.f32 %v1745_v33, %v1358_v34  ;;  %v1167_v7 = vmul.f32 %v5455_v35, %v7167_v44  ;;  %3558 = vmatmul.bf16.gmra.mxu3 %v8226_v11  ;;  %v5450_v42 = vld [vmem:[%s7119_s3 + $0x13f8] sm:$0xff]  ;;  %v5456_v33 = vld [vmem:[%s7119_s3 + $0x1428] sm:$0xff] }
 0x15c   : > { %10078 = vst [vmem:[#allocation70_spill] sm:$0xff] %v8244_v30  ;;  %v1353_v39 = vadd.f32 %v1161_v2, %v774_v12  ;;  %v1740_v20 = vmul.f32 %v5642_v24, %v7175_v50  ;;  %v1746_v17 = vmul.f32 %v5648_v57, %v7175_v50  ;;  %v2319_v21 = vmul.f32 %v5835_v27, %v7183_v56  ;;  %v5643_v34 = vld [vmem:[%s7119_s3 + $0x1458] sm:$0xff]  ;;  %v5649_v27 = vld [vmem:[%s7119_s3 + $0x1488] sm:$0xff] }
 0x15d   : > { %v3431_v62 = vadd.f32 %v3430_v54, %v8208_v60  ;;  %v2510_v37 = vadd.f32 %v2318_v52, %v1931_v14  ;;  %v2516_v35 = vadd.f32 %v2324_v55, %v1937_v15  ;;  %v1359_v9 = vadd.f32 %v1167_v7, %v780_v23  ;;  %v5836_v2 = vld [vmem:[%s7119_s3 + $0x14b8] sm:$0xff]  ;;  %v3519_v11 = vpop.f32.mrf.mxu3  ;;  %v3257_v48 = vpop.f32.mrf.mxu0  ;;  %v5842_v14 = vld [vmem:[%s7119_s3 + $0x14e8] sm:$0xff]  ;;  %v590_v15 = vld [vmem:[%s7119_s3 + $0x1500] sm:$0xff] }
 0x15e   : > { %v1932_v22 = vadd.f32 %v1740_v20, %v1353_v39  ;;  %v2325_v12 = vmul.f32 %v5841_v47, %v7183_v56  ;;  %v775_v24 = vmul.f32 %v7159_v38, %v581_v43  ;;  %v781_v57 = vmul.f32 %v7159_v38, %v587_v51  ;;  %v596_v7 = vld [vmem:[%s7119_s3 + $0x1530] sm:$0xff]  ;;  %v5459_v39 = vld [vmem:[%s7119_s3 + $0x1560] sm:$0xff] }
 0x15f   : > { %v8268_v60 = vpack.c.bf16 %v2516_v35, %v2510_v37  ;;  %v1938_v52 = vadd.f32 %v1746_v17, %v1359_v9  ;;  %v1162_v55 = vmul.f32 %v5450_v42, %v7167_v44  ;;  %v1168_v23 = vmul.f32 %v5456_v33, %v7167_v44  ;;  %v5465_v33 = vld [vmem:[%s7119_s3 + $0x1590] sm:$0xff]  ;;  %v5652_v35 = vld [vmem:[%s7119_s3 + $0x15c0] sm:$0xff] }
 0x160   : > { %v8275_v47 = vadd.f32 %v3519_v11, %v3431_v62  ;;  %v3258_v43 = vadd.f32 %v3257_v48, %v7770_v61  ;;  %v2511_v51 = vadd.f32 %v2319_v21, %v1932_v22  ;;  %v1741_v54 = vmul.f32 %v5643_v34, %v7175_v50  ;;  %v5658_v9 = vld [vmem:[%s7119_s3 + $0x15f0] sm:$0xff]  ;;  %v3346_v13 = vpop.f32.mrf.mxu1  ;;  %v5845_v34 = vld [vmem:[%s7119_s3 + $0x1620] sm:$0xff] }
 0x161   : > { %10079 = vst [vmem:[#allocation71_spill] sm:$0xff] %v8268_v60  ;;  %v2517_v20 = vadd.f32 %v2325_v12, %v1938_v52  ;;  %v1354_v17 = vadd.f32 %v1162_v55, %v775_v24  ;;  %v1360_v37 = vadd.f32 %v1168_v23, %v781_v57  ;;  %v1747_v42 = vmul.f32 %v5649_v27, %v7175_v50  ;;  %v5851_v27 = vld [vmem:[%s7119_s3 + $0x1650] sm:$0xff]  ;;  %v591_v52 = vld [vmem:[%s7119_s3 + $0x1508] sm:$0xff] }
 0x162   : > { %10080 = vst [vmem:[#allocation72_spill] sm:$0xff] %v8275_v47  ;;  %3296 = vmatmul.bf16.gmra.mxu0 %v8244_v30  ;;  %v2320_v48 = vmul.f32 %v5836_v2, %v7183_v56  ;;  %v2326_v11 = vmul.f32 %v5842_v14, %v7183_v56  ;;  %v784_v21 = vmul.f32 %v7159_v38, %v590_v15  ;;  %v3432_v55 = vpop.f32.mrf.mxu2 }
 0x163   : > { %v790_v62 = vmul.f32 %v7159_v38, %v596_v7  ;;  %v8290_v22 = vadd.f32 %v3346_v13, %v3258_v43  ;;  %v8292_v12 = vpack.c.bf16 %v2517_v20, %v2511_v51  ;;  %v1933_v24 = vadd.f32 %v1741_v54, %v1354_v17  ;;  %v597_v7 = vld [vmem:[%s7119_s3 + $0x1538] sm:$0xff]  ;;  %v5460_v13 = vld [vmem:[%s7119_s3 + $0x1568] sm:$0xff] }
 0x164   : > { %v1939_v57 = vadd.f32 %v1747_v42, %v1360_v37  ;;  %v1171_v2 = vmul.f32 %v5459_v39, %v7167_v44  ;;  %v1177_v23 = vmul.f32 %v5465_v33, %v7167_v44  ;;  %v1750_v14 = vmul.f32 %v5652_v35, %v7175_v50  ;;  %v5466_v43 = vld [vmem:[%s7119_s3 + $0x1598] sm:$0xff]  ;;  %v5653_v35 = vld [vmem:[%s7119_s3 + $0x15c8] sm:$0xff] }
 0x165   : > { %10081 = vst [vmem:[#allocation73_spill] sm:$0xff] %v8292_v12  ;;  %v1756_v15 = vmul.f32 %v5658_v9, %v7175_v50  ;;  %v3433_v51 = vadd.f32 %v3432_v55, %v8249_v36  ;;  %3385 = vmatmul.bf16.gmra.mxu1 %v8268_v60  ;;  %v2512_v54 = vadd.f32 %v2320_v48, %v1933_v24  ;;  %v5659_v9 = vld [vmem:[%s7119_s3 + $0x15f8] sm:$0xff]  ;;  %v3521_v30 = vpop.f32.mrf.mxu3  ;;  %v3259_v36 = vpop.f32.mrf.mxu0  ;;  %v592_v55 = vld [vmem:[%s7119_s3 + $0x1510] sm:$0xff] }
 0x166   : > { %v2518_v20 = vadd.f32 %v2326_v11, %v1939_v57  ;;  %v2329_v39 = vmul.f32 %v5845_v34, %v7183_v56  ;;  %v1363_v17 = vadd.f32 %v1171_v2, %v784_v21  ;;  %v1369_v37 = vadd.f32 %v1177_v23, %v790_v62  ;;  %v5846_v62 = vld [vmem:[%s7119_s3 + $0x1628] sm:$0xff]  ;;  %v5852_v34 = vld [vmem:[%s7119_s3 + $0x1658] sm:$0xff] }
 0x167   : > { %v2335_v42 = vmul.f32 %v5851_v27, %v7183_v56  ;;  %v785_v33 = vmul.f32 %v7159_v38, %v591_v52  ;;  %v791_v48 = vmul.f32 %v7159_v38, %v597_v7  ;;  %v1172_v11 = vmul.f32 %v5460_v13, %v7167_v44 }
 0x168   : > { %v8310_v47 = vpack.c.bf16 %v2518_v20, %v2512_v54  ;;  %v1178_v21 = vmul.f32 %v5466_v43, %v7167_v44  ;;  %v8317_v24 = vadd.f32 %v3521_v30, %v3433_v51  ;;  %v3260_v57 = vadd.f32 %v3259_v36, %v7770_v61  ;;  %3474 = vmatmul.bf16.gmra.mxu2 %v8292_v12  ;;  %v598_v43 = vld [vmem:[%s7119_s3 + $0x1540] sm:$0xff]  ;;  %v5461_v30 = vld [vmem:[%s7119_s3 + $0x1570] sm:$0xff]  ;;  %v3348_v54 = vpop.f32.mrf.mxu1  ;;  %v5661_v12 = vld [vmem:[%s7119_s3 + $0x1608] sm:$0xff] }
 0x169   : > { %v1942_v27 = vadd.f32 %v1750_v14, %v1363_v17  ;;  %v1948_v52 = vadd.f32 %v1756_v15, %v1369_v37  ;;  %v1364_v2 = vadd.f32 %v1172_v11, %v785_v33  ;;  %v1751_v7 = vmul.f32 %v5653_v35, %v7175_v50  ;;  %v5467_v51 = vld [vmem:[%s7119_s3 + $0x15a0] sm:$0xff]  ;;  %v5654_v37 = vld [vmem:[%s7119_s3 + $0x15d0] sm:$0xff] }
 0x16a   : > { %10082 = vst [vmem:[#allocation74_spill] sm:$0xff] %v8310_v47  ;;  %v1370_v23 = vadd.f32 %v1178_v21, %v791_v48  ;;  %v1757_v13 = vmul.f32 %v5659_v9, %v7175_v50  ;;  %v2330_v15 = vmul.f32 %v5846_v62, %v7183_v56  ;;  %v2336_v17 = vmul.f32 %v5852_v34, %v7183_v56  ;;  %v5660_v33 = vld [vmem:[%s7119_s3 + $0x1600] sm:$0xff]  ;;  %v5847_v11 = vld [vmem:[%s7119_s3 + $0x1630] sm:$0xff] }
 0x16b   : > { %10083 = vst [vmem:[#allocation75_spill] sm:$0xff] %v8317_v24  ;;  %v2521_v14 = vadd.f32 %v2329_v39, %v1942_v27  ;;  %v2527_v20 = vadd.f32 %v2335_v42, %v1948_v52  ;;  %v8331_v35 = vadd.f32 %v3348_v54, %v3260_v57  ;;  %v1943_v9 = vadd.f32 %v1751_v7, %v1364_v2  ;;  %v5853_v21 = vld [vmem:[%s7119_s3 + $0x1660] sm:$0xff]  ;;  %v593_v39 = vld [vmem:[%s7119_s3 + $0x1518] sm:$0xff]  ;;  %v3435_v42 = vpop.f32.mrf.mxu2  ;;  %v599_v52 = vld [vmem:[%s7119_s3 + $0x1548] sm:$0xff] }
 0x16c   : > { %v1949_v36 = vadd.f32 %v1757_v13, %v1370_v23  ;;  %v786_v48 = vmul.f32 %v7159_v38, %v592_v55  ;;  %3563 = vmatmul.bf16.gmra.mxu3 %v8310_v47  ;;  %v792_v34 = vmul.f32 %v7159_v38, %v598_v43  ;;  %v1173_v57 = vmul.f32 %v5461_v30, %v7167_v44  ;;  %v5462_v55 = vld [vmem:[%s7119_s3 + $0x1578] sm:$0xff]  ;;  %v5468_v2 = vld [vmem:[%s7119_s3 + $0x15a8] sm:$0xff] }
 0x16d   : > { %v8338_v62 = vpack.c.bf16 %v2527_v20, %v2521_v14  ;;  %v1179_v27 = vmul.f32 %v5467_v51, %v7167_v44  ;;  %v3436_v23 = vadd.f32 %v3435_v42, %v8290_v22  ;;  %v2522_v7 = vadd.f32 %v2330_v15, %v1943_v9  ;;  %v5655_v47 = vld [vmem:[%s7119_s3 + $0x15d8] sm:$0xff]  ;;  %v5854_v24 = vld [vmem:[%s7119_s3 + $0x1668] sm:$0xff]  ;;  %v6184_v51 = vld [vmem:[#allocation9 + $0x270] sm:$0xf]  ;;  %v3524_v49 = vpop.f32.mrf.mxu3  ;;  %v3262_v31 = vpop.f32.mrf.mxu0 }
 0x16e   : > { %v2528_v13 = vadd.f32 %v2336_v17, %v1949_v36  ;;  %v1752_v54 = vmul.f32 %v5654_v37, %v7175_v50  ;;  %v5848_v14 = vld [vmem:[%s7119_s3 + $0x1638] sm:$0xff]  ;;  %v1365_v20 = vadd.f32 %v1173_v57, %v786_v48  ;;  %v1758_v43 = vmul.f32 %v5660_v33, %v7175_v50  ;;  %v6248_v37 = vld [vmem:[#allocation9 + $0x2f0] sm:$0xf]  ;;  %v6404_v36 = vld [vmem:[#allocation9 + $0x74] sm:$0xf] }
 0x16f   : > { %10084 = vst [vmem:[#allocation76_spill] sm:$0xff] %v8338_v62  ;;  %v1371_v60 = vadd.f32 %v1179_v27, %v792_v34  ;;  %v2331_v30 = vmul.f32 %v5847_v11, %v7183_v56  ;;  %v2337_v22 = vmul.f32 %v5853_v21, %v7183_v56  ;;  %v787_v15 = vmul.f32 %v7159_v38, %v593_v39  ;;  %v6485_v9 = vld [vmem:[#allocation9 + $0x2f4] sm:$0xf0]  ;;  %v5930_v34 = vld [vmem:[#allocation9 + $0x78] sm:$0xf0] }
 0x170   : > { %v8354_v10 = vpack.c.bf16 %v2528_v13, %v2522_v7  ;;  %v793_v17 = vmul.f32 %v7159_v38, %v599_v52  ;;  %v8359_v48 = vadd.f32 %v3524_v49, %v3436_v23  ;;  %v3263_v33 = vadd.f32 %v3262_v31, %v7770_v61  ;;  %v6420_v57 = vld [vmem:[#allocation9 + $0xf4] sm:$0xf]  ;;  %v5994_v27 = vld [vmem:[#allocation9 + $0xf8] sm:$0xf0]  ;;  %v8366_v13 = vld [vmem:[#allocation9 + $0x260] sm:$0xf] }
 0x171   : > { %v1944_v11 = vadd.f32 %v1752_v54, %v1365_v20  ;;  %v1950_v42 = vadd.f32 %v1758_v43, %v1371_v60  ;;  %v1174_v7 = vmul.f32 %v5462_v55, %v7167_v44  ;;  %v1180_v21 = vmul.f32 %v5468_v2, %v7167_v44  ;;  %v8370_v49 = vld [vmem:[#allocation9 + $0x2e0] sm:$0xf]  ;;  %v8372_v31 = vld [vmem:[#allocation9 + $0x2e4] sm:$0xf0]  ;;  %v8374_v60 = vld [vmem:[#allocation9 + $0x64] sm:$0xf]  ;;  %v3351_v54 = vpop.f32.mrf.mxu1 }
 0x172   : > { %10085 = vst [vmem:[#allocation77_spill] sm:$0xff] %v8359_v48  ;;  %v1753_v39 = vmul.f32 %v5655_v47, %v7175_v50  ;;  %v1759_v52 = vmul.f32 %v5661_v12, %v7175_v50  ;;  %v8376_v23 = vld [vmem:[#allocation9 + $0x68] sm:$0xf0]  ;;  %3301 = vmatmul.bf16.gmra.mxu0 %v8338_v62  ;;  %v2332_v47 = vmul.f32 %v5848_v14, %v7183_v56  ;;  %v8381_v20 = vld [vmem:[#allocation9 + $0xe4] sm:$0xf] }
 0x173   : > { %v2523_v55 = vadd.f32 %v2331_v30, %v1944_v11  ;;  %v2529_v2 = vadd.f32 %v2337_v22, %v1950_v42  ;;  %v2338_v12 = vmul.f32 %v5854_v24, %v7183_v56  ;;  %v8383_v43 = vld [vmem:[#allocation9 + $0xe8] sm:$0xf0]  ;;  %v8385_v48 = vld [vmem:[#allocation9 + $0x250] sm:$0xf]  ;;  %v8387_v58 = vadd.f32 %v3351_v54, %v3263_v33  ;;  %v8393_v30 = vld [vmem:[#allocation9 + $0x2d4] sm:$0xf0]  ;;  %v3437_v14 = vpop.f32.mrf.mxu2 }
 0x174   : > { %v1366_v59 = vadd.f32 %v1174_v7, %v787_v15  ;;  %v1372_v18 = vadd.f32 %v1180_v21, %v793_v17  ;;  %v6185_v6 = vor.u32 %v6469_v5, %v6184_v51  ;;  %v8391_v62 = vld [vmem:[#allocation9 + $0x2d0] sm:$0xf]  ;;  %v6249_v24 = vor.u32 %v6485_v9, %v6248_v37  ;;  %v8401_v33 = vld [vmem:[#allocation9 + $0xd4] sm:$0xf]  ;;  %v8405_v17 = vld [vmem:[#allocation9 + $0xd8] sm:$0xf0] }
 0x175   : > { %v8395_v22 = vpack.c.bf16 %v2529_v2, %v2523_v55  ;;  %v5933_v11 = vor.u32 %v6404_v36, %v5930_v34  ;;  %v5997_v42 = vor.u32 %v6420_v57, %v5994_v27  ;;  %v3438_v5 = vadd.f32 %v3437_v14, %v8331_v35  ;;  %3390 = vmatmul.bf16.gmra.mxu1 %v8354_v10  ;;  %v8407_v7 = vld [vmem:[#allocation9 + $0x240] sm:$0xf]  ;;  %v8409_v37 = vld [vmem:[#allocation9 + $0x244] sm:$0xf0]  ;;  %v3526_v57 = vpop.f32.mrf.mxu3  ;;  %v5477_v2 = vld [vmem:[%s7119_s3 + $0x1710] sm:$0xff] }
 0x176   : > { %v1945_v51 = vadd.f32 %v1753_v39, %v1366_v59  ;;  %v1951_v15 = vadd.f32 %v1759_v52, %v1372_v18  ;;  %3579 = vmatpush.bf16.msrb.mxu0 %v6185_v6  ;;  %3668 = vmatpush.bf16.msrb.mxu1 %v6249_v24  ;;  %v6177_v9 = vor.u32 %v8368_v0, %v8366_v13  ;;  %v8417_v59 = vld [vmem:[#allocation9 + $0x2c0] sm:$0xf]  ;;  %v8419_v6 = vld [vmem:[#allocation9 + $0x2c4] sm:$0xf0]  ;;  %v8421_v18 = vld [vmem:[#allocation9 + $0x44] sm:$0xf]  ;;  %v3264_v0 = vpop.f32.mrf.mxu0 }
 0x177   : > { %10086 = vst [vmem:[#allocation78_spill] sm:$0xff] %v8395_v22  ;;  %3757 = vmatpush.bf16.msrb.mxu2 %v5933_v11  ;;  %v6241_v35 = vor.u32 %v8372_v31, %v8370_v49  ;;  %v5925_v36 = vor.u32 %v8374_v60, %v8376_v23  ;;  %v602_v34 = vld [vmem:[%s7119_s3 + $0x1680] sm:$0xff]  ;;  %3846 = vmatpush.bf16.msrb.mxu3 %v5997_v42  ;;  %v8428_v13 = vld [vmem:[#allocation9 + $0x48] sm:$0xf0]  ;;  %v5863_v11 = vld [vmem:[%s7119_s3 + $0x17d0] sm:$0xff] }
 0x178   : > { %v2524_v27 = vadd.f32 %v2332_v47, %v1945_v51  ;;  %v2530_v21 = vadd.f32 %v2338_v12, %v1951_v15  ;;  %v5989_v39 = vor.u32 %v8381_v20, %v8383_v43  ;;  %v6169_v52 = vor.u32 %v8389_v19, %v8385_v48  ;;  %v8430_v49 = vld [vmem:[#allocation9 + $0xc4] sm:$0xf]  ;;  %v8432_v31 = vld [vmem:[#allocation9 + $0xc8] sm:$0xf0]  ;;  %v608_v19 = vld [vmem:[%s7119_s3 + $0x16b0] sm:$0xff]  ;;  %3479 = vmatmul.bf16.gmra.mxu2 %v8395_v22 }
 0x179   : > { %v8434_v60 = vadd.f32 %v3526_v57, %v3438_v5  ;;  %v3265_v23 = vadd.f32 %v3264_v0, %v7770_v61  ;;  %v6233_v54 = vor.u32 %v8393_v30, %v8391_v62  ;;  %v5917_v55 = vor.u32 %v8397_v29, %v8399_v45  ;;  %v5471_v48 = vld [vmem:[%s7119_s3 + $0x16e0] sm:$0xff]  ;;  %v5670_v43 = vld [vmem:[%s7119_s3 + $0x1770] sm:$0xff]  ;;  %v3353_v29 = vpop.f32.mrf.mxu1  ;;  %v603_v42 = vld [vmem:[%s7119_s3 + $0x1688] sm:$0xff] }
 0x17a   : > { %v8445_v47 = vpack.c.bf16 %v2530_v21, %v2524_v27  ;;  %3580 = vmatpush.bf16.msrb.mxu0 %v6177_v9  ;;  %v5981_v12 = vor.u32 %v8401_v33, %v8405_v17  ;;  %v6161_v20 = vor.u32 %v8409_v37, %v8407_v7  ;;  %v5664_v62 = vld [vmem:[%s7119_s3 + $0x1740] sm:$0xff]  ;;  %3669 = vmatpush.bf16.msrb.mxu1 %v6241_v35  ;;  %v609_v17 = vld [vmem:[%s7119_s3 + $0x16b8] sm:$0xff]  ;;  %v5472_v7 = vld [vmem:[%s7119_s3 + $0x16e8] sm:$0xff] }
 0x17b   : > { %v5857_v45 = vld [vmem:[%s7119_s3 + $0x17a0] sm:$0xff]  ;;  %3758 = vmatpush.bf16.msrb.mxu2 %v5925_v36  ;;  %v6225_v30 = vor.u32 %v8419_v6, %v8417_v59  ;;  %v5909_v14 = vor.u32 %v8421_v18, %v8428_v13  ;;  %v5973_v24 = vor.u32 %v8430_v49, %v8432_v31  ;;  %v8462_v33 = vadd.f32 %v3353_v29, %v3265_v23  ;;  %v3440_v37 = vpop.f32.mrf.mxu2  ;;  %v5478_v6 = vld [vmem:[%s7119_s3 + $0x1718] sm:$0xff]  ;;  %v5665_v18 = vld [vmem:[%s7119_s3 + $0x1748] sm:$0xff] }
 0x17c   : > { %10087 = vst [vmem:[#allocation79_spill] sm:$0xff] %v8445_v47  ;;  %3847 = vmatpush.bf16.msrb.mxu3 %v5989_v39  ;;  %v796_v5 = vmul.f32 %v7159_v38, %v602_v34  ;;  %v802_v51 = vmul.f32 %v7159_v38, %v608_v19  ;;  %v1183_v15 = vmul.f32 %v5471_v48, %v7167_v44  ;;  %v5671_v34 = vld [vmem:[%s7119_s3 + $0x1778] sm:$0xff]  ;;  %v5858_v19 = vld [vmem:[%s7119_s3 + $0x17a8] sm:$0xff] }
 0x17d   : > { %3568 = vmatmul.bf16.gmra.mxu3 %v8445_v47  ;;  %v1189_v9 = vmul.f32 %v5477_v2, %v7167_v44  ;;  %v1762_v35 = vmul.f32 %v5664_v62, %v7175_v50  ;;  %v1768_v36 = vmul.f32 %v5670_v43, %v7175_v50  ;;  %v2341_v59 = vmul.f32 %v5857_v45, %v7183_v56  ;;  %v5864_v48 = vld [vmem:[%s7119_s3 + $0x17d8] sm:$0xff]  ;;  %v3529_v2 = vpop.f32.mrf.mxu3  ;;  %v604_v43 = vld [vmem:[%s7119_s3 + $0x1690] sm:$0xff]  ;;  %v5673_v49 = vld [vmem:[%s7119_s3 + $0x1788] sm:$0xff] }
 0x17e   : > { %v3441_v57 = vadd.f32 %v3440_v37, %v8387_v58  ;;  %3581 = vmatpush.bf16.msrb.mxu0 %v6169_v52  ;;  %v1375_v27 = vadd.f32 %v1183_v15, %v796_v5  ;;  %v2347_v21 = vmul.f32 %v5863_v11, %v7183_v56  ;;  %v797_v0 = vmul.f32 %v7159_v38, %v603_v42  ;;  %v3267_v58 = vpop.f32.mrf.mxu0  ;;  %v610_v5 = vld [vmem:[%s7119_s3 + $0x16c0] sm:$0xff]  ;;  %v5860_v31 = vld [vmem:[%s7119_s3 + $0x17b8] sm:$0xff]  ;;  %v8550_v22 = vld [vmem:[#allocation9 + $0xa8] sm:$0xf0] }
 0x17f   : > { %3670 = vmatpush.bf16.msrb.mxu1 %v6233_v54  ;;  %3759 = vmatpush.bf16.msrb.mxu2 %v5917_v55  ;;  %v1381_v39 = vadd.f32 %v1189_v9, %v802_v51  ;;  %v803_v13 = vmul.f32 %v7159_v38, %v609_v17  ;;  %v1184_v23 = vmul.f32 %v5472_v7, %v7167_v44  ;;  %v5479_v37 = vld [vmem:[%s7119_s3 + $0x1720] sm:$0xff]  ;;  %v5666_v9 = vld [vmem:[%s7119_s3 + $0x1750] sm:$0xff] }
 0x180   : > { %3848 = vmatpush.bf16.msrb.mxu3 %v5981_v12  ;;  %v1954_v52 = vadd.f32 %v1762_v35, %v1375_v27  ;;  %v1190_v62 = vmul.f32 %v5478_v6, %v7167_v44  ;;  %v1763_v54 = vmul.f32 %v5665_v18, %v7175_v50  ;;  %v1769_v55 = vmul.f32 %v5671_v34, %v7175_v50  ;;  %v5473_v12 = vld [vmem:[%s7119_s3 + $0x16f0] sm:$0xff]  ;;  %v5672_v35 = vld [vmem:[%s7119_s3 + $0x1780] sm:$0xff] }
 0x181   : > { %v8488_v45 = vadd.f32 %v3529_v2, %v3441_v57  ;;  %v3268_v29 = vadd.f32 %v3267_v58, %v7770_v61  ;;  %v1960_v11 = vadd.f32 %v1768_v36, %v1381_v39  ;;  %v1376_v42 = vadd.f32 %v1184_v23, %v797_v0  ;;  %v3356_v6 = vpop.f32.mrf.mxu1  ;;  %v5859_v34 = vld [vmem:[%s7119_s3 + $0x17b0] sm:$0xff]  ;;  %v605_v57 = vld [vmem:[%s7119_s3 + $0x1698] sm:$0xff]  ;;  %v8548_v47 = vld [vmem:[#allocation9 + $0xa4] sm:$0xf] }
 0x182   : > { %3582 = vmatpush.bf16.msrb.mxu0 %v6161_v20  ;;  %v2533_v51 = vadd.f32 %v2341_v59, %v1954_v52  ;;  %v1382_v15 = vadd.f32 %v1190_v62, %v803_v13  ;;  %v2342_v17 = vmul.f32 %v5858_v19, %v7183_v56  ;;  %v2348_v7 = vmul.f32 %v5864_v48, %v7183_v56  ;;  %v5865_v59 = vld [vmem:[%s7119_s3 + $0x17e0] sm:$0xff]  ;;  %v5474_v39 = vld [vmem:[%s7119_s3 + $0x16f8] sm:$0xff]  ;;  %v5480_v13 = vld [vmem:[%s7119_s3 + $0x1728] sm:$0xff] }
 0x183   : > { %3671 = vmatpush.bf16.msrb.mxu1 %v6225_v30  ;;  %3760 = vmatpush.bf16.msrb.mxu2 %v5909_v14  ;;  %v2539_v36 = vadd.f32 %v2347_v21, %v1960_v11  ;;  %v1955_v18 = vadd.f32 %v1763_v54, %v1376_v42  ;;  %v798_v20 = vmul.f32 %v7159_v38, %v604_v43  ;;  %v611_v21 = vld [vmem:[%s7119_s3 + $0x16c8] sm:$0xff]  ;;  %v3442_v23 = vpop.f32.mrf.mxu2  ;;  %v5667_v52 = vld [vmem:[%s7119_s3 + $0x1758] sm:$0xff] }
 0x184   : > { %v8502_v27 = vadd.f32 %v3356_v6, %v3268_v29  ;;  %3849 = vmatpush.bf16.msrb.mxu3 %v5973_v24  ;;  %v1961_v0 = vadd.f32 %v1769_v55, %v1382_v15  ;;  %v804_v30 = vmul.f32 %v7159_v38, %v610_v5  ;;  %v1185_v14 = vmul.f32 %v5473_v12, %v7167_v44  ;;  %v5866_v43 = vld [vmem:[%s7119_s3 + $0x17e8] sm:$0xff]  ;;  %v6152_v29 = vld [vmem:[#allocation9 + $0x230] sm:$0xf]  ;;  %v6461_v11 = vld [vmem:[#allocation9 + $0x234] sm:$0xf0] }
 0x185   : > { %v8512_v19 = vpack.c.bf16 %v2539_v36, %v2533_v51  ;;  %v2534_v48 = vadd.f32 %v2342_v17, %v1955_v18  ;;  %v1191_v2 = vmul.f32 %v5479_v37, %v7167_v44  ;;  %v1764_v58 = vmul.f32 %v5666_v9, %v7175_v50  ;;  %v6216_v15 = vld [vmem:[#allocation9 + $0x2b0] sm:$0xf]  ;;  %v6477_v17 = vld [vmem:[#allocation9 + $0x2b4] sm:$0xf0]  ;;  %v6396_v37 = vld [vmem:[#allocation9 + $0x34] sm:$0xf] }
 0x186   : > { %v3443_v24 = vadd.f32 %v3442_v23, %v8462_v33  ;;  %v2540_v62 = vadd.f32 %v2348_v7, %v1961_v0  ;;  %v1377_v54 = vadd.f32 %v1185_v14, %v798_v20  ;;  %v1770_v55 = vmul.f32 %v5672_v35, %v7175_v50  ;;  %v3531_v33 = vpop.f32.mrf.mxu3  ;;  %v5898_v36 = vld [vmem:[#allocation9 + $0x38] sm:$0xf0]  ;;  %v6412_v18 = vld [vmem:[#allocation9 + $0xb4] sm:$0xf]  ;;  %v3269_v0 = vpop.f32.mrf.mxu0  ;;  %v8534_v14 = vld [vmem:[#allocation9 + $0x220] sm:$0xf] }
 0x187   : > { %10088 = vst [vmem:[#allocation80_spill] sm:$0xff] %v8512_v19  ;;  %3306 = vmatmul.bf16.gmra.mxu0 %v8512_v19  ;;  %v1383_v42 = vadd.f32 %v1191_v2, %v804_v30  ;;  %v2343_v5 = vmul.f32 %v5859_v34, %v7183_v56  ;;  %v2349_v12 = vmul.f32 %v5865_v59, %v7183_v56  ;;  %v5962_v20 = vld [vmem:[#allocation9 + $0xb8] sm:$0xf0]  ;;  %v8536_v23 = vld [vmem:[#allocation9 + $0x224] sm:$0xf0] }
 0x188   : > { %v799_v51 = vmul.f32 %v7159_v38, %v605_v57  ;;  %v8526_v7 = vpack.c.bf16 %v2540_v62, %v2534_v48  ;;  %v1956_v9 = vadd.f32 %v1764_v58, %v1377_v54  ;;  %v805_v35 = vmul.f32 %v7159_v38, %v611_v21  ;;  %v8538_v48 = vld [vmem:[#allocation9 + $0x2a0] sm:$0xf]  ;;  %v8545_v62 = vld [vmem:[#allocation9 + $0x24] sm:$0xf] }
 0x189   : > { %v1186_v6 = vmul.f32 %v5474_v39, %v7167_v44  ;;  %v8530_v34 = vadd.f32 %v3531_v33, %v3443_v24  ;;  %v1962_v59 = vadd.f32 %v1770_v55, %v1383_v42  ;;  %v1192_v57 = vmul.f32 %v5480_v13, %v7167_v44  ;;  %v8543_v24 = vld [vmem:[#allocation9 + $0x2a4] sm:$0xf0]  ;;  %v5890_v13 = vld [vmem:[#allocation9 + $0x28] sm:$0xf0]  ;;  %v3358_v33 = vpop.f32.mrf.mxu1 }
 0x18a   : > { %10089 = vst [vmem:[#allocation81_spill] sm:$0xff] %v8526_v7  ;;  %v1765_v30 = vmul.f32 %v5667_v52, %v7175_v50  ;;  %3395 = vmatmul.bf16.gmra.mxu1 %v8526_v7  ;;  %v2535_v21 = vadd.f32 %v2343_v5, %v1956_v9  ;;  %v1771_v2 = vmul.f32 %v5673_v49, %v7175_v50  ;;  %v8552_v5 = vld [vmem:[#allocation9 + $0x210] sm:$0xf]  ;;  %v8554_v49 = vld [vmem:[#allocation9 + $0x214] sm:$0xf0] }
 0x18b   : > { %10090 = vst [vmem:[#allocation82_spill] sm:$0xff] %v8530_v34  ;;  %v1378_v39 = vadd.f32 %v1186_v6, %v799_v51  ;;  %v2344_v58 = vmul.f32 %v5860_v31, %v7183_v56  ;;  %v2541_v52 = vadd.f32 %v2349_v12, %v1962_v59  ;;  %v1384_v54 = vadd.f32 %v1192_v57, %v805_v35  ;;  %v8556_v31 = vld [vmem:[#allocation9 + $0x290] sm:$0xf]  ;;  %v8558_v51 = vld [vmem:[#allocation9 + $0x294] sm:$0xf0]  ;;  %v3445_v7 = vpop.f32.mrf.mxu2 }
 0x18c   : > { %v2350_v55 = vmul.f32 %v5866_v43, %v7183_v56  ;;  %v6153_v42 = vor.u32 %v6461_v11, %v6152_v29  ;;  %v6217_v6 = vor.u32 %v6477_v17, %v6216_v15  ;;  %v5901_v12 = vor.u32 %v6396_v37, %v5898_v36  ;;  %v8560_v59 = vld [vmem:[#allocation9 + $0x14] sm:$0xf]  ;;  %v8562_v43 = vld [vmem:[#allocation9 + $0x18] sm:$0xf0]  ;;  %v8573_v15 = vld [vmem:[#allocation9 + $0x200] sm:$0xf] }
 0x18d   : > { %v1957_v9 = vadd.f32 %v1765_v30, %v1378_v39  ;;  %v5965_v35 = vor.u32 %v6412_v18, %v5962_v20  ;;  %v8564_v29 = vld [vmem:[#allocation9 + $0x94] sm:$0xf]  ;;  %v8566_v11 = vpack.c.bf16 %v2541_v52, %v2535_v21  ;;  %v1963_v57 = vadd.f32 %v1771_v2, %v1384_v54  ;;  %v8571_v30 = vld [vmem:[#allocation9 + $0x98] sm:$0xf0]  ;;  %v8575_v17 = vld [vmem:[#allocation9 + $0x204] sm:$0xf0] }
 0x18e   : > { %3583 = vmatpush.bf16.msrb.mxu0 %v6153_v42  ;;  %v3270_v19 = vadd.f32 %v3269_v0, %v7770_v61  ;;  %v6145_v34 = vor.u32 %v8536_v23, %v8534_v14  ;;  %3672 = vmatpush.bf16.msrb.mxu1 %v6217_v6  ;;  %v3446_v36 = vadd.f32 %v3445_v7, %v8502_v27  ;;  %v8580_v20 = vld [vmem:[#allocation9 + $0x280] sm:$0xf]  ;;  %v8582_v0 = vld [vmem:[#allocation9 + $0x284] sm:$0xf0]  ;;  %v8584_v14 = vld [vmem:[#allocation9 + $0x4] sm:$0xf]  ;;  %v3534_v2 = vpop.f32.mrf.mxu3 }
 0x18f   : > { %10091 = vst [vmem:[#allocation83_spill] sm:$0xff] %v8566_v11  ;;  %v2536_v37 = vadd.f32 %v2344_v58, %v1957_v9  ;;  %3761 = vmatpush.bf16.msrb.mxu2 %v5901_v12  ;;  %v6209_v18 = vor.u32 %v8543_v24, %v8538_v48  ;;  %v2542_v23 = vadd.f32 %v2350_v55, %v1963_v57  ;;  %v8588_v27 = vld [vmem:[#allocation9 + $0x8] sm:$0xf0]  ;;  %v8590_v7 = vld [vmem:[#allocation9 + $0x84] sm:$0xf]  ;;  %v432_v54 = vld [vmem:[%s7119_s3 + $0x50] sm:$0xff] }
 0x190   : > { %3484 = vmatmul.bf16.gmra.mxu2 %v8566_v11  ;;  %3850 = vmatpush.bf16.msrb.mxu3 %v5965_v35  ;;  %v3359_v21 = vadd.f32 %v3358_v33, %v3270_v19  ;;  %v5893_v39 = vor.u32 %v8545_v62, %v5890_v13  ;;  %v8592_v48 = vld [vmem:[#allocation9 + $0x88] sm:$0xf0]  ;;  %v5957_v58 = vor.u32 %v8548_v47, %v8550_v22  ;;  %v3272_v13 = vpop.f32.mrf.mxu0  ;;  %v426_v52 = vld [vmem:[%s7119_s3 + $0x20] sm:$0xff]  ;;  %v5687_v12 = vld [vmem:[%s7119_s3 + $0x170] sm:$0xff] }
 0x191   : > { %v6137_v24 = vor.u32 %v8554_v49, %v8552_v5  ;;  %v6201_v19 = vor.u32 %v8558_v51, %v8556_v31  ;;  %v5885_v62 = vor.u32 %v8560_v59, %v8562_v43  ;;  %v5295_v55 = vld [vmem:[%s7119_s3 + $0x80] sm:$0xff]  ;;  %v8605_v42 = vpack.c.bf16 %v2542_v23, %v2536_v37  ;;  %v5301_v5 = vld [vmem:[%s7119_s3 + $0xb0] sm:$0xff]  ;;  %v427_v35 = vld [vmem:[%s7119_s3 + $0x28] sm:$0xff]  ;;  %v3361_v59 = vpop.f32.mrf.mxu1 }
 0x192   : > { %v8607_v33 = vadd.f32 %v3534_v2, %v3446_v36  ;;  %3584 = vmatpush.bf16.msrb.mxu0 %v6145_v34  ;;  %v5949_v22 = vor.u32 %v8564_v29, %v8571_v30  ;;  %v3273_v47 = vadd.f32 %v3272_v13, %v7770_v61  ;;  %v5488_v49 = vld [vmem:[%s7119_s3 + $0xe0] sm:$0xff]  ;;  %v5494_v31 = vld [vmem:[%s7119_s3 + $0x110] sm:$0xff]  ;;  %3673 = vmatpush.bf16.msrb.mxu1 %v6209_v18  ;;  %v5495_v2 = vld [vmem:[%s7119_s3 + $0x118] sm:$0xff] }
 0x193   : > { %10092 = vst [vmem:[#allocation84_spill] sm:$0xff] %v8605_v42  ;;  %3762 = vmatpush.bf16.msrb.mxu2 %v5893_v39  ;;  %v6129_v51 = vor.u32 %v8575_v17, %v8573_v15  ;;  %v6193_v9 = vor.u32 %v8582_v0, %v8580_v20  ;;  %v5877_v34 = vor.u32 %v8584_v14, %v8588_v27  ;;  %v5681_v6 = vld [vmem:[%s7119_s3 + $0x140] sm:$0xff]  ;;  %v433_v15 = vld [vmem:[%s7119_s3 + $0x58] sm:$0xff]  ;;  %v5296_v20 = vld [vmem:[%s7119_s3 + $0x88] sm:$0xff]  ;;  %v3447_v23 = vpop.f32.mrf.mxu2 }
 0x194   : > { %3573 = vmatmul.bf16.gmra.mxu3 %v8605_v42  ;;  %v5941_v43 = vor.u32 %v8590_v7, %v8592_v48  ;;  %v620_v29 = vmul.f32 %v7159_v38, %v426_v52  ;;  %v626_v57 = vmul.f32 %v7159_v38, %v432_v54  ;;  %v1007_v30 = vmul.f32 %v5295_v55, %v7167_v44  ;;  %v5302_v0 = vld [vmem:[%s7119_s3 + $0xb8] sm:$0xff]  ;;  %v5489_v14 = vld [vmem:[%s7119_s3 + $0xe8] sm:$0xff] }
 0x195   : > { %3851 = vmatpush.bf16.msrb.mxu3 %v5957_v58  ;;  %v8631_v17 = vadd.f32 %v3361_v59, %v3273_v47  ;;  %v1013_v37 = vmul.f32 %v5301_v5, %v7167_v44  ;;  %v1586_v36 = vmul.f32 %v5488_v49, %v7175_v50  ;;  %v1592_v18 = vmul.f32 %v5494_v31, %v7175_v50  ;;  %v5682_v58 = vld [vmem:[%s7119_s3 + $0x148] sm:$0xff]  ;;  %v5688_v13 = vld [vmem:[%s7119_s3 + $0x178] sm:$0xff]  ;;  %v438_v31 = vld [vmem:[%s7119_s3 + $0x1a0] sm:$0xff] }
 0x196   : > { %3585 = vmatpush.bf16.msrb.mxu0 %v6137_v24  ;;  %v1199_v39 = vadd.f32 %v1007_v30, %v620_v29  ;;  %v2165_v27 = vmul.f32 %v5681_v6, %v7183_v56  ;;  %v2171_v7 = vmul.f32 %v5687_v12, %v7183_v56  ;;  %v621_v48 = vmul.f32 %v7159_v38, %v427_v35  ;;  %v3536_v6 = vpop.f32.mrf.mxu3  ;;  %v444_v59 = vld [vmem:[%s7119_s3 + $0x1d0] sm:$0xff]  ;;  %v5307_v29 = vld [vmem:[%s7119_s3 + $0x200] sm:$0xff] }
 0x197   : > { %3674 = vmatpush.bf16.msrb.mxu1 %v6201_v19  ;;  %3763 = vmatpush.bf16.msrb.mxu2 %v5885_v62  ;;  %v3448_v52 = vadd.f32 %v3447_v23, %v3359_v21  ;;  %v1205_v54 = vadd.f32 %v1013_v37, %v626_v57  ;;  %v627_v24 = vmul.f32 %v7159_v38, %v433_v15 }
 0x198   : > { %v1778_v55 = vadd.f32 %v1586_v36, %v1199_v39  ;;  %v1008_v47 = vmul.f32 %v5296_v20, %v7167_v44  ;;  %v1014_v5 = vmul.f32 %v5302_v0, %v7167_v44  ;;  %v1587_v49 = vmul.f32 %v5489_v14, %v7175_v50  ;;  %v3274_v35 = vpop.f32.mrf.mxu0  ;;  %v5500_v0 = vld [vmem:[%s7119_s3 + $0x260] sm:$0xff] }
 0x199   : > { %3852 = vmatpush.bf16.msrb.mxu3 %v5949_v22  ;;  %v1784_v12 = vadd.f32 %v1592_v18, %v1205_v54  ;;  %v1593_v19 = vmul.f32 %v5495_v2, %v7175_v50  ;;  %v2166_v21 = vmul.f32 %v5682_v58, %v7183_v56  ;;  %v2172_v62 = vmul.f32 %v5688_v13, %v7183_v56  ;;  %v5313_v22 = vld [vmem:[%s7119_s3 + $0x230] sm:$0xff]  ;;  %v439_v2 = vld [vmem:[%s7119_s3 + $0x1a8] sm:$0xff]  ;;  %v445_v58 = vld [vmem:[%s7119_s3 + $0x1d8] sm:$0xff] }
 0x19a   : > { %v8655_v57 = vadd.f32 %v3536_v6, %v3448_v52  ;;  %3586 = vmatpush.bf16.msrb.mxu0 %v6129_v51  ;;  %v2357_v30 = vadd.f32 %v2165_v27, %v1778_v55  ;;  %v1200_v15 = vadd.f32 %v1008_v47, %v621_v48  ;;  %v1206_v37 = vadd.f32 %v1014_v5, %v627_v24  ;;  %v3363_v51 = vpop.f32.mrf.mxu1  ;;  %v5693_v48 = vld [vmem:[%s7119_s3 + $0x2c0] sm:$0xff]  ;;  %v5699_v55 = vld [vmem:[%s7119_s3 + $0x2f0] sm:$0xff]  ;;  %v5308_v47 = vld [vmem:[%s7119_s3 + $0x208] sm:$0xff] }
 0x19b   : > { %3675 = vmatpush.bf16.msrb.mxu1 %v6193_v9  ;;  %3764 = vmatpush.bf16.msrb.mxu2 %v5877_v34  ;;  %v2363_v36 = vadd.f32 %v2171_v7, %v1784_v12  ;;  %v3275_v18 = vadd.f32 %v3274_v35, %v7770_v61  ;;  %v632_v20 = vmul.f32 %v7159_v38, %v438_v31  ;;  %v5506_v9 = vld [vmem:[%s7119_s3 + $0x290] sm:$0xff]  ;;  %v3450_v54 = vpop.f32.mrf.mxu2  ;;  %v5314_v5 = vld [vmem:[%s7119_s3 + $0x238] sm:$0xff]  ;;  %v5501_v12 = vld [vmem:[%s7119_s3 + $0x268] sm:$0xff] }
 0x19c   : > { %v1779_v14 = vadd.f32 %v1587_v49, %v1200_v15  ;;  %v1785_v23 = vadd.f32 %v1593_v19, %v1206_v37  ;;  %v638_v39 = vmul.f32 %v7159_v38, %v444_v59  ;;  %v1019_v27 = vmul.f32 %v5307_v29, %v7167_v44  ;;  %v5507_v19 = vld [vmem:[%s7119_s3 + $0x298] sm:$0xff] }
 0x19d   : > { %3853 = vmatpush.bf16.msrb.mxu3 %v5941_v43  ;;  %v8664_v34 = vpack.c.bf16 %v2363_v36, %v2357_v30  ;;  %v1025_v7 = vmul.f32 %v5313_v22, %v7167_v44  ;;  %v1598_v24 = vmul.f32 %v5500_v0, %v7175_v50  ;;  %v3451_v43 = vadd.f32 %v3450_v54, %v8631_v17  ;;  %v450_v54 = vld [vmem:[%s7119_s3 + $0x320] sm:$0xff] }
 0x19e   : > { %v2358_v13 = vadd.f32 %v2166_v21, %v1779_v14  ;;  %v2364_v52 = vadd.f32 %v2172_v62, %v1785_v23  ;;  %v1211_v49 = vadd.f32 %v1019_v27, %v632_v20  ;;  %v1604_v6 = vmul.f32 %v5506_v9, %v7175_v50  ;;  %v3539_v29 = vpop.f32.mrf.mxu3  ;;  %v5700_v27 = vld [vmem:[%s7119_s3 + $0x2f8] sm:$0xff] }
 0x19f   : > { %3587 = vmatmul.bf16.vlgmr.msrb.gmra.mxu0 %v8664_v34  ;;  %v1217_v31 = vadd.f32 %v1025_v7, %v638_v39  ;;  %v3364_v21 = vadd.f32 %v3363_v51, %v3275_v18  ;;  %v633_v62 = vmul.f32 %v7159_v38, %v439_v2  ;;  %v639_v59 = vmul.f32 %v7159_v38, %v445_v58  ;;  %v5694_v39 = vld [vmem:[%s7119_s3 + $0x2c8] sm:$0xff] }
 0x1a0   : > { %v8679_v35 = vpack.c.bf16 %v2364_v52, %v2358_v13  ;;  %3765 = vmatmul.bf16.vlgmr.msrb.gmra.mxu2 %v7213_v32  ;;  %v3277_v30 = vpop.f32.mrf.mxu0  ;;  %v2177_v17 = vmul.f32 %v5693_v48, %v7183_v56  ;;  %v2183_v15 = vmul.f32 %v5699_v55, %v7183_v56  ;;  %v1020_v37 = vmul.f32 %v5308_v47, %v7167_v44 }
 0x1a1   : > { %v1026_v22 = vmul.f32 %v5314_v5, %v7167_v44  ;;  %v8689_v32 = vadd.f32 %v3539_v29, %v3451_v43  ;;  %v3278_v36 = vadd.f32 %v3277_v30, %v7770_v61  ;;  %v1599_v18 = vmul.f32 %v5501_v12, %v7175_v50  ;;  %v5319_v5 = vld [vmem:[%s7119_s3 + $0x380] sm:$0xff]  ;;  %v456_v43 = vld [vmem:[%s7119_s3 + $0x350] sm:$0xff]  ;;  %v451_v12 = vld [vmem:[%s7119_s3 + $0x328] sm:$0xff] }
 0x1a2   : > { %3676 = vmatmul.bf16.vlgmr.msrb.gmra.mxu1 %v8679_v35  ;;  %v1605_v20 = vmul.f32 %v5507_v19, %v7175_v50  ;;  %v1790_v0 = vadd.f32 %v1598_v24, %v1211_v49  ;;  %v1796_v14 = vadd.f32 %v1604_v6, %v1217_v31  ;;  %v1212_v23 = vadd.f32 %v1020_v37, %v633_v62  ;;  %v3366_v9 = vpop.f32.mrf.mxu1  ;;  %v5320_v30 = vld [vmem:[%s7119_s3 + $0x388] sm:$0xff] }
 0x1a3   : > { %v1218_v51 = vadd.f32 %v1026_v22, %v639_v59  ;;  %v3367_v7 = vadd.f32 %v3366_v9, %v3278_v36  ;;  %v3452_v48 = vpop.f32.mrf.mxu2  ;;  %v2178_v13 = vmul.f32 %v5694_v39, %v7183_v56  ;;  %v2184_v52 = vmul.f32 %v5700_v27, %v7183_v56  ;;  %v5512_v36 = vld [vmem:[%s7119_s3 + $0x3e0] sm:$0xff] }
 0x1a4   : > { %3854 = vmatmul.bf16.vlgmr.msrb.gmra.mxu3 %v7229_v53  ;;  %v1791_v2 = vadd.f32 %v1599_v18, %v1212_v23  ;;  %v3453_v24 = vadd.f32 %v3452_v48, %v3364_v21  ;;  %v2369_v55 = vadd.f32 %v2177_v17, %v1790_v0  ;;  %v2375_v47 = vadd.f32 %v2183_v15, %v1796_v14  ;;  %v5325_v53 = vld [vmem:[%s7119_s3 + $0x3b0] sm:$0xff]  ;;  %v457_v21 = vld [vmem:[%s7119_s3 + $0x358] sm:$0xff] }
 0x1a5   : > { %v1797_v58 = vadd.f32 %v1605_v20, %v1218_v51  ;;  %v644_v6 = vmul.f32 %v7159_v38, %v450_v54  ;;  %v1031_v29 = vmul.f32 %v5319_v5, %v7167_v44  ;;  %v5326_v17 = vld [vmem:[%s7119_s3 + $0x3b8] sm:$0xff]  ;;  %v650_v37 = vmul.f32 %v7159_v38, %v456_v43  ;;  %v5518_v20 = vld [vmem:[%s7119_s3 + $0x410] sm:$0xff] }
 0x1a6   : > { %v3541_v49 = vpop.f32.mrf.mxu3  ;;  %v2370_v62 = vadd.f32 %v2178_v13, %v1791_v2  ;;  %v8711_v15 = vpack.c.bf16 %v2375_v47, %v2369_v55  ;;  %v1037_v22 = vmul.f32 %v5325_v53, %v7167_v44  ;;  %v645_v0 = vmul.f32 %v7159_v38, %v451_v12  ;;  %v5705_v2 = vld [vmem:[%s7119_s3 + $0x440] sm:$0xff]  ;;  %v5519_v55 = vld [vmem:[%s7119_s3 + $0x418] sm:$0xff]  ;;  %v5711_v47 = vld [vmem:[%s7119_s3 + $0x470] sm:$0xff] }
 0x1a7   : > { %v8705_v19 = vadd.f32 %v3541_v49, %v3453_v24  ;;  %v2376_v59 = vadd.f32 %v2184_v52, %v1797_v58  ;;  %v651_v14 = vmul.f32 %v7159_v38, %v457_v21  ;;  %v1032_v23 = vmul.f32 %v5320_v30, %v7167_v44  ;;  %v5513_v24 = vld [vmem:[%s7119_s3 + $0x3e8] sm:$0xff] }
 0x1a8   : > { %v3279_v31 = vpop.f32.mrf.mxu0  ;;  %v1038_v51 = vmul.f32 %v5326_v17, %v7167_v44  ;;  %v1223_v9 = vadd.f32 %v1031_v29, %v644_v6  ;;  %v1610_v48 = vmul.f32 %v5512_v36, %v7175_v50  ;;  %v1229_v52 = vadd.f32 %v1037_v22, %v650_v37  ;;  %v5706_v30 = vld [vmem:[%s7119_s3 + $0x448] sm:$0xff]  ;;  %v5712_v17 = vld [vmem:[%s7119_s3 + $0x478] sm:$0xff]  ;;  %v462_v36 = vld [vmem:[%s7119_s3 + $0x4a0] sm:$0xff] }
 0x1a9   : > { %v8721_v39 = vpack.c.bf16 %v2376_v59, %v2370_v62  ;;  %v3280_v13 = vadd.f32 %v3279_v31, %v7770_v61  ;;  %v1616_v54 = vmul.f32 %v5518_v20, %v7175_v50  ;;  %v2189_v53 = vmul.f32 %v5705_v2, %v7183_v56 }
 0x1aa   : > { %v3368_v18 = vpop.f32.mrf.mxu1  ;;  %v1224_v49 = vadd.f32 %v1032_v23, %v645_v0  ;;  %v1230_v6 = vadd.f32 %v1038_v51, %v651_v14  ;;  %v1611_v12 = vmul.f32 %v5513_v24, %v7175_v50  ;;  %v1802_v59 = vadd.f32 %v1610_v48, %v1223_v9  ;;  %v468_v51 = vld [vmem:[%s7119_s3 + $0x4d0] sm:$0xff] }
 0x1ab   : > { %v3455_v27 = vpop.f32.mrf.mxu2  ;;  %v3369_v62 = vadd.f32 %v3368_v18, %v3280_v13  ;;  %v1808_v29 = vadd.f32 %v1616_v54, %v1229_v52  ;;  %v2195_v21 = vmul.f32 %v5711_v47, %v7183_v56  ;;  %v2190_v18 = vmul.f32 %v5706_v30, %v7183_v56  ;;  %v5337_v9 = vld [vmem:[%s7119_s3 + $0x530] sm:$0xff]  ;;  %v5524_v47 = vld [vmem:[%s7119_s3 + $0x560] sm:$0xff] }
 0x1ac   : > { %v3456_v58 = vadd.f32 %v3455_v27, %v3367_v7  ;;  %v1803_v0 = vadd.f32 %v1611_v12, %v1224_v49  ;;  %v2196_v23 = vmul.f32 %v5712_v17, %v7183_v56  ;;  %v5331_v27 = vld [vmem:[%s7119_s3 + $0x500] sm:$0xff]  ;;  %v2381_v2 = vadd.f32 %v2189_v53, %v1802_v59 }
 0x1ad   : > { %v656_v52 = vmul.f32 %v7159_v38, %v462_v36  ;;  %v662_v54 = vmul.f32 %v7159_v38, %v468_v51  ;;  %v1043_v24 = vmul.f32 %v5331_v27, %v7167_v44  ;;  %v5723_v36 = vld [vmem:[%s7119_s3 + $0x5f0] sm:$0xff]  ;;  %v5525_v27 = vld [vmem:[%s7119_s3 + $0x568] sm:$0xff] }
 0x1ae   : > { %v3544_v5 = vpop.f32.mrf.mxu3  ;;  %v2382_v53 = vadd.f32 %v2190_v18, %v1803_v0 }
 0x1af   : > { %3592 = vmatmul.bf16.gmra.mxu0 %v8711_v15  ;;  %v8734_v7 = vadd.f32 %v3544_v5, %v3456_v58  ;;  %v5530_v5 = vld [vmem:[%s7119_s3 + $0x590] sm:$0xff]  ;;  %v1235_v30 = vadd.f32 %v1043_v24, %v656_v52 }
 0x1b0   : > { %3770 = vmatmul.bf16.gmra.mxu2 %v7284_v63  ;;  %v3282_v43 = vpop.f32.mrf.mxu0  ;;  %v1617_v63 = vmul.f32 %v5519_v55, %v7175_v50  ;;  %v1049_v55 = vmul.f32 %v5337_v9, %v7167_v44 }
 0x1b1   : > { %v3283_v31 = vadd.f32 %v3282_v43, %v7770_v61 }
 0x1b2   : > { %3681 = vmatmul.bf16.gmra.mxu1 %v8721_v39  ;;  %v3371_v37 = vpop.f32.mrf.mxu1  ;;  %v1809_v14 = vadd.f32 %v1617_v63, %v1230_v6  ;;  %v463_v6 = vld [vmem:[%s7119_s3 + $0x4a8] sm:$0xff]  ;;  %v469_v63 = vld [vmem:[%s7119_s3 + $0x4d8] sm:$0xff]  ;;  %v1241_v17 = vadd.f32 %v1049_v55, %v662_v54 }
 0x1b3   : > { %v3372_v22 = vadd.f32 %v3371_v37, %v3283_v31  ;;  %v3457_v20 = vpop.f32.mrf.mxu2  ;;  %v5332_v31 = vld [vmem:[%s7119_s3 + $0x508] sm:$0xff]  ;;  %v5717_v37 = vld [vmem:[%s7119_s3 + $0x5c0] sm:$0xff] }
 0x1b4   : > { %3859 = vmatmul.bf16.gmra.mxu3 %v7305_v25  ;;  %v3458_v48 = vadd.f32 %v3457_v20, %v3369_v62  ;;  %v2387_v25 = vadd.f32 %v2195_v21, %v1808_v29  ;;  %v2388_v49 = vadd.f32 %v2196_v23, %v1809_v14  ;;  %v5338_v62 = vld [vmem:[%s7119_s3 + $0x538] sm:$0xff]  ;;  %v1622_v29 = vmul.f32 %v5524_v47, %v7175_v50 }
 0x1b5   : > { %v1628_v21 = vmul.f32 %v5530_v5, %v7175_v50  ;;  %v657_v20 = vmul.f32 %v7159_v38, %v463_v6  ;;  %v1044_v0 = vmul.f32 %v5332_v31, %v7167_v44  ;;  %v663_v23 = vmul.f32 %v7159_v38, %v469_v63  ;;  %v5718_v6 = vld [vmem:[%s7119_s3 + $0x5c8] sm:$0xff]  ;;  %v5724_v31 = vld [vmem:[%s7119_s3 + $0x5f8] sm:$0xff] }
 0x1b6   : > { %v3546_v58 = vpop.f32.mrf.mxu3  ;;  %v8759_v12 = vpack.c.bf16 %v2387_v25, %v2381_v2  ;;  %v8769_v14 = vpack.c.bf16 %v2388_v49, %v2382_v53  ;;  %v1050_v51 = vmul.f32 %v5338_v62, %v7167_v44  ;;  %v5531_v2 = vld [vmem:[%s7119_s3 + $0x598] sm:$0xff]  ;;  %v2201_v25 = vmul.f32 %v5717_v37, %v7183_v56 }
 0x1b7   : > { %v8755_v43 = vadd.f32 %v3546_v58, %v3458_v48  ;;  %v2207_v58 = vmul.f32 %v5723_v36, %v7183_v56  ;;  %v1814_v24 = vadd.f32 %v1622_v29, %v1235_v30  ;;  %v1820_v55 = vadd.f32 %v1628_v21, %v1241_v17 }
 0x1b8   : > { %v3284_v13 = vpop.f32.mrf.mxu0  ;;  %v1236_v47 = vadd.f32 %v1044_v0, %v657_v20  ;;  %v1623_v5 = vmul.f32 %v5525_v27, %v7175_v50  ;;  %v1242_v53 = vadd.f32 %v1050_v51, %v663_v23  ;;  %v2202_v36 = vmul.f32 %v5718_v6, %v7183_v56  ;;  %v474_v0 = vld [vmem:[%s7119_s3 + $0x620] sm:$0xff]  ;;  %v475_v51 = vld [vmem:[%s7119_s3 + $0x628] sm:$0xff] }
 0x1b9   : > { %v3285_v48 = vadd.f32 %v3284_v13, %v7770_v61  ;;  %v2393_v29 = vadd.f32 %v2201_v25, %v1814_v24  ;;  %v2399_v21 = vadd.f32 %v2207_v58, %v1820_v55  ;;  %v5343_v23 = vld [vmem:[%s7119_s3 + $0x680] sm:$0xff]  ;;  %v5350_v25 = vld [vmem:[%s7119_s3 + $0x6b8] sm:$0xff]  ;;  %v668_v55 = vmul.f32 %v7159_v38, %v474_v0 }
 0x1ba   : > { %v3373_v59 = vpop.f32.mrf.mxu1  ;;  %v1815_v17 = vadd.f32 %v1623_v5, %v1236_v47  ;;  %v1055_v5 = vmul.f32 %v5343_v23, %v7167_v44  ;;  %v669_v6 = vmul.f32 %v7159_v38, %v475_v51  ;;  %v5735_v51 = vld [vmem:[%s7119_s3 + $0x770] sm:$0xff] }
 0x1bb   : > { %v3460_v18 = vpop.f32.mrf.mxu2  ;;  %v3374_v49 = vadd.f32 %v3373_v59, %v3285_v48  ;;  %v2208_v59 = vmul.f32 %v5724_v31, %v7183_v56  ;;  %v481_v48 = vld [vmem:[%s7119_s3 + $0x658] sm:$0xff] }
 0x1bc   : > { %v3461_v9 = vadd.f32 %v3460_v18, %v3372_v22  ;;  %v480_v18 = vld [vmem:[%s7119_s3 + $0x650] sm:$0xff]  ;;  %v675_v31 = vmul.f32 %v7159_v38, %v481_v48 }
 0x1bd   : > { %v674_v47 = vmul.f32 %v7159_v38, %v480_v18  ;;  %v1247_v18 = vadd.f32 %v1055_v5, %v668_v55 }
 0x1be   : > { %v3549_v52 = vpop.f32.mrf.mxu3 }
 0x1bf   : > { %3597 = vmatmul.bf16.gmra.mxu0 %v8759_v12  ;;  %v8782_v22 = vadd.f32 %v3549_v52, %v3461_v9  ;;  %v8801_v52 = vpack.c.bf16 %v2399_v21, %v2393_v29  ;;  %v1062_v29 = vmul.f32 %v5350_v25, %v7167_v44  ;;  %v5537_v21 = vld [vmem:[%s7119_s3 + $0x6e8] sm:$0xff] }
 0x1c0   : > { %3775 = vmatmul.bf16.gmra.mxu2 %v7360_v41  ;;  %v3287_v54 = vpop.f32.mrf.mxu0  ;;  %v1629_v41 = vmul.f32 %v5531_v2, %v7175_v50  ;;  %v5344_v2 = vld [vmem:[%s7119_s3 + $0x688] sm:$0xff] }
 0x1c1   : > { %v3288_v13 = vadd.f32 %v3287_v54, %v7770_v61  ;;  %v2394_v54 = vadd.f32 %v2202_v36, %v1815_v17  ;;  %v1254_v48 = vadd.f32 %v1062_v29, %v675_v31 }
 0x1c2   : > { %3686 = vmatmul.bf16.gmra.mxu1 %v8769_v14  ;;  %v3376_v63 = vpop.f32.mrf.mxu1  ;;  %v1821_v37 = vadd.f32 %v1629_v41, %v1242_v53  ;;  %v5536_v53 = vld [vmem:[%s7119_s3 + $0x6e0] sm:$0xff]  ;;  %v5542_v41 = vld [vmem:[%s7119_s3 + $0x710] sm:$0xff] }
 0x1c3   : > { %v3377_v62 = vadd.f32 %v3376_v63, %v3288_v13  ;;  %v3462_v30 = vpop.f32.mrf.mxu2  ;;  %v1056_v63 = vmul.f32 %v5344_v2, %v7167_v44  ;;  %v1634_v36 = vmul.f32 %v5536_v53, %v7175_v50  ;;  %v1635_v2 = vmul.f32 %v5537_v21, %v7175_v50  ;;  %v5730_v53 = vld [vmem:[%s7119_s3 + $0x748] sm:$0xff] }
 0x1c4   : > { %3864 = vmatmul.bf16.gmra.mxu3 %v7380_v8  ;;  %v3463_v20 = vadd.f32 %v3462_v30, %v3374_v49  ;;  %v5349_v8 = vld [vmem:[%s7119_s3 + $0x6b0] sm:$0xff]  ;;  %v2400_v24 = vadd.f32 %v2208_v59, %v1821_v37  ;;  %v5543_v30 = vld [vmem:[%s7119_s3 + $0x718] sm:$0xff]  ;;  %v1640_v59 = vmul.f32 %v5542_v41, %v7175_v50  ;;  %v2214_v29 = vmul.f32 %v5730_v53, %v7183_v56 }
 0x1c5   : > { %v1061_v13 = vmul.f32 %v5349_v8, %v7167_v44  ;;  %v5729_v8 = vld [vmem:[%s7119_s3 + $0x740] sm:$0xff]  ;;  %v1641_v25 = vmul.f32 %v5543_v30, %v7175_v50  ;;  %v5736_v41 = vld [vmem:[%s7119_s3 + $0x778] sm:$0xff] }
 0x1c6   : > { %v3551_v27 = vpop.f32.mrf.mxu3  ;;  %v8815_v17 = vpack.c.bf16 %v2400_v24, %v2394_v54  ;;  %v2220_v21 = vmul.f32 %v5736_v41, %v7183_v56  ;;  %v493_v41 = vld [vmem:[%s7119_s3 + $0x7d8] sm:$0xff] }
 0x1c7   : > { %v8799_v58 = vadd.f32 %v3551_v27, %v3463_v20  ;;  %v1253_v23 = vadd.f32 %v1061_v13, %v674_v47  ;;  %v1248_v27 = vadd.f32 %v1056_v63, %v669_v6  ;;  %v1826_v47 = vadd.f32 %v1634_v36, %v1247_v18  ;;  %v5355_v18 = vld [vmem:[%s7119_s3 + $0x800] sm:$0xff] }
 0x1c8   : > { %v3289_v9 = vpop.f32.mrf.mxu0  ;;  %v2219_v13 = vmul.f32 %v5735_v51, %v7183_v56  ;;  %v1833_v63 = vadd.f32 %v1641_v25, %v1254_v48 }
 0x1c9   : > { %v3290_v0 = vadd.f32 %v3289_v9, %v7770_v61  ;;  %v1832_v5 = vadd.f32 %v1640_v59, %v1253_v23  ;;  %v1827_v31 = vadd.f32 %v1635_v2, %v1248_v27  ;;  %v487_v2 = vld [vmem:[%s7119_s3 + $0x7a8] sm:$0xff] }
 0x1ca   : > { %v3378_v49 = vpop.f32.mrf.mxu1 }
 0x1cb   : > { %v3465_v37 = vpop.f32.mrf.mxu2  ;;  %v3379_v55 = vadd.f32 %v3378_v49, %v3290_v0  ;;  %v486_v49 = vld [vmem:[%s7119_s3 + $0x7a0] sm:$0xff]  ;;  %v2411_v59 = vadd.f32 %v2219_v13, %v1832_v5  ;;  %v492_v0 = vld [vmem:[%s7119_s3 + $0x7d0] sm:$0xff]  ;;  %v2406_v23 = vadd.f32 %v2214_v29, %v1827_v31  ;;  %v681_v29 = vmul.f32 %v7159_v38, %v487_v2 }
 0x1cc   : > { %v3466_v20 = vadd.f32 %v3465_v37, %v3377_v62  ;;  %v680_v48 = vmul.f32 %v7159_v38, %v486_v49  ;;  %v5554_v5 = vld [vmem:[%s7119_s3 + $0x890] sm:$0xff]  ;;  %v5741_v31 = vld [vmem:[%s7119_s3 + $0x8c0] sm:$0xff] }
 0x1cd   : > { %v2225_v2 = vmul.f32 %v5741_v31, %v7183_v56  ;;  %v5748_v31 = vld [vmem:[%s7119_s3 + $0x8f8] sm:$0xff] }
 0x1ce   : > { %v3554_v54 = vpop.f32.mrf.mxu3 }
 0x1cf   : > { %3602 = vmatmul.bf16.gmra.mxu0 %v8801_v52  ;;  %v8829_v62 = vadd.f32 %v3554_v54, %v3466_v20  ;;  %v686_v54 = vmul.f32 %v7159_v38, %v492_v0 }
 0x1d0   : > { %3780 = vmatmul.bf16.gmra.mxu2 %v7436_v28  ;;  %v3292_v24 = vpop.f32.mrf.mxu0  ;;  %v2213_v28 = vmul.f32 %v5729_v8, %v7183_v56  ;;  %v2412_v8 = vadd.f32 %v2220_v21, %v1833_v63  ;;  %v5747_v63 = vld [vmem:[%s7119_s3 + $0x8f0] sm:$0xff]  ;;  %v687_v21 = vmul.f32 %v7159_v38, %v493_v41 }
 0x1d1   : > { %v3293_v9 = vadd.f32 %v3292_v24, %v7770_v61  ;;  %v1067_v24 = vmul.f32 %v5355_v18, %v7167_v44  ;;  %v1652_v18 = vmul.f32 %v5554_v5, %v7175_v50 }
 0x1d2   : > { %3691 = vmatmul.bf16.gmra.mxu1 %v8815_v17  ;;  %v3381_v6 = vpop.f32.mrf.mxu1  ;;  %v2405_v36 = vadd.f32 %v2213_v28, %v1826_v47  ;;  %v5362_v28 = vld [vmem:[%s7119_s3 + $0x838] sm:$0xff]  ;;  %v5548_v47 = vld [vmem:[%s7119_s3 + $0x860] sm:$0xff]  ;;  %v8855_v13 = vpack.c.bf16 %v2412_v8, %v2406_v23 }
 0x1d3   : > { %v3382_v30 = vadd.f32 %v3381_v6, %v3293_v9  ;;  %v3467_v37 = vpop.f32.mrf.mxu2  ;;  %v5356_v9 = vld [vmem:[%s7119_s3 + $0x808] sm:$0xff]  ;;  %v1074_v49 = vmul.f32 %v5362_v28, %v7167_v44  ;;  %v1646_v0 = vmul.f32 %v5548_v47, %v7175_v50  ;;  %v5555_v23 = vld [vmem:[%s7119_s3 + $0x898] sm:$0xff] }
 0x1d4   : > { %3869 = vmatmul.bf16.gmra.mxu3 %v7456_v1  ;;  %v3468_v20 = vadd.f32 %v3467_v37, %v3379_v55  ;;  %v5361_v1 = vld [vmem:[%s7119_s3 + $0x830] sm:$0xff]  ;;  %v8851_v55 = vpack.c.bf16 %v2411_v59, %v2405_v36  ;;  %10095 = vst [vmem:[#allocation87_spill] sm:$0xff] %v8855_v13  ;;  %v1068_v37 = vmul.f32 %v5356_v9, %v7167_v44  ;;  %v5742_v47 = vld [vmem:[%s7119_s3 + $0x8c8] sm:$0xff] }
 0x1d5   : > { %v1073_v53 = vmul.f32 %v5361_v1, %v7167_v44  ;;  %v1259_v36 = vadd.f32 %v1067_v24, %v680_v48  ;;  %v5549_v1 = vld [vmem:[%s7119_s3 + $0x868] sm:$0xff]  ;;  %v2231_v48 = vmul.f32 %v5747_v63, %v7183_v56  ;;  %v1266_v41 = vadd.f32 %v1074_v49, %v687_v21 }
 0x1d6   : > { %v3556_v51 = vpop.f32.mrf.mxu3  ;;  %10094 = vst [vmem:[#allocation86_spill] sm:$0xff] %v8851_v55  ;;  %v1647_v9 = vmul.f32 %v5549_v1, %v7175_v50  ;;  %v1653_v28 = vmul.f32 %v5555_v23, %v7175_v50  ;;  %v2226_v21 = vmul.f32 %v5742_v47, %v7183_v56  ;;  %v2232_v1 = vmul.f32 %v5748_v31, %v7183_v56  ;;  %v505_v31 = vld [vmem:[%s7119_s3 + $0x958] sm:$0xff] }
 0x1d7   : > { %v8843_v25 = vadd.f32 %v3556_v51, %v3468_v20  ;;  %v1265_v59 = vadd.f32 %v1073_v53, %v686_v54  ;;  %v1260_v53 = vadd.f32 %v1068_v37, %v681_v29 }
 0x1d8   : > { %v3294_v27 = vpop.f32.mrf.mxu0 }
 0x1d9   : > { %10093 = vst [vmem:[#allocation85_spill] sm:$0xff] %v8843_v25  ;;  %v3295_v51 = vadd.f32 %v3294_v27, %v7770_v61  ;;  %v1844_v5 = vadd.f32 %v1652_v18, %v1265_v59  ;;  %v1839_v49 = vadd.f32 %v1647_v9, %v1260_v53  ;;  %v498_v18 = vld [vmem:[%s7119_s3 + $0x920] sm:$0xff] }
 0x1da   : > { %v3383_v6 = vpop.f32.mrf.mxu1  ;;  %v692_v47 = vmul.f32 %v7159_v38, %v498_v18 }
 0x1db   : > { %v3470_v20 = vpop.f32.mrf.mxu2  ;;  %v3384_v63 = vadd.f32 %v3383_v6, %v3295_v51  ;;  %v2423_v59 = vadd.f32 %v2231_v48, %v1844_v5  ;;  %v5367_v6 = vld [vmem:[%s7119_s3 + $0x980] sm:$0xff]  ;;  %v499_v48 = vld [vmem:[%s7119_s3 + $0x928] sm:$0xff] }
 0x1dc   : > { %v3471_v8 = vadd.f32 %v3470_v20, %v3382_v30  ;;  %v1845_v20 = vadd.f32 %v1653_v28, %v1266_v41  ;;  %v5560_v28 = vld [vmem:[%s7119_s3 + $0x9e0] sm:$0xff] }
 0x1de   : > { %v3559_v54 = vpop.f32.mrf.mxu3 }
 0x1df   : > { %3607 = vmatmul.bf16.gmra.mxu0 %v8851_v55  ;;  %v8876_v30 = vadd.f32 %v3559_v54, %v3471_v8  ;;  %v504_v8 = vld [vmem:[%s7119_s3 + $0x950] sm:$0xff]  ;;  %v2418_v54 = vadd.f32 %v2226_v21, %v1839_v49 }
 0x1e0   : > { %3785 = vmatmul.bf16.gmra.mxu2 %v7511_v26  ;;  %v3297_v24 = vpop.f32.mrf.mxu0  ;;  %v1838_v26 = vadd.f32 %v1646_v0, %v1259_v36  ;;  %v5843_v55 = vld [vmem:[%s7119_s3 + $0x14f0] sm:$0xff] }
 0x1e1   : > { %10096 = vst [vmem:[#allocation88_spill] sm:$0xff] %v8876_v30  ;;  %v3298_v27 = vadd.f32 %v3297_v24, %v7770_v61  ;;  %v2424_v24 = vadd.f32 %v2232_v1, %v1845_v20  ;;  %v1658_v20 = vmul.f32 %v5560_v28, %v7175_v50 }
 0x1e2   : > { %3696 = vmatmul.bf16.gmra.mxu1 %v8855_v13  ;;  %v3386_v29 = vpop.f32.mrf.mxu1  ;;  %v2417_v36 = vadd.f32 %v2225_v2, %v1838_v26  ;;  %v5566_v2 = vld [vmem:[%s7119_s3 + $0xa10] sm:$0xff]  ;;  %v1079_v26 = vmul.f32 %v5367_v6, %v7167_v44  ;;  %v5561_v6 = vld [vmem:[%s7119_s3 + $0x9e8] sm:$0xff]  ;;  %v5837_v13 = vld [vmem:[%s7119_s3 + $0x14c0] sm:$0xff] }
 0x1e3   : > { %v3387_v37 = vadd.f32 %v3386_v29, %v3298_v27  ;;  %v3472_v23 = vpop.f32.mrf.mxu2  ;;  %v698_v27 = vmul.f32 %v7159_v38, %v504_v8  ;;  %v5374_v29 = vld [vmem:[%s7119_s3 + $0x9b8] sm:$0xff]  ;;  %v8901_v49 = vpack.c.bf16 %v2424_v24, %v2418_v54  ;;  %v1664_v1 = vmul.f32 %v5566_v2, %v7175_v50  ;;  %v5759_v2 = vld [vmem:[%s7119_s3 + $0xa70] sm:$0xff] }
 0x1e4   : > { %3874 = vmatmul.bf16.gmra.mxu3 %v7532_v3  ;;  %v3473_v0 = vadd.f32 %v3472_v23, %v3384_v63  ;;  %v5373_v3 = vld [vmem:[%s7119_s3 + $0x9b0] sm:$0xff]  ;;  %v8889_v9 = vpack.c.bf16 %v2423_v59, %v2417_v36  ;;  %v5368_v63 = vld [vmem:[%s7119_s3 + $0x988] sm:$0xff]  ;;  %v5753_v36 = vld [vmem:[%s7119_s3 + $0xa40] sm:$0xff]  ;;  %v693_v59 = vmul.f32 %v7159_v38, %v499_v48  ;;  %v1086_v8 = vmul.f32 %v5374_v29, %v7167_v44 }
 0x1e5   : > { %v1085_v5 = vmul.f32 %v5373_v3, %v7167_v44  ;;  %10099 = vst [vmem:[#allocation91_spill] sm:$0xff] %v8901_v49  ;;  %v1080_v18 = vmul.f32 %v5368_v63, %v7167_v44  ;;  %v5567_v3 = vld [vmem:[%s7119_s3 + $0xa18] sm:$0xff]  ;;  %v1271_v24 = vadd.f32 %v1079_v26, %v692_v47  ;;  %v2237_v63 = vmul.f32 %v5753_v36, %v7183_v56  ;;  %v5754_v36 = vld [vmem:[%s7119_s3 + $0xa48] sm:$0xff] }
 0x1e6   : > { %v3561_v51 = vpop.f32.mrf.mxu3  ;;  %10098 = vst [vmem:[#allocation90_spill] sm:$0xff] %v8889_v9  ;;  %v1659_v29 = vmul.f32 %v5561_v6, %v7175_v50  ;;  %v1665_v42 = vmul.f32 %v5567_v3, %v7175_v50  ;;  %v5760_v6 = vld [vmem:[%s7119_s3 + $0xa78] sm:$0xff] }
 0x1e7   : > { %v8887_v41 = vadd.f32 %v3561_v51, %v3473_v0  ;;  %v699_v0 = vmul.f32 %v7159_v38, %v505_v31  ;;  %v1277_v28 = vadd.f32 %v1085_v5, %v698_v27  ;;  %v1272_v47 = vadd.f32 %v1080_v18, %v693_v59  ;;  %v5385_v18 = vld [vmem:[%s7119_s3 + $0xb30] sm:$0xff] }
 0x1e8   : > { %v3299_v53 = vpop.f32.mrf.mxu0  ;;  %v1850_v26 = vadd.f32 %v1658_v20, %v1271_v24  ;;  %v2244_v20 = vmul.f32 %v5760_v6, %v7183_v56  ;;  %v517_v6 = vld [vmem:[%s7119_s3 + $0xad8] sm:$0xff] }
 0x1e9   : > { %10097 = vst [vmem:[#allocation89_spill] sm:$0xff] %v8887_v41  ;;  %v3300_v54 = vadd.f32 %v3299_v53, %v7770_v61  ;;  %v1856_v5 = vadd.f32 %v1664_v1, %v1277_v28  ;;  %v5379_v1 = vld [vmem:[%s7119_s3 + $0xb00] sm:$0xff] }
 0x1ea   : > { %v3388_v21 = vpop.f32.mrf.mxu1 }
 0x1eb   : > { %v3475_v23 = vpop.f32.mrf.mxu2  ;;  %v3389_v27 = vadd.f32 %v3388_v21, %v3300_v54  ;;  %v2238_v21 = vmul.f32 %v5754_v36, %v7183_v56  ;;  %v2429_v54 = vadd.f32 %v2237_v63, %v1850_v26  ;;  %v511_v26 = vld [vmem:[%s7119_s3 + $0xaa8] sm:$0xff] }
 0x1ec   : > { %v3476_v51 = vadd.f32 %v3475_v23, %v3387_v37  ;;  %v2243_v23 = vmul.f32 %v5759_v2, %v7183_v56 }
 0x1ef   : > { %3612 = vmatmul.bf16.gmra.mxu0 %v8889_v9  ;;  %v3564_v48 = vpop.f32.mrf.mxu3  ;;  %v5651_v9 = vld [vmem:[%s7119_s3 + $0x1498] sm:$0xff] }
 0x1f0   : > { %3790 = vmatmul.bf16.gmra.mxu2 %v7587_v40  ;;  %v3302_v31 = vpop.f32.mrf.mxu0  ;;  %v8920_v37 = vadd.f32 %v3564_v48, %v3476_v51  ;;  %v1278_v40 = vadd.f32 %v1086_v8, %v699_v0  ;;  %v510_v51 = vld [vmem:[%s7119_s3 + $0xaa0] sm:$0xff]  ;;  %v516_v0 = vld [vmem:[%s7119_s3 + $0xad0] sm:$0xff] }
 0x1f1   : > { %v3303_v53 = vadd.f32 %v3302_v31, %v7770_v61  ;;  %v1851_v31 = vadd.f32 %v1659_v29, %v1272_v47  ;;  %v704_v28 = vmul.f32 %v7159_v38, %v510_v51  ;;  %v710_v2 = vmul.f32 %v7159_v38, %v516_v0  ;;  %v5578_v47 = vld [vmem:[%s7119_s3 + $0xb90] sm:$0xff] }
 0x1f2   : > { %3701 = vmatmul.bf16.gmra.mxu1 %v8901_v49  ;;  %10100 = vst [vmem:[#allocation92_spill] sm:$0xff] %v8920_v37  ;;  %v3391_v3 = vpop.f32.mrf.mxu1  ;;  %v1857_v59 = vadd.f32 %v1665_v42, %v1278_v40  ;;  %v1091_v42 = vmul.f32 %v5379_v1, %v7167_v44  ;;  %v1097_v29 = vmul.f32 %v5385_v18, %v7167_v44  ;;  %v5765_v18 = vld [vmem:[%s7119_s3 + $0xbc0] sm:$0xff] }
 0x1f3   : > { %v3392_v11 = vadd.f32 %v3391_v3, %v3303_v53  ;;  %v3477_v48 = vpop.f32.mrf.mxu2  ;;  %v5572_v53 = vld [vmem:[%s7119_s3 + $0xb60] sm:$0xff]  ;;  %v5386_v3 = vld [vmem:[%s7119_s3 + $0xb38] sm:$0xff] }
 0x1f4   : > { %3879 = vmatmul.bf16.gmra.mxu3 %v7608_v16  ;;  %v3478_v8 = vadd.f32 %v3477_v48, %v3389_v27  ;;  %v2435_v16 = vadd.f32 %v2243_v23, %v1856_v5  ;;  %v2430_v27 = vadd.f32 %v2238_v21, %v1851_v31  ;;  %v2436_v63 = vadd.f32 %v2244_v20, %v1857_v59  ;;  %v5380_v5 = vld [vmem:[%s7119_s3 + $0xb08] sm:$0xff] }
 0x1f5   : > { %v1670_v51 = vmul.f32 %v5572_v53, %v7175_v50  ;;  %v1676_v48 = vmul.f32 %v5578_v47, %v7175_v50  ;;  %v1283_v0 = vadd.f32 %v1091_v42, %v704_v28  ;;  %v1289_v1 = vadd.f32 %v1097_v29, %v710_v2  ;;  %v5573_v53 = vld [vmem:[%s7119_s3 + $0xb68] sm:$0xff]  ;;  %v5579_v42 = vld [vmem:[%s7119_s3 + $0xb98] sm:$0xff] }
 0x1f6   : > { %v8943_v23 = vpack.c.bf16 %v2435_v16, %v2429_v54  ;;  %v705_v31 = vmul.f32 %v7159_v38, %v511_v26  ;;  %v1092_v59 = vmul.f32 %v5380_v5, %v7167_v44  ;;  %v8953_v21 = vpack.c.bf16 %v2436_v63, %v2430_v27 }
 0x1f7   : > { %v3566_v24 = vpop.f32.mrf.mxu3  ;;  %v711_v16 = vmul.f32 %v7159_v38, %v517_v6  ;;  %v2249_v29 = vmul.f32 %v5765_v18, %v7183_v56  ;;  %v1862_v63 = vadd.f32 %v1670_v51, %v1283_v0  ;;  %v1868_v26 = vadd.f32 %v1676_v48, %v1289_v1 }
 0x1f8   : > { %v8939_v40 = vadd.f32 %v3566_v24, %v3478_v8  ;;  %10102 = vst [vmem:[#allocation94_spill] sm:$0xff] %v8943_v23  ;;  %v3304_v36 = vpop.f32.mrf.mxu0  ;;  %v5771_v8 = vld [vmem:[%s7119_s3 + $0xbf0] sm:$0xff]  ;;  %v1098_v24 = vmul.f32 %v5386_v3, %v7167_v44  ;;  %v1284_v5 = vadd.f32 %v1092_v59, %v705_v31  ;;  %v1671_v6 = vmul.f32 %v5573_v53, %v7175_v50  ;;  %v522_v53 = vld [vmem:[%s7119_s3 + $0xc20] sm:$0xff] }
 0x1f9   : > { %10103 = vst [vmem:[#allocation95_spill] sm:$0xff] %v8953_v21  ;;  %v3305_v2 = vadd.f32 %v3304_v36, %v7770_v61  ;;  %v2255_v47 = vmul.f32 %v5771_v8, %v7183_v56  ;;  %v1677_v36 = vmul.f32 %v5579_v42, %v7175_v50  ;;  %v2441_v48 = vadd.f32 %v2249_v29, %v1862_v63  ;;  %v5397_v42 = vld [vmem:[%s7119_s3 + $0xcb0] sm:$0xff]  ;;  %v523_v29 = vld [vmem:[%s7119_s3 + $0xc28] sm:$0xff] }
 0x1fa   : > { %10101 = vst [vmem:[#allocation93_spill] sm:$0xff] %v8939_v40  ;;  %v3393_v54 = vpop.f32.mrf.mxu1  ;;  %v1863_v1 = vadd.f32 %v1671_v6, %v1284_v5  ;;  %v529_v6 = vld [vmem:[%s7119_s3 + $0xc58] sm:$0xff]  ;;  %v5831_v40 = vld [vmem:[%s7119_s3 + $0x1370] sm:$0xff] }
 0x1fb   : > { %v3480_v20 = vpop.f32.mrf.mxu2  ;;  %v3394_v18 = vadd.f32 %v3393_v54, %v3305_v2  ;;  %v2447_v0 = vadd.f32 %v2255_v47, %v1868_v26  ;;  %v5392_v47 = vld [vmem:[%s7119_s3 + $0xc88] sm:$0xff] }
 0x1fc   : > { %v3481_v28 = vadd.f32 %v3480_v20, %v3392_v11  ;;  %v1290_v11 = vadd.f32 %v1098_v24, %v711_v16  ;;  %v5772_v20 = vld [vmem:[%s7119_s3 + $0xbf8] sm:$0xff] }
 0x1fd   : > { %v2256_v54 = vmul.f32 %v5772_v20, %v7183_v56  ;;  %v8981_v26 = vpack.c.bf16 %v2447_v0, %v2441_v48  ;;  %v5584_v48 = vld [vmem:[%s7119_s3 + $0xce0] sm:$0xff]  ;;  %v5590_v0 = vld [vmem:[%s7119_s3 + $0xd10] sm:$0xff] }
 0x1fe   : > { %v1869_v16 = vadd.f32 %v1677_v36, %v1290_v11  ;;  %v5398_v11 = vld [vmem:[%s7119_s3 + $0xcb8] sm:$0xff] }
 0x1ff   : > { %3617 = vmatmul.bf16.gmra.mxu0 %v8943_v23  ;;  %10105 = vst [vmem:[#allocation97_spill] sm:$0xff] %v8981_v26 }
 0x200   : > { %3795 = vmatmul.bf16.gmra.mxu2 %v7663_v4  ;;  %v3569_v27 = vpop.f32.mrf.mxu3  ;;  %v5766_v4 = vld [vmem:[%s7119_s3 + $0xbc8] sm:$0xff] }
 0x201   : > { %v8966_v3 = vadd.f32 %v3569_v27, %v3481_v28  ;;  %v2250_v8 = vmul.f32 %v5766_v4, %v7183_v56  ;;  %v528_v28 = vld [vmem:[%s7119_s3 + $0xc50] sm:$0xff]  ;;  %v2448_v4 = vadd.f32 %v2256_v54, %v1869_v16  ;;  %v1110_v16 = vmul.f32 %v5398_v11, %v7167_v44  ;;  %v5585_v54 = vld [vmem:[%s7119_s3 + $0xce8] sm:$0xff] }
 0x202   : > { %3706 = vmatmul.bf16.gmra.mxu1 %v8953_v21  ;;  %v722_v20 = vmul.f32 %v7159_v38, %v528_v28  ;;  %v1682_v28 = vmul.f32 %v5584_v48, %v7175_v50  ;;  %v10108_v11 = vld [vmem:[#allocation38_spill] sm:$0xff] }
 0x203   : > { %10104 = vst [vmem:[#allocation96_spill] sm:$0xff] %v8966_v3  ;;  %v3482_v31 = vpop.f32.mrf.mxu2  ;;  %v2442_v5 = vadd.f32 %v2250_v8, %v1863_v1  ;;  %v717_v1 = vmul.f32 %v7159_v38, %v523_v29  ;;  %v1104_v8 = vmul.f32 %v5392_v47, %v7167_v44  ;;  %v5777_v29 = vld [vmem:[%s7119_s3 + $0xd40] sm:$0xff]  ;;  %v5783_v47 = vld [vmem:[%s7119_s3 + $0xd70] sm:$0xff] }
 0x204   : > { %3884 = vmatmul.bf16.gmra.mxu3 %v7684_v46  ;;  %v3307_v51 = vpop.f32.mrf.mxu0  ;;  %v3483_v24 = vadd.f32 %v3482_v31, %v3394_v18  ;;  %v5391_v46 = vld [vmem:[%s7119_s3 + $0xc80] sm:$0xff]  ;;  %v716_v18 = vmul.f32 %v7159_v38, %v522_v53  ;;  %v1109_v31 = vmul.f32 %v5397_v42, %v7167_v44  ;;  %v5626_v3 = vld [vmem:[%s7119_s3 + $0x1190] sm:$0xff] }
 0x205   : > { %v3308_v59 = vadd.f32 %v3307_v51, %v7770_v61  ;;  %v1103_v51 = vmul.f32 %v5391_v46, %v7167_v44  ;;  %v8999_v53 = vpack.c.bf16 %v2448_v4, %v2442_v5  ;;  %v1688_v46 = vmul.f32 %v5590_v0, %v7175_v50  ;;  %v5778_v5 = vld [vmem:[%s7119_s3 + $0xd48] sm:$0xff]  ;;  %v5784_v4 = vld [vmem:[%s7119_s3 + $0xd78] sm:$0xff] }
 0x206   : > { %v1301_v42 = vadd.f32 %v1109_v31, %v722_v20  ;;  %v2261_v0 = vmul.f32 %v5777_v29, %v7183_v56  ;;  %v2268_v29 = vmul.f32 %v5784_v4, %v7183_v56 }
 0x207   : > { %v3396_v2 = vpop.f32.mrf.mxu1  ;;  %10107 = vst [vmem:[#allocation99_spill] sm:$0xff] %v8999_v53 }
 0x208   : > { %v3571_v27 = vpop.f32.mrf.mxu3  ;;  %v3397_v63 = vadd.f32 %v3396_v2, %v3308_v59  ;;  %v723_v59 = vmul.f32 %v7159_v38, %v529_v6  ;;  %v1295_v2 = vadd.f32 %v1103_v51, %v716_v18  ;;  %v1683_v6 = vmul.f32 %v5585_v54, %v7175_v50 }
 0x209   : > { %v8985_v36 = vadd.f32 %v3571_v27, %v3483_v24  ;;  %v5591_v24 = vld [vmem:[%s7119_s3 + $0xd18] sm:$0xff]  ;;  %v1296_v27 = vadd.f32 %v1104_v8, %v717_v1  ;;  %v2267_v18 = vmul.f32 %v5783_v47, %v7183_v56  ;;  %v1880_v31 = vadd.f32 %v1688_v46, %v1301_v42  ;;  %v534_v47 = vld [vmem:[%s7119_s3 + $0xda0] sm:$0xff] }
 0x20a   : > { %v1689_v21 = vmul.f32 %v5591_v24, %v7175_v50  ;;  %v1874_v51 = vadd.f32 %v1682_v28, %v1295_v2  ;;  %v2262_v8 = vmul.f32 %v5778_v5, %v7183_v56  ;;  %v540_v2 = vld [vmem:[%s7119_s3 + $0xdd0] sm:$0xff]  ;;  %v5403_v42 = vld [vmem:[%s7119_s3 + $0xe00] sm:$0xff]  ;;  %v728_v5 = vmul.f32 %v7159_v38, %v534_v47 }
 0x20b   : > { %10106 = vst [vmem:[#allocation98_spill] sm:$0xff] %v8985_v36  ;;  %v1302_v36 = vadd.f32 %v1110_v16, %v723_v59  ;;  %v1875_v1 = vadd.f32 %v1683_v6, %v1296_v27  ;;  %v10109_v59 = vld [vmem:[#allocation39_spill] sm:$0xff]  ;;  %v2459_v46 = vadd.f32 %v2267_v18, %v1880_v31  ;;  %v5409_v27 = vld [vmem:[%s7119_s3 + $0xe30] sm:$0xff]  ;;  %v734_v4 = vmul.f32 %v7159_v38, %v540_v2 }
 0x20c   : > { %v3309_v48 = vpop.f32.mrf.mxu0  ;;  %v2453_v28 = vadd.f32 %v2261_v0, %v1874_v51  ;;  %v1121_v0 = vmul.f32 %v5409_v27, %v7167_v44  ;;  %v541_v18 = vld [vmem:[%s7119_s3 + $0xdd8] sm:$0xff] }
 0x20d   : > { %v3310_v54 = vadd.f32 %v3309_v48, %v7770_v61  ;;  %v1881_v24 = vadd.f32 %v1689_v21, %v1302_v36  ;;  %v2454_v61 = vadd.f32 %v2262_v8, %v1875_v1  ;;  %v535_v36 = vld [vmem:[%s7119_s3 + $0xda8] sm:$0xff]  ;;  %v1115_v48 = vmul.f32 %v5403_v42, %v7167_v44  ;;  %v5410_v51 = vld [vmem:[%s7119_s3 + $0xe38] sm:$0xff]  ;;  %v5602_v1 = vld [vmem:[%s7119_s3 + $0xe90] sm:$0xff] }
 0x20e   : > { %v735_v47 = vmul.f32 %v7159_v38, %v541_v18  ;;  %v1313_v42 = vadd.f32 %v1121_v0, %v734_v4 }
 0x20f   : > { %3622 = vmatmul.bf16.gmra.mxu0 %v8981_v26  ;;  %v2460_v21 = vadd.f32 %v2268_v29, %v1881_v24  ;;  %v729_v24 = vmul.f32 %v7159_v38, %v535_v36  ;;  %v10113_v29 = vld [vmem:[#allocation49_spill] sm:$0xff]  ;;  %v5789_v36 = vld [vmem:[%s7119_s3 + $0xec0] sm:$0xff] }
 0x210   : > { %3800 = vmatmul.bf16.gmra.mxu2 %v10108_v11  ;;  %v3398_v11 = vpop.f32.mrf.mxu1 }
 0x211   : > { %v3399_v6 = vadd.f32 %v3398_v11, %v3310_v54  ;;  %v9036_v54 = vpack.c.bf16 %v2460_v21, %v2454_v61  ;;  %v5603_v61 = vld [vmem:[%s7119_s3 + $0xe98] sm:$0xff] }
 0x212   : > { %3711 = vmatmul.bf16.gmra.mxu1 %v8999_v53 }
 0x213   : > { %v3485_v20 = vpop.f32.mrf.mxu2  ;;  %10112 = vst [vmem:[#allocation100_spill] sm:$0xff] %v9036_v54 }
 0x214   : > { %3889 = vmatmul.bf16.gmra.mxu3 %v10109_v59  ;;  %v3486_v16 = vadd.f32 %v3485_v20, %v3397_v63  ;;  %v5404_v20 = vld [vmem:[%s7119_s3 + $0xe08] sm:$0xff]  ;;  %v9032_v59 = vpack.c.bf16 %v2459_v46, %v2453_v28  ;;  %v1122_v28 = vmul.f32 %v5410_v51, %v7167_v44  ;;  %v1307_v46 = vadd.f32 %v1115_v48, %v728_v5  ;;  %v10115_v51 = vld [vmem:[#allocation42_spill] sm:$0xff]  ;;  %v6633_v5 = vld [vmem:[#allocation10] sm:$0x3] }
 0x215   : > { %v1116_v2 = vmul.f32 %v5404_v20, %v7167_v44  ;;  %v9053_v4 = vperm.slane %v6633_v5, 1  ;;  %v546_v5 = vld [vmem:[%s7119_s3 + $0xf20] sm:$0xff] }
 0x216   : > { %10111 = vst [vmem:[#allocation39_spill] sm:$0xff] %v9032_v59  ;;  %v1314_v0 = vadd.f32 %v1122_v28, %v735_v47  ;;  %v10117_v28 = vld [vmem:[#allocation52_spill] sm:$0xff] }
 0x217   : > { %v3574_v53 = vpop.f32.mrf.mxu3  ;;  %v1308_v48 = vadd.f32 %v1116_v2, %v729_v24 }
 0x218   : > { %v9022_v63 = vadd.f32 %v3574_v53, %v3486_v16  ;;  %v5596_v53 = vld [vmem:[%s7119_s3 + $0xe60] sm:$0xff] }
 0x219   : > { %v1694_v27 = vmul.f32 %v5596_v53, %v7175_v50 }
 0x21a   : > { %10110 = vst [vmem:[#allocation38_spill] sm:$0xff] %v9022_v63 }
 0x21b   : > { %v3487_v31 = vpop.f32.mrf.mxu2 }
 0x21c   : > { %v3488_v8 = vadd.f32 %v3487_v31, %v3399_v6  ;;  %v3588_v16 = vpop.f32.mrf.mxu0  ;;  %v1700_v6 = vmul.f32 %v5602_v1, %v7175_v50  ;;  %v5597_v31 = vld [vmem:[%s7119_s3 + $0xe68] sm:$0xff]  ;;  %v1701_v1 = vmul.f32 %v5603_v61, %v7175_v50 }
 0x21d   : > { %v3589_v11 = vadd.f32 %v3588_v16, %v10113_v29  ;;  %v5795_v16 = vld [vmem:[%s7119_s3 + $0xef0] sm:$0xff]  ;;  %v1695_v53 = vmul.f32 %v5597_v31, %v7175_v50  ;;  %v5790_v29 = vld [vmem:[%s7119_s3 + $0xec8] sm:$0xff] }
 0x21e   : > { %v1892_v63 = vadd.f32 %v1700_v6, %v1313_v42  ;;  %v2274_v2 = vmul.f32 %v5790_v29, %v7183_v56  ;;  %v5415_v29 = vld [vmem:[%s7119_s3 + $0xf80] sm:$0xff] }
 0x21f   : > { %v3576_v21 = vpop.f32.mrf.mxu3  ;;  %v3677_v26 = vpop.f32.mrf.mxu1  ;;  %3627 = vmatmul.bf16.gmra.mxu0 %v9032_v59  ;;  %v1886_v59 = vadd.f32 %v1694_v27, %v1307_v46  ;;  %v1887_v42 = vadd.f32 %v1695_v53, %v1308_v48  ;;  %v1893_v27 = vadd.f32 %v1701_v1, %v1314_v0 }
 0x220   : > { %v9050_v18 = vadd.f32 %v3576_v21, %v3488_v8  ;;  %v3678_v20 = vadd.f32 %v3677_v26, %v3589_v11  ;;  %3805 = vmatmul.bf16.gmra.mxu2 %v10115_v51  ;;  %v2273_v8 = vmul.f32 %v5789_v36, %v7183_v56  ;;  %v2279_v26 = vmul.f32 %v5795_v16, %v7183_v56  ;;  %v5796_v11 = vld [vmem:[%s7119_s3 + $0xef8] sm:$0xff] }
 0x221   : > { %v10116_v51 = vld [vmem:[#allocation43_spill] sm:$0xff]  ;;  %v2280_v6 = vmul.f32 %v5796_v11, %v7183_v56  ;;  %v1127_v11 = vmul.f32 %v5415_v29, %v7167_v44 }
 0x222   : > { %10114 = vst [vmem:[#allocation49_spill] sm:$0xff] %v9050_v18  ;;  %3716 = vmatmul.bf16.gmra.mxu1 %v9036_v54  ;;  %v2465_v31 = vadd.f32 %v2273_v8, %v1886_v59  ;;  %v2471_v61 = vadd.f32 %v2279_v26, %v1892_v63  ;;  %v552_v54 = vld [vmem:[%s7119_s3 + $0xf50] sm:$0xff]  ;;  %v4291_v0 = vmax.f32 %v3678_v20, 0.0  ;;  %v547_v63 = vld [vmem:[%s7119_s3 + $0xf28] sm:$0xff]  ;;  %v740_v8 = vmul.f32 %v7159_v38, %v546_v5 }
 0x223   : > { %v3766_v21 = vpop.f32.mrf.mxu2  ;;  %v5421_v18 = vld [vmem:[%s7119_s3 + $0xfb0] sm:$0xff]  ;;  %v2472_v48 = vadd.f32 %v2280_v6, %v1893_v27  ;;  %v746_v26 = vmul.f32 %v7159_v38, %v552_v54  ;;  %v5608_v6 = vld [vmem:[%s7119_s3 + $0xfe0] sm:$0xff]  ;;  %v741_v54 = vmul.f32 %v7159_v38, %v547_v63  ;;  %v5615_v63 = vld [vmem:[%s7119_s3 + $0x1018] sm:$0xff] }
 0x224   : > { %3894 = vmatmul.bf16.gmra.mxu3 %v10116_v51  ;;  %v3767_v24 = vadd.f32 %v3766_v21, %v9053_v4  ;;  %v3590_v47 = vpop.f32.mrf.mxu0  ;;  %v9073_v59 = vpack.c.bf16 %v2471_v61, %v2465_v31  ;;  %v5614_v31 = vld [vmem:[%s7119_s3 + $0x1010] sm:$0xff]  ;;  %v10121_v61 = vld [vmem:[#allocation55_spill] sm:$0xff] }
 0x225   : > { %v3591_v46 = vadd.f32 %v3590_v47, %v10117_v28  ;;  %v2466_v47 = vadd.f32 %v2274_v2, %v1887_v42  ;;  %v553_v28 = vld [vmem:[%s7119_s3 + $0xf58] sm:$0xff] }
 0x226   : > { %10119 = vst [vmem:[#allocation43_spill] sm:$0xff] %v9073_v59  ;;  %v5422_v2 = vld [vmem:[%s7119_s3 + $0xfb8] sm:$0xff] }
 0x227   : > { %v3855_v36 = vpop.f32.mrf.mxu3  ;;  %v3679_v16 = vpop.f32.mrf.mxu1 }
 0x228   : > { %v9068_v51 = vadd.f32 %v3855_v36, %v3767_v24  ;;  %v3680_v21 = vadd.f32 %v3679_v16, %v3591_v46  ;;  %v1133_v24 = vmul.f32 %v5421_v18, %v7167_v44  ;;  %v5416_v46 = vld [vmem:[%s7119_s3 + $0xf88] sm:$0xff]  ;;  %v9089_v16 = vpack.c.bf16 %v2472_v48, %v2466_v47 }
 0x229   : > { %v747_v18 = vmul.f32 %v7159_v38, %v553_v28  ;;  %v1128_v5 = vmul.f32 %v5416_v46, %v7167_v44  ;;  %v1712_v47 = vmul.f32 %v5614_v31, %v7175_v50  ;;  %v5609_v48 = vld [vmem:[%s7119_s3 + $0xfe8] sm:$0xff]  ;;  %v10124_v46 = vld [vmem:[#allocation46_spill] sm:$0xff] }
 0x22a   : > { %10118 = vst [vmem:[#allocation42_spill] sm:$0xff] %v9068_v51  ;;  %v4293_v53 = vmax.f32 %v3680_v21, 0.0  ;;  %v1134_v21 = vmul.f32 %v5422_v2, %v7167_v44  ;;  %v5801_v2 = vld [vmem:[%s7119_s3 + $0x1040] sm:$0xff] }
 0x22b   : > { %v3768_v1 = vpop.f32.mrf.mxu2  ;;  %10122 = vst [vmem:[#allocation55_spill] sm:$0xff] %v9089_v16 }
 0x22c   : > { %v9083_v42 = vpack.c.bf16 %v4293_v53, %v4291_v0  ;;  %v3769_v20 = vadd.f32 %v3768_v1, %v9053_v4  ;;  %v3593_v27 = vpop.f32.mrf.mxu0  ;;  %v1319_v53 = vadd.f32 %v1127_v11, %v740_v8  ;;  %v1325_v1 = vadd.f32 %v1133_v24, %v746_v26 }
 0x22d   : > { %v3594_v36 = vadd.f32 %v3593_v27, %v10121_v61  ;;  %v1706_v27 = vmul.f32 %v5608_v6, %v7175_v50  ;;  %v1320_v8 = vadd.f32 %v1128_v5, %v741_v54  ;;  %v1326_v26 = vadd.f32 %v1134_v21, %v747_v18  ;;  %v10126_v5 = vld [vmem:[#allocation57_spill] sm:$0xff] }
 0x22e   : > { %10120 = vst [vmem:[#allocation52_spill] sm:$0xff] %v9083_v42  ;;  %v5807_v42 = vld [vmem:[%s7119_s3 + $0x1070] sm:$0xff]  ;;  %v1707_v11 = vmul.f32 %v5609_v48, %v7175_v50  ;;  %v1713_v24 = vmul.f32 %v5615_v63, %v7175_v50  ;;  %v1904_v31 = vadd.f32 %v1712_v47, %v1325_v1  ;;  %v558_v48 = vld [vmem:[%s7119_s3 + $0x10a0] sm:$0xff] }
 0x22f   : > { %v3857_v29 = vpop.f32.mrf.mxu3  ;;  %v3682_v0 = vpop.f32.mrf.mxu1  ;;  %3632 = vmatmul.bf16.gmra.mxu0 %v9073_v59  ;;  %v5427_v63 = vld [vmem:[%s7119_s3 + $0x1100] sm:$0xff]  ;;  %v5433_v47 = vld [vmem:[%s7119_s3 + $0x1130] sm:$0xff] }
 0x230   : > { %v9100_v61 = vadd.f32 %v3857_v29, %v3769_v20  ;;  %v9102_v28 = vadd.f32 %v3682_v0, %v3594_v36  ;;  %3810 = vmatmul.bf16.gmra.mxu2 %v10124_v46  ;;  %v1898_v20 = vadd.f32 %v1706_v27, %v1319_v53  ;;  %v2285_v36 = vmul.f32 %v5801_v2, %v7183_v56  ;;  %v5802_v0 = vld [vmem:[%s7119_s3 + $0x1048] sm:$0xff]  ;;  %v5808_v46 = vld [vmem:[%s7119_s3 + $0x1078] sm:$0xff] }
 0x231   : > { %v2291_v29 = vmul.f32 %v5807_v42, %v7183_v56  ;;  %v1899_v59 = vadd.f32 %v1707_v11, %v1320_v8  ;;  %v1905_v53 = vadd.f32 %v1713_v24, %v1326_v26  ;;  %v2286_v1 = vmul.f32 %v5802_v0, %v7183_v56  ;;  %v564_v42 = vld [vmem:[%s7119_s3 + $0x10d0] sm:$0xff] }
 0x232   : > { %10123 = vst [vmem:[#allocation101_spill] sm:$0xff] %v9100_v61  ;;  %3721 = vmatmul.bf16.gmra.mxu1 %v9089_v16  ;;  %v10125_v16 = vld [vmem:[#allocation47_spill] sm:$0xff]  ;;  %v2292_v27 = vmul.f32 %v5808_v46, %v7183_v56  ;;  %v752_v26 = vmul.f32 %v7159_v38, %v558_v48  ;;  %v1139_v11 = vmul.f32 %v5427_v63, %v7167_v44 }
 0x233   : > { %v3771_v6 = vpop.f32.mrf.mxu2  ;;  %v2483_v61 = vadd.f32 %v2291_v29, %v1904_v31  ;;  %v758_v24 = vmul.f32 %v7159_v38, %v564_v42  ;;  %v1145_v0 = vmul.f32 %v5433_v47, %v7167_v44  ;;  %v5620_v46 = vld [vmem:[%s7119_s3 + $0x1160] sm:$0xff]  ;;  %v2478_v51 = vadd.f32 %v2286_v1, %v1899_v59  ;;  %v565_v29 = vld [vmem:[%s7119_s3 + $0x10d8] sm:$0xff] }
 0x234   : > { %3899 = vmatmul.bf16.gmra.mxu3 %v10125_v16  ;;  %v3772_v54 = vadd.f32 %v3771_v6, %v9053_v4  ;;  %v3595_v18 = vpop.f32.mrf.mxu0  ;;  %v2477_v6 = vadd.f32 %v2285_v36, %v1898_v20  ;;  %v2484_v23 = vadd.f32 %v2292_v27, %v1905_v53  ;;  %v5428_v20 = vld [vmem:[%s7119_s3 + $0x1108] sm:$0xff]  ;;  %v1331_v63 = vadd.f32 %v1139_v11, %v752_v26 }
 0x235   : > { %v3596_v21 = vadd.f32 %v3595_v18, %v10126_v5  ;;  %v559_v5 = vld [vmem:[%s7119_s3 + $0x10a8] sm:$0xff]  ;;  %v1718_v42 = vmul.f32 %v5620_v46, %v7175_v50  ;;  %v1337_v27 = vadd.f32 %v1145_v0, %v758_v24  ;;  %v1724_v47 = vmul.f32 %v5626_v3, %v7175_v50 }
 0x236   : > { %v9133_v36 = vpack.c.bf16 %v2483_v61, %v2477_v6  ;;  %v753_v59 = vmul.f32 %v7159_v38, %v559_v5  ;;  %v10129_v53 = vld [vmem:[#allocation60_spill] sm:$0xff]  ;;  %v1140_v61 = vmul.f32 %v5428_v20, %v7167_v44  ;;  %v759_v26 = vmul.f32 %v7159_v38, %v565_v29 }
 0x237   : > { %v3860_v16 = vpop.f32.mrf.mxu3  ;;  %v3684_v2 = vpop.f32.mrf.mxu1  ;;  %v5813_v6 = vld [vmem:[%s7119_s3 + $0x11c0] sm:$0xff]  ;;  %v5621_v5 = vld [vmem:[%s7119_s3 + $0x1168] sm:$0xff]  ;;  %v4295_v3 = vmax.f32 %v9102_v28, 0.0  ;;  %v1916_v0 = vadd.f32 %v1724_v47, %v1337_v27 }
 0x238   : > { %v9123_v18 = vadd.f32 %v3860_v16, %v3772_v54  ;;  %v3685_v8 = vadd.f32 %v3684_v2, %v3596_v21  ;;  %10128 = vst [vmem:[#allocation47_spill] sm:$0xff] %v9133_v36  ;;  %v5434_v54 = vld [vmem:[%s7119_s3 + $0x1138] sm:$0xff]  ;;  %v9143_v2 = vpack.c.bf16 %v2484_v23, %v2478_v51  ;;  %v2297_v20 = vmul.f32 %v5813_v6, %v7183_v56 }
 0x239   : > { %v1146_v11 = vmul.f32 %v5434_v54, %v7167_v44  ;;  %v10132_v51 = vld [vmem:[#allocation51_spill] sm:$0xff]  ;;  %v1332_v54 = vadd.f32 %v1140_v61, %v753_v59 }
 0x23a   : > { %10127 = vst [vmem:[#allocation46_spill] sm:$0xff] %v9123_v18  ;;  %v4297_v16 = vmax.f32 %v3685_v8, 0.0  ;;  %v1910_v8 = vadd.f32 %v1718_v42, %v1331_v63  ;;  %v5820_v63 = vld [vmem:[%s7119_s3 + $0x11f8] sm:$0xff]  ;;  %v10134_v42 = vld [vmem:[#allocation53_spill] sm:$0xff] }
 0x23b   : > { %v3773_v31 = vpop.f32.mrf.mxu2  ;;  %10130 = vst [vmem:[#allocation57_spill] sm:$0xff] %v9143_v2  ;;  %v10135_v47 = vld [vmem:[#allocation63_spill] sm:$0xff] }
 0x23c   : > { %v3774_v21 = vadd.f32 %v3773_v31, %v9053_v4  ;;  %v3598_v48 = vpop.f32.mrf.mxu0  ;;  %v5819_v31 = vld [vmem:[%s7119_s3 + $0x11f0] sm:$0xff]  ;;  %v2489_v6 = vadd.f32 %v2297_v20, %v1910_v8  ;;  %v5440_v20 = vld [vmem:[%s7119_s3 + $0x1288] sm:$0xff] }
 0x23d   : > { %v3599_v1 = vadd.f32 %v3598_v48, %v10129_v53  ;;  %v5627_v48 = vld [vmem:[%s7119_s3 + $0x1198] sm:$0xff]  ;;  %v2303_v29 = vmul.f32 %v5819_v31, %v7183_v56  ;;  %v1338_v53 = vadd.f32 %v1146_v11, %v759_v26 }
 0x23e   : > { %v1725_v28 = vmul.f32 %v5627_v48, %v7175_v50  ;;  %v5439_v48 = vld [vmem:[%s7119_s3 + $0x1280] sm:$0xff] }
 0x23f   : > { %v3862_v46 = vpop.f32.mrf.mxu3  ;;  %v3687_v18 = vpop.f32.mrf.mxu1  ;;  %3637 = vmatmul.bf16.gmra.mxu0 %v9133_v36  ;;  %v1719_v36 = vmul.f32 %v5621_v5, %v7175_v50  ;;  %v2495_v31 = vadd.f32 %v2303_v29, %v1916_v0  ;;  %v570_v5 = vld [vmem:[%s7119_s3 + $0x1220] sm:$0xff]  ;;  %v577_v0 = vld [vmem:[%s7119_s3 + $0x1258] sm:$0xff] }
 0x240   : > { %v9153_v24 = vadd.f32 %v3862_v46, %v3774_v21  ;;  %v9155_v23 = vadd.f32 %v3687_v18, %v3599_v1  ;;  %3815 = vmatmul.bf16.gmra.mxu2 %v10132_v51  ;;  %v9163_v18 = vpack.c.bf16 %v4297_v16, %v4295_v3  ;;  %v5814_v1 = vld [vmem:[%s7119_s3 + $0x11c8] sm:$0xff]  ;;  %v1917_v26 = vadd.f32 %v1725_v28, %v1338_v53 }
 0x241   : > { %v1911_v16 = vadd.f32 %v1719_v36, %v1332_v54  ;;  %v2298_v11 = vmul.f32 %v5814_v1, %v7183_v56  ;;  %v2304_v46 = vmul.f32 %v5820_v63, %v7183_v56  ;;  %v5446_v36 = vld [vmem:[%s7119_s3 + $0x12b8] sm:$0xff]  ;;  %v9182_v29 = vpack.c.bf16 %v2495_v31, %v2489_v6 }
 0x242   : > { %10131 = vst [vmem:[#allocation60_spill] sm:$0xff] %v9153_v24  ;;  %3726 = vmatmul.bf16.gmra.mxu1 %v9143_v2  ;;  %v764_v54 = vmul.f32 %v7159_v38, %v570_v5  ;;  %v1151_v53 = vmul.f32 %v5439_v48, %v7167_v44  ;;  %v771_v6 = vmul.f32 %v7159_v38, %v577_v0  ;;  %v10138_v48 = vld [vmem:[#allocation66_spill] sm:$0xff] }
 0x243   : > { %10133 = vst [vmem:[#allocation51_spill] sm:$0xff] %v9163_v18  ;;  %v3776_v21 = vpop.f32.mrf.mxu2  ;;  %v2490_v28 = vadd.f32 %v2298_v11, %v1911_v16  ;;  %v2496_v1 = vadd.f32 %v2304_v46, %v1917_v26  ;;  %v1152_v31 = vmul.f32 %v5440_v20, %v7167_v44  ;;  %v1158_v5 = vmul.f32 %v5446_v36, %v7167_v44  ;;  %v5633_v11 = vld [vmem:[%s7119_s3 + $0x12e8] sm:$0xff]  ;;  %v5639_v46 = vld [vmem:[%s7119_s3 + $0x1318] sm:$0xff] }
 0x244   : > { %3904 = vmatmul.bf16.gmra.mxu3 %v10134_v42  ;;  %v3777_v59 = vadd.f32 %v3776_v21, %v9053_v4  ;;  %v3600_v27 = vpop.f32.mrf.mxu0  ;;  %v576_v21 = vld [vmem:[%s7119_s3 + $0x1250] sm:$0xff]  ;;  %10137 = vst [vmem:[#allocation63_spill] sm:$0xff] %v9182_v29 }
 0x245   : > { %v3601_v61 = vadd.f32 %v3600_v27, %v10135_v47  ;;  %v5445_v42 = vld [vmem:[%s7119_s3 + $0x12b0] sm:$0xff]  ;;  %v571_v27 = vld [vmem:[%s7119_s3 + $0x1228] sm:$0xff]  ;;  %v770_v63 = vmul.f32 %v7159_v38, %v576_v21 }
 0x246   : > { %v1157_v18 = vmul.f32 %v5445_v42, %v7167_v44  ;;  %v1343_v42 = vadd.f32 %v1151_v53, %v764_v54  ;;  %v1350_v54 = vadd.f32 %v1158_v5, %v771_v6  ;;  %v1737_v53 = vmul.f32 %v5639_v46, %v7175_v50  ;;  %v5451_v6 = vld [vmem:[%s7119_s3 + $0x1400] sm:$0xff] }
 0x247   : > { %v3865_v3 = vpop.f32.mrf.mxu3  ;;  %v3689_v51 = vpop.f32.mrf.mxu1 }
 0x248   : > { %v9177_v47 = vadd.f32 %v3865_v3, %v3777_v59  ;;  %v3690_v8 = vadd.f32 %v3689_v51, %v3601_v61  ;;  %v5632_v59 = vld [vmem:[%s7119_s3 + $0x12e0] sm:$0xff]  ;;  %v5638_v61 = vld [vmem:[%s7119_s3 + $0x1310] sm:$0xff]  ;;  %v765_v51 = vmul.f32 %v7159_v38, %v571_v27  ;;  %v9199_v27 = vpack.c.bf16 %v2496_v1, %v2490_v28 }
 0x249   : > { %v1730_v2 = vmul.f32 %v5632_v59, %v7175_v50  ;;  %v1349_v0 = vadd.f32 %v1157_v18, %v770_v63  ;;  %v1736_v20 = vmul.f32 %v5638_v61, %v7175_v50  ;;  %v4299_v18 = vmax.f32 %v9155_v23, 0.0  ;;  %v10141_v63 = vld [vmem:[#allocation58_spill] sm:$0xff]  ;;  %v5826_v59 = vld [vmem:[%s7119_s3 + $0x1348] sm:$0xff] }
 0x24a   : > { %10136 = vst [vmem:[#allocation53_spill] sm:$0xff] %v9177_v47  ;;  %v4301_v47 = vmax.f32 %v3690_v8, 0.0  ;;  %v1731_v8 = vmul.f32 %v5633_v11, %v7175_v50  ;;  %v5832_v61 = vld [vmem:[%s7119_s3 + $0x1378] sm:$0xff]  ;;  %v2315_v23 = vmul.f32 %v5831_v40, %v7183_v56  ;;  %v583_v11 = vld [vmem:[%s7119_s3 + $0x13a8] sm:$0xff] }
 0x24b   : > { %v3778_v3 = vpop.f32.mrf.mxu2  ;;  %10139 = vst [vmem:[#allocation66_spill] sm:$0xff] %v9199_v27 }
 0x24c   : > { %v3779_v16 = vadd.f32 %v3778_v3, %v9053_v4  ;;  %v3603_v26 = vpop.f32.mrf.mxu0  ;;  %v5825_v3 = vld [vmem:[%s7119_s3 + $0x1340] sm:$0xff]  ;;  %v9223_v46 = vpack.c.bf16 %v4301_v47, %v4299_v18  ;;  %v1163_v18 = vmul.f32 %v5451_v6, %v7167_v44 }
 0x24d   : > { %v3604_v21 = vadd.f32 %v3603_v26, %v10138_v48  ;;  %v1344_v26 = vadd.f32 %v1152_v31, %v765_v51  ;;  %v1922_v48 = vadd.f32 %v1730_v2, %v1343_v42  ;;  %v582_v51 = vld [vmem:[%s7119_s3 + $0x13a0] sm:$0xff]  ;;  %v1928_v31 = vadd.f32 %v1736_v20, %v1349_v0  ;;  %v5452_v0 = vld [vmem:[%s7119_s3 + $0x1408] sm:$0xff]  ;;  %v5458_v20 = vld [vmem:[%s7119_s3 + $0x1438] sm:$0xff] }
 0x24e   : > { %v2309_v5 = vmul.f32 %v5825_v3, %v7183_v56  ;;  %10142 = vst [vmem:[#allocation58_spill] sm:$0xff] %v9223_v46  ;;  %v1929_v42 = vadd.f32 %v1737_v53, %v1350_v54  ;;  %v10143_v3 = vld [vmem:[#allocation59_spill] sm:$0xff]  ;;  %v776_v47 = vmul.f32 %v7159_v38, %v582_v51  ;;  %v10144_v46 = vld [vmem:[#allocation69_spill] sm:$0xff]  ;;  %v1170_v51 = vmul.f32 %v5458_v20, %v7167_v44 }
 0x24f   : > { %v3867_v36 = vpop.f32.mrf.mxu3  ;;  %v3692_v24 = vpop.f32.mrf.mxu1  ;;  %3642 = vmatmul.bf16.gmra.mxu0 %v9182_v29  ;;  %v1923_v2 = vadd.f32 %v1731_v8, %v1344_v26  ;;  %v5644_v53 = vld [vmem:[%s7119_s3 + $0x1460] sm:$0xff] }
 0x250   : > { %v9208_v28 = vadd.f32 %v3867_v36, %v3779_v16  ;;  %v9210_v1 = vadd.f32 %v3692_v24, %v3604_v21  ;;  %3820 = vmatmul.bf16.gmra.mxu2 %v10141_v63  ;;  %v588_v16 = vld [vmem:[%s7119_s3 + $0x13d0] sm:$0xff]  ;;  %v2310_v36 = vmul.f32 %v5826_v59, %v7183_v56  ;;  %v2316_v63 = vmul.f32 %v5832_v61, %v7183_v56 }
 0x251   : > { %v5457_v24 = vld [vmem:[%s7119_s3 + $0x1430] sm:$0xff]  ;;  %v782_v54 = vmul.f32 %v7159_v38, %v588_v16  ;;  %v777_v61 = vmul.f32 %v7159_v38, %v583_v11 }
 0x252   : > { %10140 = vst [vmem:[#allocation102_spill] sm:$0xff] %v9208_v28  ;;  %3731 = vmatmul.bf16.gmra.mxu1 %v9199_v27  ;;  %v589_v27 = vld [vmem:[%s7119_s3 + $0x13d8] sm:$0xff]  ;;  %v1169_v8 = vmul.f32 %v5457_v24, %v7167_v44  ;;  %v5650_v59 = vld [vmem:[%s7119_s3 + $0x1490] sm:$0xff]  ;;  %v2502_v49 = vadd.f32 %v2310_v36, %v1923_v2  ;;  %v2508_v16 = vadd.f32 %v2316_v63, %v1929_v42  ;;  %v5645_v24 = vld [vmem:[%s7119_s3 + $0x1468] sm:$0xff] }
 0x253   : > { %v3781_v21 = vpop.f32.mrf.mxu2  ;;  %v1748_v20 = vmul.f32 %v5650_v59, %v7175_v50  ;;  %v5844_v36 = vld [vmem:[%s7119_s3 + $0x14f8] sm:$0xff] }
 0x254   : > { %3909 = vmatmul.bf16.gmra.mxu3 %v10143_v3  ;;  %v3782_v40 = vadd.f32 %v3781_v21, %v9053_v4  ;;  %v3605_v29 = vpop.f32.mrf.mxu0  ;;  %v783_v3 = vmul.f32 %v7159_v38, %v589_v27  ;;  %v1164_v21 = vmul.f32 %v5452_v0, %v7167_v44  ;;  %v1355_v27 = vadd.f32 %v1163_v18, %v776_v47 }
 0x255   : > { %v3606_v26 = vadd.f32 %v3605_v29, %v10144_v46  ;;  %v2501_v29 = vadd.f32 %v2309_v5, %v1922_v48  ;;  %v2507_v46 = vadd.f32 %v2315_v23, %v1928_v31  ;;  %v1742_v0 = vmul.f32 %v5644_v53, %v7175_v50  ;;  %v5838_v23 = vld [vmem:[%s7119_s3 + $0x14c8] sm:$0xff] }
 0x256   : > { %v1361_v41 = vadd.f32 %v1169_v8, %v782_v54  ;;  %v1356_v30 = vadd.f32 %v1164_v21, %v777_v61  ;;  %v1362_v48 = vadd.f32 %v1170_v51, %v783_v3  ;;  %v1743_v31 = vmul.f32 %v5645_v24, %v7175_v50 }
 0x257   : > { %v3870_v6 = vpop.f32.mrf.mxu3  ;;  %v3694_v28 = vpop.f32.mrf.mxu1  ;;  %v1749_v5 = vmul.f32 %v5651_v9, %v7175_v50  ;;  %v9254_v42 = vpack.c.bf16 %v2507_v46, %v2501_v29  ;;  %v1934_v47 = vadd.f32 %v1742_v0, %v1355_v27  ;;  %v2321_v18 = vmul.f32 %v5837_v13, %v7183_v56  ;;  %v594_v46 = vld [vmem:[%s7119_s3 + $0x1520] sm:$0xff]  ;;  %v6436_v0 = vld [vmem:[#allocation9 + $0x174] sm:$0xf] }
 0x258   : > { %v9245_v37 = vadd.f32 %v3870_v6, %v3782_v40  ;;  %v3695_v11 = vadd.f32 %v3694_v28, %v3606_v26  ;;  %v9258_v40 = vpack.c.bf16 %v2508_v16, %v2502_v49  ;;  %v10148_v26 = vld [vmem:[#allocation72_spill] sm:$0xff]  ;;  %v1940_v8 = vadd.f32 %v1748_v20, %v1361_v41  ;;  %v6058_v20 = vld [vmem:[#allocation9 + $0x178] sm:$0xf0] }
 0x259   : > { %10146 = vst [vmem:[#allocation69_spill] sm:$0xff] %v9254_v42  ;;  %v2327_v53 = vmul.f32 %v5843_v55, %v7183_v56  ;;  %v2322_v9 = vmul.f32 %v5838_v23, %v7183_v56  ;;  %v1935_v61 = vadd.f32 %v1743_v31, %v1356_v30  ;;  %v1941_v3 = vadd.f32 %v1749_v5, %v1362_v48  ;;  %v10150_v55 = vld [vmem:[#allocation64_spill] sm:$0xff]  ;;  %v6452_v5 = vld [vmem:[#allocation9 + $0x1f4] sm:$0xf]  ;;  %v6122_v23 = vld [vmem:[#allocation9 + $0x1f8] sm:$0xf0] }
 0x25a   : > { %10145 = vst [vmem:[#allocation59_spill] sm:$0xff] %v9245_v37  ;;  %v4305_v59 = vmax.f32 %v3695_v11, 0.0  ;;  %v2328_v21 = vmul.f32 %v5844_v36, %v7183_v56  ;;  %v4303_v13 = vmax.f32 %v9210_v1, 0.0  ;;  %v2513_v29 = vadd.f32 %v2321_v18, %v1934_v47  ;;  %v600_v11 = vld [vmem:[%s7119_s3 + $0x1550] sm:$0xff]  ;;  %v5463_v27 = vld [vmem:[%s7119_s3 + $0x1580] sm:$0xff]  ;;  %v595_v18 = vld [vmem:[%s7119_s3 + $0x1528] sm:$0xff] }
 0x25b   : > { %v3783_v2 = vpop.f32.mrf.mxu2  ;;  %10147 = vst [vmem:[#allocation103_spill] sm:$0xff] %v9258_v40  ;;  %v2519_v30 = vadd.f32 %v2327_v53, %v1940_v8  ;;  %v2514_v16 = vadd.f32 %v2322_v9, %v1935_v61  ;;  %v6061_v31 = vor.u32 %v6436_v0, %v6058_v20  ;;  %v10152_v36 = vld [vmem:[#allocation65_spill] sm:$0xff]  ;;  %v6484_v8 = vld [vmem:[#allocation9 + $0x2f4] sm:$0xf]  ;;  %v6250_v53 = vld [vmem:[#allocation9 + $0x2f8] sm:$0xf0]  ;;  %v788_v0 = vmul.f32 %v7159_v38, %v594_v46 }
 0x25c   : > { %v3784_v28 = vadd.f32 %v3783_v2, %v9053_v4  ;;  %v3608_v63 = vpop.f32.mrf.mxu0  ;;  %v2520_v24 = vadd.f32 %v2328_v21, %v1941_v3  ;;  %v9276_v1 = vpack.c.bf16 %v4305_v59, %v4303_v13  ;;  %v6468_v2 = vld [vmem:[#allocation9 + $0x274] sm:$0xf]  ;;  %v10153_v9 = vld [vmem:[#allocation75_spill] sm:$0xff]  ;;  %v5464_v3 = vld [vmem:[%s7119_s3 + $0x1588] sm:$0xff] }
 0x25d   : > { %v3609_v54 = vadd.f32 %v3608_v63, %v10148_v26  ;;  %v5469_v47 = vld [vmem:[%s7119_s3 + $0x15b0] sm:$0xff]  ;;  %v6125_v26 = vor.u32 %v6452_v5, %v6122_v23  ;;  %v601_v61 = vld [vmem:[%s7119_s3 + $0x1558] sm:$0xff]  ;;  %3935 = vmatpush.bf16.msra.mxu0 %v6061_v31  ;;  %v9286_v13 = vpack.c.bf16 %v2519_v30, %v2513_v29  ;;  %v6434_v20 = vld [vmem:[#allocation9 + $0x164] sm:$0xf]  ;;  %v1175_v31 = vmul.f32 %v5463_v27, %v7167_v44 }
 0x25e   : > { %10151 = vst [vmem:[#allocation64_spill] sm:$0xff] %v9276_v1  ;;  %v5470_v21 = vld [vmem:[%s7119_s3 + $0x15b8] sm:$0xff]  ;;  %v6450_v5 = vld [vmem:[#allocation9 + $0x1e4] sm:$0xf]  ;;  %v6114_v30 = vld [vmem:[#allocation9 + $0x1e8] sm:$0xf0] }
 0x25f   : > { %v3872_v49 = vpop.f32.mrf.mxu3  ;;  %v3697_v51 = vpop.f32.mrf.mxu1  ;;  %3647 = vmatmul.bf16.gmra.mxu0 %v9254_v42  ;;  %4024 = vmatpush.bf16.msra.mxu1 %v6125_v26  ;;  %v6178_v46 = vld [vmem:[#allocation9 + $0x268] sm:$0xf0]  ;;  %v5656_v26 = vld [vmem:[%s7119_s3 + $0x15e0] sm:$0xff]  ;;  %v5662_v27 = vld [vmem:[%s7119_s3 + $0x1610] sm:$0xff] }
 0x260   : > { %v9267_v6 = vadd.f32 %v3872_v49, %v3784_v28  ;;  %v9269_v41 = vadd.f32 %v3697_v51, %v3609_v54  ;;  %3825 = vmatmul.bf16.gmra.mxu2 %v10150_v55  ;;  %v6186_v54 = vld [vmem:[#allocation9 + $0x278] sm:$0xf0]  ;;  %v6253_v51 = vor.u32 %v6484_v8, %v6250_v53  ;;  %v9288_v55 = vpack.c.bf16 %v2520_v24, %v2514_v16  ;;  %v6466_v16 = vld [vmem:[#allocation9 + $0x264] sm:$0xf]  ;;  %v5855_v42 = vld [vmem:[%s7119_s3 + $0x1670] sm:$0xff] }
 0x261   : > { %v6189_v49 = vor.u32 %v6468_v2, %v6186_v54  ;;  %v6117_v54 = vor.u32 %v6450_v5, %v6114_v30  ;;  %v6181_v8 = vor.u32 %v6466_v16, %v6178_v46  ;;  %v6482_v53 = vld [vmem:[#allocation9 + $0x2e4] sm:$0xf]  ;;  %v1176_v5 = vmul.f32 %v5464_v3, %v7167_v44  ;;  %v6432_v30 = vld [vmem:[#allocation9 + $0x154] sm:$0xf] }
 0x262   : > { %10149 = vst [vmem:[#allocation72_spill] sm:$0xff] %v9267_v6  ;;  %3736 = vmatmul.bf16.gmra.mxu1 %v9258_v40  ;;  %4202 = vmatpush.bf16.msra.mxu3 %v6253_v51  ;;  %v795_v51 = vmul.f32 %v7159_v38, %v601_v61  ;;  %v1367_v46 = vadd.f32 %v1175_v31, %v788_v0  ;;  %v6480_v40 = vld [vmem:[#allocation9 + $0x2d4] sm:$0xf]  ;;  %v6234_v0 = vld [vmem:[#allocation9 + $0x2d8] sm:$0xf0] }
 0x263   : > { %v3786_v48 = vpop.f32.mrf.mxu2  ;;  %10154 = vst [vmem:[#allocation65_spill] sm:$0xff] %v9288_v55  ;;  %4113 = vmatpush.bf16.msra.mxu2 %v6189_v49  ;;  %v789_v49 = vmul.f32 %v7159_v38, %v595_v18  ;;  %4025 = vmatpush.bf16.msra.mxu1 %v6117_v54  ;;  %v1754_v18 = vmul.f32 %v5656_v26, %v7175_v50  ;;  %v10157_v26 = vld [vmem:[#allocation77_spill] sm:$0xff] }
 0x264   : > { %3914 = vmatmul.bf16.gmra.mxu3 %v10152_v36  ;;  %v3787_v28 = vadd.f32 %v3786_v48, %v9053_v4  ;;  %v3610_v63 = vpop.f32.mrf.mxu0  ;;  %v6050_v48 = vld [vmem:[#allocation9 + $0x168] sm:$0xf0]  ;;  %v6237_v6 = vor.u32 %v6480_v40, %v6234_v0 }
 0x265   : > { %v3611_v59 = vadd.f32 %v3610_v63, %v10153_v9  ;;  %v794_v63 = vmul.f32 %v7159_v38, %v600_v11  ;;  %v6053_v29 = vor.u32 %v6434_v20, %v6050_v48  ;;  %v6242_v11 = vld [vmem:[#allocation9 + $0x2e8] sm:$0xf0]  ;;  %v1181_v9 = vmul.f32 %v5469_v47, %v7167_v44  ;;  %v5663_v48 = vld [vmem:[%s7119_s3 + $0x1618] sm:$0xff] }
 0x266   : > { %v5657_v20 = vld [vmem:[%s7119_s3 + $0x15e8] sm:$0xff]  ;;  %v6245_v1 = vor.u32 %v6482_v53, %v6242_v11  ;;  %v6042_v47 = vld [vmem:[#allocation9 + $0x158] sm:$0xf0]  ;;  %v1368_v37 = vadd.f32 %v1176_v5, %v789_v49  ;;  %v6462_v49 = vld [vmem:[#allocation9 + $0x244] sm:$0xf] }
 0x267   : > { %v3875_v23 = vpop.f32.mrf.mxu3  ;;  %v3699_v36 = vpop.f32.mrf.mxu1  ;;  %3936 = vmatpush.bf16.msra.mxu0 %v6053_v29  ;;  %4114 = vmatpush.bf16.msra.mxu2 %v6181_v8  ;;  %v6045_v61 = vor.u32 %v6432_v30, %v6042_v47  ;;  %v6106_v29 = vld [vmem:[#allocation9 + $0x1d8] sm:$0xf0]  ;;  %v5850_v30 = vld [vmem:[%s7119_s3 + $0x1648] sm:$0xff]  ;;  %v1755_v25 = vmul.f32 %v5657_v20, %v7175_v50 }
 0x268   : > { %v9293_v24 = vadd.f32 %v3875_v23, %v3787_v28  ;;  %v3700_v2 = vadd.f32 %v3699_v36, %v3611_v59  ;;  %v4307_v28 = vmax.f32 %v9269_v41, 0.0  ;;  %v5849_v23 = vld [vmem:[%s7119_s3 + $0x1640] sm:$0xff]  ;;  %v1182_v36 = vmul.f32 %v5470_v21, %v7167_v44  ;;  %4203 = vmatpush.bf16.msra.mxu3 %v6245_v1  ;;  %v6448_v41 = vld [vmem:[#allocation9 + $0x1d4] sm:$0xf]  ;;  %v6170_v11 = vld [vmem:[#allocation9 + $0x258] sm:$0xf0] }
 0x269   : > { %v1760_v21 = vmul.f32 %v5662_v27, %v7175_v50  ;;  %v6109_v54 = vor.u32 %v6448_v41, %v6106_v29  ;;  %v1373_v1 = vadd.f32 %v1181_v9, %v794_v63  ;;  %v5856_v47 = vld [vmem:[%s7119_s3 + $0x1678] sm:$0xff]  ;;  %v1761_v27 = vmul.f32 %v5663_v48, %v7175_v50  ;;  %v6430_v41 = vld [vmem:[#allocation9 + $0x144] sm:$0xf]  ;;  %v6034_v29 = vld [vmem:[#allocation9 + $0x148] sm:$0xf0] }
 0x26a   : > { %10155 = vst [vmem:[#allocation75_spill] sm:$0xff] %v9293_v24  ;;  %v4309_v59 = vmax.f32 %v3700_v2, 0.0  ;;  %v6464_v2 = vld [vmem:[#allocation9 + $0x254] sm:$0xf]  ;;  %v1946_v63 = vadd.f32 %v1754_v18, %v1367_v46  ;;  %v2333_v9 = vmul.f32 %v5849_v23, %v7183_v56  ;;  %v6098_v40 = vld [vmem:[#allocation9 + $0x1c8] sm:$0xf0]  ;;  %v2339_v23 = vmul.f32 %v5855_v42, %v7183_v56 }
 0x26b   : > { %v3788_v16 = vpop.f32.mrf.mxu2  ;;  %3937 = vmatpush.bf16.msra.mxu0 %v6045_v61  ;;  %v6173_v24 = vor.u32 %v6464_v2, %v6170_v11  ;;  %4026 = vmatpush.bf16.msra.mxu1 %v6109_v54  ;;  %v6037_v61 = vor.u32 %v6430_v41, %v6034_v29  ;;  %v10158_v48 = vld [vmem:[#allocation70_spill] sm:$0xff]  ;;  %v6478_v2 = vld [vmem:[#allocation9 + $0x2c4] sm:$0xf]  ;;  %v1952_v46 = vadd.f32 %v1760_v21, %v1373_v1  ;;  %v10159_v21 = vld [vmem:[#allocation71_spill] sm:$0xff] }
 0x26c   : > { %v3789_v3 = vadd.f32 %v3788_v16, %v9053_v4  ;;  %v3613_v53 = vpop.f32.mrf.mxu0  ;;  %v9309_v31 = vpack.c.bf16 %v4309_v59, %v4307_v28  ;;  %v1374_v16 = vadd.f32 %v1182_v36, %v795_v51  ;;  %v6446_v28 = vld [vmem:[#allocation9 + $0x1c4] sm:$0xf]  ;;  %v6162_v51 = vld [vmem:[#allocation9 + $0x248] sm:$0xf0]  ;;  %4204 = vmatpush.bf16.msra.mxu3 %v6237_v6  ;;  %v2334_v11 = vmul.f32 %v5850_v30, %v7183_v56  ;;  %v6460_v41 = vld [vmem:[#allocation9 + $0x234] sm:$0xf] }
 0x26d   : > { %v3614_v8 = vadd.f32 %v3613_v53, %v10157_v26  ;;  %4115 = vmatpush.bf16.msra.mxu2 %v6173_v24  ;;  %v6101_v36 = vor.u32 %v6446_v28, %v6098_v40  ;;  %v6226_v53 = vld [vmem:[#allocation9 + $0x2c8] sm:$0xf0]  ;;  %v6165_v24 = vor.u32 %v6462_v49, %v6162_v51  ;;  %v2340_v0 = vmul.f32 %v5856_v47, %v7183_v56  ;;  %v5475_v26 = vld [vmem:[%s7119_s3 + $0x1700] sm:$0xff]  ;;  %v6154_v29 = vld [vmem:[#allocation9 + $0x238] sm:$0xf0] }
 0x26e   : > { %10156 = vst [vmem:[#allocation104_spill] sm:$0xff] %v9309_v31  ;;  %v6229_v18 = vor.u32 %v6478_v2, %v6226_v53  ;;  %v1953_v54 = vadd.f32 %v1761_v27, %v1374_v16  ;;  %v6090_v16 = vld [vmem:[#allocation9 + $0x1b8] sm:$0xf0]  ;;  %v2525_v47 = vadd.f32 %v2333_v9, %v1946_v63  ;;  %v2531_v27 = vadd.f32 %v2339_v23, %v1952_v46  ;;  %v6476_v28 = vld [vmem:[#allocation9 + $0x2b4] sm:$0xf]  ;;  %v607_v51 = vld [vmem:[%s7119_s3 + $0x16a8] sm:$0xff] }
 0x26f   : > { %v3877_v59 = vpop.f32.mrf.mxu3  ;;  %v3702_v31 = vpop.f32.mrf.mxu1  ;;  %3652 = vmatmul.bf16.gmra.mxu0 %v9286_v13  ;;  %4027 = vmatpush.bf16.msra.mxu1 %v6101_v36  ;;  %v612_v40 = vld [vmem:[%s7119_s3 + $0x16d0] sm:$0xff]  ;;  %v6218_v2 = vld [vmem:[#allocation9 + $0x2b8] sm:$0xf0]  ;;  %v6426_v53 = vld [vmem:[#allocation9 + $0x124] sm:$0xf]  ;;  %v1187_v63 = vmul.f32 %v5475_v26, %v7167_v44  ;;  %v6157_v9 = vor.u32 %v6460_v41, %v6154_v29 }
 0x270   : > { %v9319_v5 = vadd.f32 %v3877_v59, %v3789_v3  ;;  %v9321_v20 = vadd.f32 %v3702_v31, %v3614_v8  ;;  %3830 = vmatmul.bf16.gmra.mxu2 %v10158_v48  ;;  %3938 = vmatpush.bf16.msra.mxu0 %v6037_v61  ;;  %v1947_v3 = vadd.f32 %v1755_v25, %v1368_v37  ;;  %v606_v31 = vld [vmem:[%s7119_s3 + $0x16a0] sm:$0xff]  ;;  %v6428_v8 = vld [vmem:[#allocation9 + $0x134] sm:$0xf]  ;;  %v6026_v25 = vld [vmem:[#allocation9 + $0x138] sm:$0xf0] }
 0x271   : > { %4116 = vmatpush.bf16.msra.mxu2 %v6165_v24  ;;  %v6444_v37 = vld [vmem:[#allocation9 + $0x1b4] sm:$0xf]  ;;  %4205 = vmatpush.bf16.msra.mxu3 %v6229_v18  ;;  %v2532_v61 = vadd.f32 %v2340_v0, %v1953_v54  ;;  %v6029_v48 = vor.u32 %v6428_v8, %v6026_v25  ;;  %v6018_v24 = vld [vmem:[#allocation9 + $0x128] sm:$0xf0]  ;;  %v6221_v46 = vor.u32 %v6476_v28, %v6218_v2  ;;  %v6442_v23 = vld [vmem:[#allocation9 + $0x1a4] sm:$0xf] }
 0x272   : > { %3741 = vmatmul.bf16.gmra.mxu1 %v9288_v55  ;;  %v2526_v59 = vadd.f32 %v2334_v11, %v1947_v3  ;;  %v5481_v49 = vld [vmem:[%s7119_s3 + $0x1730] sm:$0xff]  ;;  %v6093_v36 = vor.u32 %v6444_v37, %v6090_v16  ;;  %v6082_v18 = vld [vmem:[#allocation9 + $0x1a8] sm:$0xf0]  ;;  %v6458_v3 = vld [vmem:[#allocation9 + $0x224] sm:$0xf]  ;;  %v6021_v0 = vor.u32 %v6426_v53, %v6018_v24  ;;  %v9341_v25 = vpack.c.bf16 %v2531_v27, %v2525_v47 }
 0x273   : > { %v3791_v6 = vpop.f32.mrf.mxu2  ;;  %v6474_v8 = vld [vmem:[#allocation9 + $0x2a4] sm:$0xf]  ;;  %v6210_v26 = vld [vmem:[#allocation9 + $0x2a8] sm:$0xf0]  ;;  %v613_v37 = vld [vmem:[%s7119_s3 + $0x16d8] sm:$0xff]  ;;  %v1193_v47 = vmul.f32 %v5481_v49, %v7167_v44 }
 0x274   : > { %3919 = vmatmul.bf16.gmra.mxu3 %v10159_v21  ;;  %v3792_v42 = vadd.f32 %v3791_v6, %v9053_v4  ;;  %v3615_v1 = vpop.f32.mrf.mxu0  ;;  %3939 = vmatpush.bf16.msra.mxu0 %v6029_v48  ;;  %v5476_v16 = vld [vmem:[%s7119_s3 + $0x1708] sm:$0xff]  ;;  %v5482_v41 = vld [vmem:[%s7119_s3 + $0x1738] sm:$0xff]  ;;  %v9346_v29 = vpack.c.bf16 %v2532_v61, %v2526_v59  ;;  %v5668_v28 = vld [vmem:[%s7119_s3 + $0x1760] sm:$0xff]  ;;  %v6213_v53 = vor.u32 %v6474_v8, %v6210_v26 }
 0x275   : > { %v3616_v30 = vadd.f32 %v3615_v1, %v8434_v60  ;;  %v800_v60 = vmul.f32 %v7159_v38, %v606_v31  ;;  %4028 = vmatpush.bf16.msra.mxu1 %v6093_v36  ;;  %v6146_v31 = vld [vmem:[#allocation9 + $0x228] sm:$0xf0]  ;;  %v4311_v1 = vmax.f32 %v9321_v20, 0.0  ;;  %4117 = vmatpush.bf16.msra.mxu2 %v6157_v9  ;;  %v5674_v48 = vld [vmem:[%s7119_s3 + $0x1790] sm:$0xff]  ;;  %v806_v20 = vmul.f32 %v7159_v38, %v612_v40  ;;  %v6202_v8 = vld [vmem:[#allocation9 + $0x298] sm:$0xf0] }
 0x276   : > { %4206 = vmatpush.bf16.msra.mxu3 %v6221_v46  ;;  %v5669_v36 = vld [vmem:[%s7119_s3 + $0x1768] sm:$0xff]  ;;  %v6149_v2 = vor.u32 %v6458_v3, %v6146_v31  ;;  %v6424_v24 = vld [vmem:[#allocation9 + $0x114] sm:$0xf]  ;;  %v801_v9 = vmul.f32 %v7159_v38, %v607_v51  ;;  %v5861_v26 = vld [vmem:[%s7119_s3 + $0x17c0] sm:$0xff]  ;;  %v807_v55 = vmul.f32 %v7159_v38, %v613_v37 }
 0x277   : > { %v3880_v6 = vpop.f32.mrf.mxu3  ;;  %v3704_v21 = vpop.f32.mrf.mxu1  ;;  %v1379_v27 = vadd.f32 %v1187_v63, %v800_v60  ;;  %v6440_v46 = vld [vmem:[#allocation9 + $0x194] sm:$0xf]  ;;  %v5675_v60 = vld [vmem:[%s7119_s3 + $0x1798] sm:$0xff]  ;;  %v1767_v38 = vmul.f32 %v5669_v36, %v7175_v50  ;;  %v6066_v37 = vld [vmem:[#allocation9 + $0x188] sm:$0xf0] }
 0x278   : > { %v9338_v54 = vadd.f32 %v3880_v6, %v3792_v42  ;;  %v3705_v11 = vadd.f32 %v3704_v21, %v3616_v30  ;;  %v6085_v42 = vor.u32 %v6442_v23, %v6082_v18  ;;  %v6010_v6 = vld [vmem:[#allocation9 + $0x118] sm:$0xf0]  ;;  %v6456_v59 = vld [vmem:[#allocation9 + $0x214] sm:$0xf]  ;;  %3940 = vmatpush.bf16.msra.mxu0 %v6021_v0  ;;  %v1194_v0 = vmul.f32 %v5482_v41, %v7167_v44 }
 0x279   : > { %v6074_v23 = vld [vmem:[#allocation9 + $0x198] sm:$0xf0]  ;;  %v6013_v3 = vor.u32 %v6424_v24, %v6010_v6  ;;  %v6472_v31 = vld [vmem:[#allocation9 + $0x294] sm:$0xf]  ;;  %4118 = vmatpush.bf16.msra.mxu2 %v6149_v2  ;;  %v6422_v24 = vld [vmem:[#allocation9 + $0x104] sm:$0xf]  ;;  %v1766_v2 = vmul.f32 %v5668_v28, %v7175_v50  ;;  %v1773_v28 = vmul.f32 %v5675_v60, %v7175_v50 }
 0x27a   : > { %v4313_v30 = vmax.f32 %v3705_v11, 0.0  ;;  %4029 = vmatpush.bf16.msra.mxu1 %v6085_v42  ;;  %v6138_v11 = vld [vmem:[#allocation9 + $0x218] sm:$0xf0]  ;;  %4207 = vmatpush.bf16.msra.mxu3 %v6213_v53  ;;  %v6077_v51 = vor.u32 %v6440_v46, %v6074_v23  ;;  %v6205_v42 = vor.u32 %v6472_v31, %v6202_v8  ;;  %v6002_v6 = vld [vmem:[#allocation9 + $0x108] sm:$0xf0]  ;;  %v1772_v53 = vmul.f32 %v5674_v48, %v7175_v50  ;;  %v10161_v23 = vld [vmem:[#allocation76_spill] sm:$0xff] }
 0x27b   : > { %v3793_v21 = vpop.f32.mrf.mxu2  ;;  %v6141_v63 = vor.u32 %v6456_v59, %v6138_v11  ;;  %v6130_v46 = vld [vmem:[#allocation9 + $0x208] sm:$0xf0]  ;;  %v5867_v59 = vld [vmem:[%s7119_s3 + $0x17f0] sm:$0xff]  ;;  %v6470_v11 = vld [vmem:[#allocation9 + $0x284] sm:$0xf] }
 0x27c   : > { %v3794_v61 = vadd.f32 %v3793_v21, %v9053_v4  ;;  %v3618_v18 = vpop.f32.mrf.mxu0  ;;  %v9355_v40 = vpack.c.bf16 %v4313_v30, %v4311_v1  ;;  %v1188_v21 = vmul.f32 %v5476_v16, %v7167_v44  ;;  %v6438_v1 = vld [vmem:[#allocation9 + $0x184] sm:$0xf]  ;;  %3941 = vmatpush.bf16.msra.mxu0 %v6013_v3  ;;  %v6194_v31 = vld [vmem:[#allocation9 + $0x288] sm:$0xf0]  ;;  %v5868_v50 = vld [vmem:[%s7119_s3 + $0x17f8] sm:$0xff] }
 0x27d   : > { %v3619_v49 = vadd.f32 %v3618_v18, %v8488_v45  ;;  %v1385_v45 = vadd.f32 %v1193_v47, %v806_v20  ;;  %v6454_v16 = vld [vmem:[#allocation9 + $0x204] sm:$0xf]  ;;  %v6005_v18 = vor.u32 %v6422_v24, %v6002_v6  ;;  %4119 = vmatpush.bf16.msra.mxu2 %v6141_v63  ;;  %v6069_v48 = vor.u32 %v6438_v1, %v6066_v37  ;;  %v5862_v6 = vld [vmem:[%s7119_s3 + $0x17c8] sm:$0xff]  ;;  %v10162_v63 = vld [vmem:[#allocation82_spill] sm:$0xff]  ;;  %s6849_s3 = scalar_lea.hbm %s9937_s7, 64 }
 0x27e   : > { %10160 = vst [vmem:[#allocation77_spill] sm:$0xff] %v9355_v40  ;;  %4030 = vmatpush.bf16.msra.mxu1 %v6077_v51  ;;  %v6133_v36 = vor.u32 %v6454_v16, %v6130_v46  ;;  %v1380_v20 = vadd.f32 %v1188_v21, %v801_v9  ;;  %v1386_v47 = vadd.f32 %v1194_v0, %v807_v55  ;;  %p6851_p9 = scmp.lt.s32.totalorder %s6849_s3, %s6845_s21 }
 0x27f   : > { %v3882_v30 = vpop.f32.mrf.mxu3  ;;  %v3707_v40 = vpop.f32.mrf.mxu1  ;;  %3657 = vmatmul.bf16.gmra.mxu0 %v9341_v25  ;;  %4208 = vmatpush.bf16.msra.mxu3 %v6205_v42  ;;  %v1964_v3 = vadd.f32 %v1772_v53, %v1385_v45  ;;  %v2351_v24 = vmul.f32 %v5867_v59, %v7183_v56 }
 0x280   : > { %v9367_v44 = vadd.f32 %v3882_v30, %v3794_v61  ;;  %v3708_v41 = vadd.f32 %v3707_v40, %v3619_v49  ;;  %3835 = vmatmul.bf16.gmra.mxu2 %v10161_v23  ;;  %v6197_v61 = vor.u32 %v6470_v11, %v6194_v31  ;;  %v1958_v40 = vadd.f32 %v1766_v2, %v1379_v27  ;;  %p6852_p5 = por %p6851_p9, %p6850_p8 }
 0x281   : > { %v2345_v49 = vmul.f32 %v5861_v26, %v7183_v56  ;;  %3942 = vmatpush.bf16.msra.mxu0 %v6005_v18  ;;  %4120 = vmatpush.bf16.msra.mxu2 %v6133_v36  ;;  %v1959_v55 = vadd.f32 %v1767_v38, %v1380_v20  ;;  %v1965_v21 = vadd.f32 %v1773_v28, %v1386_v47  ;;  %v10163_v36 = vld [vmem:[#allocation80_spill] sm:$0xff]  ;;  %v10164_v47 = vld [vmem:[#allocation81_spill] sm:$0xff] }
 0x282   : > { %3746 = vmatmul.bf16.gmra.mxu1 %v9346_v29  ;;  %v2346_v27 = vmul.f32 %v5862_v6, %v7183_v56  ;;  %v2352_v26 = vmul.f32 %v5868_v50, %v7183_v56  ;;  %v2543_v30 = vadd.f32 %v2351_v24, %v1964_v3  ;;  %v4315_v2 = vmax.f32 %v3708_v41, 0.0  ;;  %p6853_p7 = pnand %p6852_p5, %p6848_p13 }
 0x283   : > { %v3796_v8 = vpop.f32.mrf.mxu2  ;;  %4031 = vmatpush.bf16.msra.mxu1 %v6069_v48  ;;  %4209 = vmatpush.bf16.msra.mxu3 %v6197_v61  ;;  %v2537_v1 = vadd.f32 %v2345_v49, %v1958_v40 }
 0x284   : > { %3924 = vmatmul.bf16.gmra.mxu3 %v8354_v10  ;;  %v3797_v60 = vadd.f32 %v3796_v8, %v9053_v4  ;;  %v3620_v51 = vpop.f32.mrf.mxu0  ;;  %v2538_v37 = vadd.f32 %v2346_v27, %v1959_v55  ;;  %v2544_v16 = vadd.f32 %v2352_v26, %v1965_v21  ;;  %v10165_v26 = vld [vmem:[#allocation24_spill] sm:$0xff] }
 0x285   : > { %v3621_v9 = vadd.f32 %v3620_v51, %v10162_v63  ;;  %v9384_v23 = vpack.c.bf16 %v2543_v30, %v2537_v1 }
 0x286   : > { %v9390_v11 = vpack.c.bf16 %v2544_v16, %v2538_v37 }
 0x287   : > { %v3885_v0 = vpop.f32.mrf.mxu3  ;;  %v3709_v42 = vpop.f32.mrf.mxu1 }
 0x288   : > { %v9382_v10 = vadd.f32 %v3885_v0, %v3797_v60  ;;  %v3710_v45 = vadd.f32 %v3709_v42, %v3621_v9  ;;  %v10166_v42 = vld [vmem:[#allocation25_spill] sm:$0xff] }
 0x28a   : > { %v4317_v53 = vmax.f32 %v3710_v45, 0.0 }
 0x28b   : > { %v3798_v46 = vpop.f32.mrf.mxu2 }
 0x28c   : > { %v3799_v38 = vadd.f32 %v3798_v46, %v9053_v4  ;;  %v3623_v59 = vpop.f32.mrf.mxu0  ;;  %v9387_v18 = vpack.c.bf16 %v4317_v53, %v4315_v2 }
 0x28d   : > { %v3624_v56 = vadd.f32 %v3623_v59, %v8607_v33 }
 0x28f   : > { %v3887_v31 = vpop.f32.mrf.mxu3  ;;  %v3712_v28 = vpop.f32.mrf.mxu1  ;;  %3662 = vmatmul.bf16.gmra.mxu0 %v9384_v23 }
 0x290   : > { %v9393_v41 = vadd.f32 %v3887_v31, %v3799_v38  ;;  %v3713_v48 = vadd.f32 %v3712_v28, %v3624_v56  ;;  %3840 = vmatmul.bf16.gmra.mxu2 %v10163_v36  ;;  %v10167_v36 = vld [vmem:[#allocation26_spill] sm:$0xff] }
 0x292   : > { %3751 = vmatmul.bf16.gmra.mxu1 %v9390_v11  ;;  %v4319_v6 = vmax.f32 %v3713_v48, 0.0 }
 0x293   : > { %v3801_v20 = vpop.f32.mrf.mxu2 }
 0x294   : > { %3929 = vmatmul.bf16.gmra.mxu3 %v10164_v47  ;;  %v3802_v61 = vadd.f32 %v3801_v20, %v9053_v4  ;;  %v3625_v8 = vpop.f32.mrf.mxu0  ;;  %v10168_v47 = vld [vmem:[#allocation27_spill] sm:$0xff] }
 0x295   : > { %v3626_v33 = vadd.f32 %v3625_v8, %v8655_v57 }
 0x297   : > { %v3890_v40 = vpop.f32.mrf.mxu3  ;;  %v3714_v3 = vpop.f32.mrf.mxu1 }
 0x298   : > { %v9400_v49 = vadd.f32 %v3890_v40, %v3802_v61  ;;  %v3715_v24 = vadd.f32 %v3714_v3, %v3626_v33 }
 0x29a   : > { %v4321_v50 = vmax.f32 %v3715_v24, 0.0 }
 0x29b   : > { %v3803_v60 = vpop.f32.mrf.mxu2 }
 0x29c   : > { %v3804_v51 = vadd.f32 %v3803_v60, %v9053_v4  ;;  %v3628_v63 = vpop.f32.mrf.mxu0  ;;  %v9403_v9 = vpack.c.bf16 %v4321_v50, %v4319_v6 }
 0x29d   : > { %v3629_v55 = vadd.f32 %v3628_v63, %v8689_v32 }
 0x29f   : > { %v3892_v21 = vpop.f32.mrf.mxu3  ;;  %v3717_v27 = vpop.f32.mrf.mxu1  ;;  %3943 = vmatmul.bf16.vlgmr.msra.gmra.mxu0 %v10165_v26  ;;  %v10169_v26 = vld [vmem:[#allocation28_spill] sm:$0xff] }
 0x2a0   : > { %v9407_v57 = vadd.f32 %v3892_v21, %v3804_v51  ;;  %v3718_v0 = vadd.f32 %v3717_v27, %v3629_v55  ;;  %4121 = vmatmul.bf16.vlgmr.msra.gmra.mxu2 %v8664_v34 }
 0x2a2   : > { %4032 = vmatmul.bf16.vlgmr.msra.gmra.mxu1 %v10166_v42  ;;  %v4323_v46 = vmax.f32 %v3718_v0, 0.0  ;;  %v10170_v42 = vld [vmem:[#allocation29_spill] sm:$0xff] }
 0x2a3   : > { %v3806_v1 = vpop.f32.mrf.mxu2 }
 0x2a4   : > { %4210 = vmatmul.bf16.vlgmr.msra.gmra.mxu3 %v8679_v35  ;;  %v3807_v30 = vadd.f32 %v3806_v1, %v9053_v4  ;;  %v3630_v45 = vpop.f32.mrf.mxu0 }
 0x2a5   : > { %v3631_v2 = vadd.f32 %v3630_v45, %v8705_v19 }
 0x2a7   : > { %v3895_v32 = vpop.f32.mrf.mxu3  ;;  %v3719_v53 = vpop.f32.mrf.mxu1 }
 0x2a8   : > { %v9414_v37 = vadd.f32 %v3895_v32, %v3807_v30  ;;  %v3720_v16 = vadd.f32 %v3719_v53, %v3631_v2 }
 0x2aa   : > { %v4325_v38 = vmax.f32 %v3720_v16, 0.0 }
 0x2ab   : > { %v3808_v59 = vpop.f32.mrf.mxu2 }
 0x2ac   : > { %v3809_v34 = vadd.f32 %v3808_v59, %v9053_v4  ;;  %v3633_v56 = vpop.f32.mrf.mxu0  ;;  %v9417_v31 = vpack.c.bf16 %v4325_v38, %v4323_v46 }
 0x2ad   : > { %v3634_v35 = vadd.f32 %v3633_v56, %v8734_v7 }
 0x2af   : > { %v3897_v28 = vpop.f32.mrf.mxu3  ;;  %v3722_v48 = vpop.f32.mrf.mxu1  ;;  %3948 = vmatmul.bf16.gmra.mxu0 %v10167_v36 }
 0x2b0   : > { %v9421_v19 = vadd.f32 %v3897_v28, %v3809_v34  ;;  %v3723_v20 = vadd.f32 %v3722_v48, %v3634_v35  ;;  %4126 = vmatmul.bf16.gmra.mxu2 %v8711_v15  ;;  %v10171_v48 = vld [vmem:[#allocation30_spill] sm:$0xff] }
 0x2b2   : > { %4037 = vmatmul.bf16.gmra.mxu1 %v10168_v47  ;;  %v4327_v50 = vmax.f32 %v3723_v20, 0.0  ;;  %v10172_v20 = vld [vmem:[#allocation31_spill] sm:$0xff] }
 0x2b3   : > { %v3811_v61 = vpop.f32.mrf.mxu2 }
 0x2b4   : > { %4215 = vmatmul.bf16.gmra.mxu3 %v8721_v39  ;;  %v3812_v8 = vadd.f32 %v3811_v61, %v9053_v4  ;;  %v3635_v33 = vpop.f32.mrf.mxu0 }
 0x2b5   : > { %v3636_v40 = vadd.f32 %v3635_v33, %v8755_v43  ;;  %v10173_v33 = vld [vmem:[#allocation85_spill] sm:$0xff] }
 0x2b7   : > { %v3900_v7 = vpop.f32.mrf.mxu3  ;;  %v3724_v3 = vpop.f32.mrf.mxu1 }
 0x2b8   : > { %v9428_v24 = vadd.f32 %v3900_v7, %v3812_v8  ;;  %v3725_v6 = vadd.f32 %v3724_v3, %v3636_v40 }
 0x2ba   : > { %v4329_v60 = vmax.f32 %v3725_v6, 0.0 }
 0x2bb   : > { %v3813_v51 = vpop.f32.mrf.mxu2 }
 0x2bc   : > { %v3814_v15 = vadd.f32 %v3813_v51, %v9053_v4  ;;  %v3638_v63 = vpop.f32.mrf.mxu0  ;;  %v9431_v55 = vpack.c.bf16 %v4329_v60, %v4327_v50 }
 0x2bd   : > { %v3639_v39 = vadd.f32 %v3638_v63, %v8782_v22 }
 0x2bf   : > { %v3902_v21 = vpop.f32.mrf.mxu3  ;;  %v3727_v27 = vpop.f32.mrf.mxu1  ;;  %3953 = vmatmul.bf16.gmra.mxu0 %v10169_v26  ;;  %v10175_v26 = vld [vmem:[#allocation32_spill] sm:$0xff] }
 0x2c0   : > { %v9435_v43 = vadd.f32 %v3902_v21, %v3814_v15  ;;  %v3728_v0 = vadd.f32 %v3727_v27, %v3639_v39  ;;  %4131 = vmatmul.bf16.gmra.mxu2 %v8759_v12  ;;  %v10174_v39 = vld [vmem:[#allocation88_spill] sm:$0xff] }
 0x2c2   : > { %4042 = vmatmul.bf16.gmra.mxu1 %v10170_v42  ;;  %v4331_v46 = vmax.f32 %v3728_v0, 0.0 }
 0x2c3   : > { %v3816_v1 = vpop.f32.mrf.mxu2 }
 0x2c4   : > { %4220 = vmatmul.bf16.gmra.mxu3 %v8769_v14  ;;  %v3817_v30 = vadd.f32 %v3816_v1, %v9053_v4  ;;  %v3640_v45 = vpop.f32.mrf.mxu0  ;;  %v10176_v1 = vld [vmem:[#allocation86_spill] sm:$0xff] }
 0x2c5   : > { %v3641_v2 = vadd.f32 %v3640_v45, %v8799_v58 }
 0x2c7   : > { %v3905_v22 = vpop.f32.mrf.mxu3  ;;  %v3729_v32 = vpop.f32.mrf.mxu1 }
 0x2c8   : > { %v9442_v53 = vadd.f32 %v3905_v22, %v3817_v30  ;;  %v3730_v16 = vadd.f32 %v3729_v32, %v3641_v2  ;;  %v10177_v30 = vld [vmem:[#allocation33_spill] sm:$0xff]  ;;  %v10178_v2 = vld [vmem:[#allocation87_spill] sm:$0xff] }
 0x2ca   : > { %v4333_v38 = vmax.f32 %v3730_v16, 0.0  ;;  %v10179_v16 = vld [vmem:[#allocation89_spill] sm:$0xff] }
 0x2cb   : > { %v3818_v59 = vpop.f32.mrf.mxu2 }
 0x2cc   : > { %v3819_v12 = vadd.f32 %v3818_v59, %v9053_v4  ;;  %v3643_v34 = vpop.f32.mrf.mxu0  ;;  %v9445_v56 = vpack.c.bf16 %v4333_v38, %v4331_v46 }
 0x2cd   : > { %v3644_v14 = vadd.f32 %v3643_v34, %v8829_v62 }
 0x2cf   : > { %v3907_v35 = vpop.f32.mrf.mxu3  ;;  %v3732_v28 = vpop.f32.mrf.mxu1  ;;  %3958 = vmatmul.bf16.gmra.mxu0 %v10171_v48 }
 0x2d0   : > { %v9449_v58 = vadd.f32 %v3907_v35, %v3819_v12  ;;  %v3733_v36 = vadd.f32 %v3732_v28, %v3644_v14  ;;  %4136 = vmatmul.bf16.gmra.mxu2 %v8801_v52 }
 0x2d2   : > { %4047 = vmatmul.bf16.gmra.mxu1 %v10172_v20  ;;  %v4335_v50 = vmax.f32 %v3733_v36, 0.0 }
 0x2d3   : > { %v3821_v47 = vpop.f32.mrf.mxu2 }
 0x2d4   : > { %4225 = vmatmul.bf16.gmra.mxu3 %v8815_v17  ;;  %v3822_v61 = vadd.f32 %v3821_v47, %v9053_v4  ;;  %v3645_v8 = vpop.f32.mrf.mxu0  ;;  %v10180_v47 = vld [vmem:[#allocation92_spill] sm:$0xff] }
 0x2d5   : > { %v3646_v40 = vadd.f32 %v3645_v8, %v10173_v33 }
 0x2d7   : > { %v3910_v62 = vpop.f32.mrf.mxu3  ;;  %v3734_v7 = vpop.f32.mrf.mxu1 }
 0x2d8   : > { %v9456_v3 = vadd.f32 %v3910_v62, %v3822_v61  ;;  %v3735_v6 = vadd.f32 %v3734_v7, %v3646_v40  ;;  %v10181_v40 = vld [vmem:[#allocation34_spill] sm:$0xff] }
 0x2da   : > { %v4337_v60 = vmax.f32 %v3735_v6, 0.0  ;;  %v10182_v6 = vld [vmem:[#allocation90_spill] sm:$0xff] }
 0x2db   : > { %v3823_v51 = vpop.f32.mrf.mxu2 }
 0x2dc   : > { %v3824_v52 = vadd.f32 %v3823_v51, %v9053_v4  ;;  %v3648_v15 = vpop.f32.mrf.mxu0  ;;  %v9459_v63 = vpack.c.bf16 %v4337_v60, %v4335_v50  ;;  %v10183_v50 = vld [vmem:[#allocation35_spill] sm:$0xff] }
 0x2dd   : > { %v3649_v17 = vadd.f32 %v3648_v15, %v10174_v39  ;;  %v10184_v51 = vld [vmem:[#allocation91_spill] sm:$0xff]  ;;  %v10185_v39 = vld [vmem:[#allocation93_spill] sm:$0xff] }
 0x2df   : > { %v3912_v21 = vpop.f32.mrf.mxu3  ;;  %v3737_v27 = vpop.f32.mrf.mxu1  ;;  %3963 = vmatmul.bf16.gmra.mxu0 %v10175_v26 }
 0x2e0   : > { %v9463_v0 = vadd.f32 %v3912_v21, %v3824_v52  ;;  %v3738_v42 = vadd.f32 %v3737_v27, %v3649_v17  ;;  %4141 = vmatmul.bf16.gmra.mxu2 %v10176_v1 }
 0x2e2   : > { %4052 = vmatmul.bf16.gmra.mxu1 %v10177_v30  ;;  %v4339_v14 = vmax.f32 %v3738_v42, 0.0 }
 0x2e3   : > { %v3826_v45 = vpop.f32.mrf.mxu2 }
 0x2e4   : > { %4230 = vmatmul.bf16.gmra.mxu3 %v10178_v2  ;;  %v3827_v22 = vadd.f32 %v3826_v45, %v9053_v4  ;;  %v3650_v32 = vpop.f32.mrf.mxu0 }
 0x2e5   : > { %v3651_v46 = vadd.f32 %v3650_v32, %v10179_v16  ;;  %v10186_v16 = vld [vmem:[#allocation96_spill] sm:$0xff] }
 0x2e7   : > { %v3915_v38 = vpop.f32.mrf.mxu3  ;;  %v3739_v59 = vpop.f32.mrf.mxu1 }
 0x2e8   : > { %v9470_v12 = vadd.f32 %v3915_v38, %v3827_v22  ;;  %v3740_v34 = vadd.f32 %v3739_v59, %v3651_v46 }
 0x2ea   : > { %v4341_v35 = vmax.f32 %v3740_v34, 0.0  ;;  %v10187_v34 = vld [vmem:[#allocation36_spill] sm:$0xff] }
 0x2eb   : > { %v3828_v28 = vpop.f32.mrf.mxu2 }
 0x2ec   : > { %v3829_v48 = vadd.f32 %v3828_v28, %v9053_v4  ;;  %v3653_v36 = vpop.f32.mrf.mxu0  ;;  %v9473_v20 = vpack.c.bf16 %v4341_v35, %v4339_v14  ;;  %v10188_v28 = vld [vmem:[#allocation94_spill] sm:$0xff] }
 0x2ed   : > { %v3654_v61 = vadd.f32 %v3653_v36, %v10180_v47  ;;  %v10190_v47 = vld [vmem:[#allocation95_spill] sm:$0xff] }
 0x2ef   : > { %v3917_v8 = vpop.f32.mrf.mxu3  ;;  %v3742_v33 = vpop.f32.mrf.mxu1  ;;  %3968 = vmatmul.bf16.gmra.mxu0 %v10181_v40 }
 0x2f0   : > { %v9477_v62 = vadd.f32 %v3917_v8, %v3829_v48  ;;  %v3743_v7 = vadd.f32 %v3742_v33, %v3654_v61  ;;  %4146 = vmatmul.bf16.gmra.mxu2 %v10182_v6  ;;  %v10189_v48 = vld [vmem:[#allocation37_spill] sm:$0xff]  ;;  %v10191_v33 = vld [vmem:[#allocation98_spill] sm:$0xff] }
 0x2f2   : > { %4057 = vmatmul.bf16.gmra.mxu1 %v10183_v50  ;;  %v4343_v1 = vmax.f32 %v3743_v7, 0.0 }
 0x2f3   : > { %v3831_v60 = vpop.f32.mrf.mxu2 }
 0x2f4   : > { %4235 = vmatmul.bf16.gmra.mxu3 %v10184_v51  ;;  %v3832_v52 = vadd.f32 %v3831_v60, %v9053_v4  ;;  %v3655_v15 = vpop.f32.mrf.mxu0 }
 0x2f5   : > { %v3656_v17 = vadd.f32 %v3655_v15, %v10185_v39 }
 0x2f7   : > { %v3920_v21 = vpop.f32.mrf.mxu3  ;;  %v3744_v27 = vpop.f32.mrf.mxu1 }
 0x2f8   : > { %v9484_v26 = vadd.f32 %v3920_v21, %v3832_v52  ;;  %v3745_v42 = vadd.f32 %v3744_v27, %v3656_v17  ;;  %v10192_v27 = vld [vmem:[#allocation38_spill] sm:$0xff] }
 0x2fa   : > { %v4345_v30 = vmax.f32 %v3745_v42, 0.0 }
 0x2fb   : > { %v3833_v45 = vpop.f32.mrf.mxu2 }
 0x2fc   : > { %v3834_v2 = vadd.f32 %v3833_v45, %v9053_v4  ;;  %v3658_v22 = vpop.f32.mrf.mxu0  ;;  %v9487_v32 = vpack.c.bf16 %v4345_v30, %v4343_v1  ;;  %v10193_v45 = vld [vmem:[#allocation40_spill] sm:$0xff] }
 0x2fd   : > { %v3659_v46 = vadd.f32 %v3658_v22, %v10186_v16  ;;  %v10194_v16 = vld [vmem:[#allocation97_spill] sm:$0xff] }
 0x2ff   : > { %v3922_v38 = vpop.f32.mrf.mxu3  ;;  %v3747_v59 = vpop.f32.mrf.mxu1  ;;  %3973 = vmatmul.bf16.gmra.mxu0 %v10187_v34 }
 0x300   : > { %v9491_v14 = vadd.f32 %v3922_v38, %v3834_v2  ;;  %v3748_v35 = vadd.f32 %v3747_v59, %v3659_v46  ;;  %4151 = vmatmul.bf16.gmra.mxu2 %v10188_v28  ;;  %v10195_v46 = vld [vmem:[#allocation41_spill] sm:$0xff]  ;;  %v10196_v59 = vld [vmem:[#allocation99_spill] sm:$0xff] }
 0x301   : > { %v10197_v28 = vld [vmem:[#allocation49_spill] sm:$0xff] }
 0x302   : > { %4062 = vmatmul.bf16.gmra.mxu1 %v10189_v48  ;;  %v4347_v51 = vmax.f32 %v3748_v35, 0.0 }
 0x303   : > { %v3836_v36 = vpop.f32.mrf.mxu2 }
 0x304   : > { %4240 = vmatmul.bf16.gmra.mxu3 %v10190_v47  ;;  %v3837_v61 = vadd.f32 %v3836_v36, %v9053_v4  ;;  %v3660_v8 = vpop.f32.mrf.mxu0 }
 0x305   : > { %v3661_v40 = vadd.f32 %v3660_v8, %v10191_v33 }
 0x307   : > { %v3925_v7 = vpop.f32.mrf.mxu3  ;;  %v3749_v6 = vpop.f32.mrf.mxu1 }
 0x308   : > { %v9498_v50 = vadd.f32 %v3925_v7, %v3837_v61  ;;  %v3750_v60 = vadd.f32 %v3749_v6, %v3661_v40 }
 0x30a   : > { %v4349_v52 = vmax.f32 %v3750_v60, 0.0 }
 0x30b   : > { %v3838_v15 = vpop.f32.mrf.mxu2 }
 0x30c   : > { %v3839_v39 = vadd.f32 %v3838_v15, %v9053_v4  ;;  %v3663_v17 = vpop.f32.mrf.mxu0  ;;  %v9501_v21 = vpack.c.bf16 %v4349_v52, %v4347_v51  ;;  %v10199_v52 = vld [vmem:[#allocation42_spill] sm:$0xff] }
 0x30d   : > { %v3664_v42 = vadd.f32 %v3663_v17, %v10192_v27  ;;  %v10200_v27 = vld [vmem:[#allocation44_spill] sm:$0xff] }
 0x30f   : > { %v3927_v1 = vpop.f32.mrf.mxu3  ;;  %v3752_v30 = vpop.f32.mrf.mxu1  ;;  %3978 = vmatmul.bf16.gmra.mxu0 %v10193_v45  ;;  %v10202_v45 = vld [vmem:[#allocation45_spill] sm:$0xff] }
 0x310   : > { %v9505_v2 = vadd.f32 %v3927_v1, %v3839_v39  ;;  %v3753_v22 = vadd.f32 %v3752_v30, %v3664_v42  ;;  %4156 = vmatmul.bf16.gmra.mxu2 %v10194_v16  ;;  %v10201_v30 = vld [vmem:[#allocation39_spill] sm:$0xff]  ;;  %v10203_v16 = vld [vmem:[#allocation100_spill] sm:$0xff] }
 0x312   : > { %4067 = vmatmul.bf16.gmra.mxu1 %v10195_v46  ;;  %v4351_v33 = vmax.f32 %v3753_v22, 0.0 }
 0x313   : > { %v3841_v38 = vpop.f32.mrf.mxu2 }
 0x314   : > { %4245 = vmatmul.bf16.gmra.mxu3 %v10196_v59  ;;  %v3842_v34 = vadd.f32 %v3841_v38, %v9053_v4  ;;  %v3665_v35 = vpop.f32.mrf.mxu0  ;;  %v10204_v38 = vld [vmem:[#allocation101_spill] sm:$0xff] }
 0x315   : > { %v3666_v48 = vadd.f32 %v3665_v35, %v10197_v28 }
 0x317   : > { %v3930_v36 = vpop.f32.mrf.mxu3  ;;  %v3754_v47 = vpop.f32.mrf.mxu1 }
 0x318   : > { %v9512_v61 = vadd.f32 %v3930_v36, %v3842_v34  ;;  %v3755_v8 = vadd.f32 %v3754_v47, %v3666_v48 }
 0x31a   : > { %v4353_v40 = vmax.f32 %v3755_v8, 0.0 }
 0x31b   : > { %v3843_v7 = vpop.f32.mrf.mxu2 }
 0x31c   : > { %v3844_v6 = vadd.f32 %v3843_v7, %v9053_v4  ;;  %v3944_v60 = vpop.f32.mrf.mxu0  ;;  %v9515_v51 = vpack.c.bf16 %v4353_v40, %v4351_v33  ;;  %v10205_v33 = vld [vmem:[#allocation46_spill] sm:$0xff] }
 0x31d   : > { %v3945_v15 = vadd.f32 %v3944_v60, %v10199_v52  ;;  %v10206_v60 = vld [vmem:[#allocation48_spill] sm:$0xff] }
 0x31e   : > { %10198 = vst [vmem:[#allocation70_spill] sm:$0xff] %v9515_v51 }
 0x31f   : > { %v3932_v39 = vpop.f32.mrf.mxu3  ;;  %v4033_v17 = vpop.f32.mrf.mxu1  ;;  %3983 = vmatmul.bf16.gmra.mxu0 %v10200_v27 }
 0x320   : > { %v9519_v42 = vadd.f32 %v3932_v39, %v3844_v6  ;;  %v4034_v1 = vadd.f32 %v4033_v17, %v3945_v15  ;;  %4161 = vmatmul.bf16.gmra.mxu2 %v10201_v30  ;;  %v10207_v39 = vld [vmem:[#allocation43_spill] sm:$0xff] }
 0x322   : > { %4072 = vmatmul.bf16.gmra.mxu1 %v10202_v45 }
 0x323   : > { %v4122_v22 = vpop.f32.mrf.mxu2 }
 0x324   : > { %4250 = vmatmul.bf16.gmra.mxu3 %v10203_v16  ;;  %v4123_v4 = vadd.f32 %v4122_v22, %v4034_v1  ;;  %v3946_v46 = vpop.f32.mrf.mxu0  ;;  %v10208_v1 = vld [vmem:[#allocation50_spill] sm:$0xff]  ;;  %v10209_v22 = vld [vmem:[#allocation55_spill] sm:$0xff] }
 0x325   : > { %v3947_v59 = vadd.f32 %v3946_v46, %v10204_v38  ;;  %v10210_v46 = vld [vmem:[#allocation60_spill] sm:$0xff] }
 0x327   : > { %v4211_v34 = vpop.f32.mrf.mxu3  ;;  %v4035_v35 = vpop.f32.mrf.mxu1 }
 0x328   : > { %v4212_v28 = vadd.f32 %v4211_v34, %v4123_v4  ;;  %v4036_v48 = vadd.f32 %v4035_v35, %v3947_v59 }
 0x32a   : > { %v4292_v17 = vmax.f32 %v4212_v28, 0.0  ;;  %v10211_v28 = vld [vmem:[#allocation53_spill] sm:$0xff] }
 0x32b   : > { %v4124_v36 = vpop.f32.mrf.mxu2 }
 0x32c   : > { %v4125_v47 = vadd.f32 %v4124_v36, %v4036_v48  ;;  %v3949_v8 = vpop.f32.mrf.mxu0 }
 0x32d   : > { %v3950_v40 = vadd.f32 %v3949_v8, %v10205_v33 }
 0x32f   : > { %v4213_v7 = vpop.f32.mrf.mxu3  ;;  %v4038_v6 = vpop.f32.mrf.mxu1  ;;  %3988 = vmatmul.bf16.gmra.mxu0 %v10206_v60 }
 0x330   : > { %v4214_v52 = vadd.f32 %v4213_v7, %v4125_v47  ;;  %v4039_v15 = vadd.f32 %v4038_v6, %v3950_v40  ;;  %4166 = vmatmul.bf16.gmra.mxu2 %v10207_v39  ;;  %v10212_v6 = vld [vmem:[#allocation54_spill] sm:$0xff]  ;;  %v10213_v39 = vld [vmem:[#allocation47_spill] sm:$0xff] }
 0x332   : > { %v4294_v27 = vmax.f32 %v4214_v52, 0.0  ;;  %4077 = vmatmul.bf16.gmra.mxu1 %v10208_v1 }
 0x333   : > { %v4127_v30 = vpop.f32.mrf.mxu2 }
 0x334   : > { %v9529_v45 = vpack.c.bf16 %v4294_v27, %v4292_v17  ;;  %4255 = vmatmul.bf16.gmra.mxu3 %v10209_v22  ;;  %v4128_v16 = vadd.f32 %v4127_v30, %v4039_v15  ;;  %v3951_v4 = vpop.f32.mrf.mxu0  ;;  %v10214_v27 = vld [vmem:[#allocation56_spill] sm:$0xff]  ;;  %v10215_v30 = vld [vmem:[#allocation57_spill] sm:$0xff] }
 0x335   : > { %v3952_v38 = vadd.f32 %v3951_v4, %v10210_v46  ;;  %v10216_v46 = vld [vmem:[#allocation102_spill] sm:$0xff] }
 0x337   : > { %v4216_v59 = vpop.f32.mrf.mxu3  ;;  %v4040_v34 = vpop.f32.mrf.mxu1 }
 0x338   : > { %v4217_v35 = vadd.f32 %v4216_v59, %v4128_v16  ;;  %v4041_v48 = vadd.f32 %v4040_v34, %v3952_v38 }
 0x33a   : > { %v4296_v15 = vmax.f32 %v4217_v35, 0.0  ;;  %v10217_v35 = vld [vmem:[#allocation59_spill] sm:$0xff] }
 0x33b   : > { %v4129_v36 = vpop.f32.mrf.mxu2 }
 0x33c   : > { %v4130_v47 = vadd.f32 %v4129_v36, %v4041_v48  ;;  %v3954_v8 = vpop.f32.mrf.mxu0 }
 0x33d   : > { %v3955_v33 = vadd.f32 %v3954_v8, %v10211_v28 }
 0x33f   : > { %v4218_v40 = vpop.f32.mrf.mxu3  ;;  %v4043_v7 = vpop.f32.mrf.mxu1  ;;  %3993 = vmatmul.bf16.gmra.mxu0 %v10212_v6  ;;  %v10218_v6 = vld [vmem:[#allocation61_spill] sm:$0xff] }
 0x340   : > { %v4219_v60 = vadd.f32 %v4218_v40, %v4130_v47  ;;  %v4044_v52 = vadd.f32 %v4043_v7, %v3955_v33  ;;  %4171 = vmatmul.bf16.gmra.mxu2 %v10213_v39  ;;  %v10219_v39 = vld [vmem:[#allocation63_spill] sm:$0xff] }
 0x342   : > { %v4298_v17 = vmax.f32 %v4219_v60, 0.0  ;;  %4082 = vmatmul.bf16.gmra.mxu1 %v10214_v27  ;;  %v10220_v27 = vld [vmem:[#allocation62_spill] sm:$0xff] }
 0x343   : > { %v4132_v1 = vpop.f32.mrf.mxu2 }
 0x344   : > { %4260 = vmatmul.bf16.gmra.mxu3 %v10215_v30  ;;  %v4133_v22 = vadd.f32 %v4132_v1, %v4044_v52  ;;  %v3956_v16 = vpop.f32.mrf.mxu0  ;;  %v9538_v4 = vpack.c.bf16 %v4298_v17, %v4296_v15  ;;  %v10221_v30 = vld [vmem:[#allocation66_spill] sm:$0xff] }
 0x345   : > { %v3957_v38 = vadd.f32 %v3956_v16, %v10216_v46 }
 0x347   : > { %v4221_v59 = vpop.f32.mrf.mxu3  ;;  %v4045_v34 = vpop.f32.mrf.mxu1 }
 0x348   : > { %v4222_v48 = vadd.f32 %v4221_v59, %v4133_v22  ;;  %v4046_v36 = vadd.f32 %v4045_v34, %v3957_v38  ;;  %v10222_v38 = vld [vmem:[#allocation72_spill] sm:$0xff] }
 0x34a   : > { %v4300_v15 = vmax.f32 %v4222_v48, 0.0  ;;  %v10223_v48 = vld [vmem:[#allocation75_spill] sm:$0xff] }
 0x34b   : > { %v4134_v47 = vpop.f32.mrf.mxu2 }
 0x34c   : > { %v4135_v8 = vadd.f32 %v4134_v47, %v4046_v36  ;;  %v3959_v28 = vpop.f32.mrf.mxu0 }
 0x34d   : > { %v3960_v33 = vadd.f32 %v3959_v28, %v10217_v35 }
 0x34f   : > { %v4223_v40 = vpop.f32.mrf.mxu3  ;;  %v4048_v7 = vpop.f32.mrf.mxu1  ;;  %3998 = vmatmul.bf16.gmra.mxu0 %v10218_v6 }
 0x350   : > { %v4224_v60 = vadd.f32 %v4223_v40, %v4135_v8  ;;  %v4049_v52 = vadd.f32 %v4048_v7, %v3960_v33  ;;  %4176 = vmatmul.bf16.gmra.mxu2 %v10219_v39 }
 0x352   : > { %v4302_v17 = vmax.f32 %v4224_v60, 0.0  ;;  %4087 = vmatmul.bf16.gmra.mxu1 %v10220_v27  ;;  %v10224_v60 = vld [vmem:[#allocation67_spill] sm:$0xff]  ;;  %v10225_v27 = vld [vmem:[#allocation69_spill] sm:$0xff] }
 0x353   : > { %v4137_v1 = vpop.f32.mrf.mxu2 }
 0x354   : > { %4265 = vmatmul.bf16.gmra.mxu3 %v10221_v30  ;;  %v4138_v22 = vadd.f32 %v4137_v1, %v4049_v52  ;;  %v3961_v16 = vpop.f32.mrf.mxu0  ;;  %v9546_v46 = vpack.c.bf16 %v4302_v17, %v4300_v15  ;;  %v10226_v1 = vld [vmem:[#allocation68_spill] sm:$0xff]  ;;  %v6312_v30 = vld [vmem:[#allocation12 + $0x70] sm:$0xf] }
 0x355   : > { %v3962_v59 = vadd.f32 %v3961_v16, %v10222_v38 }
 0x357   : > { %v4226_v34 = vpop.f32.mrf.mxu3  ;;  %v4050_v36 = vpop.f32.mrf.mxu1 }
 0x358   : > { %v4227_v47 = vadd.f32 %v4226_v34, %v4138_v22  ;;  %v4051_v8 = vadd.f32 %v4050_v36, %v3962_v59  ;;  %v6501_v22 = vld [vmem:[#allocation12 + $0x74] sm:$0xf0]  ;;  %v6376_v59 = vld [vmem:[#allocation12 + $0xf0] sm:$0xf]  ;;  %v6500_v36 = vld [vmem:[#allocation12 + $0x74] sm:$0xf] }
 0x359   : > { %v6313_v38 = vor.u32 %v6501_v22, %v6312_v30  ;;  %v6517_v34 = vld [vmem:[#allocation12 + $0xf4] sm:$0xf0]  ;;  %v6368_v30 = vld [vmem:[#allocation12 + $0xe0] sm:$0xf] }
 0x35a   : > { %v4304_v15 = vmax.f32 %v4227_v47, 0.0 }
 0x35b   : > { %v4139_v28 = vpop.f32.mrf.mxu2  ;;  %4585 = vmatpush.bf16.msrb.mxu0 %v6313_v38  ;;  %v6514_v38 = vld [vmem:[#allocation12 + $0xe4] sm:$0xf] }
 0x35c   : > { %v4140_v35 = vadd.f32 %v4139_v28, %v4051_v8  ;;  %v3964_v33 = vpop.f32.mrf.mxu0  ;;  %v10227_v8 = vld [vmem:[#allocation103_spill] sm:$0xff] }
 0x35d   : > { %v3965_v40 = vadd.f32 %v3964_v33, %v10223_v48  ;;  %v6377_v48 = vor.u32 %v6517_v34, %v6376_v59  ;;  %v6498_v59 = vld [vmem:[#allocation12 + $0x64] sm:$0xf]  ;;  %v6306_v34 = vld [vmem:[#allocation12 + $0x68] sm:$0xf0] }
 0x35f   : > { %v4228_v7 = vpop.f32.mrf.mxu3  ;;  %v4053_v6 = vpop.f32.mrf.mxu1  ;;  %4003 = vmatmul.bf16.gmra.mxu0 %v10224_v60  ;;  %4674 = vmatpush.bf16.msrb.mxu1 %v6377_v48  ;;  %v6296_v48 = vld [vmem:[#allocation12 + $0x50] sm:$0xf] }
 0x360   : > { %v4229_v39 = vadd.f32 %v4228_v7, %v4140_v35  ;;  %v4054_v52 = vadd.f32 %v4053_v6, %v3965_v40  ;;  %4181 = vmatmul.bf16.gmra.mxu2 %v10225_v27  ;;  %v6314_v35 = vld [vmem:[#allocation12 + $0x78] sm:$0xf0]  ;;  %v6516_v40 = vld [vmem:[#allocation12 + $0xf4] sm:$0xf]  ;;  %v6304_v27 = vld [vmem:[#allocation12 + $0x60] sm:$0xf] }
 0x361   : > { %v6378_v7 = vld [vmem:[#allocation12 + $0xf8] sm:$0xf0]  ;;  %v6317_v60 = vor.u32 %v6500_v36, %v6314_v35  ;;  %v6370_v36 = vld [vmem:[#allocation12 + $0xe8] sm:$0xf0]  ;;  %v6497_v35 = vld [vmem:[#allocation12 + $0x54] sm:$0xf0] }
 0x362   : > { %v4306_v17 = vmax.f32 %v4229_v39, 0.0  ;;  %4092 = vmatmul.bf16.gmra.mxu1 %v10226_v1  ;;  %v6381_v39 = vor.u32 %v6516_v40, %v6378_v7  ;;  %v6499_v1 = vld [vmem:[#allocation12 + $0x64] sm:$0xf0]  ;;  %v6297_v7 = vor.u32 %v6497_v35, %v6296_v48  ;;  %v6494_v35 = vld [vmem:[#allocation12 + $0x44] sm:$0xf] }
 0x363   : > { %v4142_v16 = vpop.f32.mrf.mxu2  ;;  %4763 = vmatpush.bf16.msrb.mxu2 %v6317_v60  ;;  %v6360_v60 = vld [vmem:[#allocation12 + $0xd0] sm:$0xf]  ;;  %v6511_v48 = vld [vmem:[#allocation12 + $0xc4] sm:$0xf0] }
 0x364   : > { %4270 = vmatmul.bf16.gmra.mxu3 %v10227_v8  ;;  %v4143_v28 = vadd.f32 %v4142_v16, %v4054_v52  ;;  %v3966_v33 = vpop.f32.mrf.mxu0  ;;  %v9554_v6 = vpack.c.bf16 %v4306_v17, %v4304_v15  ;;  %v6305_v52 = vor.u32 %v6499_v1, %v6304_v27  ;;  %v6515_v16 = vld [vmem:[#allocation12 + $0xe4] sm:$0xf0]  ;;  %v6496_v27 = vld [vmem:[#allocation12 + $0x54] sm:$0xf] }
 0x365   : > { %v3967_v47 = vadd.f32 %v3966_v33, %v9319_v5  ;;  %4852 = vmatpush.bf16.msrb.mxu3 %v6381_v39  ;;  %v6369_v17 = vor.u32 %v6515_v16, %v6368_v30  ;;  %v6309_v5 = vor.u32 %v6498_v59, %v6306_v34  ;;  %v6373_v33 = vor.u32 %v6514_v38, %v6370_v36  ;;  %v6513_v39 = vld [vmem:[#allocation12 + $0xd4] sm:$0xf0]  ;;  %v6362_v30 = vld [vmem:[#allocation12 + $0xd8] sm:$0xf0]  ;;  %v6288_v34 = vld [vmem:[#allocation12 + $0x40] sm:$0xf] }
 0x366   : > { %4586 = vmatpush.bf16.msrb.mxu0 %v6305_v52 }
 0x367   : > { %v4231_v22 = vpop.f32.mrf.mxu3  ;;  %v4055_v51 = vpop.f32.mrf.mxu1  ;;  %4675 = vmatpush.bf16.msrb.mxu1 %v6369_v17  ;;  %4764 = vmatpush.bf16.msrb.mxu2 %v6309_v5  ;;  %v6495_v17 = vld [vmem:[#allocation12 + $0x44] sm:$0xf0]  ;;  %v6352_v5 = vld [vmem:[#allocation12 + $0xc0] sm:$0xf] }
 0x368   : > { %v9557_v8 = vadd.f32 %v4231_v22, %v4143_v28  ;;  %v4056_v15 = vadd.f32 %v4055_v51, %v3967_v47  ;;  %v6361_v22 = vor.u32 %v6513_v39, %v6360_v60  ;;  %v6298_v51 = vld [vmem:[#allocation12 + $0x58] sm:$0xf0]  ;;  %v6512_v47 = vld [vmem:[#allocation12 + $0xd4] sm:$0xf] }
 0x369   : > { %4853 = vmatpush.bf16.msrb.mxu3 %v6373_v33  ;;  %v6301_v52 = vor.u32 %v6496_v27, %v6298_v51  ;;  %v6365_v59 = vor.u32 %v6512_v47, %v6362_v30  ;;  %v10228_v33 = vld [vmem:[#allocation73_spill] sm:$0xff]  ;;  %v10229_v30 = vld [vmem:[#allocation74_spill] sm:$0xff] }
 0x36a   : > { %4587 = vmatpush.bf16.msrb.mxu0 %v6297_v7  ;;  %v6510_v7 = vld [vmem:[#allocation12 + $0xc4] sm:$0xf]  ;;  %v6354_v27 = vld [vmem:[#allocation12 + $0xc8] sm:$0xf0]  ;;  %v4308_v51 = vmax.f32 %v9557_v8, 0.0 }
 0x36b   : > { %v4144_v40 = vpop.f32.mrf.mxu2  ;;  %4676 = vmatpush.bf16.msrb.mxu1 %v6361_v22  ;;  %4765 = vmatpush.bf16.msrb.mxu2 %v6301_v52  ;;  %v6357_v22 = vor.u32 %v6510_v7, %v6354_v27  ;;  %v6280_v52 = vld [vmem:[#allocation12 + $0x30] sm:$0xf]  ;;  %v6346_v8 = vld [vmem:[#allocation12 + $0xb8] sm:$0xf0]  ;;  %v6272_v7 = vld [vmem:[#allocation12 + $0x20] sm:$0xf] }
 0x36c   : > { %v4145_v1 = vadd.f32 %v4144_v40, %v4056_v15  ;;  %v3969_v28 = vpop.f32.mrf.mxu0  ;;  %v6289_v15 = vor.u32 %v6495_v17, %v6288_v34  ;;  %v6290_v40 = vld [vmem:[#allocation12 + $0x48] sm:$0xf0]  ;;  %v6493_v34 = vld [vmem:[#allocation12 + $0x34] sm:$0xf0]  ;;  %v6491_v27 = vld [vmem:[#allocation12 + $0x24] sm:$0xf0] }
 0x36d   : > { %v3970_v16 = vadd.f32 %v3969_v28, %v9338_v54  ;;  %4854 = vmatpush.bf16.msrb.mxu3 %v6365_v59  ;;  %v6353_v54 = vor.u32 %v6511_v48, %v6352_v5  ;;  %v6293_v28 = vor.u32 %v6494_v35, %v6290_v40  ;;  %v6492_v59 = vld [vmem:[#allocation12 + $0x34] sm:$0xf]  ;;  %v10230_v5 = vld [vmem:[#allocation65_spill] sm:$0xff] }
 0x36e   : > { %4588 = vmatpush.bf16.msrb.mxu0 %v6289_v15  ;;  %v6282_v15 = vld [vmem:[#allocation12 + $0x38] sm:$0xf0]  ;;  %v6508_v48 = vld [vmem:[#allocation12 + $0xb4] sm:$0xf] }
 0x36f   : > { %v4233_v38 = vpop.f32.mrf.mxu3  ;;  %v4058_v36 = vpop.f32.mrf.mxu1  ;;  %4008 = vmatmul.bf16.gmra.mxu0 %v10228_v33  ;;  %4677 = vmatpush.bf16.msrb.mxu1 %v6353_v54  ;;  %v6349_v54 = vor.u32 %v6508_v48, %v6346_v8  ;;  %v6328_v48 = vld [vmem:[#allocation12 + $0x90] sm:$0xf]  ;;  %v6505_v8 = vld [vmem:[#allocation12 + $0x94] sm:$0xf0] }
 0x370   : > { %v4234_v60 = vadd.f32 %v4233_v38, %v4145_v1  ;;  %v4059_v39 = vadd.f32 %v4058_v36, %v3970_v16  ;;  %4186 = vmatmul.bf16.gmra.mxu2 %v9286_v13  ;;  %v6281_v1 = vor.u32 %v6493_v34, %v6280_v52  ;;  %v6344_v16 = vld [vmem:[#allocation12 + $0xb0] sm:$0xf]  ;;  %v6509_v13 = vld [vmem:[#allocation12 + $0xb4] sm:$0xf0]  ;;  %v6507_v34 = vld [vmem:[#allocation12 + $0xa4] sm:$0xf0] }
 0x371   : > { %4766 = vmatpush.bf16.msrb.mxu2 %v6293_v28  ;;  %v6345_v33 = vor.u32 %v6509_v13, %v6344_v16  ;;  %4855 = vmatpush.bf16.msrb.mxu3 %v6357_v22  ;;  %v6336_v28 = vld [vmem:[#allocation12 + $0xa0] sm:$0xf]  ;;  %v6274_v16 = vld [vmem:[#allocation12 + $0x28] sm:$0xf0] }
 0x372   : > { %v4310_v47 = vmax.f32 %v4234_v60, 0.0  ;;  %4097 = vmatmul.bf16.gmra.mxu1 %v10229_v30  ;;  %4589 = vmatpush.bf16.msrb.mxu0 %v6281_v1  ;;  %v6285_v60 = vor.u32 %v6492_v59, %v6282_v15  ;;  %v6338_v22 = vld [vmem:[#allocation12 + $0xa8] sm:$0xf0]  ;;  %v6264_v59 = vld [vmem:[#allocation12 + $0x10] sm:$0xf] }
 0x373   : > { %v4147_v17 = vpop.f32.mrf.mxu2  ;;  %4678 = vmatpush.bf16.msrb.mxu1 %v6345_v33 }
 0x374   : > { %4275 = vmatmul.bf16.gmra.mxu3 %v10230_v5  ;;  %v4148_v38 = vadd.f32 %v4147_v17, %v4059_v39  ;;  %v3971_v36 = vpop.f32.mrf.mxu0  ;;  %v9565_v35 = vpack.c.bf16 %v4310_v47, %v4308_v51  ;;  %v6273_v39 = vor.u32 %v6491_v27, %v6272_v7  ;;  %v6490_v17 = vld [vmem:[#allocation12 + $0x24] sm:$0xf]  ;;  %v6337_v47 = vor.u32 %v6507_v34, %v6336_v28  ;;  %v6504_v28 = vld [vmem:[#allocation12 + $0x94] sm:$0xf]  ;;  %v6256_v34 = vld [vmem:[#allocation12] sm:$0xf] }
 0x375   : > { %v3972_v40 = vadd.f32 %v3971_v36, %v9367_v44  ;;  %4767 = vmatpush.bf16.msrb.mxu2 %v6285_v60  ;;  %v6277_v5 = vor.u32 %v6490_v17, %v6274_v16  ;;  %v6506_v44 = vld [vmem:[#allocation12 + $0xa4] sm:$0xf]  ;;  %4856 = vmatpush.bf16.msrb.mxu3 %v6349_v54  ;;  %v6489_v36 = vld [vmem:[#allocation12 + $0x14] sm:$0xf0]  ;;  %v6488_v60 = vld [vmem:[#allocation12 + $0x14] sm:$0xf] }
 0x376   : > { %4590 = vmatpush.bf16.msrb.mxu0 %v6273_v39  ;;  %v6341_v1 = vor.u32 %v6506_v44, %v6338_v22  ;;  %v6265_v33 = vor.u32 %v6489_v36, %v6264_v59  ;;  %v6487_v17 = vld [vmem:[#allocation12 + $0x4] sm:$0xf0]  ;;  %v6320_v16 = vld [vmem:[#allocation12 + $0x80] sm:$0xf]  ;;  %v10231_v44 = vld [vmem:[#allocation78_spill] sm:$0xff] }
 0x377   : > { %v4236_v30 = vpop.f32.mrf.mxu3  ;;  %v4060_v52 = vpop.f32.mrf.mxu1  ;;  %4679 = vmatpush.bf16.msrb.mxu1 %v6337_v47  ;;  %v6503_v22 = vld [vmem:[#allocation12 + $0x84] sm:$0xf0]  ;;  %v6486_v59 = vld [vmem:[#allocation12 + $0x4] sm:$0xf]  ;;  %v6258_v36 = vld [vmem:[#allocation12 + $0x8] sm:$0xf0] }
 0x378   : > { %v4237_v13 = vadd.f32 %v4236_v30, %v4148_v38  ;;  %v4061_v51 = vadd.f32 %v4060_v52, %v3972_v40  ;;  %v6329_v38 = vor.u32 %v6505_v8, %v6328_v48  ;;  %v6266_v40 = vld [vmem:[#allocation12 + $0x18] sm:$0xf0]  ;;  %v6261_v8 = vor.u32 %v6486_v59, %v6258_v36 }
 0x379   : > { %4768 = vmatpush.bf16.msrb.mxu2 %v6277_v5  ;;  %v6330_v30 = vld [vmem:[#allocation12 + $0x98] sm:$0xf0]  ;;  %4857 = vmatpush.bf16.msrb.mxu3 %v6341_v1  ;;  %v6269_v54 = vor.u32 %v6488_v60, %v6266_v40  ;;  %v6502_v1 = vld [vmem:[#allocation12 + $0x84] sm:$0xf] }
 0x37a   : > { %4591 = vmatpush.bf16.msrb.mxu0 %v6265_v33  ;;  %v6333_v39 = vor.u32 %v6504_v28, %v6330_v30  ;;  %v6322_v33 = vld [vmem:[#allocation12 + $0x88] sm:$0xf0]  ;;  %v10232_v28 = vld [vmem:[#allocation79_spill] sm:$0xff] }
 0x37b   : > { %v4149_v15 = vpop.f32.mrf.mxu2  ;;  %4680 = vmatpush.bf16.msrb.mxu1 %v6329_v38  ;;  %v6325_v60 = vor.u32 %v6502_v1, %v6322_v33 }
 0x37c   : > { %v4150_v7 = vadd.f32 %v4149_v15, %v4061_v51  ;;  %v3974_v27 = vpop.f32.mrf.mxu0  ;;  %v6257_v51 = vor.u32 %v6487_v17, %v6256_v34 }
 0x37d   : > { %v3975_v52 = vadd.f32 %v3974_v27, %v9382_v10  ;;  %v6321_v10 = vor.u32 %v6503_v22, %v6320_v16  ;;  %4769 = vmatpush.bf16.msrb.mxu2 %v6269_v54  ;;  %4858 = vmatpush.bf16.msrb.mxu3 %v6333_v39  ;;  %v4312_v27 = vmax.f32 %v4237_v13, 0.0 }
 0x37e   : > { %4592 = vmatpush.bf16.msrb.mxu0 %v6257_v51 }
 0x37f   : > { %v4238_v47 = vpop.f32.mrf.mxu3  ;;  %v4063_v5 = vpop.f32.mrf.mxu1  ;;  %4013 = vmatmul.bf16.gmra.mxu0 %v10231_v44  ;;  %4681 = vmatpush.bf16.msrb.mxu1 %v6321_v10 }
 0x380   : > { %v4239_v15 = vadd.f32 %v4238_v47, %v4150_v7  ;;  %v4064_v48 = vadd.f32 %v4063_v5, %v3975_v52  ;;  %4191 = vmatmul.bf16.gmra.mxu2 %v9341_v25 }
 0x381   : > { %4770 = vmatpush.bf16.msrb.mxu2 %v6261_v8  ;;  %4859 = vmatpush.bf16.msrb.mxu3 %v6325_v60 }
 0x382   : > { %v4314_v40 = vmax.f32 %v4239_v15, 0.0  ;;  %4102 = vmatmul.bf16.gmra.mxu1 %v10232_v28  ;;  %v10234_v15 = vld [vmem:[#allocation84_spill] sm:$0xff] }
 0x383   : > { %v4152_v38 = vpop.f32.mrf.mxu2 }
 0x384   : > { %4280 = vmatmul.bf16.gmra.mxu3 %v9346_v29  ;;  %v4153_v7 = vadd.f32 %v4152_v38, %v4064_v48  ;;  %v3976_v30 = vpop.f32.mrf.mxu0  ;;  %v9573_v52 = vpack.c.bf16 %v4314_v40, %v4312_v27  ;;  %v10233_v29 = vld [vmem:[#allocation83_spill] sm:$0xff] }
 0x385   : > { %v3977_v25 = vadd.f32 %v3976_v30, %v9393_v41 }
 0x387   : > { %v4241_v54 = vpop.f32.mrf.mxu3  ;;  %v4065_v39 = vpop.f32.mrf.mxu1 }
 0x388   : > { %v4242_v34 = vadd.f32 %v4241_v54, %v4153_v7  ;;  %v4066_v13 = vadd.f32 %v4065_v39, %v3977_v25  ;;  %v10235_v54 = vld [vmem:[#allocation52_spill] sm:$0xff] }
 0x38a   : > { %v4316_v41 = vmax.f32 %v4242_v34, 0.0 }
 0x38b   : > { %v4154_v17 = vpop.f32.mrf.mxu2 }
 0x38c   : > { %v4155_v16 = vadd.f32 %v4154_v17, %v4066_v13  ;;  %v3979_v47 = vpop.f32.mrf.mxu0 }
 0x38d   : > { %v3980_v5 = vadd.f32 %v3979_v47, %v9400_v49 }
 0x38f   : > { %v4243_v44 = vpop.f32.mrf.mxu3  ;;  %v4068_v51 = vpop.f32.mrf.mxu1  ;;  %4018 = vmatmul.bf16.gmra.mxu0 %v10233_v29 }
 0x390   : > { %v4244_v22 = vadd.f32 %v4243_v44, %v4155_v16  ;;  %v4069_v59 = vadd.f32 %v4068_v51, %v3980_v5  ;;  %4196 = vmatmul.bf16.gmra.mxu2 %v9384_v23 }
 0x392   : > { %v4318_v36 = vmax.f32 %v4244_v22, 0.0  ;;  %4107 = vmatmul.bf16.gmra.mxu1 %v10234_v15 }
 0x393   : > { %v4157_v48 = vpop.f32.mrf.mxu2 }
 0x394   : > { %4285 = vmatmul.bf16.gmra.mxu3 %v9390_v11  ;;  %v4158_v10 = vadd.f32 %v4157_v48, %v4069_v59  ;;  %v3981_v1 = vpop.f32.mrf.mxu0  ;;  %v9581_v33 = vpack.c.bf16 %v4318_v36, %v4316_v41 }
 0x395   : > { %v3982_v49 = vadd.f32 %v3981_v1, %v9407_v57 }
 0x397   : > { %v4246_v8 = vpop.f32.mrf.mxu3  ;;  %v4070_v60 = vpop.f32.mrf.mxu1 }
 0x398   : > { %v4247_v27 = vadd.f32 %v4246_v8, %v4158_v10  ;;  %v4071_v40 = vadd.f32 %v4070_v60, %v3982_v49  ;;  %v10236_v10 = vld [vmem:[#allocation51_spill] sm:$0xff] }
 0x39a   : > { %v4320_v34 = vmax.f32 %v4247_v27, 0.0 }
 0x39b   : > { %v4159_v28 = vpop.f32.mrf.mxu2 }
 0x39c   : > { %v4160_v38 = vadd.f32 %v4159_v28, %v4071_v40  ;;  %v3984_v23 = vpop.f32.mrf.mxu0 }
 0x39d   : > { %v3985_v7 = vadd.f32 %v3984_v23, %v9414_v37 }
 0x39f   : > { %v4248_v30 = vpop.f32.mrf.mxu3  ;;  %v4073_v25 = vpop.f32.mrf.mxu1  ;;  %4593 = vmatmul.bf16.vlgmr.msrb.gmra.mxu0 %v10235_v54 }
 0x3a0   : > { %v4249_v11 = vadd.f32 %v4248_v30, %v4160_v38  ;;  %v4074_v39 = vadd.f32 %v4073_v25, %v3985_v7  ;;  %4771 = vmatmul.bf16.vlgmr.msrb.gmra.mxu2 %v10235_v54 }
 0x3a2   : > { %v4322_v13 = vmax.f32 %v4249_v11, 0.0  ;;  %4682 = vmatmul.bf16.vlgmr.msrb.gmra.mxu1 %v9529_v45 }
 0x3a3   : > { %v4162_v57 = vpop.f32.mrf.mxu2 }
 0x3a4   : > { %4860 = vmatmul.bf16.vlgmr.msrb.gmra.mxu3 %v9529_v45  ;;  %v4163_v17 = vadd.f32 %v4162_v57, %v4074_v39  ;;  %v3986_v16 = vpop.f32.mrf.mxu0  ;;  %v9589_v47 = vpack.c.bf16 %v4322_v13, %v4320_v34  ;;  %v10237_v13 = vld [vmem:[#allocation58_spill] sm:$0xff] }
 0x3a5   : > { %v3987_v37 = vadd.f32 %v3986_v16, %v9421_v19 }
 0x3a7   : > { %v4251_v5 = vpop.f32.mrf.mxu3  ;;  %v4075_v44 = vpop.f32.mrf.mxu1 }
 0x3a8   : > { %v4252_v51 = vadd.f32 %v4251_v5, %v4163_v17  ;;  %v4076_v29 = vadd.f32 %v4075_v44, %v3987_v37 }
 0x3aa   : > { %v4324_v49 = vmax.f32 %v4252_v51, 0.0 }
 0x3ab   : > { %v4164_v22 = vpop.f32.mrf.mxu2 }
 0x3ac   : > { %v4165_v59 = vadd.f32 %v4164_v22, %v4076_v29  ;;  %v3989_v41 = vpop.f32.mrf.mxu0 }
 0x3ad   : > { %v3990_v36 = vadd.f32 %v3989_v41, %v9428_v24 }
 0x3af   : > { %v4253_v15 = vpop.f32.mrf.mxu3  ;;  %v4078_v48 = vpop.f32.mrf.mxu1  ;;  %4598 = vmatmul.bf16.gmra.mxu0 %v10236_v10 }
 0x3b0   : > { %v4254_v45 = vadd.f32 %v4253_v15, %v4165_v59  ;;  %v4079_v1 = vadd.f32 %v4078_v48, %v3990_v36  ;;  %4776 = vmatmul.bf16.gmra.mxu2 %v10236_v10 }
 0x3b2   : > { %v4326_v8 = vmax.f32 %v4254_v45, 0.0  ;;  %4687 = vmatmul.bf16.gmra.mxu1 %v9538_v4 }
 0x3b3   : > { %v4167_v19 = vpop.f32.mrf.mxu2 }
 0x3b4   : > { %4865 = vmatmul.bf16.gmra.mxu3 %v9538_v4  ;;  %v4168_v60 = vadd.f32 %v4167_v19, %v4079_v1  ;;  %v3991_v27 = vpop.f32.mrf.mxu0  ;;  %v9597_v40 = vpack.c.bf16 %v4326_v8, %v4324_v49  ;;  %v10238_v1 = vld [vmem:[#allocation64_spill] sm:$0xff] }
 0x3b5   : > { %v3992_v24 = vadd.f32 %v3991_v27, %v9435_v43 }
 0x3b7   : > { %v4256_v28 = vpop.f32.mrf.mxu3  ;;  %v4080_v38 = vpop.f32.mrf.mxu1 }
 0x3b8   : > { %v4257_v23 = vadd.f32 %v4256_v28, %v4168_v60  ;;  %v4081_v7 = vadd.f32 %v4080_v38, %v3992_v24 }
 0x3ba   : > { %v4328_v17 = vmax.f32 %v4257_v23, 0.0 }
 0x3bb   : > { %v4169_v30 = vpop.f32.mrf.mxu2 }
 0x3bc   : > { %v4170_v25 = vadd.f32 %v4169_v30, %v4081_v7  ;;  %v3994_v54 = vpop.f32.mrf.mxu0 }
 0x3bd   : > { %v3995_v11 = vadd.f32 %v3994_v54, %v9442_v53 }
 0x3bf   : > { %v4258_v39 = vpop.f32.mrf.mxu3  ;;  %v4083_v34 = vpop.f32.mrf.mxu1  ;;  %4603 = vmatmul.bf16.gmra.mxu0 %v10237_v13 }
 0x3c0   : > { %v4259_v4 = vadd.f32 %v4258_v39, %v4170_v25  ;;  %v4084_v57 = vadd.f32 %v4083_v34, %v3995_v11  ;;  %4781 = vmatmul.bf16.gmra.mxu2 %v10237_v13  ;;  %v10239_v13 = vld [vmem:[#allocation104_spill] sm:$0xff] }
 0x3c2   : > { %v4330_v16 = vmax.f32 %v4259_v4, 0.0  ;;  %4692 = vmatmul.bf16.gmra.mxu1 %v9546_v46 }
 0x3c3   : > { %v4172_v43 = vpop.f32.mrf.mxu2 }
 0x3c4   : > { %4870 = vmatmul.bf16.gmra.mxu3 %v9546_v46  ;;  %v4173_v37 = vadd.f32 %v4172_v43, %v4084_v57  ;;  %v3996_v5 = vpop.f32.mrf.mxu0  ;;  %v9605_v44 = vpack.c.bf16 %v4330_v16, %v4328_v17 }
 0x3c5   : > { %v3997_v53 = vadd.f32 %v3996_v5, %v9449_v58 }
 0x3c7   : > { %v4261_v51 = vpop.f32.mrf.mxu3  ;;  %v4085_v29 = vpop.f32.mrf.mxu1 }
 0x3c8   : > { %v4262_v22 = vadd.f32 %v4261_v51, %v4173_v37  ;;  %v4086_v59 = vadd.f32 %v4085_v29, %v3997_v53 }
 0x3ca   : > { %v4332_v8 = vmax.f32 %v4262_v22, 0.0 }
 0x3cb   : > { %v4174_v41 = vpop.f32.mrf.mxu2 }
 0x3cc   : > { %v4175_v36 = vadd.f32 %v4174_v41, %v4086_v59  ;;  %v3999_v15 = vpop.f32.mrf.mxu0 }
 0x3cd   : > { %v4000_v48 = vadd.f32 %v3999_v15, %v9456_v3 }
 0x3cf   : > { %v4263_v10 = vpop.f32.mrf.mxu3  ;;  %v4088_v45 = vpop.f32.mrf.mxu1  ;;  %4608 = vmatmul.bf16.gmra.mxu0 %v10238_v1 }
 0x3d0   : > { %v4264_v46 = vadd.f32 %v4263_v10, %v4175_v36  ;;  %v4089_v49 = vadd.f32 %v4088_v45, %v4000_v48  ;;  %4786 = vmatmul.bf16.gmra.mxu2 %v10238_v1  ;;  %v10240_v10 = vld [vmem:[#allocation77_spill] sm:$0xff] }
 0x3d2   : > { %v4334_v19 = vmax.f32 %v4264_v46, 0.0  ;;  %4697 = vmatmul.bf16.gmra.mxu1 %v9554_v6 }
 0x3d3   : > { %v4177_v58 = vpop.f32.mrf.mxu2 }
 0x3d4   : > { %4875 = vmatmul.bf16.gmra.mxu3 %v9554_v6  ;;  %v4178_v60 = vadd.f32 %v4177_v58, %v4089_v49  ;;  %v4001_v27 = vpop.f32.mrf.mxu0  ;;  %v9613_v24 = vpack.c.bf16 %v4334_v19, %v4332_v8 }
 0x3d5   : > { %v4002_v3 = vadd.f32 %v4001_v27, %v9463_v0 }
 0x3d7   : > { %v4266_v28 = vpop.f32.mrf.mxu3  ;;  %v4090_v38 = vpop.f32.mrf.mxu1 }
 0x3d8   : > { %v4267_v23 = vadd.f32 %v4266_v28, %v4178_v60  ;;  %v4091_v7 = vadd.f32 %v4090_v38, %v4002_v3 }
 0x3da   : > { %v4336_v57 = vmax.f32 %v4267_v23, 0.0 }
 0x3db   : > { %v4179_v30 = vpop.f32.mrf.mxu2 }
 0x3dc   : > { %v4180_v25 = vadd.f32 %v4179_v30, %v4091_v7  ;;  %v4004_v54 = vpop.f32.mrf.mxu0 }
 0x3dd   : > { %v4005_v11 = vadd.f32 %v4004_v54, %v9470_v12 }
 0x3df   : > { %v4268_v39 = vpop.f32.mrf.mxu3  ;;  %v4093_v34 = vpop.f32.mrf.mxu1  ;;  %4613 = vmatmul.bf16.gmra.mxu0 %v10239_v13 }
 0x3e0   : > { %v4269_v6 = vadd.f32 %v4268_v39, %v4180_v25  ;;  %v4094_v4 = vadd.f32 %v4093_v34, %v4005_v11  ;;  %4791 = vmatmul.bf16.gmra.mxu2 %v10239_v13 }
 0x3e2   : > { %v4338_v17 = vmax.f32 %v4269_v6, 0.0  ;;  %4702 = vmatmul.bf16.gmra.mxu1 %v9565_v35 }
 0x3e3   : > { %v4182_v0 = vpop.f32.mrf.mxu2 }
 0x3e4   : > { %4880 = vmatmul.bf16.gmra.mxu3 %v9565_v35  ;;  %v4183_v16 = vadd.f32 %v4182_v0, %v4094_v4  ;;  %v4006_v43 = vpop.f32.mrf.mxu0  ;;  %v9621_v37 = vpack.c.bf16 %v4338_v17, %v4336_v57 }
 0x3e5   : > { %v4007_v12 = vadd.f32 %v4006_v43, %v9477_v62 }
 0x3e7   : > { %v4271_v5 = vpop.f32.mrf.mxu3  ;;  %v4095_v53 = vpop.f32.mrf.mxu1 }
 0x3e8   : > { %v4272_v51 = vadd.f32 %v4271_v5, %v4183_v16  ;;  %v4096_v29 = vadd.f32 %v4095_v53, %v4007_v12 }
 0x3ea   : > { %v4340_v1 = vmax.f32 %v4272_v51, 0.0 }
 0x3eb   : > { %v4184_v22 = vpop.f32.mrf.mxu2 }
 0x3ec   : > { %v4185_v59 = vadd.f32 %v4184_v22, %v4096_v29  ;;  %v4009_v41 = vpop.f32.mrf.mxu0 }
 0x3ed   : > { %v4010_v36 = vadd.f32 %v4009_v41, %v9484_v26 }
 0x3ef   : > { %v4273_v15 = vpop.f32.mrf.mxu3  ;;  %v4098_v48 = vpop.f32.mrf.mxu1  ;;  %4618 = vmatmul.bf16.gmra.mxu0 %v10240_v10 }
 0x3f0   : > { %v4274_v35 = vadd.f32 %v4273_v15, %v4185_v59  ;;  %v4099_v45 = vadd.f32 %v4098_v48, %v4010_v36  ;;  %4796 = vmatmul.bf16.gmra.mxu2 %v10240_v10  ;;  %v4419_v15 = vld [vmem:[#allocation13] sm:$0x3] }
 0x3f2   : > { %v4342_v46 = vmax.f32 %v4274_v35, 0.0  ;;  %4707 = vmatmul.bf16.gmra.mxu1 %v9573_v52 }
 0x3f3   : > { %v4187_v62 = vpop.f32.mrf.mxu2 }
 0x3f4   : > { %4885 = vmatmul.bf16.gmra.mxu3 %v9573_v52  ;;  %v4188_v49 = vadd.f32 %v4187_v62, %v4099_v45  ;;  %v4011_v8 = vpop.f32.mrf.mxu0  ;;  %v9629_v19 = vpack.c.bf16 %v4342_v46, %v4340_v1  ;;  %v9648_v1 = vperm.slane %v4419_v15, 0 }
 0x3f5   : > { %v4012_v26 = vadd.f32 %v4011_v8, %v9491_v14 }
 0x3f7   : > { %v4276_v58 = vpop.f32.mrf.mxu3  ;;  %v4100_v60 = vpop.f32.mrf.mxu1 }
 0x3f8   : > { %v4277_v27 = vadd.f32 %v4276_v58, %v4188_v49  ;;  %v4101_v3 = vadd.f32 %v4100_v60, %v4012_v26 }
 0x3fa   : > { %v4344_v11 = vmax.f32 %v4277_v27, 0.0 }
 0x3fb   : > { %v4189_v28 = vpop.f32.mrf.mxu2 }
 0x3fc   : > { %v4190_v38 = vadd.f32 %v4189_v28, %v4101_v3  ;;  %v4014_v23 = vpop.f32.mrf.mxu0 }
 0x3fd   : > { %v4015_v7 = vadd.f32 %v4014_v23, %v9498_v50 }
 0x3ff   : > { %v4278_v30 = vpop.f32.mrf.mxu3  ;;  %v4103_v25 = vpop.f32.mrf.mxu1  ;;  %4623 = vmatmul.bf16.gmra.mxu0 %v9387_v18 }
 0x400   : > { %v4279_v52 = vadd.f32 %v4278_v30, %v4190_v38  ;;  %v4104_v54 = vadd.f32 %v4103_v25, %v4015_v7  ;;  %4801 = vmatmul.bf16.gmra.mxu2 %v9387_v18 }
 0x402   : > { %v4346_v39 = vmax.f32 %v4279_v52, 0.0  ;;  %4712 = vmatmul.bf16.gmra.mxu1 %v9581_v33 }
 0x403   : > { %v4192_v14 = vpop.f32.mrf.mxu2 }
 0x404   : > { %4890 = vmatmul.bf16.gmra.mxu3 %v9581_v33  ;;  %v4193_v34 = vadd.f32 %v4192_v14, %v4104_v54  ;;  %v4016_v13 = vpop.f32.mrf.mxu0  ;;  %v9637_v6 = vpack.c.bf16 %v4346_v39, %v4344_v11 }
 0x405   : > { %v4017_v50 = vadd.f32 %v4016_v13, %v9505_v2 }
 0x407   : > { %v4281_v4 = vpop.f32.mrf.mxu3  ;;  %v4105_v57 = vpop.f32.mrf.mxu1 }
 0x408   : > { %v4282_v17 = vadd.f32 %v4281_v4, %v4193_v34  ;;  %v4106_v0 = vadd.f32 %v4105_v57, %v4017_v50 }
 0x40a   : > { %v4348_v29 = vmax.f32 %v4282_v17, 0.0 }
 0x40b   : > { %v4194_v16 = vpop.f32.mrf.mxu2 }
 0x40c   : > { %v4195_v43 = vadd.f32 %v4194_v16, %v4106_v0  ;;  %v4019_v18 = vpop.f32.mrf.mxu0 }
 0x40d   : > { %v4020_v12 = vadd.f32 %v4019_v18, %v9512_v61 }
 0x40f   : > { %v4283_v5 = vpop.f32.mrf.mxu3  ;;  %v4108_v53 = vpop.f32.mrf.mxu1  ;;  %4628 = vmatmul.bf16.gmra.mxu0 %v9403_v9 }
 0x410   : > { %v4284_v33 = vadd.f32 %v4283_v5, %v4195_v43  ;;  %v4109_v51 = vadd.f32 %v4108_v53, %v4020_v12  ;;  %4806 = vmatmul.bf16.gmra.mxu2 %v9403_v9 }
 0x412   : > { %v4350_v22 = vmax.f32 %v4284_v33, 0.0  ;;  %4717 = vmatmul.bf16.gmra.mxu1 %v9589_v47 }
 0x413   : > { %v4197_v2 = vpop.f32.mrf.mxu2 }
 0x414   : > { %4895 = vmatmul.bf16.gmra.mxu3 %v9589_v47  ;;  %v4198_v59 = vadd.f32 %v4197_v2, %v4109_v51  ;;  %v4021_v41 = vpop.f32.mrf.mxu0  ;;  %v9645_v36 = vpack.c.bf16 %v4350_v22, %v4348_v29 }
 0x415   : > { %v4022_v61 = vadd.f32 %v4021_v41, %v9519_v42  ;;  %v9655_v42 = vperm.slane %v4419_v15, 1 }
 0x417   : > { %v4286_v48 = vpop.f32.mrf.mxu3  ;;  %v4110_v10 = vpop.f32.mrf.mxu1 }
 0x418   : > { %v4287_v35 = vadd.f32 %v4286_v48, %v4198_v59  ;;  %v4111_v45 = vadd.f32 %v4110_v10, %v4022_v61 }
 0x41a   : > { %v4352_v60 = vmax.f32 %v4287_v35, 0.0 }
 0x41b   : > { %v4199_v9 = vpop.f32.mrf.mxu2 }
 0x41c   : > { %v4200_v46 = vadd.f32 %v4199_v9, %v4111_v45  ;;  %v4594_v62 = vpop.f32.mrf.mxu0 }
 0x41d   : > { %v4595_v49 = vadd.f32 %v4594_v62, %v9648_v1 }
 0x41f   : > { %v4288_v8 = vpop.f32.mrf.mxu3  ;;  %v4683_v47 = vpop.f32.mrf.mxu1  ;;  %4633 = vmatmul.bf16.gmra.mxu0 %v9417_v31 }
 0x420   : > { %v4289_v26 = vadd.f32 %v4288_v8, %v4200_v46  ;;  %v9652_v58 = vadd.f32 %v4683_v47, %v4595_v49  ;;  %4811 = vmatmul.bf16.gmra.mxu2 %v9417_v31 }
 0x422   : > { %v4354_v27 = vmax.f32 %v4289_v26, 0.0  ;;  %4722 = vmatmul.bf16.gmra.mxu1 %v9597_v40 }
 0x423   : > { %v4772_v3 = vpop.f32.mrf.mxu2 }
 0x424   : > { %4900 = vmatmul.bf16.gmra.mxu3 %v9597_v40  ;;  %v4773_v28 = vadd.f32 %v4772_v3, %v9655_v42  ;;  %v4596_v38 = vpop.f32.mrf.mxu0  ;;  %v9660_v23 = vpack.c.bf16 %v4354_v27, %v4352_v60 }
 0x425   : > { %v4597_v7 = vadd.f32 %v4596_v38, %v9648_v1 }
 0x427   : > { %v4861_v30 = vpop.f32.mrf.mxu3  ;;  %v4685_v25 = vpop.f32.mrf.mxu1 }
 0x428   : > { %v9663_v52 = vadd.f32 %v4861_v30, %v4773_v28  ;;  %v9665_v31 = vadd.f32 %v4685_v25, %v4597_v7 }
 0x42b   : > { %v4774_v54 = vpop.f32.mrf.mxu2 }
 0x42c   : > { %v4775_v11 = vadd.f32 %v4774_v54, %v9655_v42  ;;  %v4599_v39 = vpop.f32.mrf.mxu0 }
 0x42d   : > { %v4600_v14 = vadd.f32 %v4599_v39, %v9648_v1 }
 0x42f   : > { %v4863_v40 = vpop.f32.mrf.mxu3  ;;  %v4688_v34 = vpop.f32.mrf.mxu1  ;;  %4638 = vmatmul.bf16.gmra.mxu0 %v9431_v55 }
 0x430   : > { %v9670_v13 = vadd.f32 %v4863_v40, %v4775_v11  ;;  %v9672_v50 = vadd.f32 %v4688_v34, %v4600_v14  ;;  %4816 = vmatmul.bf16.gmra.mxu2 %v9431_v55 }
 0x432   : > { %4727 = vmatmul.bf16.gmra.mxu1 %v9605_v44 }
 0x433   : > { %v4777_v4 = vpop.f32.mrf.mxu2 }
 0x434   : > { %4905 = vmatmul.bf16.gmra.mxu3 %v9605_v44  ;;  %v4778_v57 = vadd.f32 %v4777_v4, %v9655_v42  ;;  %v4601_v17 = vpop.f32.mrf.mxu0 }
 0x435   : > { %v4602_v0 = vadd.f32 %v4601_v17, %v9648_v1 }
 0x437   : > { %v4866_v16 = vpop.f32.mrf.mxu3  ;;  %v4690_v43 = vpop.f32.mrf.mxu1 }
 0x438   : > { %v9679_v18 = vadd.f32 %v4866_v16, %v4778_v57  ;;  %v9681_v12 = vadd.f32 %v4690_v43, %v4602_v0 }
 0x43b   : > { %v4779_v5 = vpop.f32.mrf.mxu2 }
 0x43c   : > { %v4780_v53 = vadd.f32 %v4779_v5, %v9655_v42  ;;  %v4604_v55 = vpop.f32.mrf.mxu0 }
 0x43d   : > { %v4605_v33 = vadd.f32 %v4604_v55, %v9648_v1 }
 0x43f   : > { %v4868_v51 = vpop.f32.mrf.mxu3  ;;  %v4693_v29 = vpop.f32.mrf.mxu1  ;;  %4643 = vmatmul.bf16.gmra.mxu0 %v9445_v56 }
 0x440   : > { %v9686_v44 = vadd.f32 %v4868_v51, %v4780_v53  ;;  %v9688_v22 = vadd.f32 %v4693_v29, %v4605_v33  ;;  %4821 = vmatmul.bf16.gmra.mxu2 %v9445_v56 }
 0x442   : > { %4732 = vmatmul.bf16.gmra.mxu1 %v9613_v24 }
 0x443   : > { %v4782_v2 = vpop.f32.mrf.mxu2 }
 0x444   : > { %4910 = vmatmul.bf16.gmra.mxu3 %v9613_v24  ;;  %v4783_v59 = vadd.f32 %v4782_v2, %v9655_v42  ;;  %v4606_v41 = vpop.f32.mrf.mxu0 }
 0x445   : > { %v4607_v61 = vadd.f32 %v4606_v41, %v9648_v1 }
 0x447   : > { %v4871_v15 = vpop.f32.mrf.mxu3  ;;  %v4695_v48 = vpop.f32.mrf.mxu1 }
 0x448   : > { %v9695_v10 = vadd.f32 %v4871_v15, %v4783_v59  ;;  %v9697_v35 = vadd.f32 %v4695_v48, %v4607_v61  ;;  %v10241_v15 = vld [vmem:[#allocation70_spill] sm:$0xff] }
 0x44b   : > { %v4784_v45 = vpop.f32.mrf.mxu2 }
 0x44c   : > { %v4785_v9 = vadd.f32 %v4784_v45, %v9655_v42  ;;  %v4609_v56 = vpop.f32.mrf.mxu0 }
 0x44d   : > { %v4610_v46 = vadd.f32 %v4609_v56, %v9648_v1 }
 0x44f   : > { %v4873_v62 = vpop.f32.mrf.mxu3  ;;  %v4698_v49 = vpop.f32.mrf.mxu1  ;;  %4648 = vmatmul.bf16.gmra.mxu0 %v9459_v63 }
 0x450   : > { %v9702_v24 = vadd.f32 %v4873_v62, %v4785_v9  ;;  %v9704_v8 = vadd.f32 %v4698_v49, %v4610_v46  ;;  %4826 = vmatmul.bf16.gmra.mxu2 %v9459_v63 }
 0x452   : > { %4737 = vmatmul.bf16.gmra.mxu1 %v9621_v37 }
 0x453   : > { %v4787_v47 = vpop.f32.mrf.mxu2 }
 0x454   : > { %4915 = vmatmul.bf16.gmra.mxu3 %v9621_v37  ;;  %v4788_v26 = vadd.f32 %v4787_v47, %v9655_v42  ;;  %v4611_v60 = vpop.f32.mrf.mxu0 }
 0x455   : > { %v4612_v27 = vadd.f32 %v4611_v60, %v9648_v1 }
 0x457   : > { %v4876_v3 = vpop.f32.mrf.mxu3  ;;  %v4700_v28 = vpop.f32.mrf.mxu1 }
 0x458   : > { %v9711_v38 = vadd.f32 %v4876_v3, %v4788_v26  ;;  %v9713_v7 = vadd.f32 %v4700_v28, %v4612_v27 }
 0x45b   : > { %v4789_v30 = vpop.f32.mrf.mxu2 }
 0x45c   : > { %v4790_v25 = vadd.f32 %v4789_v30, %v9655_v42  ;;  %v9716_v63 = vpop.f32.mrf.mxu0 }
 0x45f   : > { %v4878_v54 = vpop.f32.mrf.mxu3  ;;  %v9718_v11 = vpop.f32.mrf.mxu1  ;;  %4653 = vmatmul.bf16.gmra.mxu0 %v9473_v20 }
 0x460   : > { %v9721_v37 = vadd.f32 %v4878_v54, %v4790_v25  ;;  %4831 = vmatmul.bf16.gmra.mxu2 %v9473_v20 }
 0x462   : > { %4742 = vmatmul.bf16.gmra.mxu1 %v9629_v19 }
 0x463   : > { %v9725_v39 = vpop.f32.mrf.mxu2 }
 0x464   : > { %4920 = vmatmul.bf16.gmra.mxu3 %v9629_v19  ;;  %v4616_v14 = vpop.f32.mrf.mxu0 }
 0x467   : > { %v9728_v40 = vpop.f32.mrf.mxu3  ;;  %v9730_v34 = vpop.f32.mrf.mxu1 }
 0x46b   : > { %v9732_v4 = vpop.f32.mrf.mxu2 }
 0x46c   : > { %v4619_v57 = vpop.f32.mrf.mxu0 }
 0x46d   : > { %v4620_v3 = vadd.f32 %v4619_v57, %v9648_v1  ;;  %v4615_v57 = vadd.f32 %v9716_v63, %v9648_v1 }
 0x46f   : > { %v9734_v17 = vpop.f32.mrf.mxu3  ;;  %v4708_v0 = vpop.f32.mrf.mxu1  ;;  %4658 = vmatmul.bf16.gmra.mxu0 %v9487_v32  ;;  %v4704_v63 = vadd.f32 %v9718_v11, %v4615_v57 }
 0x470   : > { %4836 = vmatmul.bf16.gmra.mxu2 %v9487_v32 }
 0x472   : > { %4747 = vmatmul.bf16.gmra.mxu1 %v9637_v6 }
 0x473   : > { %v9739_v20 = vpop.f32.mrf.mxu2 }
 0x474   : > { %4925 = vmatmul.bf16.gmra.mxu3 %v9637_v6  ;;  %v4621_v19 = vpop.f32.mrf.mxu0 }
 0x475   : > { %v4622_v26 = vadd.f32 %v4621_v19, %v9648_v1 }
 0x477   : > { %v9742_v16 = vpop.f32.mrf.mxu3  ;;  %v4710_v43 = vpop.f32.mrf.mxu1 }
 0x47b   : > { %v4799_v5 = vpop.f32.mrf.mxu2 }
 0x47c   : > { %v4624_v53 = vpop.f32.mrf.mxu0 }
 0x47d   : > { %v4625_v56 = vadd.f32 %v4624_v53, %v9648_v1  ;;  %v4617_v53 = vadd.f32 %v4616_v14, %v9648_v1 }
 0x47f   : > { %v9744_v55 = vpop.f32.mrf.mxu3  ;;  %v4713_v33 = vpop.f32.mrf.mxu1  ;;  %4663 = vmatmul.bf16.gmra.mxu0 %v9501_v21  ;;  %v4706_v14 = vadd.f32 %v9730_v34, %v4617_v53 }
 0x480   : > { %4841 = vmatmul.bf16.gmra.mxu2 %v9501_v21  ;;  %v4714_v28 = vadd.f32 %v4713_v33, %v4625_v56  ;;  %v4709_v33 = vadd.f32 %v4708_v0, %v4620_v3 }
 0x482   : > { %4752 = vmatmul.bf16.gmra.mxu1 %v9645_v36  ;;  %v4961_v0 = vmax.f32 %v4709_v33, 0.0 }
 0x483   : > { %v4802_v32 = vpop.f32.mrf.mxu2 }
 0x484   : > { %4930 = vmatmul.bf16.gmra.mxu3 %v9645_v36  ;;  %v4626_v51 = vpop.f32.mrf.mxu0 }
 0x485   : > { %v4627_v9 = vadd.f32 %v4626_v51, %v9648_v1 }
 0x487   : > { %v4891_v6 = vpop.f32.mrf.mxu3  ;;  %v4715_v29 = vpop.f32.mrf.mxu1 }
 0x488   : > { %v4716_v60 = vadd.f32 %v4715_v29, %v4627_v9  ;;  %v4965_v29 = vmax.f32 %v4714_v28, 0.0  ;;  %v4957_v28 = vmax.f32 %v4704_v63, 0.0  ;;  %v4941_v63 = vmax.f32 %v9652_v58, 0.0 }
 0x48b   : > { %v4804_v2 = vpop.f32.mrf.mxu2 }
 0x48c   : > { %v4629_v59 = vpop.f32.mrf.mxu0  ;;  %v4805_v19 = vadd.f32 %v4804_v2, %v9655_v42  ;;  %v4800_v2 = vadd.f32 %v4799_v5, %v9655_v42  ;;  %v4959_v5 = vmax.f32 %v4706_v14, 0.0  ;;  %v4954_v14 = vmax.f32 %v9711_v38, 0.0 }
 0x48d   : > { %v4630_v21 = vadd.f32 %v4629_v59, %v9648_v1 }
 0x48e   : > { %v4889_v11 = vadd.f32 %v9744_v55, %v4800_v2 }
 0x48f   : > { %v4893_v41 = vpop.f32.mrf.mxu3  ;;  %v4718_v61 = vpop.f32.mrf.mxu1  ;;  %4668 = vmatmul.bf16.gmra.mxu0 %v10241_v15 }
 0x490   : > { %4846 = vmatmul.bf16.gmra.mxu2 %v10241_v15  ;;  %v4719_v49 = vadd.f32 %v4718_v61, %v4630_v21  ;;  %v4711_v61 = vadd.f32 %v4710_v43, %v4622_v26  ;;  %v4967_v15 = vmax.f32 %v4716_v60, 0.0  ;;  %v4964_v53 = vmax.f32 %v4889_v11, 0.0 }
 0x492   : > { %4757 = vmatmul.bf16.gmra.mxu1 %v9660_v23  ;;  %v4963_v43 = vmax.f32 %v4711_v61, 0.0 }
 0x493   : > { %v4807_v48 = vpop.f32.mrf.mxu2 }
 0x494   : > { %4935 = vmatmul.bf16.gmra.mxu3 %v9660_v23  ;;  %v4631_v45 = vpop.f32.mrf.mxu0  ;;  %v4969_v23 = vmax.f32 %v4719_v49, 0.0  ;;  %v4808_v25 = vadd.f32 %v4807_v48, %v9655_v42 }
 0x495   : > { %v4632_v36 = vadd.f32 %v4631_v45, %v9648_v1  ;;  %v4803_v45 = vadd.f32 %v4802_v32, %v9655_v42  ;;  %v4798_v32 = vadd.f32 %v9739_v20, %v9655_v42  ;;  %v4793_v20 = vadd.f32 %v9725_v39, %v9655_v42 }
 0x496   : > { %v4953_v39 = vmax.f32 %v9704_v8, 0.0 }
 0x497   : > { %v4896_v46 = vpop.f32.mrf.mxu3  ;;  %v4720_v62 = vpop.f32.mrf.mxu1  ;;  %v4882_v61 = vadd.f32 %v9728_v40, %v4793_v20 }
 0x498   : > { %v4721_v47 = vadd.f32 %v4720_v62, %v4632_v36  ;;  %v4897_v36 = vadd.f32 %v4896_v46, %v4808_v25  ;;  %v4894_v62 = vadd.f32 %v4893_v41, %v4805_v19  ;;  %v4892_v46 = vadd.f32 %v4891_v6, %v4803_v45 }
 0x499   : > { %v4795_v41 = vadd.f32 %v9732_v4, %v9655_v42  ;;  %v4955_v4 = vmax.f32 %v9713_v7, 0.0  ;;  %v4951_v7 = vmax.f32 %v9697_v35, 0.0  ;;  %v4958_v8 = vmax.f32 %v4882_v61, 0.0 }
 0x49a   : > { %v4971_v27 = vmax.f32 %v4721_v47, 0.0  ;;  %v4970_v26 = vmax.f32 %v4897_v36, 0.0  ;;  %v4968_v3 = vmax.f32 %v4894_v62, 0.0  ;;  %v4966_v25 = vmax.f32 %v4892_v46, 0.0 }
 0x49b   : > { %v4809_v30 = vpop.f32.mrf.mxu2  ;;  %v4884_v55 = vadd.f32 %v9734_v17, %v4795_v41  ;;  %v4947_v45 = vmax.f32 %v9681_v12, 0.0  ;;  %v4956_v36 = vmax.f32 %v9721_v37, 0.0  ;;  %v4943_v62 = vmax.f32 %v9665_v31, 0.0 }
 0x49c   : > { %v4810_v54 = vadd.f32 %v4809_v30, %v9655_v42  ;;  %5009 = vmatpush.msra.mxu0 %v4971_v27  ;;  %v4634_v51 = vpop.f32.mrf.mxu0  ;;  %v4952_v12 = vmax.f32 %v9702_v24, 0.0  ;;  %v4946_v24 = vmax.f32 %v9679_v18, 0.0 }
 0x49d   : > { %v4635_v59 = vadd.f32 %v4634_v51, %v9648_v1  ;;  %v4960_v33 = vmax.f32 %v4884_v55, 0.0 }
 0x49e   : > { %5010 = vmatpush.msra.mxu0 %v4969_v23  ;;  %v4887_v23 = vadd.f32 %v9742_v16, %v4798_v32 }
 0x49f   : > { %v4898_v21 = vpop.f32.mrf.mxu3  ;;  %v4723_v48 = vpop.f32.mrf.mxu1 }
 0x4a0   : > { %v4899_v9 = vadd.f32 %v4898_v21, %v4810_v54  ;;  %v9768_v56 = vadd.f32 %v4723_v48, %v4635_v59  ;;  %5011 = vmatpush.msra.mxu0 %v4967_v15  ;;  %v4962_v16 = vmax.f32 %v4887_v23, 0.0  ;;  %v4949_v21 = vmax.f32 %v9688_v22, 0.0 }
 0x4a2   : > { %v4972_v49 = vmax.f32 %v4899_v9, 0.0  ;;  %5012 = vmatpush.msra.mxu0 %v4965_v29  ;;  %v4945_v9 = vmax.f32 %v9672_v50, 0.0  ;;  %v4950_v50 = vmax.f32 %v9695_v10, 0.0  ;;  %v4944_v10 = vmax.f32 %v9670_v13, 0.0 }
 0x4a3   : > { %v4812_v47 = vpop.f32.mrf.mxu2 }
 0x4a4   : > { %5055 = vmatpush.msra.mxu2 %v4972_v49  ;;  %v4813_v60 = vadd.f32 %v4812_v47, %v9655_v42  ;;  %5013 = vmatpush.msra.mxu0 %v4963_v43  ;;  %v4636_v34 = vpop.f32.mrf.mxu0  ;;  %v4948_v47 = vmax.f32 %v9686_v44, 0.0 }
 0x4a5   : > { %v4637_v27 = vadd.f32 %v4636_v34, %v9648_v1  ;;  %v4942_v34 = vmax.f32 %v9663_v52, 0.0 }
 0x4a6   : > { %5056 = vmatpush.msra.mxu2 %v4970_v26  ;;  %5014 = vmatpush.msra.mxu0 %v4961_v0 }
 0x4a7   : > { %v4901_v6 = vpop.f32.mrf.mxu3  ;;  %v4725_v30 = vpop.f32.mrf.mxu1 }
 0x4a8   : > { %v9783_v54 = vadd.f32 %v4901_v6, %v4813_v60  ;;  %v9785_v51 = vadd.f32 %v4725_v30, %v4637_v27  ;;  %5057 = vmatpush.msra.mxu2 %v4968_v3  ;;  %5015 = vmatpush.msra.mxu0 %v4959_v5 }
 0x4aa   : > { %5058 = vmatpush.msra.mxu2 %v4966_v25  ;;  %5016 = vmatpush.msra.mxu0 %v4957_v28 }
 0x4ab   : > { %v4814_v59 = vpop.f32.mrf.mxu2 }
 0x4ac   : > { %5059 = vmatpush.msra.mxu2 %v4964_v53  ;;  %v4815_v15 = vadd.f32 %v4814_v59, %v9655_v42  ;;  %5017 = vmatpush.msra.mxu0 %v4955_v4  ;;  %v4639_v19 = vpop.f32.mrf.mxu0 }
 0x4ad   : > { %v4640_v57 = vadd.f32 %v4639_v19, %v9648_v1 }
 0x4ae   : > { %5060 = vmatpush.msra.mxu2 %v4962_v16  ;;  %5018 = vmatpush.msra.mxu0 %v4953_v39 }
 0x4af   : > { %v4903_v17 = vpop.f32.mrf.mxu3  ;;  %v4728_v29 = vpop.f32.mrf.mxu1 }
 0x4b0   : > { %v9795_v48 = vadd.f32 %v4903_v17, %v4815_v15  ;;  %v9797_v40 = vadd.f32 %v4728_v29, %v4640_v57  ;;  %5061 = vmatpush.msra.mxu2 %v4960_v33  ;;  %5019 = vmatpush.msra.mxu0 %v4951_v7 }
 0x4b2   : > { %5062 = vmatpush.msra.mxu2 %v4958_v8  ;;  %5020 = vmatpush.msra.mxu0 %v4949_v21 }
 0x4b3   : > { %v4817_v35 = vpop.f32.mrf.mxu2 }
 0x4b4   : > { %5063 = vmatpush.msra.mxu2 %v4956_v36  ;;  %v4818_v22 = vadd.f32 %v4817_v35, %v9655_v42  ;;  %5021 = vmatpush.msra.mxu0 %v4947_v45  ;;  %v4641_v43 = vpop.f32.mrf.mxu0 }
 0x4b5   : > { %v4642_v2 = vadd.f32 %v4641_v43, %v9648_v1 }
 0x4b6   : > { %5064 = vmatpush.msra.mxu2 %v4954_v14  ;;  %5022 = vmatpush.msra.mxu0 %v4945_v9 }
 0x4b7   : > { %v4906_v37 = vpop.f32.mrf.mxu3  ;;  %v4730_v49 = vpop.f32.mrf.mxu1 }
 0x4b8   : > { %v9809_v38 = vadd.f32 %v4906_v37, %v4818_v22  ;;  %v9811_v0 = vadd.f32 %v4730_v49, %v4642_v2  ;;  %5065 = vmatpush.msra.mxu2 %v4952_v12  ;;  %5023 = vmatpush.msra.mxu0 %v4943_v62 }
 0x4ba   : > { %5066 = vmatpush.msra.mxu2 %v4950_v50  ;;  %5024 = vmatpush.msra.mxu0 %v4941_v63 }
 0x4bb   : > { %v4819_v31 = vpop.f32.mrf.mxu2 }
 0x4bc   : > { %5067 = vmatpush.msra.mxu2 %v4948_v47  ;;  %v4820_v32 = vadd.f32 %v4819_v31, %v9655_v42  ;;  %v4644_v46 = vpop.f32.mrf.mxu0 }
 0x4bd   : > { %v4645_v58 = vadd.f32 %v4644_v46, %v9648_v1 }
 0x4be   : > { %5068 = vmatpush.msra.mxu2 %v4946_v24 }
 0x4bf   : > { %v4908_v26 = vpop.f32.mrf.mxu3  ;;  %v4733_v60 = vpop.f32.mrf.mxu1 }
 0x4c0   : > { %v9819_v27 = vadd.f32 %v4908_v26, %v4820_v32  ;;  %v9821_v44 = vadd.f32 %v4733_v60, %v4645_v58  ;;  %5069 = vmatpush.msra.mxu2 %v4944_v10 }
 0x4c2   : > { %5070 = vmatpush.msra.mxu2 %v4942_v34 }
 0x4c3   : > { %v4822_v18 = vpop.f32.mrf.mxu2 }
 0x4c4   : > { %v4823_v5 = vadd.f32 %v4822_v18, %v9655_v42  ;;  %v4646_v41 = vpop.f32.mrf.mxu0 }
 0x4c5   : > { %v4647_v11 = vadd.f32 %v4646_v41, %v9648_v1 }
 0x4c7   : > { %v4911_v3 = vpop.f32.mrf.mxu3  ;;  %v4735_v28 = vpop.f32.mrf.mxu1 }
 0x4c8   : > { %v9825_v13 = vadd.f32 %v4911_v3, %v4823_v5  ;;  %v9827_v20 = vadd.f32 %v4735_v28, %v4647_v11 }
 0x4cb   : > { %v4824_v6 = vpop.f32.mrf.mxu2 }
 0x4cc   : > { %v4825_v52 = vadd.f32 %v4824_v6, %v9655_v42  ;;  %v4649_v30 = vpop.f32.mrf.mxu0 }
 0x4cd   : > { %v4650_v23 = vadd.f32 %v4649_v30, %v9648_v1 }
 0x4cf   : > { %v4913_v25 = vpop.f32.mrf.mxu3  ;;  %v4738_v4 = vpop.f32.mrf.mxu1 }
 0x4d0   : > { %v9831_v55 = vadd.f32 %v4913_v25, %v4825_v52  ;;  %v9833_v53 = vadd.f32 %v4738_v4, %v4650_v23 }
 0x4d3   : > { %v4827_v59 = vpop.f32.mrf.mxu2 }
 0x4d4   : > { %v4828_v39 = vadd.f32 %v4827_v59, %v9655_v42  ;;  %v4651_v61 = vpop.f32.mrf.mxu0 }
 0x4d5   : > { %v4652_v16 = vadd.f32 %v4651_v61, %v9648_v1 }
 0x4d7   : > { %v4916_v15 = vpop.f32.mrf.mxu3  ;;  %v4740_v19 = vpop.f32.mrf.mxu1 }
 0x4d8   : > { %v9837_v57 = vadd.f32 %v4916_v15, %v4828_v39  ;;  %v9839_v7 = vadd.f32 %v4740_v19, %v4652_v16 }
 0x4db   : > { %v4829_v33 = vpop.f32.mrf.mxu2 }
 0x4dc   : > { %v4830_v17 = vadd.f32 %v4829_v33, %v9655_v42  ;;  %v4654_v29 = vpop.f32.mrf.mxu0 }
 0x4dd   : > { %v4655_v21 = vadd.f32 %v4654_v29, %v9648_v1 }
 0x4df   : > { %v4918_v8 = vpop.f32.mrf.mxu3  ;;  %v4743_v45 = vpop.f32.mrf.mxu1 }
 0x4e0   : > { %v9843_v36 = vadd.f32 %v4918_v8, %v4830_v17  ;;  %v9845_v35 = vadd.f32 %v4743_v45, %v4655_v21 }
 0x4e3   : > { %v4832_v9 = vpop.f32.mrf.mxu2 }
 0x4e4   : > { %v4833_v14 = vadd.f32 %v4832_v9, %v9655_v42  ;;  %v4656_v22 = vpop.f32.mrf.mxu0 }
 0x4e5   : > { %v4657_v9 = vadd.f32 %v4656_v22, %v9648_v1  ;;  %v5005_v22 = vld [vmem:[%s7129_s4] sm:$0xff] }
 0x4e6   : > { %5071 = vmatmul.f32.vlgmr.msra.gmra.mxu2 %v5005_v22  ;;  %5025 = vmatmul.f32.vlgmr.msra.gmra.mxu0 %v5005_v22 }
 0x4e7   : > { %v4921_v43 = vpop.f32.mrf.mxu3  ;;  %v4745_v2 = vpop.f32.mrf.mxu1 }
 0x4e8   : > { %v9848_v62 = vadd.f32 %v4921_v43, %v4833_v14 }
 0x4eb   : > { %v9850_v12 = vpop.f32.mrf.mxu2 }
 0x4ec   : > { %v4659_v37 = vpop.f32.mrf.mxu0 }
 0x4ed   : > { %v4660_v33 = vadd.f32 %v4659_v37, %v9648_v1 }
 0x4ef   : > { %v9852_v49 = vpop.f32.mrf.mxu3  ;;  %v4748_v63 = vpop.f32.mrf.mxu1 }
 0x4f3   : > { %v4837_v50 = vpop.f32.mrf.mxu2 }
 0x4f4   : > { %v4661_v47 = vpop.f32.mrf.mxu0 }
 0x4f5   : > { %v4662_v16 = vadd.f32 %v4661_v47, %v9648_v1  ;;  %v4749_v47 = vadd.f32 %v4748_v63, %v4660_v33  ;;  %v4838_v63 = vadd.f32 %v4837_v50, %v9655_v42  ;;  %v5007_v50 = vld [vmem:[%s7129_s4 + $0x10] sm:$0xff] }
 0x4f6   : > { %5074 = vmatmul.f32.gmra.mxu2 %v5007_v50  ;;  %5028 = vmatmul.f32.gmra.mxu0 %v5007_v50 }
 0x4f7   : > { %v9854_v31 = vpop.f32.mrf.mxu3  ;;  %v4750_v24 = vpop.f32.mrf.mxu1 }
 0x4f8   : > { %v4751_v14 = vadd.f32 %v4750_v24, %v4662_v16  ;;  %v4993_v24 = vmax.f32 %v4749_v47, 0.0  ;;  %v4975_v16 = vmax.f32 %v9785_v51, 0.0  ;;  %v4978_v51 = vmax.f32 %v9809_v38, 0.0 }
 0x4fb   : > { %v4839_v32 = vpop.f32.mrf.mxu2 }
 0x4fc   : > { %v4664_v46 = vpop.f32.mrf.mxu0 }
 0x4fd   : > { %v4665_v59 = vadd.f32 %v4664_v46, %v9648_v1 }
 0x4ff   : > { %v4928_v58 = vpop.f32.mrf.mxu3  ;;  %v4753_v10 = vpop.f32.mrf.mxu1 }
 0x500   : > { %v4754_v29 = vadd.f32 %v4753_v10, %v4665_v59 }
 0x503   : > { %v4842_v26 = vpop.f32.mrf.mxu2 }
 0x504   : > { %v4666_v60 = vpop.f32.mrf.mxu0  ;;  %v4843_v37 = vadd.f32 %v4842_v26, %v9655_v42 }
 0x505   : > { %v4667_v23 = vadd.f32 %v4666_v60, %v9648_v1 }
 0x507   : > { %v4931_v34 = vpop.f32.mrf.mxu3  ;;  %v4755_v18 = vpop.f32.mrf.mxu1 }
 0x508   : > { %v4756_v15 = vadd.f32 %v4755_v18, %v4667_v23  ;;  %v4997_v18 = vmax.f32 %v4754_v29, 0.0 }
 0x50a   : > { %v4999_v43 = vmax.f32 %v4756_v15, 0.0 }
 0x50b   : > { %v4844_v5 = vpop.f32.mrf.mxu2 }
 0x50c   : > { %v4669_v41 = vpop.f32.mrf.mxu0  ;;  %v4845_v46 = vadd.f32 %v4844_v5, %v9655_v42  ;;  %v4932_v5 = vadd.f32 %v4931_v34, %v4843_v37  ;;  %v4987_v34 = vmax.f32 %v9839_v7, 0.0  ;;  %v4990_v7 = vmax.f32 %v9848_v62, 0.0 }
 0x50d   : > { %v4670_v6 = vadd.f32 %v4669_v41, %v9648_v1  ;;  %v4973_v62 = vmax.f32 %v9768_v56, 0.0  ;;  %v4974_v56 = vmax.f32 %v9783_v54, 0.0 }
 0x50f   : > { %v4933_v11 = vpop.f32.mrf.mxu3  ;;  %v4758_v3 = vpop.f32.mrf.mxu1 }
 0x510   : > { %v4759_v39 = vadd.f32 %v4758_v3, %v4670_v6  ;;  %v4746_v3 = vadd.f32 %v4745_v2, %v4657_v9  ;;  %v4840_v6 = vadd.f32 %v4839_v32, %v9655_v42  ;;  %v4835_v2 = vadd.f32 %v9850_v12, %v9655_v42 }
 0x512   : > { %v5001_v21 = vmax.f32 %v4759_v39, 0.0  ;;  %v4991_v26 = vmax.f32 %v4746_v3, 0.0  ;;  %v4929_v23 = vadd.f32 %v4928_v58, %v4840_v6  ;;  %v4924_v59 = vadd.f32 %v9852_v49, %v4835_v2 }
 0x513   : > { %v4847_v28 = vpop.f32.mrf.mxu2  ;;  %v4981_v58 = vmax.f32 %v9821_v44, 0.0  ;;  %v4979_v49 = vmax.f32 %v9811_v0, 0.0  ;;  %v4984_v44 = vmax.f32 %v9831_v55, 0.0  ;;  %v4982_v0 = vmax.f32 %v9825_v13, 0.0  ;;  %v5008_v13 = vld [vmem:[%s7129_s4 + $0x18] sm:$0xff] }
 0x514   : > { %v4671_v52 = vpop.f32.mrf.mxu0  ;;  %v4848_v8 = vadd.f32 %v4847_v28, %v9655_v42  ;;  %v4995_v28 = vmax.f32 %v4751_v14, 0.0  ;;  %v4996_v39 = vmax.f32 %v4929_v23, 0.0  ;;  %v4976_v55 = vmax.f32 %v9795_v48, 0.0 }
 0x515   : > { %v4672_v30 = vadd.f32 %v4671_v52, %v9648_v1  ;;  %v4934_v52 = vadd.f32 %v4933_v11, %v4845_v46  ;;  %v4989_v11 = vmax.f32 %v9845_v35, 0.0  ;;  %v4983_v35 = vmax.f32 %v9827_v20, 0.0 }
 0x516   : > { %v4986_v20 = vmax.f32 %v9837_v57, 0.0 }
 0x517   : > { %v4936_v25 = vpop.f32.mrf.mxu3  ;;  %v4760_v4 = vpop.f32.mrf.mxu1  ;;  %v5000_v32 = vmax.f32 %v4934_v52, 0.0 }
 0x518   : > { %v4761_v61 = vadd.f32 %v4760_v4, %v4672_v30  ;;  %v4937_v10 = vadd.f32 %v4936_v25, %v4848_v8  ;;  %v4927_v25 = vadd.f32 %v9854_v31, %v4838_v63  ;;  %v4998_v4 = vmax.f32 %v4932_v5, 0.0 }
 0x519   : > { %v4992_v31 = vmax.f32 %v4924_v59, 0.0 }
 0x51a   : > { %v5003_v19 = vmax.f32 %v4761_v61, 0.0  ;;  %v5002_v30 = vmax.f32 %v4937_v10, 0.0  ;;  %v4994_v12 = vmax.f32 %v4927_v25, 0.0  ;;  %v4988_v61 = vmax.f32 %v9843_v36, 0.0 }
 0x51b   : > { %v4849_v17 = vpop.f32.mrf.mxu2  ;;  %v4980_v36 = vmax.f32 %v9819_v27, 0.0 }
 0x51c   : > { %v4850_v45 = vadd.f32 %v4849_v17, %v9655_v42  ;;  %5032 = vmatpush.msra.mxu1 %v5003_v19  ;;  %v4985_v42 = vmax.f32 %v9833_v53, 0.0  ;;  %v4977_v53 = vmax.f32 %v9797_v40, 0.0  ;;  %v5006_v40 = vld [vmem:[%s7129_s4 + $0x8] sm:$0xff] }
 0x51e   : > { %5033 = vmatpush.msra.mxu1 %v5001_v21 }
 0x51f   : > { %v4938_v60 = vpop.f32.mrf.mxu3 }
 0x520   : > { %v4939_v41 = vadd.f32 %v4938_v60, %v4850_v45  ;;  %5034 = vmatpush.msra.mxu1 %v4999_v43 }
 0x522   : > { %v5004_v1 = vmax.f32 %v4939_v41, 0.0  ;;  %5035 = vmatpush.msra.mxu1 %v4997_v18 }
 0x524   : > { %5078 = vmatpush.msra.mxu3 %v5004_v1  ;;  %5036 = vmatpush.msra.mxu1 %v4995_v28 }
 0x526   : > { %5079 = vmatpush.msra.mxu3 %v5002_v30  ;;  %5037 = vmatpush.msra.mxu1 %v4993_v24 }
 0x528   : > { %5080 = vmatpush.msra.mxu3 %v5000_v32  ;;  %5038 = vmatpush.msra.mxu1 %v4991_v26 }
 0x52a   : > { %5081 = vmatpush.msra.mxu3 %v4998_v4  ;;  %5039 = vmatpush.msra.mxu1 %v4989_v11 }
 0x52c   : > { %5082 = vmatpush.msra.mxu3 %v4996_v39  ;;  %5040 = vmatpush.msra.mxu1 %v4987_v34 }
 0x52e   : > { %5083 = vmatpush.msra.mxu3 %v4994_v12  ;;  %5041 = vmatpush.msra.mxu1 %v4985_v42 }
 0x530   : > { %5084 = vmatpush.msra.mxu3 %v4992_v31  ;;  %5042 = vmatpush.msra.mxu1 %v4983_v35 }
 0x532   : > { %5085 = vmatpush.msra.mxu3 %v4990_v7  ;;  %5043 = vmatpush.msra.mxu1 %v4981_v58 }
 0x534   : > { %5086 = vmatpush.msra.mxu3 %v4988_v61  ;;  %5044 = vmatpush.msra.mxu1 %v4979_v49 }
 0x536   : > { %5087 = vmatpush.msra.mxu3 %v4986_v20  ;;  %5045 = vmatpush.msra.mxu1 %v4977_v53 }
 0x538   : > { %5088 = vmatpush.msra.mxu3 %v4984_v44  ;;  %5046 = vmatpush.msra.mxu1 %v4975_v16 }
 0x53a   : > { %5089 = vmatpush.msra.mxu3 %v4982_v0  ;;  %5047 = vmatpush.msra.mxu1 %v4973_v62 }
 0x53b   : > { %5048 = vmatmul.f32.vlgmr.msra.gmra.mxu1 %v5006_v40 }
 0x53c   : > { %5090 = vmatpush.msra.mxu3 %v4980_v36 }
 0x53e   : > { %5091 = vmatpush.msra.mxu3 %v4978_v51 }
 0x540   : > { %5092 = vmatpush.msra.mxu3 %v4976_v55 }
 0x542   : > { %5093 = vmatpush.msra.mxu3 %v4974_v56 }
 0x543   : > { %5094 = vmatmul.f32.vlgmr.msra.gmra.mxu3 %v5006_v40  ;;  %5051 = vmatmul.f32.gmra.mxu1 %v5008_v13 }
 0x54b   : > { %5097 = vmatmul.f32.gmra.mxu3 %v5008_v13 }
 0x563   : > { %v5026_v27 = vpop.f32.mrf.mxu0 }
 0x569   : > { %v5072_v48 = vpop.f32.mrf.mxu2 }
 0x573   : > { %v5029_v38 = vpop.f32.mrf.mxu0 }
 0x579   : > { %v5075_v29 = vpop.f32.mrf.mxu2 }
 0x5b8   : > { %v5049_v57 = vpop.f32.mrf.mxu1 }
 0x5b9   : > { %v5050_v15 = vadd.f32 %v5049_v57, %v5026_v27 }
 0x5bb   : > { %5101 = vst [vmem:[%s418_s11] sm:$0xff] %v5050_v15 }
 0x5c0   : > { %v5052_v19 = vpop.f32.mrf.mxu1 }
 0x5c1   : > { %v5053_v33 = vadd.f32 %v5052_v19, %v5029_v38 }
 0x5c3   : > { %5103 = vst [vmem:[%s418_s11 + $0x10] sm:$0xff] %v5053_v33 }
 0x5c6   : > { %v5095_v54 = vpop.f32.mrf.mxu3 }
 0x5c7   : > { %v5096_v17 = vadd.f32 %v5095_v54, %v5072_v48 }
 0x5c9   : > { %5102 = vst [vmem:[%s418_s11 + $0x8] sm:$0xff] %v5096_v17 }
 0x5ce   : > { %v5098_v21 = vpop.f32.mrf.mxu3 }
 0x5cf   : > { %v5099_v8 = vadd.f32 %v5098_v21, %v5075_v29 }
 0x5d1   : > { %5104 = vst [vmem:[%s418_s11 + $0x18] sm:$0xff] %v5099_v8 }
 0x5d2   : > { %6856 = shalt.err (!%p6853_p7)
}
 0x5d3   : > { %s6928_s1 = smov 256   ;;  %s6929_s30 = smov 16  }
 0x5d4   : > { %6547 = dma.vmem_to_hbm [thread:$0]  (%p7056_p0), %s5120_s18, 512, %s5122_s20, %s5106_s13, %s6928_s1, %s6928_s1, %s6929_s30  }
 0x5d5 PF: > { %s5136_s4 = sand.u32 1, %s6903_s24   ;;  %p10242_p10 = scmp.ge.s32.totalorder %s6915_s27, 2 }
 0x5d6   : > { %s5137_s15 = scalar_lea.sflag [#allocation4], %s5136_s4 }
 0x5d7   : > { %p6573_p11 = pnand %p10242_p10, %p7064_p6 }
 0x5d9   : > { %p6574_p12 = pneg %p6573_p11 }
 0x5db   : > { %6898 = dma.done.wait (%p6574_p12), %s5137_s15, 512  }
 0x5dc   : > { %6900 = vsyncadd (%p6574_p12), %s5137_s15, 4294966784  ;;  %s10243_s10 = sld [smem:[#allocation23_spill]]  ;;  %p26_p2 = scmp.ge.s32.totalorder %s7036_s19, 4  }
 0x5dd   : > { %s10244_s24 = smov %s6907_s25  ;;  %s10245_s25 = smov %s6911_s26 }
 0x5de   : > { %s10247_s27 = smov %s7036_s19  ;;  %28 = sbr.rel (!%p26_p2) target bundleno = 17 (0x11), region = 130 }
 0x5e2   : > { %s10246_s26 = smov %s10243_s10 }
 0x5e3   :  { %5143 = vsyncpa [#allocation3], 1 }
 0x5e4   :  { %5145 = vsyncpa [#allocation3 + $0x1], 1 }
 0x5e5   :  { %5146 = vsyncpa [#allocation8], 1 }
 0x5e6   :  { %5148 = vsyncpa [#allocation8 + $0x1], 1 }
 0x5e7   :  { %5149 = vsyncpa [#allocation11], 1 }
 0x5e8   :  { %5150 = vsyncpa [#allocation14], 1 }
 0x5e9   :  { %5151 = vsyncpa [#allocation4], 1 }
 0x5ea   :  { %5153 = vsyncpa [#allocation4 + $0x1], 1 }
 0x5eb   :  { %5154 = vsyncpa [#allocation5], 1 }
 0x5ec   :  { %5156 = vsyncpa [#allocation5 + $0x1], 1 }

</bundles_post_ra>
